<compile_context>
chip_gen: v6e
topology: v6e:2x2x1
jax: 0.10.0
libtpu: 0.0.40
codegen_flags: <defaults>
</compile_context>

<pallas_src>
import math
from functools import partial, lru_cache

import jax
import jax.numpy as jnp
from jax import lax
from jax.experimental import pallas as pl
from jax.experimental.pallas import tpu as pltpu

_EPS = 1e-5
_ACT_DTYPE = jnp.bfloat16           # inter-layer activation / matmul operand dtype
_VMEM_LIMIT = 32 * 1024 * 1024      # safe on v5e/v6e (128 MiB phys) and v7x (64 MiB)


# ----------------------------------------------------------------------------
# tiling helpers
# ----------------------------------------------------------------------------
def _round_up(x, m):
    return ((x + m - 1) // m) * m


def _pick_tile(padded, candidates):
    for t in candidates:
        if padded % t == 0:
            return t
    return candidates[-1]


def _tile_major(dim):
    """M (row) dim: big tiles so each grid step carries >=0.5us of MXU work."""
    p = _round_up(dim, 128)
    return p, _pick_tile(p, (1024, 512, 256, 128))


def _tile_reduce(dim):
    """K (contraction) dim; tile is a multiple of 128."""
    p = _round_up(dim, 128)
    return p, _pick_tile(p, (512, 384, 256, 128))


def _tile_minor(dim):
    """N (lane / out-channel) dim; tn up to 512 so the im2col X matrix is only
    re-streamed gn = Np/512 times (1-2x for the bottleneck layers)."""
    p = _round_up(dim, 128)
    return p, _pick_tile(p, (512, 256, 128))


def _maybe_pad2(a, Mp, Np):
    M, N = a.shape
    if M == Mp and N == Np:
        return a
    return jnp.pad(a, ((0, Mp - M), (0, Np - N)))


# ----------------------------------------------------------------------------
# fused matmul + bias + optional residual + optional ReLU kernel
# (BatchNorm scale is already folded into the weights at init time)
# ----------------------------------------------------------------------------
@lru_cache(maxsize=None)
def _make_mm_kernel(relu: bool, has_res: bool):
    def kernel(x_ref, w_ref, b_ref, *rest):
        if has_res:
            r_ref, o_ref, acc_ref = rest
        else:
            o_ref, acc_ref = rest
        k = pl.program_id(2)

        @pl.when(k == 0)
        def _():
            acc_ref[...] = jnp.zeros_like(acc_ref)

        acc_ref[...] += jnp.dot(x_ref[...], w_ref[...],
                                preferred_element_type=jnp.float32)

        @pl.when(k == pl.num_programs(2) - 1)
        def _():
            y = acc_ref[...] + b_ref[...]
            if has_res:
                y = y + r_ref[...].astype(jnp.float32)
            if relu:
                y = jnp.maximum(y, 0.0)
            o_ref[...] = y.astype(o_ref.dtype)

    return kernel


def matmul_bias_act(x, w, bias, residual=None, relu=True, out_dtype=_ACT_DTYPE):
    """y = act(x @ w + bias [+ residual]) as one fused bf16 / f32-acc Pallas kernel."""
    M, K = x.shape
    Kw, N = w.shape
    assert K == Kw
    Mp, tm = _tile_major(M)
    Kp, tk = _tile_reduce(K)
    Np, tn = _tile_minor(N)

    xp = _maybe_pad2(x, Mp, Kp).astype(_ACT_DTYPE)
    wp = _maybe_pad2(w.astype(_ACT_DTYPE), Kp, Np)
    bp = _maybe_pad2(bias.reshape(1, N).astype(jnp.float32), 1, Np)

    has_res = residual is not None
    ins = [xp, wp, bp]
    in_specs = [
        pl.BlockSpec((tm, tk), lambda i, j, k: (i, k)),
        pl.BlockSpec((tk, tn), lambda i, j, k: (k, j)),
        pl.BlockSpec((1, tn), lambda i, j, k: (0, j)),
    ]
    if has_res:
        ins.append(_maybe_pad2(residual, Mp, Np).astype(_ACT_DTYPE))
        # index does not depend on k -> the block is only DMA'd once per (i, j)
        in_specs.append(pl.BlockSpec((tm, tn), lambda i, j, k: (i, j)))

    gm, gn, gk = Mp // tm, Np // tn, Kp // tk
    cost = pl.CostEstimate(
        flops=2 * Mp * Np * Kp,
        transcendentals=0,
        bytes_accessed=(2 * (Mp * Kp * gn + Kp * Np * gm)
                        + 2 * Mp * Np * (2 if has_res else 1) + 4 * Np),
    )

    # TODO(synk): on v6e the HBM-bound 1x1 bottleneck convs would additionally
    # benefit from pipeline_mode=pl.Buffered(3) on the X spec; left out to keep
    # the lowering maximally compatible.
    out = pl.pallas_call(
        _make_mm_kernel(bool(relu), has_res),
        out_shape=jax.ShapeDtypeStruct((Mp, Np), out_dtype),
        grid_spec=pltpu.PrefetchScalarGridSpec(
            num_scalar_prefetch=0,
            grid=(gm, gn, gk),
            in_specs=in_specs,
            out_specs=pl.BlockSpec((tm, tn), lambda i, j, k: (i, j)),
            scratch_shapes=[pltpu.VMEM((tm, tn), jnp.float32)],
        ),
        compiler_params=pltpu.CompilerParams(
            dimension_semantics=("parallel", "parallel", "arbitrary"),
            vmem_limit_bytes=_VMEM_LIMIT),
        cost_estimate=cost,
    )(*ins)
    if Mp != M or Np != N:
        out = out[:M, :N]
    return out


# ----------------------------------------------------------------------------
# im2col patch extraction (glue) + conv wrapper
# ----------------------------------------------------------------------------
def _extract_patches(x, ksize, stride, dilation, padding, pad_value=0.0):
    """x: (B, D, H, W, C) -> list of k^3 tensors (B, Do, Ho, Wo, C)."""
    B, D, H, W, C = x.shape
    if padding:
        x = jnp.pad(x, ((0, 0), (padding, padding), (padding, padding),
                        (padding, padding), (0, 0)), constant_values=pad_value)

    def out_dim(n):
        return (n + 2 * padding - dilation * (ksize - 1) - 1) // stride + 1

    Do, Ho, Wo = out_dim(D), out_dim(H), out_dim(W)
    patches = []
    for kd in range(ksize):
        for kh in range(ksize):
            for kw in range(ksize):
                sl = x[:,
                       kd * dilation: kd * dilation + (Do - 1) * stride + 1: stride,
                       kh * dilation: kh * dilation + (Ho - 1) * stride + 1: stride,
                       kw * dilation: kw * dilation + (Wo - 1) * stride + 1: stride,
                       :]
                patches.append(sl)
    return patches, (Do, Ho, Wo)


def conv3d_bn_act(x, w, bias, *, ksize, stride=1, dilation=1, padding=0,
                  relu=True, residual=None):
    """Conv3d (no bias) + BN(eval, folded into w) + optional residual + ReLU."""
    B, _, _, _, Cin = x.shape
    patches, (Do, Ho, Wo) = _extract_patches(x, ksize, stride, dilation, padding)
    M = B * Do * Ho * Wo
    if ksize == 1:
        xm = patches[0].reshape(M, Cin)                 # no im2col for 1x1x1
    else:
        # TODO(synk): 3x3x3 im2col is still materialized in HBM (~27x activation
        # traffic, halved by bf16); the halo-tiled manual-DMA tap-accumulating
        # conv suggested by the review needs shifted-window blocks that Mosaic's
        # (8,128) constraints reject at these spatial extents.
        xm = jnp.concatenate(patches, axis=-1).reshape(M, ksize ** 3 * Cin)
    rm = residual.reshape(M, -1) if residual is not None else None
    out = matmul_bias_act(xm, w, bias, residual=rm, relu=relu)
    return out.reshape(B, Do, Ho, Wo, -1)


# ----------------------------------------------------------------------------
# MaxPool3d: plain-JAX pairwise max fold over the 27 strided slices
# (output-sized HBM traffic; XLA fuses the slices — per perf review)
# ----------------------------------------------------------------------------
def maxpool3d(x, ksize=3, stride=2, padding=1):
    patches, _ = _extract_patches(x, ksize, stride, 1, padding,
                                  pad_value=-jnp.inf)
    out = patches[0]
    for p in patches[1:]:
        out = jnp.maximum(out, p)
    return out


# ----------------------------------------------------------------------------
# AdaptiveAvgPool3d((1,1,1)) + Linear kernel (spatial axis tiled as reduction)
# ----------------------------------------------------------------------------
def _make_avgpool_fc_kernel(inv_s):
    def kernel(x_ref, w_ref, b_ref, o_ref, acc_ref):
        s = pl.program_id(0)

        @pl.when(s == 0)
        def _():
            acc_ref[...] = jnp.zeros_like(acc_ref)

        acc_ref[...] += jnp.sum(x_ref[...].astype(jnp.float32), axis=1)

        @pl.when(s == pl.num_programs(0) - 1)
        def _():
            feat = acc_ref[...] * inv_s
            o_ref[...] = (jnp.dot(feat, w_ref[...],
                                  preferred_element_type=jnp.float32)
                          + b_ref[...])
    return kernel


def avgpool_fc(x, w, b):
    B, D, H, W, C = x.shape
    S = D * H * W
    Cin, N = w.shape
    assert Cin == C
    if S <= 256:
        Sp = _round_up(S, 8)
        ts = Sp
    else:
        Sp = _round_up(S, 256)
        ts = 512 if Sp % 512 == 0 else 256
    Cp = _round_up(C, 128)
    Np = _round_up(N, 128)

    xr = x.reshape(B, S, C)
    if Sp != S or Cp != C:
        xr = jnp.pad(xr, ((0, 0), (0, Sp - S), (0, Cp - C)))
    wp = jnp.pad(w.astype(jnp.float32), ((0, Cp - C), (0, Np - N)))
    bp = jnp.pad(b.reshape(1, N).astype(jnp.float32), ((0, 0), (0, Np - N)))

    out = pl.pallas_call(
        _make_avgpool_fc_kernel(1.0 / S),
        out_shape=jax.ShapeDtypeStruct((B, Np), jnp.float32),
        grid=(Sp // ts,),
        in_specs=[pl.BlockSpec((B, ts, Cp), lambda s: (0, s, 0)),
                  pl.BlockSpec((Cp, Np), lambda s: (0, 0)),
                  pl.BlockSpec((1, Np), lambda s: (0, 0))],
        out_specs=pl.BlockSpec((B, Np), lambda s: (0, 0)),
        scratch_shapes=[pltpu.VMEM((B, Cp), jnp.float32)],
        compiler_params=pltpu.CompilerParams(
            dimension_semantics=("arbitrary",),
            vmem_limit_bytes=_VMEM_LIMIT),
    )(xr, wp, bp)
    return out[:, :N]


# ----------------------------------------------------------------------------
# parameter initialization (deterministic, mirrors the PyTorch __init__ shapes)
# BN scale (eval-mode, fresh module) is folded into the bf16 weights here, once.
# ----------------------------------------------------------------------------
_CONFIGS = {
    10: ("basic", [1, 1, 1, 1]),
    18: ("basic", [2, 2, 2, 2]),
    34: ("basic", [3, 4, 6, 3]),
    50: ("bottleneck", [3, 4, 6, 3]),
    101: ("bottleneck", [3, 4, 23, 3]),
}
LAYER_CFG = [(1, 1), (2, 1), (1, 2), (1, 4)]       # (stride, dilation) per layer


def _bn_scale_bias(c):
    # eval-mode BN of a fresh module: gamma=1, beta=0, mean=0, var=1
    scale = jnp.full((c,), 1.0 / math.sqrt(1.0 + _EPS), jnp.float32)
    bias = jnp.zeros((c,), jnp.float32)    # beta - mean*scale = 0
    return scale, bias


def _conv_mat(key, cin, cout, k):
    """kaiming_normal_(fan_out) conv weight as an im2col matrix with folded BN
    scale, pre-cast to bf16.  Returns (w_bf16 (k^3*cin, cout), bias_f32 (cout,))."""
    std = math.sqrt(2.0 / (cout * k ** 3))
    w = std * jax.random.normal(key, (k, k, k, cin, cout), jnp.float32)
    scale, bias = _bn_scale_bias(cout)
    w = w.reshape(k ** 3 * cin, cout) * scale[None, :]
    return w.astype(_ACT_DTYPE), bias


def _stem_weight(key, cin, cout):
    """7x7x7 stem weight kept in DHWIO layout for lax.conv (BN scale folded)."""
    std = math.sqrt(2.0 / (cout * 7 ** 3))
    w = std * jax.random.normal(key, (7, 7, 7, cin, cout), jnp.float32)
    scale, bias = _bn_scale_bias(cout)
    return (w * scale).astype(_ACT_DTYPE), bias


def init_params(key, model_depth=50, num_input_channels=1):
    block_type, layers = _CONFIGS[model_depth]
    expansion = 1 if block_type == "basic" else 4
    keys = iter(jax.random.split(key, 4096))

    params = {}
    params["conv1_w"], params["conv1_b"] = _stem_weight(next(keys),
                                                        num_input_channels, 64)

    inplanes = 64

    def make_layer(planes, blocks, stride, dilation):
        nonlocal inplanes
        blocks_p = []
        for bi in range(blocks):
            bp = {}
            need_ds = (bi == 0) and (stride != 1 or inplanes != planes * expansion)
            if block_type == "basic":
                bp["conv1_w"], bp["conv1_b"] = _conv_mat(next(keys), inplanes, planes, 3)
                bp["conv2_w"], bp["conv2_b"] = _conv_mat(next(keys), planes, planes, 3)
                out_c = planes
            else:
                bp["conv1_w"], bp["conv1_b"] = _conv_mat(next(keys), inplanes, planes, 1)
                bp["conv2_w"], bp["conv2_b"] = _conv_mat(next(keys), planes, planes, 3)
                bp["conv3_w"], bp["conv3_b"] = _conv_mat(next(keys), planes, planes * 4, 1)
                out_c = planes * 4
            if need_ds:
                bp["ds_w"], bp["ds_b"] = _conv_mat(next(keys), inplanes, out_c, 1)
            blocks_p.append(bp)
            inplanes = out_c
        return blocks_p

    for li, ((stride, dilation), planes, blocks) in enumerate(
            zip(LAYER_CFG, (64, 128, 256, 512), layers)):
        params[f"layer{li + 1}"] = make_layer(planes, blocks, stride, dilation)

    fc_in = 512 * expansion
    params["fc_w"] = 0.01 * jax.random.normal(next(keys), (fc_in, 1), jnp.float32)
    params["fc_b"] = jnp.zeros((1,), jnp.float32)
    return params, block_type


# ----------------------------------------------------------------------------
# forward pass
# ----------------------------------------------------------------------------
def basic_block_fwd(x, bp, stride, dilation):
    out = conv3d_bn_act(x, bp["conv1_w"], bp["conv1_b"], ksize=3,
                        stride=stride, dilation=dilation, padding=dilation,
                        relu=True)
    if "ds_w" in bp:
        residual = conv3d_bn_act(x, bp["ds_w"], bp["ds_b"], ksize=1,
                                 stride=stride, dilation=1, padding=0, relu=False)
    else:
        residual = x
    out = conv3d_bn_act(out, bp["conv2_w"], bp["conv2_b"], ksize=3,
                        stride=1, dilation=dilation, padding=dilation,
                        relu=True, residual=residual)
    return out


def bottleneck_fwd(x, bp, stride, dilation):
    out = conv3d_bn_act(x, bp["conv1_w"], bp["conv1_b"], ksize=1,
                        stride=1, dilation=1, padding=0, relu=True)
    out = conv3d_bn_act(out, bp["conv2_w"], bp["conv2_b"], ksize=3,
                        stride=stride, dilation=dilation, padding=dilation,
                        relu=True)
    if "ds_w" in bp:
        residual = conv3d_bn_act(x, bp["ds_w"], bp["ds_b"], ksize=1,
                                 stride=stride, dilation=1, padding=0, relu=False)
    else:
        residual = x
    out = conv3d_bn_act(out, bp["conv3_w"], bp["conv3_b"], ksize=1,
                        stride=1, dilation=1, padding=0,
                        relu=True, residual=residual)
    return out


def forward(params, x, *, block_type):
    """x: (B, 2, D, H, W)  (PyTorch NCDHW); only channel 0 (MRI) is used."""
    x = x[:, 0:1]                                               # (B, 1, D, H, W)
    x = jnp.transpose(x, (0, 2, 3, 4, 1)).astype(_ACT_DTYPE)    # channels-last bf16

    # TODO(synk): stem conv (Cin=1) goes through XLA's conv (per perf review):
    # a Pallas im2col here degenerates into 343 lane-width-1 concats and is
    # dominated by layout glue rather than the MXU.  BN + ReLU are fused as
    # elementwise ops into the conv epilogue.
    y = lax.conv_general_dilated(
        x, params["conv1_w"],
        window_strides=(2, 2, 2), padding=[(3, 3)] * 3,
        dimension_numbers=("NDHWC", "DHWIO", "NDHWC"),
        preferred_element_type=jnp.float32)
    x = jnp.maximum(y + params["conv1_b"], 0.0).astype(_ACT_DTYPE)

    x = maxpool3d(x, ksize=3, stride=2, padding=1)

    block_fwd = basic_block_fwd if block_type == "basic" else bottleneck_fwd
    for li, (stride, dilation) in enumerate(LAYER_CFG):
        for bi, bp in enumerate(params[f"layer{li + 1}"]):
            s = stride if bi == 0 else 1
            x = block_fwd(x, bp, s, dilation)

    logit = avgpool_fc(x, params["fc_w"], params["fc_b"])   # (B, 1) f32
    return logit


# ----------------------------------------------------------------------------
if __name__ == "__main__":
    key = jax.random.PRNGKey(0)
    kp, kx = jax.random.split(key)

    # model_depth=10 (BasicBlock [1,1,1,1]) keeps compile time small; the same
    # code path supports depths 18/34 (BasicBlock) and 50/101 (Bottleneck).
    model_depth = 10
    params, block_type = init_params(kp, model_depth=model_depth,
                                     num_input_channels=1)

    # input: (B, 2, D, H, W) — dual channel, only MRI channel 0 is consumed.
    x = jax.random.normal(kx, (2, 2, 16, 16, 16), dtype=jnp.float32)

    fwd = jax.jit(partial(forward, block_type=block_type))
    logit = fwd(params, x)
    jax.block_until_ready(logit)

    assert logit.shape == (2, 1), logit.shape
    assert bool(jnp.all(jnp.isfinite(logit)))
    print("KERNEL_OK")
</pallas_src>

<mosaic_0001>
module attributes {stable_mosaic.version = 11 : i64} {
  func.func @kernel(%arg0: i32, %arg1: i32, %arg2: i32, %arg3: memref<128x256xbf16, #tpu.memory_space<vmem>>, %arg4: memref<256x128xbf16, #tpu.memory_space<vmem>>, %arg5: memref<1x128xf32, #tpu.memory_space<vmem>>, %arg6: memref<128x128xbf16, #tpu.memory_space<vmem>>, %arg7: memref<128x128xf32, #tpu.memory_space<vmem>>) attributes {dimension_semantics = [#tpu.dimension_semantics<parallel>, #tpu.dimension_semantics<parallel>, #tpu.dimension_semantics<arbitrary>], iteration_bounds = array<i64: 1, 1, 7>, scalar_prefetch = 0 : i64, scratch_operands = 1 : i64, tpu.core_type = #tpu.core_type<tc>, window_params = [{transform_indices = @transform_0, window_bounds = array<i64: 128, 256>}, {transform_indices = @transform_1, window_bounds = array<i64: 256, 128>}, {transform_indices = @transform_2, window_bounds = array<i64: 1, 128>}, {transform_indices = @transform_3, window_bounds = array<i64: 128, 128>}]} {
    %c0_i32 = arith.constant 0 : i32
    %0 = arith.cmpi eq, %arg2, %c0_i32 : i32
    %1 = arith.extui %0 : i1 to i32
    %c0_i32_0 = arith.constant 0 : i32
    %2 = arith.cmpi ne, %1, %c0_i32_0 : i32
    scf.if %2 {
      %cst_9 = arith.constant 0.000000e+00 : f32
      %12 = vector.broadcast %cst_9 : f32 to vector<128x128xf32>
      %c0_10 = arith.constant 0 : index
      %c0_11 = arith.constant 0 : index
      %13 = vector.load %arg7[%c0_10, %c0_11] : memref<128x128xf32, #tpu.memory_space<vmem>>, vector<128x128xf32>
      tpu.vector_store %arg7[%c0_10, %c0_11], %12 {strides = array<i32>} : memref<128x128xf32, #tpu.memory_space<vmem>>, vector<128x128xf32>,
    } else {
    }
    %c0 = arith.constant 0 : index
    %c0_1 = arith.constant 0 : index
    %3 = vector.load %arg7[%c0, %c0_1] : memref<128x128xf32, #tpu.memory_space<vmem>>, vector<128x128xf32>
    %c0_2 = arith.constant 0 : index
    %c0_3 = arith.constant 0 : index
    %4 = vector.load %arg3[%c0_2, %c0_3] : memref<128x256xbf16, #tpu.memory_space<vmem>>, vector<128x256xbf16>
    %c0_4 = arith.constant 0 : index
    %c0_5 = arith.constant 0 : index
    %5 = vector.load %arg4[%c0_4, %c0_5] : memref<256x128xbf16, #tpu.memory_space<vmem>>, vector<256x128xbf16>
    %cst = arith.constant dense<0.000000e+00> : vector<128x128xf32>
    %6 = tpu.matmul %4, %5, %cst {dimension_numbers = #tpu.dot_dimension_numbers<[1], [0], [0], [1], [0, 0, 1, 1], [], []>} : vector<128x256xbf16>, vector<256x128xbf16>, vector<128x128xf32> -> vector<128x128xf32>
    %7 = arith.addf %3, %6 : vector<128x128xf32>
    %c0_6 = arith.constant 0 : index
    %c0_7 = arith.constant 0 : index
    %8 = vector.load %arg7[%c0_6, %c0_7] : memref<128x128xf32, #tpu.memory_space<vmem>>, vector<128x128xf32>
    tpu.vector_store %arg7[%c0_6, %c0_7], %7 {strides = array<i32>} : memref<128x128xf32, #tpu.memory_space<vmem>>, vector<128x128xf32>,
    %c6_i32 = arith.constant 6 : i32
    %9 = arith.cmpi eq, %arg2, %c6_i32 : i32
    %10 = arith.extui %9 : i1 to i32
    %c0_i32_8 = arith.constant 0 : i32
    %11 = arith.cmpi ne, %10, %c0_i32_8 : i32
    scf.if %11 {
      %c0_9 = arith.constant 0 : index
      %c0_10 = arith.constant 0 : index
      %12 = vector.load %arg7[%c0_9, %c0_10] : memref<128x128xf32, #tpu.memory_space<vmem>>, vector<128x128xf32>
      %c0_11 = arith.constant 0 : index
      %c0_12 = arith.constant 0 : index
      %13 = vector.load %arg5[%c0_11, %c0_12] : memref<1x128xf32, #tpu.memory_space<vmem>>, vector<1x128xf32>
      %14 = vector.broadcast %13 : vector<1x128xf32> to vector<128x128xf32>
      %15 = arith.addf %12, %14 : vector<128x128xf32>
      %cst_13 = arith.constant 0.000000e+00 : f32
      %16 = vector.broadcast %cst_13 : f32 to vector<128x128xf32>
      %17 = arith.maximumf %15, %16 : vector<128x128xf32>
      %18 = arith.truncf %17 : vector<128x128xf32> to vector<128x128xbf16>
      %c0_14 = arith.constant 0 : index
      %c0_15 = arith.constant 0 : index
      %19 = vector.load %arg6[%c0_14, %c0_15] : memref<128x128xbf16, #tpu.memory_space<vmem>>, vector<128x128xbf16>
      tpu.vector_store %arg6[%c0_14, %c0_15], %18 {strides = array<i32>} : memref<128x128xbf16, #tpu.memory_space<vmem>>, vector<128x128xbf16>,
    } else {
    }
    return
  }
  func.func @transform_0(%arg0: i32, %arg1: i32, %arg2: i32) -> (i32, i32) {
    %c0_i32 = arith.constant 0 : i32
    return %arg0, %arg2 : i32, i32
  }
  func.func @transform_1(%arg0: i32, %arg1: i32, %arg2: i32) -> (i32, i32) {
    %c0_i32 = arith.constant 0 : i32
    return %arg2, %arg1 : i32, i32
  }
  func.func @transform_2(%arg0: i32, %arg1: i32, %arg2: i32) -> (i32, i32) {
    %c0_i32 = arith.constant 0 : i32
    %c0_i32_0 = arith.constant 0 : i32
    return %c0_i32, %arg1 : i32, i32
  }
  func.func @transform_3(%arg0: i32, %arg1: i32, %arg2: i32) -> (i32, i32) {
    %c0_i32 = arith.constant 0 : i32
    return %arg0, %arg1 : i32, i32
  }
}

module attributes {stable_mosaic.version = 11 : i64} {
  func.func @kernel(%arg0: i32, %arg1: i32, %arg2: i32, %arg3: memref<128x256xbf16, #tpu.memory_space<vmem>>, %arg4: memref<256x128xbf16, #tpu.memory_space<vmem>>, %arg5: memref<1x128xf32, #tpu.memory_space<vmem>>, %arg6: memref<128x128xbf16, #tpu.memory_space<vmem>>, %arg7: memref<128x128xbf16, #tpu.memory_space<vmem>>, %arg8: memref<128x128xf32, #tpu.memory_space<vmem>>) attributes {dimension_semantics = [#tpu.dimension_semantics<parallel>, #tpu.dimension_semantics<parallel>, #tpu.dimension_semantics<arbitrary>], iteration_bounds = array<i64: 1, 1, 7>, scalar_prefetch = 0 : i64, scratch_operands = 1 : i64, tpu.core_type = #tpu.core_type<tc>, window_params = [{transform_indices = @transform_0, window_bounds = array<i64: 128, 256>}, {transform_indices = @transform_1, window_bounds = array<i64: 256, 128>}, {transform_indices = @transform_2, window_bounds = array<i64: 1, 128>}, {transform_indices = @transform_3, window_bounds = array<i64: 128, 128>}, {transform_indices = @transform_4, window_bounds = array<i64: 128, 128>}]} {
    %c0_i32 = arith.constant 0 : i32
    %0 = arith.cmpi eq, %arg2, %c0_i32 : i32
    %1 = arith.extui %0 : i1 to i32
    %c0_i32_0 = arith.constant 0 : i32
    %2 = arith.cmpi ne, %1, %c0_i32_0 : i32
    scf.if %2 {
      %cst_9 = arith.constant 0.000000e+00 : f32
      %12 = vector.broadcast %cst_9 : f32 to vector<128x128xf32>
      %c0_10 = arith.constant 0 : index
      %c0_11 = arith.constant 0 : index
      %13 = vector.load %arg8[%c0_10, %c0_11] : memref<128x128xf32, #tpu.memory_space<vmem>>, vector<128x128xf32>
      tpu.vector_store %arg8[%c0_10, %c0_11], %12 {strides = array<i32>} : memref<128x128xf32, #tpu.memory_space<vmem>>, vector<128x128xf32>,
    } else {
    }
    %c0 = arith.constant 0 : index
    %c0_1 = arith.constant 0 : index
    %3 = vector.load %arg8[%c0, %c0_1] : memref<128x128xf32, #tpu.memory_space<vmem>>, vector<128x128xf32>
    %c0_2 = arith.constant 0 : index
    %c0_3 = arith.constant 0 : index
    %4 = vector.load %arg3[%c0_2, %c0_3] : memref<128x256xbf16, #tpu.memory_space<vmem>>, vector<128x256xbf16>
    %c0_4 = arith.constant 0 : index
    %c0_5 = arith.constant 0 : index
    %5 = vector.load %arg4[%c0_4, %c0_5] : memref<256x128xbf16, #tpu.memory_space<vmem>>, vector<256x128xbf16>
    %cst = arith.constant dense<0.000000e+00> : vector<128x128xf32>
    %6 = tpu.matmul %4, %5, %cst {dimension_numbers = #tpu.dot_dimension_numbers<[1], [0], [0], [1], [0, 0, 1, 1], [], []>} : vector<128x256xbf16>, vector<256x128xbf16>, vector<128x128xf32> -> vector<128x128xf32>
    %7 = arith.addf %3, %6 : vector<128x128xf32>
    %c0_6 = arith.constant 0 : index
    %c0_7 = arith.constant 0 : index
    %8 = vector.load %arg8[%c0_6, %c0_7] : memref<128x128xf32, #tpu.memory_space<vmem>>, vector<128x128xf32>
    tpu.vector_store %arg8[%c0_6, %c0_7], %7 {strides = array<i32>} : memref<128x128xf32, #tpu.memory_space<vmem>>, vector<128x128xf32>,
    %c6_i32 = arith.constant 6 : i32
    %9 = arith.cmpi eq, %arg2, %c6_i32 : i32
    %10 = arith.extui %9 : i1 to i32
    %c0_i32_8 = arith.constant 0 : i32
    %11 = arith.cmpi ne, %10, %c0_i32_8 : i32
    scf.if %11 {
      %c0_9 = arith.constant 0 : index
      %c0_10 = arith.constant 0 : index
      %12 = vector.load %arg8[%c0_9, %c0_10] : memref<128x128xf32, #tpu.memory_space<vmem>>, vector<128x128xf32>
      %c0_11 = arith.constant 0 : index
      %c0_12 = arith.constant 0 : index
      %13 = vector.load %arg5[%c0_11, %c0_12] : memref<1x128xf32, #tpu.memory_space<vmem>>, vector<1x128xf32>
      %14 = vector.broadcast %13 : vector<1x128xf32> to vector<128x128xf32>
      %15 = arith.addf %12, %14 : vector<128x128xf32>
      %c0_13 = arith.constant 0 : index
      %c0_14 = arith.constant 0 : index
      %16 = vector.load %arg6[%c0_13, %c0_14] : memref<128x128xbf16, #tpu.memory_space<vmem>>, vector<128x128xbf16>
      %17 = arith.extf %16 : vector<128x128xbf16> to vector<128x128xf32>
      %18 = arith.addf %15, %17 : vector<128x128xf32>
      %cst_15 = arith.constant 0.000000e+00 : f32
      %19 = vector.broadcast %cst_15 : f32 to vector<128x128xf32>
      %20 = arith.maximumf %18, %19 : vector<128x128xf32>
      %21 = arith.truncf %20 : vector<128x128xf32> to vector<128x128xbf16>
      %c0_16 = arith.constant 0 : index
      %c0_17 = arith.constant 0 : index
      %22 = vector.load %arg7[%c0_16, %c0_17] : memref<128x128xbf16, #tpu.memory_space<vmem>>, vector<128x128xbf16>
      tpu.vector_store %arg7[%c0_16, %c0_17], %21 {strides = array<i32>} : memref<128x128xbf16, #tpu.memory_space<vmem>>, vector<128x128xbf16>,
    } else {
    }
    return
  }
  func.func @transform_0(%arg0: i32, %arg1: i32, %arg2: i32) -> (i32, i32) {
    %c0_i32 = arith.constant 0 : i32
    return %arg0, %arg2 : i32, i32
  }
  func.func @transform_1(%arg0: i32, %arg1: i32, %arg2: i32) -> (i32, i32) {
    %c0_i32 = arith.constant 0 : i32
    return %arg2, %arg1 : i32, i32
  }
  func.func @transform_2(%arg0: i32, %arg1: i32, %arg2: i32) -> (i32, i32) {
    %c0_i32 = arith.constant 0 : i32
    %c0_i32_0 = arith.constant 0 : i32
    return %c0_i32, %arg1 : i32, i32
  }
  func.func @transform_3(%arg0: i32, %arg1: i32, %arg2: i32) -> (i32, i32) {
    %c0_i32 = arith.constant 0 : i32
    return %arg0, %arg1 : i32, i32
  }
  func.func @transform_4(%arg0: i32, %arg1: i32, %arg2: i32) -> (i32, i32) {
    %c0_i32 = arith.constant 0 : i32
    return %arg0, %arg1 : i32, i32
  }
}

module attributes {stable_mosaic.version = 11 : i64} {
  func.func @kernel(%arg0: i32, %arg1: i32, %arg2: i32, %arg3: memref<128x128xbf16, #tpu.memory_space<vmem>>, %arg4: memref<128x128xbf16, #tpu.memory_space<vmem>>, %arg5: memref<1x128xf32, #tpu.memory_space<vmem>>, %arg6: memref<128x128xbf16, #tpu.memory_space<vmem>>, %arg7: memref<128x128xf32, #tpu.memory_space<vmem>>) attributes {dimension_semantics = [#tpu.dimension_semantics<parallel>, #tpu.dimension_semantics<parallel>, #tpu.dimension_semantics<arbitrary>], iteration_bounds = array<i64: 1, 1, 1>, scalar_prefetch = 0 : i64, scratch_operands = 1 : i64, tpu.core_type = #tpu.core_type<tc>, window_params = [{transform_indices = @transform_0, window_bounds = array<i64: 128, 128>}, {transform_indices = @transform_1, window_bounds = array<i64: 128, 128>}, {transform_indices = @transform_2, window_bounds = array<i64: 1, 128>}, {transform_indices = @transform_3, window_bounds = array<i64: 128, 128>}]} {
    %c0_i32 = arith.constant 0 : i32
    %0 = arith.cmpi eq, %arg2, %c0_i32 : i32
    %1 = arith.extui %0 : i1 to i32
    %c0_i32_0 = arith.constant 0 : i32
    %2 = arith.cmpi ne, %1, %c0_i32_0 : i32
    scf.if %2 {
      %cst_10 = arith.constant 0.000000e+00 : f32
      %12 = vector.broadcast %cst_10 : f32 to vector<128x128xf32>
      %c0_11 = arith.constant 0 : index
      %c0_12 = arith.constant 0 : index
      %13 = vector.load %arg7[%c0_11, %c0_12] : memref<128x128xf32, #tpu.memory_space<vmem>>, vector<128x128xf32>
      tpu.vector_store %arg7[%c0_11, %c0_12], %12 {strides = array<i32>} : memref<128x128xf32, #tpu.memory_space<vmem>>, vector<128x128xf32>,
    } else {
    }
    %c0 = arith.constant 0 : index
    %c0_1 = arith.constant 0 : index
    %3 = vector.load %arg7[%c0, %c0_1] : memref<128x128xf32, #tpu.memory_space<vmem>>, vector<128x128xf32>
    %c0_2 = arith.constant 0 : index
    %c0_3 = arith.constant 0 : index
    %4 = vector.load %arg3[%c0_2, %c0_3] : memref<128x128xbf16, #tpu.memory_space<vmem>>, vector<128x128xbf16>
    %c0_4 = arith.constant 0 : index
    %c0_5 = arith.constant 0 : index
    %5 = vector.load %arg4[%c0_4, %c0_5] : memref<128x128xbf16, #tpu.memory_space<vmem>>, vector<128x128xbf16>
    %cst = arith.constant dense<0.000000e+00> : vector<128x128xf32>
    %6 = tpu.matmul %4, %5, %cst {dimension_numbers = #tpu.dot_dimension_numbers<[1], [0], [0], [1], [0, 0, 1, 1], [], []>} : vector<128x128xbf16>, vector<128x128xbf16>, vector<128x128xf32> -> vector<128x128xf32>
    %7 = arith.addf %3, %6 : vector<128x128xf32>
    %c0_6 = arith.constant 0 : index
    %c0_7 = arith.constant 0 : index
    %8 = vector.load %arg7[%c0_6, %c0_7] : memref<128x128xf32, #tpu.memory_space<vmem>>, vector<128x128xf32>
    tpu.vector_store %arg7[%c0_6, %c0_7], %7 {strides = array<i32>} : memref<128x128xf32, #tpu.memory_space<vmem>>, vector<128x128xf32>,
    %c0_i32_8 = arith.constant 0 : i32
    %9 = arith.cmpi eq, %arg2, %c0_i32_8 : i32
    %10 = arith.extui %9 : i1 to i32
    %c0_i32_9 = arith.constant 0 : i32
    %11 = arith.cmpi ne, %10, %c0_i32_9 : i32
    scf.if %11 {
      %c0_10 = arith.constant 0 : index
      %c0_11 = arith.constant 0 : index
      %12 = vector.load %arg7[%c0_10, %c0_11] : memref<128x128xf32, #tpu.memory_space<vmem>>, vector<128x128xf32>
      %c0_12 = arith.constant 0 : index
      %c0_13 = arith.constant 0 : index
      %13 = vector.load %arg5[%c0_12, %c0_13] : memref<1x128xf32, #tpu.memory_space<vmem>>, vector<1x128xf32>
      %14 = vector.broadcast %13 : vector<1x128xf32> to vector<128x128xf32>
      %15 = arith.addf %12, %14 : vector<128x128xf32>
      %16 = arith.truncf %15 : vector<128x128xf32> to vector<128x128xbf16>
      %c0_14 = arith.constant 0 : index
      %c0_15 = arith.constant 0 : index
      %17 = vector.load %arg6[%c0_14, %c0_15] : memref<128x128xbf16, #tpu.memory_space<vmem>>, vector<128x128xbf16>
      tpu.vector_store %arg6[%c0_14, %c0_15], %16 {strides = array<i32>} : memref<128x128xbf16, #tpu.memory_space<vmem>>, vector<128x128xbf16>,
    } else {
    }
    return
  }
  func.func @transform_0(%arg0: i32, %arg1: i32, %arg2: i32) -> (i32, i32) {
    %c0_i32 = arith.constant 0 : i32
    return %arg0, %arg2 : i32, i32
  }
  func.func @transform_1(%arg0: i32, %arg1: i32, %arg2: i32) -> (i32, i32) {
    %c0_i32 = arith.constant 0 : i32
    return %arg2, %arg1 : i32, i32
  }
  func.func @transform_2(%arg0: i32, %arg1: i32, %arg2: i32) -> (i32, i32) {
    %c0_i32 = arith.constant 0 : i32
    %c0_i32_0 = arith.constant 0 : i32
    return %c0_i32, %arg1 : i32, i32
  }
  func.func @transform_3(%arg0: i32, %arg1: i32, %arg2: i32) -> (i32, i32) {
    %c0_i32 = arith.constant 0 : i32
    return %arg0, %arg1 : i32, i32
  }
}

module attributes {stable_mosaic.version = 11 : i64} {
  func.func @kernel(%arg0: i32, %arg1: i32, %arg2: i32, %arg3: memref<128x384xbf16, #tpu.memory_space<vmem>>, %arg4: memref<384x128xbf16, #tpu.memory_space<vmem>>, %arg5: memref<1x128xf32, #tpu.memory_space<vmem>>, %arg6: memref<128x128xbf16, #tpu.memory_space<vmem>>, %arg7: memref<128x128xbf16, #tpu.memory_space<vmem>>, %arg8: memref<128x128xf32, #tpu.memory_space<vmem>>) attributes {dimension_semantics = [#tpu.dimension_semantics<parallel>, #tpu.dimension_semantics<parallel>, #tpu.dimension_semantics<arbitrary>], iteration_bounds = array<i64: 1, 1, 9>, scalar_prefetch = 0 : i64, scratch_operands = 1 : i64, tpu.core_type = #tpu.core_type<tc>, window_params = [{transform_indices = @transform_0, window_bounds = array<i64: 128, 384>}, {transform_indices = @transform_1, window_bounds = array<i64: 384, 128>}, {transform_indices = @transform_2, window_bounds = array<i64: 1, 128>}, {transform_indices = @transform_3, window_bounds = array<i64: 128, 128>}, {transform_indices = @transform_4, window_bounds = array<i64: 128, 128>}]} {
    %c0_i32 = arith.constant 0 : i32
    %0 = arith.cmpi eq, %arg2, %c0_i32 : i32
    %1 = arith.extui %0 : i1 to i32
    %c0_i32_0 = arith.constant 0 : i32
    %2 = arith.cmpi ne, %1, %c0_i32_0 : i32
    scf.if %2 {
      %cst_9 = arith.constant 0.000000e+00 : f32
      %12 = vector.broadcast %cst_9 : f32 to vector<128x128xf32>
      %c0_10 = arith.constant 0 : index
      %c0_11 = arith.constant 0 : index
      %13 = vector.load %arg8[%c0_10, %c0_11] : memref<128x128xf32, #tpu.memory_space<vmem>>, vector<128x128xf32>
      tpu.vector_store %arg8[%c0_10, %c0_11], %12 {strides = array<i32>} : memref<128x128xf32, #tpu.memory_space<vmem>>, vector<128x128xf32>,
    } else {
    }
    %c0 = arith.constant 0 : index
    %c0_1 = arith.constant 0 : index
    %3 = vector.load %arg8[%c0, %c0_1] : memref<128x128xf32, #tpu.memory_space<vmem>>, vector<128x128xf32>
    %c0_2 = arith.constant 0 : index
    %c0_3 = arith.constant 0 : index
    %4 = vector.load %arg3[%c0_2, %c0_3] : memref<128x384xbf16, #tpu.memory_space<vmem>>, vector<128x384xbf16>
    %c0_4 = arith.constant 0 : index
    %c0_5 = arith.constant 0 : index
    %5 = vector.load %arg4[%c0_4, %c0_5] : memref<384x128xbf16, #tpu.memory_space<vmem>>, vector<384x128xbf16>
    %cst = arith.constant dense<0.000000e+00> : vector<128x128xf32>
    %6 = tpu.matmul %4, %5, %cst {dimension_numbers = #tpu.dot_dimension_numbers<[1], [0], [0], [1], [0, 0, 1, 1], [], []>} : vector<128x384xbf16>, vector<384x128xbf16>, vector<128x128xf32> -> vector<128x128xf32>
    %7 = arith.addf %3, %6 : vector<128x128xf32>
    %c0_6 = arith.constant 0 : index
    %c0_7 = arith.constant 0 : index
    %8 = vector.load %arg8[%c0_6, %c0_7] : memref<128x128xf32, #tpu.memory_space<vmem>>, vector<128x128xf32>
    tpu.vector_store %arg8[%c0_6, %c0_7], %7 {strides = array<i32>} : memref<128x128xf32, #tpu.memory_space<vmem>>, vector<128x128xf32>,
    %c8_i32 = arith.constant 8 : i32
    %9 = arith.cmpi eq, %arg2, %c8_i32 : i32
    %10 = arith.extui %9 : i1 to i32
    %c0_i32_8 = arith.constant 0 : i32
    %11 = arith.cmpi ne, %10, %c0_i32_8 : i32
    scf.if %11 {
      %c0_9 = arith.constant 0 : index
      %c0_10 = arith.constant 0 : index
      %12 = vector.load %arg8[%c0_9, %c0_10] : memref<128x128xf32, #tpu.memory_space<vmem>>, vector<128x128xf32>
      %c0_11 = arith.constant 0 : index
      %c0_12 = arith.constant 0 : index
      %13 = vector.load %arg5[%c0_11, %c0_12] : memref<1x128xf32, #tpu.memory_space<vmem>>, vector<1x128xf32>
      %14 = vector.broadcast %13 : vector<1x128xf32> to vector<128x128xf32>
      %15 = arith.addf %12, %14 : vector<128x128xf32>
      %c0_13 = arith.constant 0 : index
      %c0_14 = arith.constant 0 : index
      %16 = vector.load %arg6[%c0_13, %c0_14] : memref<128x128xbf16, #tpu.memory_space<vmem>>, vector<128x128xbf16>
      %17 = arith.extf %16 : vector<128x128xbf16> to vector<128x128xf32>
      %18 = arith.addf %15, %17 : vector<128x128xf32>
      %cst_15 = arith.constant 0.000000e+00 : f32
      %19 = vector.broadcast %cst_15 : f32 to vector<128x128xf32>
      %20 = arith.maximumf %18, %19 : vector<128x128xf32>
      %21 = arith.truncf %20 : vector<128x128xf32> to vector<128x128xbf16>
      %c0_16 = arith.constant 0 : index
      %c0_17 = arith.constant 0 : index
      %22 = vector.load %arg7[%c0_16, %c0_17] : memref<128x128xbf16, #tpu.memory_space<vmem>>, vector<128x128xbf16>
      tpu.vector_store %arg7[%c0_16, %c0_17], %21 {strides = array<i32>} : memref<128x128xbf16, #tpu.memory_space<vmem>>, vector<128x128xbf16>,
    } else {
    }
    return
  }
  func.func @transform_0(%arg0: i32, %arg1: i32, %arg2: i32) -> (i32, i32) {
    %c0_i32 = arith.constant 0 : i32
    return %arg0, %arg2 : i32, i32
  }
  func.func @transform_1(%arg0: i32, %arg1: i32, %arg2: i32) -> (i32, i32) {
    %c0_i32 = arith.constant 0 : i32
    return %arg2, %arg1 : i32, i32
  }
  func.func @transform_2(%arg0: i32, %arg1: i32, %arg2: i32) -> (i32, i32) {
    %c0_i32 = arith.constant 0 : i32
    %c0_i32_0 = arith.constant 0 : i32
    return %c0_i32, %arg1 : i32, i32
  }
  func.func @transform_3(%arg0: i32, %arg1: i32, %arg2: i32) -> (i32, i32) {
    %c0_i32 = arith.constant 0 : i32
    return %arg0, %arg1 : i32, i32
  }
  func.func @transform_4(%arg0: i32, %arg1: i32, %arg2: i32) -> (i32, i32) {
    %c0_i32 = arith.constant 0 : i32
    return %arg0, %arg1 : i32, i32
  }
}

module attributes {stable_mosaic.version = 11 : i64} {
  func.func @kernel(%arg0: i32, %arg1: i32, %arg2: i32, %arg3: memref<128x384xbf16, #tpu.memory_space<vmem>>, %arg4: memref<384x256xbf16, #tpu.memory_space<vmem>>, %arg5: memref<1x256xf32, #tpu.memory_space<vmem>>, %arg6: memref<128x256xbf16, #tpu.memory_space<vmem>>, %arg7: memref<128x256xf32, #tpu.memory_space<vmem>>) attributes {dimension_semantics = [#tpu.dimension_semantics<parallel>, #tpu.dimension_semantics<parallel>, #tpu.dimension_semantics<arbitrary>], iteration_bounds = array<i64: 1, 1, 9>, scalar_prefetch = 0 : i64, scratch_operands = 1 : i64, tpu.core_type = #tpu.core_type<tc>, window_params = [{transform_indices = @transform_0, window_bounds = array<i64: 128, 384>}, {transform_indices = @transform_1, window_bounds = array<i64: 384, 256>}, {transform_indices = @transform_2, window_bounds = array<i64: 1, 256>}, {transform_indices = @transform_3, window_bounds = array<i64: 128, 256>}]} {
    %c0_i32 = arith.constant 0 : i32
    %0 = arith.cmpi eq, %arg2, %c0_i32 : i32
    %1 = arith.extui %0 : i1 to i32
    %c0_i32_0 = arith.constant 0 : i32
    %2 = arith.cmpi ne, %1, %c0_i32_0 : i32
    scf.if %2 {
      %cst_9 = arith.constant 0.000000e+00 : f32
      %12 = vector.broadcast %cst_9 : f32 to vector<128x256xf32>
      %c0_10 = arith.constant 0 : index
      %c0_11 = arith.constant 0 : index
      %13 = vector.load %arg7[%c0_10, %c0_11] : memref<128x256xf32, #tpu.memory_space<vmem>>, vector<128x256xf32>
      tpu.vector_store %arg7[%c0_10, %c0_11], %12 {strides = array<i32>} : memref<128x256xf32, #tpu.memory_space<vmem>>, vector<128x256xf32>,
    } else {
    }
    %c0 = arith.constant 0 : index
    %c0_1 = arith.constant 0 : index
    %3 = vector.load %arg7[%c0, %c0_1] : memref<128x256xf32, #tpu.memory_space<vmem>>, vector<128x256xf32>
    %c0_2 = arith.constant 0 : index
    %c0_3 = arith.constant 0 : index
    %4 = vector.load %arg3[%c0_2, %c0_3] : memref<128x384xbf16, #tpu.memory_space<vmem>>, vector<128x384xbf16>
    %c0_4 = arith.constant 0 : index
    %c0_5 = arith.constant 0 : index
    %5 = vector.load %arg4[%c0_4, %c0_5] : memref<384x256xbf16, #tpu.memory_space<vmem>>, vector<384x256xbf16>
    %cst = arith.constant dense<0.000000e+00> : vector<128x256xf32>
    %6 = tpu.matmul %4, %5, %cst {dimension_numbers = #tpu.dot_dimension_numbers<[1], [0], [0], [1], [0, 0, 1, 1], [], []>} : vector<128x384xbf16>, vector<384x256xbf16>, vector<128x256xf32> -> vector<128x256xf32>
    %7 = arith.addf %3, %6 : vector<128x256xf32>
    %c0_6 = arith.constant 0 : index
    %c0_7 = arith.constant 0 : index
    %8 = vector.load %arg7[%c0_6, %c0_7] : memref<128x256xf32, #tpu.memory_space<vmem>>, vector<128x256xf32>
    tpu.vector_store %arg7[%c0_6, %c0_7], %7 {strides = array<i32>} : memref<128x256xf32, #tpu.memory_space<vmem>>, vector<128x256xf32>,
    %c8_i32 = arith.constant 8 : i32
    %9 = arith.cmpi eq, %arg2, %c8_i32 : i32
    %10 = arith.extui %9 : i1 to i32
    %c0_i32_8 = arith.constant 0 : i32
    %11 = arith.cmpi ne, %10, %c0_i32_8 : i32
    scf.if %11 {
      %c0_9 = arith.constant 0 : index
      %c0_10 = arith.constant 0 : index
      %12 = vector.load %arg7[%c0_9, %c0_10] : memref<128x256xf32, #tpu.memory_space<vmem>>, vector<128x256xf32>
      %c0_11 = arith.constant 0 : index
      %c0_12 = arith.constant 0 : index
      %13 = vector.load %arg5[%c0_11, %c0_12] : memref<1x256xf32, #tpu.memory_space<vmem>>, vector<1x256xf32>
      %14 = vector.broadcast %13 : vector<1x256xf32> to vector<128x256xf32>
      %15 = arith.addf %12, %14 : vector<128x256xf32>
      %cst_13 = arith.constant 0.000000e+00 : f32
      %16 = vector.broadcast %cst_13 : f32 to vector<128x256xf32>
      %17 = arith.maximumf %15, %16 : vector<128x256xf32>
      %18 = arith.truncf %17 : vector<128x256xf32> to vector<128x256xbf16>
      %c0_14 = arith.constant 0 : index
      %c0_15 = arith.constant 0 : index
      %19 = vector.load %arg6[%c0_14, %c0_15] : memref<128x256xbf16, #tpu.memory_space<vmem>>, vector<128x256xbf16>
      tpu.vector_store %arg6[%c0_14, %c0_15], %18 {strides = array<i32>} : memref<128x256xbf16, #tpu.memory_space<vmem>>, vector<128x256xbf16>,
    } else {
    }
    return
  }
  func.func @transform_0(%arg0: i32, %arg1: i32, %arg2: i32) -> (i32, i32) {
    %c0_i32 = arith.constant 0 : i32
    return %arg0, %arg2 : i32, i32
  }
  func.func @transform_1(%arg0: i32, %arg1: i32, %arg2: i32) -> (i32, i32) {
    %c0_i32 = arith.constant 0 : i32
    return %arg2, %arg1 : i32, i32
  }
  func.func @transform_2(%arg0: i32, %arg1: i32, %arg2: i32) -> (i32, i32) {
    %c0_i32 = arith.constant 0 : i32
    %c0_i32_0 = arith.constant 0 : i32
    return %c0_i32, %arg1 : i32, i32
  }
  func.func @transform_3(%arg0: i32, %arg1: i32, %arg2: i32) -> (i32, i32) {
    %c0_i32 = arith.constant 0 : i32
    return %arg0, %arg1 : i32, i32
  }
}

module attributes {stable_mosaic.version = 11 : i64} {
  func.func @kernel(%arg0: i32, %arg1: i32, %arg2: i32, %arg3: memref<128x128xbf16, #tpu.memory_space<vmem>>, %arg4: memref<128x256xbf16, #tpu.memory_space<vmem>>, %arg5: memref<1x256xf32, #tpu.memory_space<vmem>>, %arg6: memref<128x256xbf16, #tpu.memory_space<vmem>>, %arg7: memref<128x256xf32, #tpu.memory_space<vmem>>) attributes {dimension_semantics = [#tpu.dimension_semantics<parallel>, #tpu.dimension_semantics<parallel>, #tpu.dimension_semantics<arbitrary>], iteration_bounds = array<i64: 1, 1, 1>, scalar_prefetch = 0 : i64, scratch_operands = 1 : i64, tpu.core_type = #tpu.core_type<tc>, window_params = [{transform_indices = @transform_0, window_bounds = array<i64: 128, 128>}, {transform_indices = @transform_1, window_bounds = array<i64: 128, 256>}, {transform_indices = @transform_2, window_bounds = array<i64: 1, 256>}, {transform_indices = @transform_3, window_bounds = array<i64: 128, 256>}]} {
    %c0_i32 = arith.constant 0 : i32
    %0 = arith.cmpi eq, %arg2, %c0_i32 : i32
    %1 = arith.extui %0 : i1 to i32
    %c0_i32_0 = arith.constant 0 : i32
    %2 = arith.cmpi ne, %1, %c0_i32_0 : i32
    scf.if %2 {
      %cst_10 = arith.constant 0.000000e+00 : f32
      %12 = vector.broadcast %cst_10 : f32 to vector<128x256xf32>
      %c0_11 = arith.constant 0 : index
      %c0_12 = arith.constant 0 : index
      %13 = vector.load %arg7[%c0_11, %c0_12] : memref<128x256xf32, #tpu.memory_space<vmem>>, vector<128x256xf32>
      tpu.vector_store %arg7[%c0_11, %c0_12], %12 {strides = array<i32>} : memref<128x256xf32, #tpu.memory_space<vmem>>, vector<128x256xf32>,
    } else {
    }
    %c0 = arith.constant 0 : index
    %c0_1 = arith.constant 0 : index
    %3 = vector.load %arg7[%c0, %c0_1] : memref<128x256xf32, #tpu.memory_space<vmem>>, vector<128x256xf32>
    %c0_2 = arith.constant 0 : index
    %c0_3 = arith.constant 0 : index
    %4 = vector.load %arg3[%c0_2, %c0_3] : memref<128x128xbf16, #tpu.memory_space<vmem>>, vector<128x128xbf16>
    %c0_4 = arith.constant 0 : index
    %c0_5 = arith.constant 0 : index
    %5 = vector.load %arg4[%c0_4, %c0_5] : memref<128x256xbf16, #tpu.memory_space<vmem>>, vector<128x256xbf16>
    %cst = arith.constant dense<0.000000e+00> : vector<128x256xf32>
    %6 = tpu.matmul %4, %5, %cst {dimension_numbers = #tpu.dot_dimension_numbers<[1], [0], [0], [1], [0, 0, 1, 1], [], []>} : vector<128x128xbf16>, vector<128x256xbf16>, vector<128x256xf32> -> vector<128x256xf32>
    %7 = arith.addf %3, %6 : vector<128x256xf32>
    %c0_6 = arith.constant 0 : index
    %c0_7 = arith.constant 0 : index
    %8 = vector.load %arg7[%c0_6, %c0_7] : memref<128x256xf32, #tpu.memory_space<vmem>>, vector<128x256xf32>
    tpu.vector_store %arg7[%c0_6, %c0_7], %7 {strides = array<i32>} : memref<128x256xf32, #tpu.memory_space<vmem>>, vector<128x256xf32>,
    %c0_i32_8 = arith.constant 0 : i32
    %9 = arith.cmpi eq, %arg2, %c0_i32_8 : i32
    %10 = arith.extui %9 : i1 to i32
    %c0_i32_9 = arith.constant 0 : i32
    %11 = arith.cmpi ne, %10, %c0_i32_9 : i32
    scf.if %11 {
      %c0_10 = arith.constant 0 : index
      %c0_11 = arith.constant 0 : index
      %12 = vector.load %arg7[%c0_10, %c0_11] : memref<128x256xf32, #tpu.memory_space<vmem>>, vector<128x256xf32>
      %c0_12 = arith.constant 0 : index
      %c0_13 = arith.constant 0 : index
      %13 = vector.load %arg5[%c0_12, %c0_13] : memref<1x256xf32, #tpu.memory_space<vmem>>, vector<1x256xf32>
      %14 = vector.broadcast %13 : vector<1x256xf32> to vector<128x256xf32>
      %15 = arith.addf %12, %14 : vector<128x256xf32>
      %16 = arith.truncf %15 : vector<128x256xf32> to vector<128x256xbf16>
      %c0_14 = arith.constant 0 : index
      %c0_15 = arith.constant 0 : index
      %17 = vector.load %arg6[%c0_14, %c0_15] : memref<128x256xbf16, #tpu.memory_space<vmem>>, vector<128x256xbf16>
      tpu.vector_store %arg6[%c0_14, %c0_15], %16 {strides = array<i32>} : memref<128x256xbf16, #tpu.memory_space<vmem>>, vector<128x256xbf16>,
    } else {
    }
    return
  }
  func.func @transform_0(%arg0: i32, %arg1: i32, %arg2: i32) -> (i32, i32) {
    %c0_i32 = arith.constant 0 : i32
    return %arg0, %arg2 : i32, i32
  }
  func.func @transform_1(%arg0: i32, %arg1: i32, %arg2: i32) -> (i32, i32) {
    %c0_i32 = arith.constant 0 : i32
    return %arg2, %arg1 : i32, i32
  }
  func.func @transform_2(%arg0: i32, %arg1: i32, %arg2: i32) -> (i32, i32) {
    %c0_i32 = arith.constant 0 : i32
    %c0_i32_0 = arith.constant 0 : i32
    return %c0_i32, %arg1 : i32, i32
  }
  func.func @transform_3(%arg0: i32, %arg1: i32, %arg2: i32) -> (i32, i32) {
    %c0_i32 = arith.constant 0 : i32
    return %arg0, %arg1 : i32, i32
  }
}

module attributes {stable_mosaic.version = 11 : i64} {
  func.func @kernel(%arg0: i32, %arg1: i32, %arg2: i32, %arg3: memref<128x384xbf16, #tpu.memory_space<vmem>>, %arg4: memref<384x256xbf16, #tpu.memory_space<vmem>>, %arg5: memref<1x256xf32, #tpu.memory_space<vmem>>, %arg6: memref<128x256xbf16, #tpu.memory_space<vmem>>, %arg7: memref<128x256xbf16, #tpu.memory_space<vmem>>, %arg8: memref<128x256xf32, #tpu.memory_space<vmem>>) attributes {dimension_semantics = [#tpu.dimension_semantics<parallel>, #tpu.dimension_semantics<parallel>, #tpu.dimension_semantics<arbitrary>], iteration_bounds = array<i64: 1, 1, 18>, scalar_prefetch = 0 : i64, scratch_operands = 1 : i64, tpu.core_type = #tpu.core_type<tc>, window_params = [{transform_indices = @transform_0, window_bounds = array<i64: 128, 384>}, {transform_indices = @transform_1, window_bounds = array<i64: 384, 256>}, {transform_indices = @transform_2, window_bounds = array<i64: 1, 256>}, {transform_indices = @transform_3, window_bounds = array<i64: 128, 256>}, {transform_indices = @transform_4, window_bounds = array<i64: 128, 256>}]} {
    %c0_i32 = arith.constant 0 : i32
    %0 = arith.cmpi eq, %arg2, %c0_i32 : i32
    %1 = arith.extui %0 : i1 to i32
    %c0_i32_0 = arith.constant 0 : i32
    %2 = arith.cmpi ne, %1, %c0_i32_0 : i32
    scf.if %2 {
      %cst_9 = arith.constant 0.000000e+00 : f32
      %12 = vector.broadcast %cst_9 : f32 to vector<128x256xf32>
      %c0_10 = arith.constant 0 : index
      %c0_11 = arith.constant 0 : index
      %13 = vector.load %arg8[%c0_10, %c0_11] : memref<128x256xf32, #tpu.memory_space<vmem>>, vector<128x256xf32>
      tpu.vector_store %arg8[%c0_10, %c0_11], %12 {strides = array<i32>} : memref<128x256xf32, #tpu.memory_space<vmem>>, vector<128x256xf32>,
    } else {
    }
    %c0 = arith.constant 0 : index
    %c0_1 = arith.constant 0 : index
    %3 = vector.load %arg8[%c0, %c0_1] : memref<128x256xf32, #tpu.memory_space<vmem>>, vector<128x256xf32>
    %c0_2 = arith.constant 0 : index
    %c0_3 = arith.constant 0 : index
    %4 = vector.load %arg3[%c0_2, %c0_3] : memref<128x384xbf16, #tpu.memory_space<vmem>>, vector<128x384xbf16>
    %c0_4 = arith.constant 0 : index
    %c0_5 = arith.constant 0 : index
    %5 = vector.load %arg4[%c0_4, %c0_5] : memref<384x256xbf16, #tpu.memory_space<vmem>>, vector<384x256xbf16>
    %cst = arith.constant dense<0.000000e+00> : vector<128x256xf32>
    %6 = tpu.matmul %4, %5, %cst {dimension_numbers = #tpu.dot_dimension_numbers<[1], [0], [0], [1], [0, 0, 1, 1], [], []>} : vector<128x384xbf16>, vector<384x256xbf16>, vector<128x256xf32> -> vector<128x256xf32>
    %7 = arith.addf %3, %6 : vector<128x256xf32>
    %c0_6 = arith.constant 0 : index
    %c0_7 = arith.constant 0 : index
    %8 = vector.load %arg8[%c0_6, %c0_7] : memref<128x256xf32, #tpu.memory_space<vmem>>, vector<128x256xf32>
    tpu.vector_store %arg8[%c0_6, %c0_7], %7 {strides = array<i32>} : memref<128x256xf32, #tpu.memory_space<vmem>>, vector<128x256xf32>,
    %c17_i32 = arith.constant 17 : i32
    %9 = arith.cmpi eq, %arg2, %c17_i32 : i32
    %10 = arith.extui %9 : i1 to i32
    %c0_i32_8 = arith.constant 0 : i32
    %11 = arith.cmpi ne, %10, %c0_i32_8 : i32
    scf.if %11 {
      %c0_9 = arith.constant 0 : index
      %c0_10 = arith.constant 0 : index
      %12 = vector.load %arg8[%c0_9, %c0_10] : memref<128x256xf32, #tpu.memory_space<vmem>>, vector<128x256xf32>
      %c0_11 = arith.constant 0 : index
      %c0_12 = arith.constant 0 : index
      %13 = vector.load %arg5[%c0_11, %c0_12] : memref<1x256xf32, #tpu.memory_space<vmem>>, vector<1x256xf32>
      %14 = vector.broadcast %13 : vector<1x256xf32> to vector<128x256xf32>
      %15 = arith.addf %12, %14 : vector<128x256xf32>
      %c0_13 = arith.constant 0 : index
      %c0_14 = arith.constant 0 : index
      %16 = vector.load %arg6[%c0_13, %c0_14] : memref<128x256xbf16, #tpu.memory_space<vmem>>, vector<128x256xbf16>
      %17 = arith.extf %16 : vector<128x256xbf16> to vector<128x256xf32>
      %18 = arith.addf %15, %17 : vector<128x256xf32>
      %cst_15 = arith.constant 0.000000e+00 : f32
      %19 = vector.broadcast %cst_15 : f32 to vector<128x256xf32>
      %20 = arith.maximumf %18, %19 : vector<128x256xf32>
      %21 = arith.truncf %20 : vector<128x256xf32> to vector<128x256xbf16>
      %c0_16 = arith.constant 0 : index
      %c0_17 = arith.constant 0 : index
      %22 = vector.load %arg7[%c0_16, %c0_17] : memref<128x256xbf16, #tpu.memory_space<vmem>>, vector<128x256xbf16>
      tpu.vector_store %arg7[%c0_16, %c0_17], %21 {strides = array<i32>} : memref<128x256xbf16, #tpu.memory_space<vmem>>, vector<128x256xbf16>,
    } else {
    }
    return
  }
  func.func @transform_0(%arg0: i32, %arg1: i32, %arg2: i32) -> (i32, i32) {
    %c0_i32 = arith.constant 0 : i32
    return %arg0, %arg2 : i32, i32
  }
  func.func @transform_1(%arg0: i32, %arg1: i32, %arg2: i32) -> (i32, i32) {
    %c0_i32 = arith.constant 0 : i32
    return %arg2, %arg1 : i32, i32
  }
  func.func @transform_2(%arg0: i32, %arg1: i32, %arg2: i32) -> (i32, i32) {
    %c0_i32 = arith.constant 0 : i32
    %c0_i32_0 = arith.constant 0 : i32
    return %c0_i32, %arg1 : i32, i32
  }
  func.func @transform_3(%arg0: i32, %arg1: i32, %arg2: i32) -> (i32, i32) {
    %c0_i32 = arith.constant 0 : i32
    return %arg0, %arg1 : i32, i32
  }
  func.func @transform_4(%arg0: i32, %arg1: i32, %arg2: i32) -> (i32, i32) {
    %c0_i32 = arith.constant 0 : i32
    return %arg0, %arg1 : i32, i32
  }
}

module attributes {stable_mosaic.version = 11 : i64} {
  func.func @kernel(%arg0: i32, %arg1: i32, %arg2: i32, %arg3: memref<128x384xbf16, #tpu.memory_space<vmem>>, %arg4: memref<384x512xbf16, #tpu.memory_space<vmem>>, %arg5: memref<1x512xf32, #tpu.memory_space<vmem>>, %arg6: memref<128x512xbf16, #tpu.memory_space<vmem>>, %arg7: memref<128x512xf32, #tpu.memory_space<vmem>>) attributes {dimension_semantics = [#tpu.dimension_semantics<parallel>, #tpu.dimension_semantics<parallel>, #tpu.dimension_semantics<arbitrary>], iteration_bounds = array<i64: 1, 1, 18>, scalar_prefetch = 0 : i64, scratch_operands = 1 : i64, tpu.core_type = #tpu.core_type<tc>, window_params = [{transform_indices = @transform_0, window_bounds = array<i64: 128, 384>}, {transform_indices = @transform_1, window_bounds = array<i64: 384, 512>}, {transform_indices = @transform_2, window_bounds = array<i64: 1, 512>}, {transform_indices = @transform_3, window_bounds = array<i64: 128, 512>}]} {
    %c0_i32 = arith.constant 0 : i32
    %0 = arith.cmpi eq, %arg2, %c0_i32 : i32
    %1 = arith.extui %0 : i1 to i32
    %c0_i32_0 = arith.constant 0 : i32
    %2 = arith.cmpi ne, %1, %c0_i32_0 : i32
    scf.if %2 {
      %cst_9 = arith.constant 0.000000e+00 : f32
      %12 = vector.broadcast %cst_9 : f32 to vector<128x512xf32>
      %c0_10 = arith.constant 0 : index
      %c0_11 = arith.constant 0 : index
      %13 = vector.load %arg7[%c0_10, %c0_11] : memref<128x512xf32, #tpu.memory_space<vmem>>, vector<128x512xf32>
      tpu.vector_store %arg7[%c0_10, %c0_11], %12 {strides = array<i32>} : memref<128x512xf32, #tpu.memory_space<vmem>>, vector<128x512xf32>,
    } else {
    }
    %c0 = arith.constant 0 : index
    %c0_1 = arith.constant 0 : index
    %3 = vector.load %arg7[%c0, %c0_1] : memref<128x512xf32, #tpu.memory_space<vmem>>, vector<128x512xf32>
    %c0_2 = arith.constant 0 : index
    %c0_3 = arith.constant 0 : index
    %4 = vector.load %arg3[%c0_2, %c0_3] : memref<128x384xbf16, #tpu.memory_space<vmem>>, vector<128x384xbf16>
    %c0_4 = arith.constant 0 : index
    %c0_5 = arith.constant 0 : index
    %5 = vector.load %arg4[%c0_4, %c0_5] : memref<384x512xbf16, #tpu.memory_space<vmem>>, vector<384x512xbf16>
    %cst = arith.constant dense<0.000000e+00> : vector<128x512xf32>
    %6 = tpu.matmul %4, %5, %cst {dimension_numbers = #tpu.dot_dimension_numbers<[1], [0], [0], [1], [0, 0, 1, 1], [], []>} : vector<128x384xbf16>, vector<384x512xbf16>, vector<128x512xf32> -> vector<128x512xf32>
    %7 = arith.addf %3, %6 : vector<128x512xf32>
    %c0_6 = arith.constant 0 : index
    %c0_7 = arith.constant 0 : index
    %8 = vector.load %arg7[%c0_6, %c0_7] : memref<128x512xf32, #tpu.memory_space<vmem>>, vector<128x512xf32>
    tpu.vector_store %arg7[%c0_6, %c0_7], %7 {strides = array<i32>} : memref<128x512xf32, #tpu.memory_space<vmem>>, vector<128x512xf32>,
    %c17_i32 = arith.constant 17 : i32
    %9 = arith.cmpi eq, %arg2, %c17_i32 : i32
    %10 = arith.extui %9 : i1 to i32
    %c0_i32_8 = arith.constant 0 : i32
    %11 = arith.cmpi ne, %10, %c0_i32_8 : i32
    scf.if %11 {
      %c0_9 = arith.constant 0 : index
      %c0_10 = arith.constant 0 : index
      %12 = vector.load %arg7[%c0_9, %c0_10] : memref<128x512xf32, #tpu.memory_space<vmem>>, vector<128x512xf32>
      %c0_11 = arith.constant 0 : index
      %c0_12 = arith.constant 0 : index
      %13 = vector.load %arg5[%c0_11, %c0_12] : memref<1x512xf32, #tpu.memory_space<vmem>>, vector<1x512xf32>
      %14 = vector.broadcast %13 : vector<1x512xf32> to vector<128x512xf32>
      %15 = arith.addf %12, %14 : vector<128x512xf32>
      %cst_13 = arith.constant 0.000000e+00 : f32
      %16 = vector.broadcast %cst_13 : f32 to vector<128x512xf32>
      %17 = arith.maximumf %15, %16 : vector<128x512xf32>
      %18 = arith.truncf %17 : vector<128x512xf32> to vector<128x512xbf16>
      %c0_14 = arith.constant 0 : index
      %c0_15 = arith.constant 0 : index
      %19 = vector.load %arg6[%c0_14, %c0_15] : memref<128x512xbf16, #tpu.memory_space<vmem>>, vector<128x512xbf16>
      tpu.vector_store %arg6[%c0_14, %c0_15], %18 {strides = array<i32>} : memref<128x512xbf16, #tpu.memory_space<vmem>>, vector<128x512xbf16>,
    } else {
    }
    return
  }
  func.func @transform_0(%arg0: i32, %arg1: i32, %arg2: i32) -> (i32, i32) {
    %c0_i32 = arith.constant 0 : i32
    return %arg0, %arg2 : i32, i32
  }
  func.func @transform_1(%arg0: i32, %arg1: i32, %arg2: i32) -> (i32, i32) {
    %c0_i32 = arith.constant 0 : i32
    return %arg2, %arg1 : i32, i32
  }
  func.func @transform_2(%arg0: i32, %arg1: i32, %arg2: i32) -> (i32, i32) {
    %c0_i32 = arith.constant 0 : i32
    %c0_i32_0 = arith.constant 0 : i32
    return %c0_i32, %arg1 : i32, i32
  }
  func.func @transform_3(%arg0: i32, %arg1: i32, %arg2: i32) -> (i32, i32) {
    %c0_i32 = arith.constant 0 : i32
    return %arg0, %arg1 : i32, i32
  }
}

module attributes {stable_mosaic.version = 11 : i64} {
  func.func @kernel(%arg0: i32, %arg1: i32, %arg2: i32, %arg3: memref<128x256xbf16, #tpu.memory_space<vmem>>, %arg4: memref<256x512xbf16, #tpu.memory_space<vmem>>, %arg5: memref<1x512xf32, #tpu.memory_space<vmem>>, %arg6: memref<128x512xbf16, #tpu.memory_space<vmem>>, %arg7: memref<128x512xf32, #tpu.memory_space<vmem>>) attributes {dimension_semantics = [#tpu.dimension_semantics<parallel>, #tpu.dimension_semantics<parallel>, #tpu.dimension_semantics<arbitrary>], iteration_bounds = array<i64: 1, 1, 1>, scalar_prefetch = 0 : i64, scratch_operands = 1 : i64, tpu.core_type = #tpu.core_type<tc>, window_params = [{transform_indices = @transform_0, window_bounds = array<i64: 128, 256>}, {transform_indices = @transform_1, window_bounds = array<i64: 256, 512>}, {transform_indices = @transform_2, window_bounds = array<i64: 1, 512>}, {transform_indices = @transform_3, window_bounds = array<i64: 128, 512>}]} {
    %c0_i32 = arith.constant 0 : i32
    %0 = arith.cmpi eq, %arg2, %c0_i32 : i32
    %1 = arith.extui %0 : i1 to i32
    %c0_i32_0 = arith.constant 0 : i32
    %2 = arith.cmpi ne, %1, %c0_i32_0 : i32
    scf.if %2 {
      %cst_10 = arith.constant 0.000000e+00 : f32
      %12 = vector.broadcast %cst_10 : f32 to vector<128x512xf32>
      %c0_11 = arith.constant 0 : index
      %c0_12 = arith.constant 0 : index
      %13 = vector.load %arg7[%c0_11, %c0_12] : memref<128x512xf32, #tpu.memory_space<vmem>>, vector<128x512xf32>
      tpu.vector_store %arg7[%c0_11, %c0_12], %12 {strides = array<i32>} : memref<128x512xf32, #tpu.memory_space<vmem>>, vector<128x512xf32>,
    } else {
    }
    %c0 = arith.constant 0 : index
    %c0_1 = arith.constant 0 : index
    %3 = vector.load %arg7[%c0, %c0_1] : memref<128x512xf32, #tpu.memory_space<vmem>>, vector<128x512xf32>
    %c0_2 = arith.constant 0 : index
    %c0_3 = arith.constant 0 : index
    %4 = vector.load %arg3[%c0_2, %c0_3] : memref<128x256xbf16, #tpu.memory_space<vmem>>, vector<128x256xbf16>
    %c0_4 = arith.constant 0 : index
    %c0_5 = arith.constant 0 : index
    %5 = vector.load %arg4[%c0_4, %c0_5] : memref<256x512xbf16, #tpu.memory_space<vmem>>, vector<256x512xbf16>
    %cst = arith.constant dense<0.000000e+00> : vector<128x512xf32>
    %6 = tpu.matmul %4, %5, %cst {dimension_numbers = #tpu.dot_dimension_numbers<[1], [0], [0], [1], [0, 0, 1, 1], [], []>} : vector<128x256xbf16>, vector<256x512xbf16>, vector<128x512xf32> -> vector<128x512xf32>
    %7 = arith.addf %3, %6 : vector<128x512xf32>
    %c0_6 = arith.constant 0 : index
    %c0_7 = arith.constant 0 : index
    %8 = vector.load %arg7[%c0_6, %c0_7] : memref<128x512xf32, #tpu.memory_space<vmem>>, vector<128x512xf32>
    tpu.vector_store %arg7[%c0_6, %c0_7], %7 {strides = array<i32>} : memref<128x512xf32, #tpu.memory_space<vmem>>, vector<128x512xf32>,
    %c0_i32_8 = arith.constant 0 : i32
    %9 = arith.cmpi eq, %arg2, %c0_i32_8 : i32
    %10 = arith.extui %9 : i1 to i32
    %c0_i32_9 = arith.constant 0 : i32
    %11 = arith.cmpi ne, %10, %c0_i32_9 : i32
    scf.if %11 {
      %c0_10 = arith.constant 0 : index
      %c0_11 = arith.constant 0 : index
      %12 = vector.load %arg7[%c0_10, %c0_11] : memref<128x512xf32, #tpu.memory_space<vmem>>, vector<128x512xf32>
      %c0_12 = arith.constant 0 : index
      %c0_13 = arith.constant 0 : index
      %13 = vector.load %arg5[%c0_12, %c0_13] : memref<1x512xf32, #tpu.memory_space<vmem>>, vector<1x512xf32>
      %14 = vector.broadcast %13 : vector<1x512xf32> to vector<128x512xf32>
      %15 = arith.addf %12, %14 : vector<128x512xf32>
      %16 = arith.truncf %15 : vector<128x512xf32> to vector<128x512xbf16>
      %c0_14 = arith.constant 0 : index
      %c0_15 = arith.constant 0 : index
      %17 = vector.load %arg6[%c0_14, %c0_15] : memref<128x512xbf16, #tpu.memory_space<vmem>>, vector<128x512xbf16>
      tpu.vector_store %arg6[%c0_14, %c0_15], %16 {strides = array<i32>} : memref<128x512xbf16, #tpu.memory_space<vmem>>, vector<128x512xbf16>,
    } else {
    }
    return
  }
  func.func @transform_0(%arg0: i32, %arg1: i32, %arg2: i32) -> (i32, i32) {
    %c0_i32 = arith.constant 0 : i32
    return %arg0, %arg2 : i32, i32
  }
  func.func @transform_1(%arg0: i32, %arg1: i32, %arg2: i32) -> (i32, i32) {
    %c0_i32 = arith.constant 0 : i32
    return %arg2, %arg1 : i32, i32
  }
  func.func @transform_2(%arg0: i32, %arg1: i32, %arg2: i32) -> (i32, i32) {
    %c0_i32 = arith.constant 0 : i32
    %c0_i32_0 = arith.constant 0 : i32
    return %c0_i32, %arg1 : i32, i32
  }
  func.func @transform_3(%arg0: i32, %arg1: i32, %arg2: i32) -> (i32, i32) {
    %c0_i32 = arith.constant 0 : i32
    return %arg0, %arg1 : i32, i32
  }
}

module attributes {stable_mosaic.version = 11 : i64} {
  func.func @kernel(%arg0: i32, %arg1: i32, %arg2: i32, %arg3: memref<128x512xbf16, #tpu.memory_space<vmem>>, %arg4: memref<512x512xbf16, #tpu.memory_space<vmem>>, %arg5: memref<1x512xf32, #tpu.memory_space<vmem>>, %arg6: memref<128x512xbf16, #tpu.memory_space<vmem>>, %arg7: memref<128x512xbf16, #tpu.memory_space<vmem>>, %arg8: memref<128x512xf32, #tpu.memory_space<vmem>>) attributes {dimension_semantics = [#tpu.dimension_semantics<parallel>, #tpu.dimension_semantics<parallel>, #tpu.dimension_semantics<arbitrary>], iteration_bounds = array<i64: 1, 1, 27>, scalar_prefetch = 0 : i64, scratch_operands = 1 : i64, tpu.core_type = #tpu.core_type<tc>, window_params = [{transform_indices = @transform_0, window_bounds = array<i64: 128, 512>}, {transform_indices = @transform_1, window_bounds = array<i64: 512, 512>}, {transform_indices = @transform_2, window_bounds = array<i64: 1, 512>}, {transform_indices = @transform_3, window_bounds = array<i64: 128, 512>}, {transform_indices = @transform_4, window_bounds = array<i64: 128, 512>}]} {
    %c0_i32 = arith.constant 0 : i32
    %0 = arith.cmpi eq, %arg2, %c0_i32 : i32
    %1 = arith.extui %0 : i1 to i32
    %c0_i32_0 = arith.constant 0 : i32
    %2 = arith.cmpi ne, %1, %c0_i32_0 : i32
    scf.if %2 {
      %cst_9 = arith.constant 0.000000e+00 : f32
      %12 = vector.broadcast %cst_9 : f32 to vector<128x512xf32>
      %c0_10 = arith.constant 0 : index
      %c0_11 = arith.constant 0 : index
      %13 = vector.load %arg8[%c0_10, %c0_11] : memref<128x512xf32, #tpu.memory_space<vmem>>, vector<128x512xf32>
      tpu.vector_store %arg8[%c0_10, %c0_11], %12 {strides = array<i32>} : memref<128x512xf32, #tpu.memory_space<vmem>>, vector<128x512xf32>,
    } else {
    }
    %c0 = arith.constant 0 : index
    %c0_1 = arith.constant 0 : index
    %3 = vector.load %arg8[%c0, %c0_1] : memref<128x512xf32, #tpu.memory_space<vmem>>, vector<128x512xf32>
    %c0_2 = arith.constant 0 : index
    %c0_3 = arith.constant 0 : index
    %4 = vector.load %arg3[%c0_2, %c0_3] : memref<128x512xbf16, #tpu.memory_space<vmem>>, vector<128x512xbf16>
    %c0_4 = arith.constant 0 : index
    %c0_5 = arith.constant 0 : index
    %5 = vector.load %arg4[%c0_4, %c0_5] : memref<512x512xbf16, #tpu.memory_space<vmem>>, vector<512x512xbf16>
    %cst = arith.constant dense<0.000000e+00> : vector<128x512xf32>
    %6 = tpu.matmul %4, %5, %cst {dimension_numbers = #tpu.dot_dimension_numbers<[1], [0], [0], [1], [0, 0, 1, 1], [], []>} : vector<128x512xbf16>, vector<512x512xbf16>, vector<128x512xf32> -> vector<128x512xf32>
    %7 = arith.addf %3, %6 : vector<128x512xf32>
    %c0_6 = arith.constant 0 : index
    %c0_7 = arith.constant 0 : index
    %8 = vector.load %arg8[%c0_6, %c0_7] : memref<128x512xf32, #tpu.memory_space<vmem>>, vector<128x512xf32>
    tpu.vector_store %arg8[%c0_6, %c0_7], %7 {strides = array<i32>} : memref<128x512xf32, #tpu.memory_space<vmem>>, vector<128x512xf32>,
    %c26_i32 = arith.constant 26 : i32
    %9 = arith.cmpi eq, %arg2, %c26_i32 : i32
    %10 = arith.extui %9 : i1 to i32
    %c0_i32_8 = arith.constant 0 : i32
    %11 = arith.cmpi ne, %10, %c0_i32_8 : i32
    scf.if %11 {
      %c0_9 = arith.constant 0 : index
      %c0_10 = arith.constant 0 : index
      %12 = vector.load %arg8[%c0_9, %c0_10] : memref<128x512xf32, #tpu.memory_space<vmem>>, vector<128x512xf32>
      %c0_11 = arith.constant 0 : index
      %c0_12 = arith.constant 0 : index
      %13 = vector.load %arg5[%c0_11, %c0_12] : memref<1x512xf32, #tpu.memory_space<vmem>>, vector<1x512xf32>
      %14 = vector.broadcast %13 : vector<1x512xf32> to vector<128x512xf32>
      %15 = arith.addf %12, %14 : vector<128x512xf32>
      %c0_13 = arith.constant 0 : index
      %c0_14 = arith.constant 0 : index
      %16 = vector.load %arg6[%c0_13, %c0_14] : memref<128x512xbf16, #tpu.memory_space<vmem>>, vector<128x512xbf16>
      %17 = arith.extf %16 : vector<128x512xbf16> to vector<128x512xf32>
      %18 = arith.addf %15, %17 : vector<128x512xf32>
      %cst_15 = arith.constant 0.000000e+00 : f32
      %19 = vector.broadcast %cst_15 : f32 to vector<128x512xf32>
      %20 = arith.maximumf %18, %19 : vector<128x512xf32>
      %21 = arith.truncf %20 : vector<128x512xf32> to vector<128x512xbf16>
      %c0_16 = arith.constant 0 : index
      %c0_17 = arith.constant 0 : index
      %22 = vector.load %arg7[%c0_16, %c0_17] : memref<128x512xbf16, #tpu.memory_space<vmem>>, vector<128x512xbf16>
      tpu.vector_store %arg7[%c0_16, %c0_17], %21 {strides = array<i32>} : memref<128x512xbf16, #tpu.memory_space<vmem>>, vector<128x512xbf16>,
    } else {
    }
    return
  }
  func.func @transform_0(%arg0: i32, %arg1: i32, %arg2: i32) -> (i32, i32) {
    %c0_i32 = arith.constant 0 : i32
    return %arg0, %arg2 : i32, i32
  }
  func.func @transform_1(%arg0: i32, %arg1: i32, %arg2: i32) -> (i32, i32) {
    %c0_i32 = arith.constant 0 : i32
    return %arg2, %arg1 : i32, i32
  }
  func.func @transform_2(%arg0: i32, %arg1: i32, %arg2: i32) -> (i32, i32) {
    %c0_i32 = arith.constant 0 : i32
    %c0_i32_0 = arith.constant 0 : i32
    return %c0_i32, %arg1 : i32, i32
  }
  func.func @transform_3(%arg0: i32, %arg1: i32, %arg2: i32) -> (i32, i32) {
    %c0_i32 = arith.constant 0 : i32
    return %arg0, %arg1 : i32, i32
  }
  func.func @transform_4(%arg0: i32, %arg1: i32, %arg2: i32) -> (i32, i32) {
    %c0_i32 = arith.constant 0 : i32
    return %arg0, %arg1 : i32, i32
  }
}

module attributes {stable_mosaic.version = 11 : i64} {
  func.func @kernel(%arg0: i32, %arg1: memref<2x8x512xbf16, #tpu.memory_space<vmem>>, %arg2: memref<512x128xf32, #tpu.memory_space<vmem>>, %arg3: memref<1x128xf32, #tpu.memory_space<vmem>>, %arg4: memref<2x128xf32, #tpu.memory_space<vmem>>, %arg5: memref<2x512xf32, #tpu.memory_space<vmem>>) attributes {dimension_semantics = [#tpu.dimension_semantics<arbitrary>], iteration_bounds = array<i64: 1>, scalar_prefetch = 0 : i64, scratch_operands = 1 : i64, tpu.core_type = #tpu.core_type<tc>, window_params = [{transform_indices = @transform_0, window_bounds = array<i64: 2, 8, 512>}, {pipeline_mode = #tpu.pipeline_mode<synchronous>, transform_indices = @transform_1, window_bounds = array<i64: 512, 128>}, {pipeline_mode = #tpu.pipeline_mode<synchronous>, transform_indices = @transform_2, window_bounds = array<i64: 1, 128>}, {pipeline_mode = #tpu.pipeline_mode<synchronous>, transform_indices = @transform_3, window_bounds = array<i64: 2, 128>}]} {
    %c0_i32 = arith.constant 0 : i32
    %0 = arith.cmpi eq, %arg0, %c0_i32 : i32
    %1 = arith.extui %0 : i1 to i32
    %c0_i32_0 = arith.constant 0 : i32
    %2 = arith.cmpi ne, %1, %c0_i32_0 : i32
    scf.if %2 {
      %cst_9 = arith.constant 0.000000e+00 : f32
      %12 = vector.broadcast %cst_9 : f32 to vector<2x512xf32>
      %c0_10 = arith.constant 0 : index
      %c0_11 = arith.constant 0 : index
      %13 = vector.load %arg5[%c0_10, %c0_11] : memref<2x512xf32, #tpu.memory_space<vmem>>, vector<2x512xf32>
      tpu.vector_store %arg5[%c0_10, %c0_11], %12 {strides = array<i32>} : memref<2x512xf32, #tpu.memory_space<vmem>>, vector<2x512xf32>,
    } else {
    }
    %c0 = arith.constant 0 : index
    %c0_1 = arith.constant 0 : index
    %3 = vector.load %arg5[%c0, %c0_1] : memref<2x512xf32, #tpu.memory_space<vmem>>, vector<2x512xf32>
    %c0_2 = arith.constant 0 : index
    %c0_3 = arith.constant 0 : index
    %c0_4 = arith.constant 0 : index
    %4 = vector.load %arg1[%c0_2, %c0_3, %c0_4] : memref<2x8x512xbf16, #tpu.memory_space<vmem>>, vector<2x8x512xbf16>
    %5 = arith.extf %4 : vector<2x8x512xbf16> to vector<2x8x512xf32>
    %cst = arith.constant dense<0.000000e+00> : vector<2x512xf32>
    %6 = vector.multi_reduction <add>, %5, %cst [1] : vector<2x8x512xf32> to vector<2x512xf32>
    %7 = arith.addf %3, %6 : vector<2x512xf32>
    %c0_5 = arith.constant 0 : index
    %c0_6 = arith.constant 0 : index
    %8 = vector.load %arg5[%c0_5, %c0_6] : memref<2x512xf32, #tpu.memory_space<vmem>>, vector<2x512xf32>
    tpu.vector_store %arg5[%c0_5, %c0_6], %7 {strides = array<i32>} : memref<2x512xf32, #tpu.memory_space<vmem>>, vector<2x512xf32>,
    %c0_i32_7 = arith.constant 0 : i32
    %9 = arith.cmpi eq, %arg0, %c0_i32_7 : i32
    %10 = arith.extui %9 : i1 to i32
    %c0_i32_8 = arith.constant 0 : i32
    %11 = arith.cmpi ne, %10, %c0_i32_8 : i32
    scf.if %11 {
      %c0_9 = arith.constant 0 : index
      %c0_10 = arith.constant 0 : index
      %12 = vector.load %arg5[%c0_9, %c0_10] : memref<2x512xf32, #tpu.memory_space<vmem>>, vector<2x512xf32>
      %cst_11 = arith.constant 1.250000e-01 : f32
      %13 = vector.broadcast %cst_11 : f32 to vector<2x512xf32>
      %14 = arith.mulf %12, %13 : vector<2x512xf32>
      %c0_12 = arith.constant 0 : index
      %c0_13 = arith.constant 0 : index
      %15 = vector.load %arg2[%c0_12, %c0_13] : memref<512x128xf32, #tpu.memory_space<vmem>>, vector<512x128xf32>
      %cst_14 = arith.constant dense<0.000000e+00> : vector<2x128xf32>
      %16 = tpu.matmul %14, %15, %cst_14 {dimension_numbers = #tpu.dot_dimension_numbers<[1], [0], [0], [1], [0, 0, 1, 1], [], []>} : vector<2x512xf32>, vector<512x128xf32>, vector<2x128xf32> -> vector<2x128xf32>
      %c0_15 = arith.constant 0 : index
      %c0_16 = arith.constant 0 : index
      %17 = vector.load %arg3[%c0_15, %c0_16] : memref<1x128xf32, #tpu.memory_space<vmem>>, vector<1x128xf32>
      %18 = vector.broadcast %17 : vector<1x128xf32> to vector<2x128xf32>
      %19 = arith.addf %16, %18 : vector<2x128xf32>
      %c0_17 = arith.constant 0 : index
      %c0_18 = arith.constant 0 : index
      %20 = vector.load %arg4[%c0_17, %c0_18] : memref<2x128xf32, #tpu.memory_space<vmem>>, vector<2x128xf32>
      tpu.vector_store %arg4[%c0_17, %c0_18], %19 {strides = array<i32>} : memref<2x128xf32, #tpu.memory_space<vmem>>, vector<2x128xf32>,
    } else {
    }
    return
  }
  func.func @transform_0(%arg0: i32) -> (i32, i32, i32) {
    %c0_i32 = arith.constant 0 : i32
    %c0_i32_0 = arith.constant 0 : i32
    %c0_i32_1 = arith.constant 0 : i32
    return %c0_i32, %arg0, %c0_i32_0 : i32, i32, i32
  }
  func.func @transform_1(%arg0: i32) -> (i32, i32) {
    %c0_i32 = arith.constant 0 : i32
    %c0_i32_0 = arith.constant 0 : i32
    %c0_i32_1 = arith.constant 0 : i32
    return %c0_i32, %c0_i32_0 : i32, i32
  }
  func.func @transform_2(%arg0: i32) -> (i32, i32) {
    %c0_i32 = arith.constant 0 : i32
    %c0_i32_0 = arith.constant 0 : i32
    %c0_i32_1 = arith.constant 0 : i32
    return %c0_i32, %c0_i32_0 : i32, i32
  }
  func.func @transform_3(%arg0: i32) -> (i32, i32) {
    %c0_i32 = arith.constant 0 : i32
    %c0_i32_0 = arith.constant 0 : i32
    %c0_i32_1 = arith.constant 0 : i32
    return %c0_i32, %c0_i32_0 : i32, i32
  }
}

</mosaic_0001>

<bundles_post_ra>
// kernel: forward.12
= control target key start
LH: loop header
LB: loop body
LE: loop exit
PB: predicated region body
PF: predicated region fallthrough
CT: control target
= control target key end

     0   :  { %s1341_s12 = smov 0   ;;  %s1343_s13 = smov 0   ;;  %s1489_s0 = inlined_call_operand.vmem [shape: bf16[128,1792], index: 0, kind: input, shape index: {}]   ;;  %s1490_s1 = inlined_call_operand.vmem [shape: bf16[1792,128], index: 1, kind: input, shape index: {}]   ;;  %s1491_s2 = inlined_call_operand.vmem [shape: f32[1,128], index: 2, kind: input, shape index: {}]   ;;  %s1492_s3 = inlined_call_operand.vmem [shape: bf16[128,128], index: 3, kind: output, shape index: {}]  }
   0x1   :  { %s1345_s14 = smov 0   ;;  %s1347_s15 = smov 0  }
   0x2   :  { %s1349_s16 = smov 0  }
   0x3 LB: > { %s25_s17 = sadd.s32 1, %s1314_s15  ;;  %p48_p1 = scmp.ne.s32.totalorder %s1306_s13, %s1302_s12  ;;  %s1318_s16 = sphi %s1349_s16, %s13_s16   ;;  %s1314_s15 = sphi %s1347_s15, %s1496_s15   ;;  %s1310_s14 = sphi %s1345_s14, %s1495_s14   ;;  %s1306_s13 = sphi %s1343_s13, %s1494_s13   ;;  %s1302_s12 = sphi %s1341_s12, %s1493_s12  }
   0x4   : > { %p26_p0 = scmp.ge.s32.totalorder %s25_s17, 7  ;;  %p49_p2 = scmp.eq.s32.totalorder %s1318_s16, 0 }
   0x5   : > { %s41_s19 = sadd.s32 1, %s1306_s13  ;;  %p992_p5 = scmp.ge.s32.totalorder %s1318_s16, 7 }
   0x6   : > { %s1498_s17 = smov (%p26_p0, %s25_s17), 0  ;;  %p50_p3 = por %p49_p2, %p48_p1 }
   0x7   : > { %s37_s18 = ssub.s32 %s1314_s15, %s1498_s17  ;;  %162 = sbr.rel (%p992_p5) target bundleno = 24 (0x18), region = 20 }
   0x8   : > { %p39_p4 = scmp.eq.s32.totalorder %s37_s18, 0 }
   0xa   : > { %s1376_s20 = scalar_select %p39_p4, %s1306_s13, %s41_s19  }
   0xc   : > { %165 = sbr.rel (!%p50_p3) target bundleno = 24 (0x18), region = 24  ;;  %s167_s21 = sand.u32 (%p50_p3), 1, %s1306_s13  }
   0xd   : > { %s1055_s22 = sshll.u32 (%p50_p3), %s1314_s15, 3  ;;  %s993_s23 = sshll.u32 (%p50_p3), %s167_s21, 7 }
   0xe   : > { %s1384_s26 = scalar_lea.vmem (%p50_p3), %s1489_s0, %s1055_s22  ;;  %s169_s27 = scalar_lea.vmem (%p50_p3), [#allocation3], %s993_s23 }
   0xf   : > { %v234_v0 = vld [vmem:[%s1384_s26] sm:$0xff] (%p50_p3)  ;;  %v236_v1 = vld [vmem:[%s1384_s26 + $0x38] sm:$0xff] (%p50_p3)  ;;  %v238_v2 = vld [vmem:[%s1384_s26 + $0x70] sm:$0xff] (%p50_p3) }
  0x10   : > { %235 = vst [vmem:[%s169_s27] sm:$0xff] (%p50_p3), %v234_v0  ;;  %237 = vst [vmem:[%s169_s27 + $0x8] sm:$0xff] (%p50_p3), %v236_v1  ;;  %v240_v3 = vld [vmem:[%s1384_s26 + $0xa8] sm:$0xff] (%p50_p3)  ;;  %v242_v4 = vld [vmem:[%s1384_s26 + $0xe0] sm:$0xff] (%p50_p3) }
  0x11   : > { %239 = vst [vmem:[%s169_s27 + $0x10] sm:$0xff] %v238_v2  ;;  %v244_v5 = vld [vmem:[%s1384_s26 + $0x118] sm:$0xff]  ;;  %241 = vst [vmem:[%s169_s27 + $0x18] sm:$0xff] %v240_v3  ;;  %v246_v6 = vld [vmem:[%s1384_s26 + $0x150] sm:$0xff] }
  0x12   : > { %243 = vst [vmem:[%s169_s27 + $0x20] sm:$0xff] %v242_v4  ;;  %245 = vst [vmem:[%s169_s27 + $0x28] sm:$0xff] %v244_v5  ;;  %v248_v7 = vld [vmem:[%s1384_s26 + $0x188] sm:$0xff]  ;;  %v250_v8 = vld [vmem:[%s1384_s26 + $0x1c0] sm:$0xff] }
  0x13   : > { %247 = vst [vmem:[%s169_s27 + $0x30] sm:$0xff] %v246_v6  ;;  %249 = vst [vmem:[%s169_s27 + $0x38] sm:$0xff] %v248_v7  ;;  %v252_v9 = vld [vmem:[%s1384_s26 + $0x1f8] sm:$0xff]  ;;  %v254_v10 = vld [vmem:[%s1384_s26 + $0x230] sm:$0xff] }
  0x14   : > { %251 = vst [vmem:[%s169_s27 + $0x40] sm:$0xff] %v250_v8  ;;  %v256_v11 = vld [vmem:[%s1384_s26 + $0x268] sm:$0xff]  ;;  %253 = vst [vmem:[%s169_s27 + $0x48] sm:$0xff] %v252_v9  ;;  %v258_v12 = vld [vmem:[%s1384_s26 + $0x2a0] sm:$0xff] }
  0x15   : > { %255 = vst [vmem:[%s169_s27 + $0x50] sm:$0xff] %v254_v10  ;;  %257 = vst [vmem:[%s169_s27 + $0x58] sm:$0xff] %v256_v11  ;;  %v260_v13 = vld [vmem:[%s1384_s26 + $0x2d8] sm:$0xff]  ;;  %v262_v14 = vld [vmem:[%s1384_s26 + $0x310] sm:$0xff] }
  0x16   : > { %259 = vst [vmem:[%s169_s27 + $0x60] sm:$0xff] %v258_v12  ;;  %261 = vst [vmem:[%s169_s27 + $0x68] sm:$0xff] %v260_v13  ;;  %v264_v15 = vld [vmem:[%s1384_s26 + $0x348] sm:$0xff] }
  0x17   : > { %263 = vst [vmem:[%s169_s27 + $0x70] sm:$0xff] %v262_v14  ;;  %265 = vst [vmem:[%s169_s27 + $0x78] sm:$0xff] %v264_v15 }
  0x18 PF: > { %p996_p6 = scmp.ge.s32.totalorder %s1318_s16, 1  ;;  %p282_p7 = scmp.lt.s32.totalorder %s1318_s16, 8 }
  0x1a   : > { %p283_p8 = pnand %p996_p6, %p282_p7 }
  0x1b   : > { %s289_s28 = sand.u32 (!%p283_p8), 1, %s1302_s12   ;;  %s998_s29 = sshll.u32 (!%p283_p8), %s1310_s14, 5 }
  0x1c   : > { %286 = sbr.rel (%p283_p8) target bundleno = 324 (0x144), region = 66  ;;  %s997_s30 = sshll.u32 (!%p283_p8), %s289_s28, 7 }
  0x1d   : > { %p329_p9 = scmp.lt.s32.totalorder (!%p283_p8), %s998_s29, 223  ;;  %s1411_s8 = scalar_lea.vmem (!%p283_p8), [#allocation3], %s997_s30 }
  0x1e   : > { %p1000_p10 = scmp.ne.s32.totalorder (!%p283_p8), %s1310_s14, 0 }
  0x21   : > { %s1500_s29 = smov (!%p329_p9, %s998_s29), 223  ;;  %353 = sbr.rel (%p1000_p10) target bundleno = 47 (0x2f), region = 74 }
  0x22   : > { %s999_s4 = sshll.u32 %s1500_s29, 2 }
  0x23   : > { %s1409_s7 = scalar_lea.vmem %s1490_s1, %s999_s4 }
  0x26   : > { %v1320_v16 = vmov 0.0  }
  0x27   : > { %354 = vst [vmem:[#allocation2 + $0x30] sm:$0xff] %v1320_v16  ;;  %355 = vst [vmem:[#allocation2] sm:$0xff] %v1320_v16 }
  0x28   : > { %356 = vst [vmem:[#allocation2 + $0x58] sm:$0xff] %v1320_v16  ;;  %357 = vst [vmem:[#allocation2 + $0x18] sm:$0xff] %v1320_v16 }
  0x29   : > { %358 = vst [vmem:[#allocation2 + $0x50] sm:$0xff] %v1320_v16  ;;  %359 = vst [vmem:[#allocation2 + $0x68] sm:$0xff] %v1320_v16 }
  0x2a   : > { %360 = vst [vmem:[#allocation2 + $0x8] sm:$0xff] %v1320_v16  ;;  %361 = vst [vmem:[#allocation2 + $0x48] sm:$0xff] %v1320_v16 }
  0x2b   : > { %362 = vst [vmem:[#allocation2 + $0x40] sm:$0xff] %v1320_v16  ;;  %363 = vst [vmem:[#allocation2 + $0x20] sm:$0xff] %v1320_v16 }
  0x2c   : > { %364 = vst [vmem:[#allocation2 + $0x10] sm:$0xff] %v1320_v16  ;;  %365 = vst [vmem:[#allocation2 + $0x38] sm:$0xff] %v1320_v16 }
  0x2d   : > { %366 = vst [vmem:[#allocation2 + $0x60] sm:$0xff] %v1320_v16  ;;  %367 = vst [vmem:[#allocation2 + $0x70] sm:$0xff] %v1320_v16 }
  0x2e   : > { %368 = vst [vmem:[#allocation2 + $0x78] sm:$0xff] %v1320_v16  ;;  %369 = vst [vmem:[#allocation2 + $0x28] sm:$0xff] %v1320_v16 }
  0x2f PF: > { %v1240_v17 = vld [vmem:[%s1409_s7 + $0x78] sm:$0xff]   ;;  %v1242_v19 = vld [vmem:[%s1409_s7 + $0x70] sm:$0xff]   ;;  %v1244_v21 = vld [vmem:[%s1409_s7 + $0x68] sm:$0xff]   ;;  %p1033_p11 = scmp.ne.s32.totalorder %s1310_s14, 6 }
  0x30   : > { %v1241_v18 = vld [vmem:[%s1409_s7 + $0x38] sm:$0xff]   ;;  %1119 = vmatprep.subr.bf16.mxu0 %v1240_v17  ;;  %1183 = vmatprep.subr.bf16.mxu1 %v1240_v17  ;;  %v1243_v20 = vld [vmem:[%s1409_s7 + $0x30] sm:$0xff]   ;;  %v1245_v22 = vld [vmem:[%s1409_s7 + $0x28] sm:$0xff]  }
  0x31   : > { %1120 = vmatpush3.bf16.msra.mxu0 %v1241_v18  ;;  %1191 = vmatpush3.bf16.msra.mxu1 %v1241_v18  ;;  %v1246_v23 = vld [vmem:[%s1409_s7 + $0x60] sm:$0xff]   ;;  %v1248_v25 = vld [vmem:[%s1409_s7 + $0x58] sm:$0xff]   ;;  %v1250_v27 = vld [vmem:[%s1409_s7 + $0x50] sm:$0xff]  }
  0x32   : > { %1121 = vmatprep.subr.bf16.mxu0 %v1242_v19  ;;  %1184 = vmatprep.subr.bf16.mxu1 %v1242_v19  ;;  %v1247_v24 = vld [vmem:[%s1409_s7 + $0x20] sm:$0xff]   ;;  %v1249_v26 = vld [vmem:[%s1409_s7 + $0x18] sm:$0xff]   ;;  %v1251_v30 = vld [vmem:[%s1409_s7 + $0x10] sm:$0xff]  }
  0x33   : > { %v1258_v28 = vld [vmem:[%s1411_s8 + $0x4] ss:$8 sps:$4 sm:$0xff]   ;;  %v1256_v35 = vld [vmem:[%s1411_s8] ss:$8 sps:$4 sm:$0xff]   ;;  %v1262_v37 = vld [vmem:[%s1411_s8 + $0x14] ss:$8 sps:$4 sm:$0xff]  }
  0x34   : > { %v1261_v29 = vld [vmem:[%s1411_s8 + $0x44] ss:$8 sps:$4 sm:$0xff]   ;;  %642 = vmatprep.mubr.bf16.mxu0 %v1258_v28  ;;  %v1259_v36 = vld [vmem:[%s1411_s8 + $0x40] ss:$8 sps:$4 sm:$0xff]   ;;  %v1264_v38 = vld [vmem:[%s1411_s8 + $0x54] ss:$8 sps:$4 sm:$0xff]  }
  0x35   : > { %1122 = vmatpush3.bf16.msra.mxu0 %v1243_v20  ;;  %1192 = vmatpush3.bf16.msra.mxu1 %v1243_v20  ;;  %v1252_v31 = vld [vmem:[%s1409_s7 + $0x48] sm:$0xff]   ;;  %v1254_v33 = vld [vmem:[%s1409_s7 + $0x40] sm:$0xff]   ;;  %v1266_v39 = vld [vmem:[%s1411_s8 + $0x10] ss:$8 sps:$4 sm:$0xff]  }
  0x36   : > { %1123 = vmatprep.subr.bf16.mxu0 %v1244_v21  ;;  %1185 = vmatprep.subr.bf16.mxu1 %v1244_v21  ;;  %v1253_v32 = vld [vmem:[%s1409_s7 + $0x8] sm:$0xff]   ;;  %v1255_v34 = vld [vmem:[%s1409_s7] sm:$0xff]   ;;  %v1267_v40 = vld [vmem:[%s1411_s8 + $0x50] ss:$8 sps:$4 sm:$0xff]  }
  0x37   : > { %674 = vmatprep.mubr.bf16.mxu1 %v1261_v29  ;;  %v1268_v41 = vld [vmem:[%s1411_s8 + $0x24] ss:$8 sps:$4 sm:$0xff]   ;;  %v1272_v43 = vld [vmem:[%s1411_s8 + $0x20] ss:$8 sps:$4 sm:$0xff]   ;;  %v1274_v45 = vld [vmem:[%s1411_s8 + $0x34] ss:$8 sps:$4 sm:$0xff]  }
  0x38   : > { %v1270_v42 = vld [vmem:[%s1411_s8 + $0x64] ss:$8 sps:$4 sm:$0xff]   ;;  %v1273_v44 = vld [vmem:[%s1411_s8 + $0x60] ss:$8 sps:$4 sm:$0xff]   ;;  %v1276_v46 = vld [vmem:[%s1411_s8 + $0x74] ss:$8 sps:$4 sm:$0xff]  }
  0x39   : > { %1124 = vmatpush3.bf16.msra.mxu0 %v1245_v22  ;;  %1193 = vmatpush3.bf16.msra.mxu1 %v1245_v22  ;;  %v1278_v47 = vld [vmem:[%s1411_s8 + $0x30] ss:$8 sps:$4 sm:$0xff]   ;;  %v378_v53 = vld [vmem:[#allocation2 + $0x40] sm:$0xff] }
  0x3a   : > { %1125 = vmatprep.subr.bf16.mxu0 %v1246_v23  ;;  %1186 = vmatprep.subr.bf16.mxu1 %v1246_v23  ;;  %v1279_v48 = vld [vmem:[%s1411_s8 + $0x70] ss:$8 sps:$4 sm:$0xff]   ;;  %v371_v61 = vld [vmem:[#allocation2] sm:$0xff] }
  0x3b   : > { %v370_v51 = vld [vmem:[#allocation2 + $0x30] sm:$0xff]  ;;  %v379_v63 = vld [vmem:[#allocation2 + $0x20] sm:$0xff]  ;;  %v372_v7 = vld [vmem:[#allocation2 + $0x58] sm:$0xff] }
  0x3c   : > { %v380_v9 = vld [vmem:[#allocation2 + $0x10] sm:$0xff]  ;;  %v373_v17 = vld [vmem:[#allocation2 + $0x18] sm:$0xff]  ;;  %v382_v29 = vld [vmem:[#allocation2 + $0x60] sm:$0xff] }
  0x3d   : > { %1126 = vmatpush3.bf16.msra.mxu0 %v1247_v24  ;;  %1194 = vmatpush3.bf16.msra.mxu1 %v1247_v24  ;;  %v381_v19 = vld [vmem:[#allocation2 + $0x38] sm:$0xff] }
  0x3e   : > { %1127 = vmatprep.subr.bf16.mxu0 %v1248_v25  ;;  %1187 = vmatprep.subr.bf16.mxu1 %v1248_v25 }
  0x41   : > { %1128 = vmatpush3.bf16.msra.mxu0 %v1249_v26  ;;  %1195 = vmatpush3.bf16.msra.mxu1 %v1249_v26 }
  0x42   : > { %1129 = vmatprep.subr.bf16.mxu0 %v1250_v27  ;;  %1188 = vmatprep.subr.bf16.mxu1 %v1250_v27  ;;  %v374_v27 = vld [vmem:[#allocation2 + $0x50] sm:$0xff] }
  0x45   : > { %1130 = vmatpush3.bf16.msra.mxu0 %v1251_v30  ;;  %1196 = vmatpush3.bf16.msra.mxu1 %v1251_v30 }
  0x46   : > { %1131 = vmatprep.subr.bf16.mxu0 %v1252_v31  ;;  %1189 = vmatprep.subr.bf16.mxu1 %v1252_v31 }
  0x49   : > { %1132 = vmatpush3.bf16.msra.mxu0 %v1253_v32  ;;  %1197 = vmatpush3.bf16.msra.mxu1 %v1253_v32 }
  0x4a   : > { %1133 = vmatprep.subr.bf16.mxu0 %v1254_v33  ;;  %1190 = vmatprep.subr.bf16.mxu1 %v1254_v33 }
  0x4d   : > { %1134 = vmatpush3.bf16.msra.mxu0 %v1255_v34  ;;  %1198 = vmatpush3.bf16.msra.mxu1 %v1255_v34 }
  0x50   : > { %643 = vmatmul.mubr.bf16.vlgmr.msra.gmra.mxu0 %v1256_v35  ;;  %675 = vmatmul.mubr.bf16.vlgmr.msra.gmra.mxu1 %v1259_v36 }
  0x51   : > { %650 = vmatprep.mubr.bf16.mxu0 %v1262_v37  ;;  %682 = vmatprep.mubr.bf16.mxu1 %v1264_v38  ;;  %v375_v37 = vld [vmem:[#allocation2 + $0x68] sm:$0xff] }
  0x58   : > { %651 = vmatmul.mubr.bf16.gmra.mxu0 %v1266_v39  ;;  %683 = vmatmul.mubr.bf16.gmra.mxu1 %v1267_v40  ;;  %v383_v39 = vld [vmem:[#allocation2 + $0x70] sm:$0xff] }
  0x59   : > { %658 = vmatprep.mubr.bf16.mxu0 %v1268_v41  ;;  %690 = vmatprep.mubr.bf16.mxu1 %v1270_v42 }
  0x60   : > { %659 = vmatmul.mubr.bf16.gmra.mxu0 %v1272_v43  ;;  %691 = vmatmul.mubr.bf16.gmra.mxu1 %v1273_v44 }
  0x61   : > { %666 = vmatprep.mubr.bf16.mxu0 %v1274_v45  ;;  %698 = vmatprep.mubr.bf16.mxu1 %v1276_v46 }
  0x68   : > { %667 = vmatmul.mubr.bf16.gmra.mxu0 %v1278_v47  ;;  %699 = vmatmul.mubr.bf16.gmra.mxu1 %v1279_v48  ;;  %v376_v47 = vld [vmem:[#allocation2 + $0x8] sm:$0xff] }
 0x110   : > { %v1135_v49 = vpop.f32.mrf.mxu0  ;;  %v1159_v50 = vpop.f32.mrf.mxu1 }
 0x112   : > { %v1136_v52 = vpop.f32.mrf.mxu0  ;;  %v1160_v54 = vpop.f32.mrf.mxu1 }
 0x113   : > { %v1137_v55 = vadd.f32 %v1136_v52, %v1135_v49  ;;  %v1161_v56 = vadd.f32 %v1160_v54, %v1159_v50  ;;  %v384_v49 = vld [vmem:[#allocation2 + $0x78] sm:$0xff] }
 0x114   : > { %v1138_v57 = vpop.f32.mrf.mxu0  ;;  %v1162_v58 = vpop.f32.mrf.mxu1 }
 0x115   : > { %v707_v59 = vadd.f32 %v1137_v55, %v370_v51  ;;  %v715_v60 = vadd.f32 %v1161_v56, %v378_v53 }
 0x116   : > { %v1139_v62 = vpop.f32.mrf.mxu0  ;;  %v1163_v0 = vpop.f32.mrf.mxu1 }
 0x117   : > { %723 = vst [vmem:[#allocation2 + $0x30] sm:$0xff] %v707_v59  ;;  %731 = vst [vmem:[#allocation2 + $0x40] sm:$0xff] %v715_v60  ;;  %v1140_v1 = vadd.f32 %v1139_v62, %v1138_v57  ;;  %v1164_v2 = vadd.f32 %v1163_v0, %v1162_v58  ;;  %v377_v57 = vld [vmem:[#allocation2 + $0x48] sm:$0xff] }
 0x118   : > { %v1141_v3 = vpop.f32.mrf.mxu0  ;;  %v1165_v4 = vpop.f32.mrf.mxu1  ;;  %v385_v59 = vld [vmem:[#allocation2 + $0x28] sm:$0xff] }
 0x119   : > { %v708_v5 = vadd.f32 %v1140_v1, %v371_v61  ;;  %v716_v6 = vadd.f32 %v1164_v2, %v379_v63 }
 0x11a   : > { %v1142_v8 = vpop.f32.mrf.mxu0  ;;  %v1166_v10 = vpop.f32.mrf.mxu1 }
 0x11b   : > { %724 = vst [vmem:[#allocation2] sm:$0xff] %v708_v5  ;;  %732 = vst [vmem:[#allocation2 + $0x20] sm:$0xff] %v716_v6  ;;  %v1143_v11 = vadd.f32 %v1142_v8, %v1141_v3  ;;  %v1167_v12 = vadd.f32 %v1166_v10, %v1165_v4 }
 0x11c   : > { %v1144_v13 = vpop.f32.mrf.mxu0  ;;  %v1168_v14 = vpop.f32.mrf.mxu1 }
 0x11d   : > { %v709_v15 = vadd.f32 %v1143_v11, %v372_v7  ;;  %v717_v16 = vadd.f32 %v1167_v12, %v380_v9 }
 0x11e   : > { %v1145_v18 = vpop.f32.mrf.mxu0  ;;  %v1169_v20 = vpop.f32.mrf.mxu1 }
 0x11f   : > { %725 = vst [vmem:[#allocation2 + $0x58] sm:$0xff] %v709_v15  ;;  %733 = vst [vmem:[#allocation2 + $0x10] sm:$0xff] %v717_v16  ;;  %v1146_v21 = vadd.f32 %v1145_v18, %v1144_v13  ;;  %v1170_v22 = vadd.f32 %v1169_v20, %v1168_v14 }
 0x120   : > { %v1147_v23 = vpop.f32.mrf.mxu0  ;;  %v1171_v24 = vpop.f32.mrf.mxu1 }
 0x121   : > { %v710_v25 = vadd.f32 %v1146_v21, %v373_v17  ;;  %v718_v26 = vadd.f32 %v1170_v22, %v381_v19 }
 0x122   : > { %v1148_v28 = vpop.f32.mrf.mxu0  ;;  %v1172_v30 = vpop.f32.mrf.mxu1 }
 0x123   : > { %726 = vst [vmem:[#allocation2 + $0x18] sm:$0xff] %v710_v25  ;;  %734 = vst [vmem:[#allocation2 + $0x38] sm:$0xff] %v718_v26  ;;  %v1149_v31 = vadd.f32 %v1148_v28, %v1147_v23  ;;  %v1173_v32 = vadd.f32 %v1172_v30, %v1171_v24 }
 0x124   : > { %v1150_v33 = vpop.f32.mrf.mxu0  ;;  %v1174_v34 = vpop.f32.mrf.mxu1 }
 0x125   : > { %v711_v35 = vadd.f32 %v1149_v31, %v374_v27  ;;  %v719_v36 = vadd.f32 %v1173_v32, %v382_v29 }
 0x126   : > { %v1151_v38 = vpop.f32.mrf.mxu0  ;;  %v1175_v40 = vpop.f32.mrf.mxu1 }
 0x127   : > { %727 = vst [vmem:[#allocation2 + $0x50] sm:$0xff] %v711_v35  ;;  %735 = vst [vmem:[#allocation2 + $0x60] sm:$0xff] %v719_v36  ;;  %v1152_v41 = vadd.f32 %v1151_v38, %v1150_v33  ;;  %v1176_v42 = vadd.f32 %v1175_v40, %v1174_v34 }
 0x128   : > { %v1153_v43 = vpop.f32.mrf.mxu0  ;;  %v1177_v44 = vpop.f32.mrf.mxu1 }
 0x129   : > { %v712_v45 = vadd.f32 %v1152_v41, %v375_v37  ;;  %v720_v46 = vadd.f32 %v1176_v42, %v383_v39 }
 0x12a   : > { %v1154_v48 = vpop.f32.mrf.mxu0  ;;  %v1178_v50 = vpop.f32.mrf.mxu1 }
 0x12b   : > { %728 = vst [vmem:[#allocation2 + $0x68] sm:$0xff] %v712_v45  ;;  %736 = vst [vmem:[#allocation2 + $0x70] sm:$0xff] %v720_v46  ;;  %v1155_v51 = vadd.f32 %v1154_v48, %v1153_v43  ;;  %v1179_v52 = vadd.f32 %v1178_v50, %v1177_v44 }
 0x12c   : > { %v1156_v53 = vpop.f32.mrf.mxu0  ;;  %v1180_v54 = vpop.f32.mrf.mxu1 }
 0x12d   : > { %v713_v55 = vadd.f32 %v1155_v51, %v376_v47  ;;  %v721_v56 = vadd.f32 %v1179_v52, %v384_v49 }
 0x12e   : > { %v1157_v58 = vpop.f32.mrf.mxu0  ;;  %v1181_v60 = vpop.f32.mrf.mxu1 }
 0x12f   : > { %729 = vst [vmem:[#allocation2 + $0x8] sm:$0xff] %v713_v55  ;;  %737 = vst [vmem:[#allocation2 + $0x78] sm:$0xff] %v721_v56  ;;  %v1158_v61 = vadd.f32 %v1157_v58, %v1156_v53  ;;  %v1182_v62 = vadd.f32 %v1181_v60, %v1180_v54  ;;  %742 = sbr.rel (%p1033_p11) target bundleno = 324 (0x144), region = 78 }
 0x131   : > { %v714_v63 = vadd.f32 %v1158_v61, %v377_v57  ;;  %v722_v0 = vadd.f32 %v1182_v62, %v385_v59 }
 0x133   : > { %730 = vst [vmem:[#allocation2 + $0x48] sm:$0xff] %v714_v63  ;;  %738 = vst [vmem:[#allocation2 + $0x28] sm:$0xff] %v722_v0 }
 0x134   : > { %v743_v1 = vld [vmem:[#allocation2 + $0x30] sm:$0xff]  ;;  %v744_v2 = vld [vmem:[#allocation2] sm:$0xff]  ;;  %v745_v6 = vld [vmem:[#allocation2 + $0x58] sm:$0xff] }
 0x135   : > { %v1034_v3 = vld [vmem:[%s1491_s2] ss:$0 sm:$0xff]  ;;  %v746_v7 = vld [vmem:[#allocation2 + $0x18] sm:$0xff]  ;;  %v747_v8 = vld [vmem:[#allocation2 + $0x50] sm:$0xff] }
 0x136   : > { %v766_v4 = vadd.f32 %v1034_v3, %v743_v1  ;;  %v767_v5 = vadd.f32 %v1034_v3, %v744_v2  ;;  %v768_v9 = vadd.f32 %v1034_v3, %v745_v6  ;;  %v769_v10 = vadd.f32 %v1034_v3, %v746_v7  ;;  %v748_v11 = vld [vmem:[#allocation2 + $0x68] sm:$0xff]  ;;  %v751_v19 = vld [vmem:[#allocation2 + $0x40] sm:$0xff]  ;;  %v753_v21 = vld [vmem:[#allocation2 + $0x10] sm:$0xff] }
 0x137   : > { %v770_v12 = vadd.f32 %v1034_v3, %v747_v8  ;;  %v749_v13 = vld [vmem:[#allocation2 + $0x8] sm:$0xff]  ;;  %v771_v17 = vadd.f32 %v1034_v3, %v748_v11  ;;  %v752_v20 = vld [vmem:[#allocation2 + $0x20] sm:$0xff]  ;;  %v754_v26 = vld [vmem:[#allocation2 + $0x38] sm:$0xff]  ;;  %v774_v31 = vadd.f32 %v1034_v3, %v751_v19  ;;  %v776_v36 = vadd.f32 %v1034_v3, %v753_v21 }
 0x138   : > { %v782_v15 = vmax.f32 %v766_v4, 0.0  ;;  %v783_v16 = vmax.f32 %v767_v5, 0.0  ;;  %v772_v18 = vadd.f32 %v1034_v3, %v749_v13  ;;  %v784_v22 = vmax.f32 %v768_v9, 0.0  ;;  %v755_v27 = vld [vmem:[#allocation2 + $0x60] sm:$0xff]  ;;  %v756_v32 = vld [vmem:[#allocation2 + $0x70] sm:$0xff]  ;;  %v757_v37 = vld [vmem:[#allocation2 + $0x78] sm:$0xff] }
 0x139   : > { %v785_v23 = vmax.f32 %v769_v10, 0.0  ;;  %v786_v24 = vmax.f32 %v770_v12, 0.0  ;;  %v787_v29 = vmax.f32 %v771_v17, 0.0  ;;  %v775_v35 = vadd.f32 %v1034_v3, %v752_v20 }
 0x13a   : > { %v750_v14 = vld [vmem:[#allocation2 + $0x48] sm:$0xff]  ;;  %v1075_v28 = vpack.c.bf16 %v783_v16, %v782_v15  ;;  %v788_v30 = vmax.f32 %v772_v18, 0.0  ;;  %v790_v40 = vmax.f32 %v774_v31, 0.0  ;;  %v777_v41 = vadd.f32 %v1034_v3, %v754_v26 }
 0x13b   : > { %v773_v25 = vadd.f32 %v1034_v3, %v750_v14  ;;  %v1080_v33 = vpack.c.bf16 %v785_v23, %v784_v22  ;;  %v758_v38 = vld [vmem:[#allocation2 + $0x28] sm:$0xff]  ;;  %v1085_v39 = vpack.c.bf16 %v787_v29, %v786_v24  ;;  %v778_v42 = vadd.f32 %v1034_v3, %v755_v27 }
 0x13c   : > { %1076 = vst [vmem:[%s1492_s3] sm:$0xff] %v1075_v28   ;;  %v791_v44 = vmax.f32 %v775_v35, 0.0  ;;  %v792_v45 = vmax.f32 %v776_v36, 0.0  ;;  %v779_v46 = vadd.f32 %v1034_v3, %v756_v32  ;;  %v793_v47 = vmax.f32 %v777_v41, 0.0 }
 0x13d   : > { %v789_v34 = vmax.f32 %v773_v25, 0.0  ;;  %1112 = vst [vmem:[%s1492_s3 + $0x8] sm:$0xff] %v1080_v33   ;;  %1113 = vst [vmem:[%s1492_s3 + $0x10] sm:$0xff] %v1085_v39   ;;  %v794_v48 = vmax.f32 %v778_v42, 0.0  ;;  %v780_v49 = vadd.f32 %v1034_v3, %v757_v37  ;;  %v781_v50 = vadd.f32 %v1034_v3, %v758_v38 }
 0x13e   : > { %v1095_v51 = vpack.c.bf16 %v791_v44, %v790_v40  ;;  %v795_v52 = vmax.f32 %v779_v46, 0.0  ;;  %v1100_v53 = vpack.c.bf16 %v793_v47, %v792_v45 }
 0x13f   : > { %v1090_v43 = vpack.c.bf16 %v789_v34, %v788_v30  ;;  %v796_v54 = vmax.f32 %v780_v49, 0.0  ;;  %v797_v55 = vmax.f32 %v781_v50, 0.0 }
 0x140   : > { %1115 = vst [vmem:[%s1492_s3 + $0x20] sm:$0xff] %v1095_v51   ;;  %v1105_v56 = vpack.c.bf16 %v795_v52, %v794_v48  ;;  %1116 = vst [vmem:[%s1492_s3 + $0x28] sm:$0xff] %v1100_v53  }
 0x141   : > { %1114 = vst [vmem:[%s1492_s3 + $0x18] sm:$0xff] %v1090_v43   ;;  %v1110_v57 = vpack.c.bf16 %v797_v55, %v796_v54 }
 0x142   : > { %1117 = vst [vmem:[%s1492_s3 + $0x30] sm:$0xff] %v1105_v56  }
 0x143   : > { %1118 = vst [vmem:[%s1492_s3 + $0x38] sm:$0xff] %v1110_v57  }
 0x144 PF: > { %s13_s16 = sadd.s32 1, %s1318_s16   ;;  %s1493_s12 = smov %s1306_s13 }
 0x145   : > { %p10_p12 = scmp.ge.s32.totalorder %s13_s16, 9   ;;  %s1494_s13 = smov %s1376_s20 }
 0x146   : > { %s1495_s14 = smov %s1314_s15  ;;  %s1496_s15 = smov %s1498_s17 }
 0x147   :  { %12 = sbr.rel (!%p10_p12) target bundleno = 3 (0x3), region = 119 }

// kernel: forward.13
= control target key start
LH: loop header
LB: loop body
LE: loop exit
PB: predicated region body
PF: predicated region fallthrough
CT: control target
= control target key end

     0   :  { %s1512_s15 = smov 0   ;;  %s1514_s16 = smov 0   ;;  %s1702_s0 = inlined_call_operand.vmem [shape: bf16[128,1792], index: 0, kind: input, shape index: {}]   ;;  %s1703_s1 = inlined_call_operand.vmem [shape: bf16[1792,128], index: 1, kind: input, shape index: {}]   ;;  %s1704_s2 = inlined_call_operand.vmem [shape: f32[1,128], index: 2, kind: input, shape index: {}]   ;;  %s1705_s3 = inlined_call_operand.vmem [shape: bf16[128,128], index: 3, kind: input, shape index: {}]   ;;  %s1706_s4 = inlined_call_operand.vmem [shape: bf16[128,128], index: 4, kind: output, shape index: {}]  }
   0x1   :  { %s1516_s17 = smov 0   ;;  %s1518_s18 = smov 0  }
   0x2   :  { %s1520_s19 = smov 0  }
   0x3 LB: > { %s26_s20 = sadd.s32 1, %s1480_s18  ;;  %p49_p1 = scmp.ne.s32.totalorder %s1472_s16, %s1468_s15  ;;  %s1484_s19 = sphi %s1520_s19, %s14_s19   ;;  %s1480_s18 = sphi %s1518_s18, %s1710_s18   ;;  %s1476_s17 = sphi %s1516_s17, %s1709_s17   ;;  %s1472_s16 = sphi %s1514_s16, %s1708_s16   ;;  %s1468_s15 = sphi %s1512_s15, %s1707_s15  }
   0x4   : > { %p27_p0 = scmp.ge.s32.totalorder %s26_s20, 7  ;;  %p50_p2 = scmp.eq.s32.totalorder %s1484_s19, 0 }
   0x5   : > { %s42_s22 = sadd.s32 1, %s1472_s16  ;;  %p1119_p5 = scmp.ge.s32.totalorder %s1484_s19, 7 }
   0x6   : > { %s1712_s20 = smov (%p27_p0, %s26_s20), 0  ;;  %p51_p3 = por %p50_p2, %p49_p1 }
   0x7   : > { %s38_s21 = ssub.s32 %s1480_s18, %s1712_s20  ;;  %203 = sbr.rel (%p1119_p5) target bundleno = 24 (0x18), region = 24 }
   0x8   : > { %p40_p4 = scmp.eq.s32.totalorder %s38_s21, 0 }
   0xa   : > { %s1547_s23 = scalar_select %p40_p4, %s1472_s16, %s42_s22  }
   0xc   : > { %206 = sbr.rel (!%p51_p3) target bundleno = 24 (0x18), region = 28  ;;  %s208_s24 = sand.u32 (%p51_p3), 1, %s1472_s16  }
   0xd   : > { %s1182_s25 = sshll.u32 (%p51_p3), %s1480_s18, 3  ;;  %s1120_s26 = sshll.u32 (%p51_p3), %s208_s24, 7 }
   0xe   : > { %s1555_s29 = scalar_lea.vmem (%p51_p3), %s1702_s0, %s1182_s25  ;;  %s210_s30 = scalar_lea.vmem (%p51_p3), [#allocation3], %s1120_s26 }
   0xf   : > { %v275_v0 = vld [vmem:[%s1555_s29] sm:$0xff] (%p51_p3)  ;;  %v277_v1 = vld [vmem:[%s1555_s29 + $0x38] sm:$0xff] (%p51_p3)  ;;  %v279_v2 = vld [vmem:[%s1555_s29 + $0x70] sm:$0xff] (%p51_p3) }
  0x10   : > { %276 = vst [vmem:[%s210_s30] sm:$0xff] (%p51_p3), %v275_v0  ;;  %278 = vst [vmem:[%s210_s30 + $0x8] sm:$0xff] (%p51_p3), %v277_v1  ;;  %v281_v3 = vld [vmem:[%s1555_s29 + $0xa8] sm:$0xff] (%p51_p3)  ;;  %v283_v4 = vld [vmem:[%s1555_s29 + $0xe0] sm:$0xff] (%p51_p3) }
  0x11   : > { %280 = vst [vmem:[%s210_s30 + $0x10] sm:$0xff] %v279_v2  ;;  %v285_v5 = vld [vmem:[%s1555_s29 + $0x118] sm:$0xff]  ;;  %282 = vst [vmem:[%s210_s30 + $0x18] sm:$0xff] %v281_v3  ;;  %v287_v6 = vld [vmem:[%s1555_s29 + $0x150] sm:$0xff] }
  0x12   : > { %284 = vst [vmem:[%s210_s30 + $0x20] sm:$0xff] %v283_v4  ;;  %286 = vst [vmem:[%s210_s30 + $0x28] sm:$0xff] %v285_v5  ;;  %v289_v7 = vld [vmem:[%s1555_s29 + $0x188] sm:$0xff]  ;;  %v291_v8 = vld [vmem:[%s1555_s29 + $0x1c0] sm:$0xff] }
  0x13   : > { %288 = vst [vmem:[%s210_s30 + $0x30] sm:$0xff] %v287_v6  ;;  %290 = vst [vmem:[%s210_s30 + $0x38] sm:$0xff] %v289_v7  ;;  %v293_v9 = vld [vmem:[%s1555_s29 + $0x1f8] sm:$0xff]  ;;  %v295_v10 = vld [vmem:[%s1555_s29 + $0x230] sm:$0xff] }
  0x14   : > { %292 = vst [vmem:[%s210_s30 + $0x40] sm:$0xff] %v291_v8  ;;  %v297_v11 = vld [vmem:[%s1555_s29 + $0x268] sm:$0xff]  ;;  %294 = vst [vmem:[%s210_s30 + $0x48] sm:$0xff] %v293_v9  ;;  %v299_v12 = vld [vmem:[%s1555_s29 + $0x2a0] sm:$0xff] }
  0x15   : > { %296 = vst [vmem:[%s210_s30 + $0x50] sm:$0xff] %v295_v10  ;;  %298 = vst [vmem:[%s210_s30 + $0x58] sm:$0xff] %v297_v11  ;;  %v301_v13 = vld [vmem:[%s1555_s29 + $0x2d8] sm:$0xff]  ;;  %v303_v14 = vld [vmem:[%s1555_s29 + $0x310] sm:$0xff] }
  0x16   : > { %300 = vst [vmem:[%s210_s30 + $0x60] sm:$0xff] %v299_v12  ;;  %302 = vst [vmem:[%s210_s30 + $0x68] sm:$0xff] %v301_v13  ;;  %v305_v15 = vld [vmem:[%s1555_s29 + $0x348] sm:$0xff] }
  0x17   : > { %304 = vst [vmem:[%s210_s30 + $0x70] sm:$0xff] %v303_v14  ;;  %306 = vst [vmem:[%s210_s30 + $0x78] sm:$0xff] %v305_v15 }
  0x18 PF: > { %p1123_p6 = scmp.ge.s32.totalorder %s1484_s19, 1  ;;  %p323_p7 = scmp.lt.s32.totalorder %s1484_s19, 8 }
  0x1a   : > { %p324_p8 = pnand %p1123_p6, %p323_p7 }
  0x1b   : > { %s330_s5 = sand.u32 (!%p324_p8), 1, %s1468_s15   ;;  %s1125_s6 = sshll.u32 (!%p324_p8), %s1476_s17, 5 }
  0x1c   : > { %327 = sbr.rel (%p324_p8) target bundleno = 334 (0x14e), region = 70  ;;  %s1124_s7 = sshll.u32 (!%p324_p8), %s330_s5, 7 }
  0x1d   : > { %p380_p9 = scmp.lt.s32.totalorder (!%p324_p8), %s1125_s6, 223  ;;  %s1582_s12 = scalar_lea.vmem (!%p324_p8), [#allocation3], %s1124_s7 }
  0x1e   : > { %p1127_p10 = scmp.ne.s32.totalorder (!%p324_p8), %s1476_s17, 0 }
  0x21   : > { %s1714_s6 = smov (!%p380_p9, %s1125_s6), 223  ;;  %413 = sbr.rel (%p1127_p10) target bundleno = 47 (0x2f), region = 78 }
  0x22   : > { %s1126_s8 = sshll.u32 %s1714_s6, 2 }
  0x23   : > { %s1580_s11 = scalar_lea.vmem %s1703_s1, %s1126_s8 }
  0x26   : > { %v1486_v16 = vmov 0.0  }
  0x27   : > { %414 = vst [vmem:[#allocation2 + $0x30] sm:$0xff] %v1486_v16  ;;  %415 = vst [vmem:[#allocation2] sm:$0xff] %v1486_v16 }
  0x28   : > { %416 = vst [vmem:[#allocation2 + $0x58] sm:$0xff] %v1486_v16  ;;  %417 = vst [vmem:[#allocation2 + $0x18] sm:$0xff] %v1486_v16 }
  0x29   : > { %418 = vst [vmem:[#allocation2 + $0x50] sm:$0xff] %v1486_v16  ;;  %419 = vst [vmem:[#allocation2 + $0x68] sm:$0xff] %v1486_v16 }
  0x2a   : > { %420 = vst [vmem:[#allocation2 + $0x8] sm:$0xff] %v1486_v16  ;;  %421 = vst [vmem:[#allocation2 + $0x48] sm:$0xff] %v1486_v16 }
  0x2b   : > { %422 = vst [vmem:[#allocation2 + $0x40] sm:$0xff] %v1486_v16  ;;  %423 = vst [vmem:[#allocation2 + $0x20] sm:$0xff] %v1486_v16 }
  0x2c   : > { %424 = vst [vmem:[#allocation2 + $0x10] sm:$0xff] %v1486_v16  ;;  %425 = vst [vmem:[#allocation2 + $0x38] sm:$0xff] %v1486_v16 }
  0x2d   : > { %426 = vst [vmem:[#allocation2 + $0x60] sm:$0xff] %v1486_v16  ;;  %427 = vst [vmem:[#allocation2 + $0x70] sm:$0xff] %v1486_v16 }
  0x2e   : > { %428 = vst [vmem:[#allocation2 + $0x78] sm:$0xff] %v1486_v16  ;;  %429 = vst [vmem:[#allocation2 + $0x28] sm:$0xff] %v1486_v16 }
  0x2f PF: > { %v1406_v17 = vld [vmem:[%s1580_s11 + $0x78] sm:$0xff]   ;;  %v1408_v19 = vld [vmem:[%s1580_s11 + $0x70] sm:$0xff]   ;;  %v1410_v21 = vld [vmem:[%s1580_s11 + $0x68] sm:$0xff]   ;;  %p1160_p11 = scmp.ne.s32.totalorder %s1476_s17, 6 }
  0x30   : > { %v1407_v18 = vld [vmem:[%s1580_s11 + $0x38] sm:$0xff]   ;;  %1285 = vmatprep.subr.bf16.mxu0 %v1406_v17  ;;  %1349 = vmatprep.subr.bf16.mxu1 %v1406_v17  ;;  %v1409_v20 = vld [vmem:[%s1580_s11 + $0x30] sm:$0xff]   ;;  %v1411_v22 = vld [vmem:[%s1580_s11 + $0x28] sm:$0xff]  }
  0x31   : > { %1286 = vmatpush3.bf16.msra.mxu0 %v1407_v18  ;;  %1357 = vmatpush3.bf16.msra.mxu1 %v1407_v18  ;;  %v1412_v23 = vld [vmem:[%s1580_s11 + $0x60] sm:$0xff]   ;;  %v1414_v25 = vld [vmem:[%s1580_s11 + $0x58] sm:$0xff]   ;;  %v1416_v27 = vld [vmem:[%s1580_s11 + $0x50] sm:$0xff]  }
  0x32   : > { %1287 = vmatprep.subr.bf16.mxu0 %v1408_v19  ;;  %1350 = vmatprep.subr.bf16.mxu1 %v1408_v19  ;;  %v1413_v24 = vld [vmem:[%s1580_s11 + $0x20] sm:$0xff]   ;;  %v1415_v26 = vld [vmem:[%s1580_s11 + $0x18] sm:$0xff]   ;;  %v1417_v30 = vld [vmem:[%s1580_s11 + $0x10] sm:$0xff]  }
  0x33   : > { %v1424_v28 = vld [vmem:[%s1582_s12 + $0x4] ss:$8 sps:$4 sm:$0xff]   ;;  %v1422_v35 = vld [vmem:[%s1582_s12] ss:$8 sps:$4 sm:$0xff]   ;;  %v1428_v37 = vld [vmem:[%s1582_s12 + $0x14] ss:$8 sps:$4 sm:$0xff]  }
  0x34   : > { %v1427_v29 = vld [vmem:[%s1582_s12 + $0x44] ss:$8 sps:$4 sm:$0xff]   ;;  %702 = vmatprep.mubr.bf16.mxu0 %v1424_v28  ;;  %v1425_v36 = vld [vmem:[%s1582_s12 + $0x40] ss:$8 sps:$4 sm:$0xff]   ;;  %v1430_v38 = vld [vmem:[%s1582_s12 + $0x54] ss:$8 sps:$4 sm:$0xff]  }
  0x35   : > { %1288 = vmatpush3.bf16.msra.mxu0 %v1409_v20  ;;  %1358 = vmatpush3.bf16.msra.mxu1 %v1409_v20  ;;  %v1418_v31 = vld [vmem:[%s1580_s11 + $0x48] sm:$0xff]   ;;  %v1420_v33 = vld [vmem:[%s1580_s11 + $0x40] sm:$0xff]   ;;  %v1432_v39 = vld [vmem:[%s1582_s12 + $0x10] ss:$8 sps:$4 sm:$0xff]  }
  0x36   : > { %1289 = vmatprep.subr.bf16.mxu0 %v1410_v21  ;;  %1351 = vmatprep.subr.bf16.mxu1 %v1410_v21  ;;  %v1419_v32 = vld [vmem:[%s1580_s11 + $0x8] sm:$0xff]   ;;  %v1421_v34 = vld [vmem:[%s1580_s11] sm:$0xff]   ;;  %v1433_v40 = vld [vmem:[%s1582_s12 + $0x50] ss:$8 sps:$4 sm:$0xff]  }
  0x37   : > { %734 = vmatprep.mubr.bf16.mxu1 %v1427_v29  ;;  %v1434_v41 = vld [vmem:[%s1582_s12 + $0x24] ss:$8 sps:$4 sm:$0xff]   ;;  %v1438_v43 = vld [vmem:[%s1582_s12 + $0x20] ss:$8 sps:$4 sm:$0xff]   ;;  %v1440_v45 = vld [vmem:[%s1582_s12 + $0x34] ss:$8 sps:$4 sm:$0xff]  }
  0x38   : > { %v1436_v42 = vld [vmem:[%s1582_s12 + $0x64] ss:$8 sps:$4 sm:$0xff]   ;;  %v1439_v44 = vld [vmem:[%s1582_s12 + $0x60] ss:$8 sps:$4 sm:$0xff]   ;;  %v1442_v46 = vld [vmem:[%s1582_s12 + $0x74] ss:$8 sps:$4 sm:$0xff]  }
  0x39   : > { %1290 = vmatpush3.bf16.msra.mxu0 %v1411_v22  ;;  %1359 = vmatpush3.bf16.msra.mxu1 %v1411_v22  ;;  %v1444_v47 = vld [vmem:[%s1582_s12 + $0x30] ss:$8 sps:$4 sm:$0xff]   ;;  %v438_v53 = vld [vmem:[#allocation2 + $0x40] sm:$0xff] }
  0x3a   : > { %1291 = vmatprep.subr.bf16.mxu0 %v1412_v23  ;;  %1352 = vmatprep.subr.bf16.mxu1 %v1412_v23  ;;  %v1445_v48 = vld [vmem:[%s1582_s12 + $0x70] ss:$8 sps:$4 sm:$0xff]   ;;  %v431_v61 = vld [vmem:[#allocation2] sm:$0xff] }
  0x3b   : > { %v430_v51 = vld [vmem:[#allocation2 + $0x30] sm:$0xff]  ;;  %v439_v63 = vld [vmem:[#allocation2 + $0x20] sm:$0xff]  ;;  %v432_v7 = vld [vmem:[#allocation2 + $0x58] sm:$0xff] }
  0x3c   : > { %v440_v9 = vld [vmem:[#allocation2 + $0x10] sm:$0xff]  ;;  %v433_v17 = vld [vmem:[#allocation2 + $0x18] sm:$0xff]  ;;  %v442_v29 = vld [vmem:[#allocation2 + $0x60] sm:$0xff] }
  0x3d   : > { %1292 = vmatpush3.bf16.msra.mxu0 %v1413_v24  ;;  %1360 = vmatpush3.bf16.msra.mxu1 %v1413_v24  ;;  %v441_v19 = vld [vmem:[#allocation2 + $0x38] sm:$0xff] }
  0x3e   : > { %1293 = vmatprep.subr.bf16.mxu0 %v1414_v25  ;;  %1353 = vmatprep.subr.bf16.mxu1 %v1414_v25 }
  0x41   : > { %1294 = vmatpush3.bf16.msra.mxu0 %v1415_v26  ;;  %1361 = vmatpush3.bf16.msra.mxu1 %v1415_v26 }
  0x42   : > { %1295 = vmatprep.subr.bf16.mxu0 %v1416_v27  ;;  %1354 = vmatprep.subr.bf16.mxu1 %v1416_v27  ;;  %v434_v27 = vld [vmem:[#allocation2 + $0x50] sm:$0xff] }
  0x45   : > { %1296 = vmatpush3.bf16.msra.mxu0 %v1417_v30  ;;  %1362 = vmatpush3.bf16.msra.mxu1 %v1417_v30 }
  0x46   : > { %1297 = vmatprep.subr.bf16.mxu0 %v1418_v31  ;;  %1355 = vmatprep.subr.bf16.mxu1 %v1418_v31 }
  0x49   : > { %1298 = vmatpush3.bf16.msra.mxu0 %v1419_v32  ;;  %1363 = vmatpush3.bf16.msra.mxu1 %v1419_v32 }
  0x4a   : > { %1299 = vmatprep.subr.bf16.mxu0 %v1420_v33  ;;  %1356 = vmatprep.subr.bf16.mxu1 %v1420_v33 }
  0x4d   : > { %1300 = vmatpush3.bf16.msra.mxu0 %v1421_v34  ;;  %1364 = vmatpush3.bf16.msra.mxu1 %v1421_v34 }
  0x50   : > { %703 = vmatmul.mubr.bf16.vlgmr.msra.gmra.mxu0 %v1422_v35  ;;  %735 = vmatmul.mubr.bf16.vlgmr.msra.gmra.mxu1 %v1425_v36 }
  0x51   : > { %710 = vmatprep.mubr.bf16.mxu0 %v1428_v37  ;;  %742 = vmatprep.mubr.bf16.mxu1 %v1430_v38  ;;  %v435_v37 = vld [vmem:[#allocation2 + $0x68] sm:$0xff] }
  0x58   : > { %711 = vmatmul.mubr.bf16.gmra.mxu0 %v1432_v39  ;;  %743 = vmatmul.mubr.bf16.gmra.mxu1 %v1433_v40  ;;  %v443_v39 = vld [vmem:[#allocation2 + $0x70] sm:$0xff] }
  0x59   : > { %718 = vmatprep.mubr.bf16.mxu0 %v1434_v41  ;;  %750 = vmatprep.mubr.bf16.mxu1 %v1436_v42 }
  0x60   : > { %719 = vmatmul.mubr.bf16.gmra.mxu0 %v1438_v43  ;;  %751 = vmatmul.mubr.bf16.gmra.mxu1 %v1439_v44 }
  0x61   : > { %726 = vmatprep.mubr.bf16.mxu0 %v1440_v45  ;;  %758 = vmatprep.mubr.bf16.mxu1 %v1442_v46 }
  0x68   : > { %727 = vmatmul.mubr.bf16.gmra.mxu0 %v1444_v47  ;;  %759 = vmatmul.mubr.bf16.gmra.mxu1 %v1445_v48  ;;  %v436_v47 = vld [vmem:[#allocation2 + $0x8] sm:$0xff] }
 0x110   : > { %v1301_v49 = vpop.f32.mrf.mxu0  ;;  %v1325_v50 = vpop.f32.mrf.mxu1 }
 0x112   : > { %v1302_v52 = vpop.f32.mrf.mxu0  ;;  %v1326_v54 = vpop.f32.mrf.mxu1 }
 0x113   : > { %v1303_v55 = vadd.f32 %v1302_v52, %v1301_v49  ;;  %v1327_v56 = vadd.f32 %v1326_v54, %v1325_v50  ;;  %v444_v49 = vld [vmem:[#allocation2 + $0x78] sm:$0xff] }
 0x114   : > { %v1304_v57 = vpop.f32.mrf.mxu0  ;;  %v1328_v58 = vpop.f32.mrf.mxu1 }
 0x115   : > { %v767_v59 = vadd.f32 %v1303_v55, %v430_v51  ;;  %v775_v60 = vadd.f32 %v1327_v56, %v438_v53 }
 0x116   : > { %v1305_v62 = vpop.f32.mrf.mxu0  ;;  %v1329_v0 = vpop.f32.mrf.mxu1 }
 0x117   : > { %783 = vst [vmem:[#allocation2 + $0x30] sm:$0xff] %v767_v59  ;;  %791 = vst [vmem:[#allocation2 + $0x40] sm:$0xff] %v775_v60  ;;  %v1306_v1 = vadd.f32 %v1305_v62, %v1304_v57  ;;  %v1330_v2 = vadd.f32 %v1329_v0, %v1328_v58  ;;  %v437_v57 = vld [vmem:[#allocation2 + $0x48] sm:$0xff] }
 0x118   : > { %v1307_v3 = vpop.f32.mrf.mxu0  ;;  %v1331_v4 = vpop.f32.mrf.mxu1  ;;  %v445_v59 = vld [vmem:[#allocation2 + $0x28] sm:$0xff] }
 0x119   : > { %v768_v5 = vadd.f32 %v1306_v1, %v431_v61  ;;  %v776_v6 = vadd.f32 %v1330_v2, %v439_v63 }
 0x11a   : > { %v1308_v8 = vpop.f32.mrf.mxu0  ;;  %v1332_v10 = vpop.f32.mrf.mxu1 }
 0x11b   : > { %784 = vst [vmem:[#allocation2] sm:$0xff] %v768_v5  ;;  %792 = vst [vmem:[#allocation2 + $0x20] sm:$0xff] %v776_v6  ;;  %v1309_v11 = vadd.f32 %v1308_v8, %v1307_v3  ;;  %v1333_v12 = vadd.f32 %v1332_v10, %v1331_v4 }
 0x11c   : > { %v1310_v13 = vpop.f32.mrf.mxu0  ;;  %v1334_v14 = vpop.f32.mrf.mxu1 }
 0x11d   : > { %v769_v15 = vadd.f32 %v1309_v11, %v432_v7  ;;  %v777_v16 = vadd.f32 %v1333_v12, %v440_v9 }
 0x11e   : > { %v1311_v18 = vpop.f32.mrf.mxu0  ;;  %v1335_v20 = vpop.f32.mrf.mxu1 }
 0x11f   : > { %785 = vst [vmem:[#allocation2 + $0x58] sm:$0xff] %v769_v15  ;;  %793 = vst [vmem:[#allocation2 + $0x10] sm:$0xff] %v777_v16  ;;  %v1312_v21 = vadd.f32 %v1311_v18, %v1310_v13  ;;  %v1336_v22 = vadd.f32 %v1335_v20, %v1334_v14 }
 0x120   : > { %v1313_v23 = vpop.f32.mrf.mxu0  ;;  %v1337_v24 = vpop.f32.mrf.mxu1 }
 0x121   : > { %v770_v25 = vadd.f32 %v1312_v21, %v433_v17  ;;  %v778_v26 = vadd.f32 %v1336_v22, %v441_v19 }
 0x122   : > { %v1314_v28 = vpop.f32.mrf.mxu0  ;;  %v1338_v30 = vpop.f32.mrf.mxu1 }
 0x123   : > { %786 = vst [vmem:[#allocation2 + $0x18] sm:$0xff] %v770_v25  ;;  %794 = vst [vmem:[#allocation2 + $0x38] sm:$0xff] %v778_v26  ;;  %v1315_v31 = vadd.f32 %v1314_v28, %v1313_v23  ;;  %v1339_v32 = vadd.f32 %v1338_v30, %v1337_v24 }
 0x124   : > { %v1316_v33 = vpop.f32.mrf.mxu0  ;;  %v1340_v34 = vpop.f32.mrf.mxu1 }
 0x125   : > { %v771_v35 = vadd.f32 %v1315_v31, %v434_v27  ;;  %v779_v36 = vadd.f32 %v1339_v32, %v442_v29 }
 0x126   : > { %v1317_v38 = vpop.f32.mrf.mxu0  ;;  %v1341_v40 = vpop.f32.mrf.mxu1 }
 0x127   : > { %787 = vst [vmem:[#allocation2 + $0x50] sm:$0xff] %v771_v35  ;;  %795 = vst [vmem:[#allocation2 + $0x60] sm:$0xff] %v779_v36  ;;  %v1318_v41 = vadd.f32 %v1317_v38, %v1316_v33  ;;  %v1342_v42 = vadd.f32 %v1341_v40, %v1340_v34 }
 0x128   : > { %v1319_v43 = vpop.f32.mrf.mxu0  ;;  %v1343_v44 = vpop.f32.mrf.mxu1 }
 0x129   : > { %v772_v45 = vadd.f32 %v1318_v41, %v435_v37  ;;  %v780_v46 = vadd.f32 %v1342_v42, %v443_v39 }
 0x12a   : > { %v1320_v48 = vpop.f32.mrf.mxu0  ;;  %v1344_v50 = vpop.f32.mrf.mxu1 }
 0x12b   : > { %788 = vst [vmem:[#allocation2 + $0x68] sm:$0xff] %v772_v45  ;;  %796 = vst [vmem:[#allocation2 + $0x70] sm:$0xff] %v780_v46  ;;  %v1321_v51 = vadd.f32 %v1320_v48, %v1319_v43  ;;  %v1345_v52 = vadd.f32 %v1344_v50, %v1343_v44 }
 0x12c   : > { %v1322_v53 = vpop.f32.mrf.mxu0  ;;  %v1346_v54 = vpop.f32.mrf.mxu1 }
 0x12d   : > { %v773_v55 = vadd.f32 %v1321_v51, %v436_v47  ;;  %v781_v56 = vadd.f32 %v1345_v52, %v444_v49 }
 0x12e   : > { %v1323_v58 = vpop.f32.mrf.mxu0  ;;  %v1347_v60 = vpop.f32.mrf.mxu1 }
 0x12f   : > { %789 = vst [vmem:[#allocation2 + $0x8] sm:$0xff] %v773_v55  ;;  %797 = vst [vmem:[#allocation2 + $0x78] sm:$0xff] %v781_v56  ;;  %v1324_v61 = vadd.f32 %v1323_v58, %v1322_v53  ;;  %v1348_v62 = vadd.f32 %v1347_v60, %v1346_v54  ;;  %802 = sbr.rel (%p1160_p11) target bundleno = 334 (0x14e), region = 82 }
 0x131   : > { %v774_v63 = vadd.f32 %v1324_v61, %v437_v57  ;;  %v782_v0 = vadd.f32 %v1348_v62, %v445_v59 }
 0x133   : > { %790 = vst [vmem:[#allocation2 + $0x48] sm:$0xff] %v774_v63  ;;  %798 = vst [vmem:[#allocation2 + $0x28] sm:$0xff] %v782_v0 }
 0x134   : > { %v803_v1 = vld [vmem:[#allocation2 + $0x30] sm:$0xff]  ;;  %v804_v2 = vld [vmem:[#allocation2] sm:$0xff]  ;;  %v805_v7 = vld [vmem:[#allocation2 + $0x58] sm:$0xff] }
 0x135   : > { %v1621_v3 = vld [vmem:[%s1704_s2] ss:$0 sm:$0xff]  ;;  %v806_v8 = vld [vmem:[#allocation2 + $0x18] sm:$0xff]  ;;  %v1271_v13 = vld [vmem:[%s1705_s3 + $0x8] sm:$0xff]  }
 0x136   : > { %v826_v4 = vadd.f32 %v1621_v3, %v803_v1  ;;  %v827_v5 = vadd.f32 %v1621_v3, %v804_v2  ;;  %v1200_v6 = vld [vmem:[%s1705_s3] sm:$0xff]   ;;  %v828_v11 = vadd.f32 %v1621_v3, %v805_v7  ;;  %v829_v12 = vadd.f32 %v1621_v3, %v806_v8  ;;  %v807_v14 = vld [vmem:[#allocation2 + $0x50] sm:$0xff]  ;;  %v808_v15 = vld [vmem:[#allocation2 + $0x68] sm:$0xff] }
 0x137   : > { %v1201_v9 = vunpack.c.l.bf16 %v1200_v6  ;;  %v1202_v10 = vunpack.c.h.bf16 %v1200_v6  ;;  %v1205_v16 = vunpack.c.l.bf16 %v1271_v13  ;;  %v1206_v17 = vunpack.c.h.bf16 %v1271_v13  ;;  %v1272_v20 = vld [vmem:[%s1705_s3 + $0x10] sm:$0xff]   ;;  %v809_v21 = vld [vmem:[#allocation2 + $0x8] sm:$0xff]  ;;  %v1273_v27 = vld [vmem:[%s1705_s3 + $0x18] sm:$0xff]  }
 0x138   : > { %v830_v18 = vadd.f32 %v1621_v3, %v807_v14  ;;  %v831_v19 = vadd.f32 %v1621_v3, %v808_v15  ;;  %v1209_v25 = vunpack.c.l.bf16 %v1272_v20  ;;  %v1210_v26 = vunpack.c.h.bf16 %v1272_v20  ;;  %v811_v32 = vld [vmem:[#allocation2 + $0x40] sm:$0xff]  ;;  %v813_v43 = vld [vmem:[#allocation2 + $0x10] sm:$0xff]  ;;  %v814_v48 = vld [vmem:[#allocation2 + $0x38] sm:$0xff] }
 0x139   : > { %v874_v23 = vadd.f32 %v1201_v9, %v826_v4  ;;  %v875_v24 = vadd.f32 %v1202_v10, %v827_v5  ;;  %v876_v28 = vadd.f32 %v1205_v16, %v828_v11  ;;  %v877_v29 = vadd.f32 %v1206_v17, %v829_v12  ;;  %v812_v37 = vld [vmem:[#allocation2 + $0x20] sm:$0xff]  ;;  %v1275_v49 = vld [vmem:[%s1705_s3 + $0x28] sm:$0xff]   ;;  %v816_v59 = vld [vmem:[#allocation2 + $0x70] sm:$0xff] }
 0x13a   : > { %v810_v22 = vld [vmem:[#allocation2 + $0x48] sm:$0xff]  ;;  %v832_v30 = vadd.f32 %v1621_v3, %v809_v21  ;;  %v878_v35 = vadd.f32 %v1209_v25, %v830_v18  ;;  %v879_v36 = vadd.f32 %v1210_v26, %v831_v19  ;;  %v1213_v40 = vunpack.c.l.bf16 %v1273_v27  ;;  %v1274_v42 = vld [vmem:[%s1705_s3 + $0x20] sm:$0xff]   ;;  %v1276_v60 = vld [vmem:[%s1705_s3 + $0x30] sm:$0xff]  }
 0x13b   : > { %v833_v31 = vadd.f32 %v1621_v3, %v810_v22  ;;  %v890_v33 = vmax.f32 %v874_v23, 0.0  ;;  %v891_v34 = vmax.f32 %v875_v24, 0.0  ;;  %v892_v38 = vmax.f32 %v876_v28, 0.0  ;;  %v815_v54 = vld [vmem:[#allocation2 + $0x60] sm:$0xff]  ;;  %v817_v6 = vld [vmem:[#allocation2 + $0x78] sm:$0xff]  ;;  %v818_v7 = vld [vmem:[#allocation2 + $0x28] sm:$0xff] }
 0x13c   : > { %v893_v39 = vmax.f32 %v877_v29, 0.0  ;;  %v1214_v41 = vunpack.c.h.bf16 %v1273_v27  ;;  %v894_v45 = vmax.f32 %v878_v35, 0.0  ;;  %v895_v46 = vmax.f32 %v879_v36, 0.0  ;;  %v1277_v12 = vld [vmem:[%s1705_s3 + $0x38] sm:$0xff]  }
 0x13d   : > { %v1234_v44 = vpack.c.bf16 %v891_v34, %v890_v33  ;;  %v834_v47 = vadd.f32 %v1621_v3, %v811_v32  ;;  %v880_v51 = vadd.f32 %v1213_v40, %v832_v30  ;;  %v835_v53 = vadd.f32 %v1621_v3, %v812_v37 }
 0x13e   : > { %v1239_v50 = vpack.c.bf16 %v893_v39, %v892_v38  ;;  %v881_v52 = vadd.f32 %v1214_v41, %v833_v31  ;;  %v1244_v55 = vpack.c.bf16 %v895_v46, %v894_v45  ;;  %v1217_v56 = vunpack.c.l.bf16 %v1274_v42 }
 0x13f   : > { %1235 = vst [vmem:[%s1706_s4] sm:$0xff] %v1234_v44   ;;  %v1218_v57 = vunpack.c.h.bf16 %v1274_v42  ;;  %v836_v58 = vadd.f32 %v1621_v3, %v813_v43  ;;  %v896_v61 = vmax.f32 %v880_v51, 0.0  ;;  %v837_v63 = vadd.f32 %v1621_v3, %v814_v48 }
 0x140   : > { %1278 = vst [vmem:[%s1706_s4 + $0x8] sm:$0xff] %v1239_v50   ;;  %v897_v62 = vmax.f32 %v881_v52, 0.0  ;;  %v1221_v0 = vunpack.c.l.bf16 %v1275_v49  ;;  %1279 = vst [vmem:[%s1706_s4 + $0x10] sm:$0xff] %v1244_v55   ;;  %v882_v1 = vadd.f32 %v1217_v56, %v834_v47  ;;  %v1222_v4 = vunpack.c.h.bf16 %v1275_v49 }
 0x141   : > { %v883_v2 = vadd.f32 %v1218_v57, %v835_v53  ;;  %v838_v5 = vadd.f32 %v1621_v3, %v815_v54  ;;  %v839_v10 = vadd.f32 %v1621_v3, %v816_v59  ;;  %v1225_v11 = vunpack.c.l.bf16 %v1276_v60 }
 0x142   : > { %v1249_v8 = vpack.c.bf16 %v897_v62, %v896_v61  ;;  %v884_v9 = vadd.f32 %v1221_v0, %v836_v58  ;;  %v898_v13 = vmax.f32 %v882_v1, 0.0  ;;  %v885_v15 = vadd.f32 %v1222_v4, %v837_v63 }
 0x143   : > { %v899_v14 = vmax.f32 %v883_v2, 0.0  ;;  %v1226_v16 = vunpack.c.h.bf16 %v1276_v60  ;;  %v886_v18 = vadd.f32 %v1225_v11, %v838_v5  ;;  %v840_v19 = vadd.f32 %v1621_v3, %v817_v6 }
 0x144   : > { %1280 = vst [vmem:[%s1706_s4 + $0x18] sm:$0xff] %v1249_v8   ;;  %v900_v17 = vmax.f32 %v884_v9, 0.0  ;;  %v841_v20 = vadd.f32 %v1621_v3, %v818_v7  ;;  %v901_v22 = vmax.f32 %v885_v15, 0.0  ;;  %v1229_v24 = vunpack.c.l.bf16 %v1277_v12 }
 0x145   : > { %v1254_v21 = vpack.c.bf16 %v899_v14, %v898_v13  ;;  %v887_v23 = vadd.f32 %v1226_v16, %v839_v10  ;;  %v902_v25 = vmax.f32 %v886_v18, 0.0  ;;  %v1230_v26 = vunpack.c.h.bf16 %v1277_v12 }
 0x146   : > { %v1259_v27 = vpack.c.bf16 %v901_v22, %v900_v17  ;;  %v888_v29 = vadd.f32 %v1229_v24, %v840_v19 }
 0x147   : > { %1281 = vst [vmem:[%s1706_s4 + $0x20] sm:$0xff] %v1254_v21   ;;  %v903_v28 = vmax.f32 %v887_v23, 0.0  ;;  %v889_v30 = vadd.f32 %v1230_v26, %v841_v20 }
 0x148   : > { %1282 = vst [vmem:[%s1706_s4 + $0x28] sm:$0xff] %v1259_v27   ;;  %v904_v3 = vmax.f32 %v888_v29, 0.0 }
 0x149   : > { %v1264_v31 = vpack.c.bf16 %v903_v28, %v902_v25  ;;  %v905_v32 = vmax.f32 %v889_v30, 0.0 }
 0x14b   : > { %1283 = vst [vmem:[%s1706_s4 + $0x30] sm:$0xff] %v1264_v31   ;;  %v1269_v33 = vpack.c.bf16 %v905_v32, %v904_v3 }
 0x14d   : > { %1284 = vst [vmem:[%s1706_s4 + $0x38] sm:$0xff] %v1269_v33  }
 0x14e PF: > { %s14_s19 = sadd.s32 1, %s1484_s19   ;;  %s1707_s15 = smov %s1472_s16 }
 0x14f   : > { %p11_p12 = scmp.ge.s32.totalorder %s14_s19, 9   ;;  %s1708_s16 = smov %s1547_s23 }
 0x150   : > { %s1709_s17 = smov %s1480_s18  ;;  %s1710_s18 = smov %s1712_s20 }
 0x151   :  { %13 = sbr.rel (!%p11_p12) target bundleno = 3 (0x3), region = 126 }

// kernel: forward.16
= control target key start
LH: loop header
LB: loop body
LE: loop exit
PB: predicated region body
PF: predicated region fallthrough
CT: control target
= control target key end

     0   :  { %s1831_s15 = smov 0   ;;  %s1833_s16 = smov 0   ;;  %s2087_s0 = inlined_call_operand.vmem [shape: bf16[128,3456], index: 0, kind: input, shape index: {}]   ;;  %s2088_s1 = inlined_call_operand.vmem [shape: bf16[3456,128], index: 1, kind: input, shape index: {}]   ;;  %s2089_s2 = inlined_call_operand.vmem [shape: f32[1,128], index: 2, kind: input, shape index: {}]   ;;  %s2090_s3 = inlined_call_operand.vmem [shape: bf16[128,128], index: 3, kind: input, shape index: {}]   ;;  %s2091_s4 = inlined_call_operand.vmem [shape: bf16[128,128], index: 4, kind: output, shape index: {}]  }
   0x1   :  { %s1835_s17 = smov 0   ;;  %s1837_s18 = smov 0  }
   0x2   :  { %s1839_s19 = smov 0  }
   0x3 LB: > { %s26_s20 = sadd.s32 1, %s1799_s18  ;;  %p49_p1 = scmp.ne.s32.totalorder %s1791_s16, %s1787_s15  ;;  %s1803_s19 = sphi %s1839_s19, %s14_s19   ;;  %s1799_s18 = sphi %s1837_s18, %s2095_s18   ;;  %s1795_s17 = sphi %s1835_s17, %s2094_s17   ;;  %s1791_s16 = sphi %s1833_s16, %s2093_s16   ;;  %s1787_s15 = sphi %s1831_s15, %s2092_s15  }
   0x4   : > { %p27_p0 = scmp.ge.s32.totalorder %s26_s20, 9  ;;  %p50_p2 = scmp.eq.s32.totalorder %s1803_s19, 0 }
   0x5   : > { %s42_s22 = sadd.s32 1, %s1791_s16  ;;  %p1344_p5 = scmp.ge.s32.totalorder %s1803_s19, 9 }
   0x6   : > { %s2097_s20 = smov (%p27_p0, %s26_s20), 0  ;;  %p51_p3 = por %p50_p2, %p49_p1 }
   0x7   : > { %s38_s21 = ssub.s32 %s1799_s18, %s2097_s20  ;;  %203 = sbr.rel (%p1344_p5) target bundleno = 35 (0x23), region = 24 }
   0x8   : > { %p40_p4 = scmp.eq.s32.totalorder %s38_s21, 0 }
   0xa   : > { %s1866_s23 = scalar_select %p40_p4, %s1791_s16, %s42_s22  }
   0xc   : > { %206 = sbr.rel (!%p51_p3) target bundleno = 35 (0x23), region = 28  ;;  %s208_s24 = sand.u32 (%p51_p3), 1, %s1791_s16  }
   0xd   : > { %s1451_s25 = smul.u32 (%p51_p3), 12, %s1799_s18 }
   0xe   : > { %s1666_s26 = smul.u32 (%p51_p3), 192, %s208_s24 }
   0xf   : > { %s1874_s29 = scalar_lea.vmem (%p51_p3), %s2087_s0, %s1451_s25 }
  0x10   : > { %v231_v0 = vld [vmem:[%s1874_s29] sm:$0xff] (%p51_p3)  ;;  %v233_v1 = vld [vmem:[%s1874_s29 + $0x6c] sm:$0xff] (%p51_p3)  ;;  %v235_v2 = vld [vmem:[%s1874_s29 + $0xd8] sm:$0xff] (%p51_p3)  ;;  %s1879_s30 = scalar_lea.vmem (%p51_p3), [#allocation3], %s1666_s26 }
  0x11   : > { %232 = vst [vmem:[%s1879_s30] sm:$0xff] %v231_v0  ;;  %234 = vst [vmem:[%s1879_s30 + $0xc] sm:$0xff] %v233_v1  ;;  %v237_v3 = vld [vmem:[%s1874_s29 + $0x144] sm:$0xff]  ;;  %v239_v4 = vld [vmem:[%s1874_s29 + $0x1b0] sm:$0xff] }
  0x12   : > { %236 = vst [vmem:[%s1879_s30 + $0x18] sm:$0xff] %v235_v2  ;;  %v241_v5 = vld [vmem:[%s1874_s29 + $0x21c] sm:$0xff]  ;;  %238 = vst [vmem:[%s1879_s30 + $0x24] sm:$0xff] %v237_v3  ;;  %v243_v6 = vld [vmem:[%s1874_s29 + $0x288] sm:$0xff] }
  0x13   : > { %240 = vst [vmem:[%s1879_s30 + $0x30] sm:$0xff] %v239_v4  ;;  %242 = vst [vmem:[%s1879_s30 + $0x3c] sm:$0xff] %v241_v5  ;;  %v245_v7 = vld [vmem:[%s1874_s29 + $0x2f4] sm:$0xff]  ;;  %v247_v8 = vld [vmem:[%s1874_s29 + $0x360] sm:$0xff] }
  0x14   : > { %244 = vst [vmem:[%s1879_s30 + $0x48] sm:$0xff] %v243_v6  ;;  %246 = vst [vmem:[%s1879_s30 + $0x54] sm:$0xff] %v245_v7  ;;  %v249_v9 = vld [vmem:[%s1874_s29 + $0x3cc] sm:$0xff]  ;;  %v251_v10 = vld [vmem:[%s1874_s29 + $0x438] sm:$0xff] }
  0x15   : > { %248 = vst [vmem:[%s1879_s30 + $0x60] sm:$0xff] %v247_v8  ;;  %v253_v11 = vld [vmem:[%s1874_s29 + $0x4a4] sm:$0xff]  ;;  %250 = vst [vmem:[%s1879_s30 + $0x6c] sm:$0xff] %v249_v9  ;;  %v255_v12 = vld [vmem:[%s1874_s29 + $0x510] sm:$0xff] }
  0x16   : > { %252 = vst [vmem:[%s1879_s30 + $0x78] sm:$0xff] %v251_v10  ;;  %254 = vst [vmem:[%s1879_s30 + $0x84] sm:$0xff] %v253_v11  ;;  %v257_v13 = vld [vmem:[%s1874_s29 + $0x57c] sm:$0xff]  ;;  %v259_v14 = vld [vmem:[%s1874_s29 + $0x5e8] sm:$0xff] }
  0x17   : > { %256 = vst [vmem:[%s1879_s30 + $0x90] sm:$0xff] %v255_v12  ;;  %258 = vst [vmem:[%s1879_s30 + $0x9c] sm:$0xff] %v257_v13  ;;  %v261_v15 = vld [vmem:[%s1874_s29 + $0x654] sm:$0xff]  ;;  %v1346_v16 = vld [vmem:[%s1874_s29 + $0x8] sm:$0xf] }
  0x18   : > { %260 = vst [vmem:[%s1879_s30 + $0xa8] sm:$0xff] %v259_v14  ;;  %v1348_v17 = vld [vmem:[%s1874_s29 + $0x74] sm:$0xf]  ;;  %262 = vst [vmem:[%s1879_s30 + $0xb4] sm:$0xff] %v261_v15  ;;  %v1350_v18 = vld [vmem:[%s1874_s29 + $0xe0] sm:$0xf] }
  0x19   : > { %1347 = vst [vmem:[%s1879_s30 + $0x8] sm:$0xf] %v1346_v16  ;;  %1349 = vst [vmem:[%s1879_s30 + $0x14] sm:$0xf] %v1348_v17  ;;  %v1352_v19 = vld [vmem:[%s1874_s29 + $0x14c] sm:$0xf] }
  0x1a   : > { %v1354_v20 = vld [vmem:[%s1874_s29 + $0x1b8] sm:$0xf]  ;;  %1351 = vst [vmem:[%s1879_s30 + $0x20] sm:$0xf] %v1350_v18  ;;  %1353 = vst [vmem:[%s1879_s30 + $0x2c] sm:$0xf] %v1352_v19 }
  0x1b   : > { %1355 = vst [vmem:[%s1879_s30 + $0x38] sm:$0xf] %v1354_v20  ;;  %v1356_v21 = vld [vmem:[%s1874_s29 + $0x224] sm:$0xf]  ;;  %v1358_v22 = vld [vmem:[%s1874_s29 + $0x290] sm:$0xf] }
  0x1c   : > { %v1360_v23 = vld [vmem:[%s1874_s29 + $0x2fc] sm:$0xf]  ;;  %1357 = vst [vmem:[%s1879_s30 + $0x44] sm:$0xf] %v1356_v21  ;;  %1359 = vst [vmem:[%s1879_s30 + $0x50] sm:$0xf] %v1358_v22 }
  0x1d   : > { %1361 = vst [vmem:[%s1879_s30 + $0x5c] sm:$0xf] %v1360_v23  ;;  %v1362_v24 = vld [vmem:[%s1874_s29 + $0x368] sm:$0xf]  ;;  %v1364_v25 = vld [vmem:[%s1874_s29 + $0x3d4] sm:$0xf] }
  0x1e   : > { %v1366_v26 = vld [vmem:[%s1874_s29 + $0x440] sm:$0xf]  ;;  %1363 = vst [vmem:[%s1879_s30 + $0x68] sm:$0xf] %v1362_v24  ;;  %1365 = vst [vmem:[%s1879_s30 + $0x74] sm:$0xf] %v1364_v25 }
  0x1f   : > { %1367 = vst [vmem:[%s1879_s30 + $0x80] sm:$0xf] %v1366_v26  ;;  %v1368_v27 = vld [vmem:[%s1874_s29 + $0x4ac] sm:$0xf]  ;;  %v1370_v28 = vld [vmem:[%s1874_s29 + $0x518] sm:$0xf] }
  0x20   : > { %v1372_v29 = vld [vmem:[%s1874_s29 + $0x584] sm:$0xf]  ;;  %1369 = vst [vmem:[%s1879_s30 + $0x8c] sm:$0xf] %v1368_v27  ;;  %1371 = vst [vmem:[%s1879_s30 + $0x98] sm:$0xf] %v1370_v28 }
  0x21   : > { %1373 = vst [vmem:[%s1879_s30 + $0xa4] sm:$0xf] %v1372_v29  ;;  %v1374_v30 = vld [vmem:[%s1874_s29 + $0x5f0] sm:$0xf]  ;;  %v1376_v31 = vld [vmem:[%s1874_s29 + $0x65c] sm:$0xf] }
  0x22   : > { %1375 = vst [vmem:[%s1879_s30 + $0xb0] sm:$0xf] %v1374_v30  ;;  %1377 = vst [vmem:[%s1879_s30 + $0xbc] sm:$0xf] %v1376_v31 }
  0x23 PF: > { %p1378_p6 = scmp.ge.s32.totalorder %s1803_s19, 1  ;;  %p319_p7 = scmp.lt.s32.totalorder %s1803_s19, 10 }
  0x25   : > { %p320_p8 = pnand %p1378_p6, %p319_p7 }
  0x26   : > { %s326_s5 = sand.u32 (!%p320_p8), 1, %s1787_s15   ;;  %s375_s6 = smul.u32 (!%p320_p8), 48, %s1795_s17 }
  0x27   : > { %323 = sbr.rel (%p320_p8) target bundleno = 379 (0x17b), region = 58  ;;  %p1380_p10 = scmp.ne.s32.totalorder (!%p320_p8), %s1795_s17, 0 }
  0x28   : > { %s1667_s7 = smul.u32 (!%p320_p8), 192, %s326_s5  ;;  %p376_p9 = scmp.lt.s32.totalorder (!%p320_p8), %s375_s6, 431 }
  0x2a   : > { %s1951_s12 = scalar_lea.vmem (!%p320_p8), [#allocation3], %s1667_s7 }
  0x2c   : > { %s2099_s6 = smov (!%p376_p9, %s375_s6), 431  ;;  %409 = sbr.rel (%p1380_p10) target bundleno = 58 (0x3a), region = 66 }
  0x2d   : > { %s1379_s8 = sshll.u32 %s2099_s6, 2 }
  0x2e   : > { %s1949_s11 = scalar_lea.vmem %s2088_s1, %s1379_s8 }
  0x31   : > { %v1805_v32 = vmov 0.0  }
  0x32   : > { %410 = vst [vmem:[#allocation2 + $0x30] sm:$0xff] %v1805_v32  ;;  %411 = vst [vmem:[#allocation2] sm:$0xff] %v1805_v32 }
  0x33   : > { %412 = vst [vmem:[#allocation2 + $0x58] sm:$0xff] %v1805_v32  ;;  %413 = vst [vmem:[#allocation2 + $0x18] sm:$0xff] %v1805_v32 }
  0x34   : > { %414 = vst [vmem:[#allocation2 + $0x50] sm:$0xff] %v1805_v32  ;;  %415 = vst [vmem:[#allocation2 + $0x68] sm:$0xff] %v1805_v32 }
  0x35   : > { %416 = vst [vmem:[#allocation2 + $0x8] sm:$0xff] %v1805_v32  ;;  %417 = vst [vmem:[#allocation2 + $0x48] sm:$0xff] %v1805_v32 }
  0x36   : > { %418 = vst [vmem:[#allocation2 + $0x40] sm:$0xff] %v1805_v32  ;;  %419 = vst [vmem:[#allocation2 + $0x20] sm:$0xff] %v1805_v32 }
  0x37   : > { %420 = vst [vmem:[#allocation2 + $0x10] sm:$0xff] %v1805_v32  ;;  %421 = vst [vmem:[#allocation2 + $0x38] sm:$0xff] %v1805_v32 }
  0x38   : > { %422 = vst [vmem:[#allocation2 + $0x60] sm:$0xff] %v1805_v32  ;;  %423 = vst [vmem:[#allocation2 + $0x70] sm:$0xff] %v1805_v32 }
  0x39   : > { %424 = vst [vmem:[#allocation2 + $0x78] sm:$0xff] %v1805_v32  ;;  %425 = vst [vmem:[#allocation2 + $0x28] sm:$0xff] %v1805_v32 }
  0x3a PF: > { %v1709_v33 = vld [vmem:[%s1949_s11 + $0x78] sm:$0xff]   ;;  %v1712_v36 = vld [vmem:[%s1949_s11 + $0x70] sm:$0xff]   ;;  %v1715_v39 = vld [vmem:[%s1949_s11 + $0x68] sm:$0xff]   ;;  %p1429_p11 = scmp.ne.s32.totalorder %s1795_s17, 8 }
  0x3b   : > { %v1710_v34 = vld [vmem:[%s1949_s11 + $0x38] sm:$0xff]   ;;  %1554 = vmatprep.subr.bf16.mxu0 %v1709_v33  ;;  %v1713_v37 = vld [vmem:[%s1949_s11 + $0x30] sm:$0xff]   ;;  %v1716_v40 = vld [vmem:[%s1949_s11 + $0x28] sm:$0xff]  }
  0x3c   : > { %v1711_v35 = vld [vmem:[%s1949_s11 + $0xb8] sm:$0xff]   ;;  %1555 = vmatpush3.bf16.msra.mxu0 %v1710_v34  ;;  %v1714_v38 = vld [vmem:[%s1949_s11 + $0xb0] sm:$0xff]   ;;  %v1717_v41 = vld [vmem:[%s1949_s11 + $0xa8] sm:$0xff]  }
  0x3d   : > { %1634 = vmatprep.subr.bf16.mxu1 %v1711_v35  ;;  %1556 = vmatprep.subr.bf16.mxu0 %v1712_v36  ;;  %v1718_v42 = vld [vmem:[%s1949_s11 + $0x60] sm:$0xff]   ;;  %v1721_v45 = vld [vmem:[%s1949_s11 + $0x58] sm:$0xff]   ;;  %v1724_v48 = vld [vmem:[%s1949_s11 + $0x50] sm:$0xff]  }
  0x3e   : > { %1635 = vmatpush3.bf16.msra.mxu1 %v1711_v35  ;;  %v1719_v43 = vld [vmem:[%s1949_s11 + $0x20] sm:$0xff]   ;;  %v1723_v46 = vld [vmem:[%s1949_s11 + $0x98] sm:$0xff]   ;;  %v1726_v49 = vld [vmem:[%s1949_s11 + $0x90] sm:$0xff]  }
  0x3f   : > { %1636 = vmatprep.subr.bf16.mxu1 %v1714_v38  ;;  %v1720_v44 = vld [vmem:[%s1949_s11 + $0xa0] sm:$0xff]   ;;  %v1722_v47 = vld [vmem:[%s1949_s11 + $0x18] sm:$0xff]   ;;  %v1725_v50 = vld [vmem:[%s1949_s11 + $0x10] sm:$0xff]  }
  0x40   : > { %1557 = vmatpush3.bf16.msra.mxu0 %v1713_v37  ;;  %v1727_v51 = vld [vmem:[%s1949_s11 + $0x48] sm:$0xff]   ;;  %v1730_v54 = vld [vmem:[%s1949_s11 + $0x40] sm:$0xff]   ;;  %v1745_v1 = vld [vmem:[%s1951_s12 + $0x50] ss:$12 sps:$4 sm:$0xff]  }
  0x41   : > { %1558 = vmatprep.subr.bf16.mxu0 %v1715_v39  ;;  %v1728_v52 = vld [vmem:[%s1949_s11 + $0x8] sm:$0xff]   ;;  %v1732_v55 = vld [vmem:[%s1949_s11 + $0x80] sm:$0xff]   ;;  %v1743_v3 = vld [vmem:[%s1951_s12 + $0x30] ss:$12 sps:$4 sm:$0xff]  }
  0x42   : > { %1637 = vmatpush3.bf16.msra.mxu1 %v1714_v38  ;;  %v1729_v53 = vld [vmem:[%s1949_s11 + $0x88] sm:$0xff]   ;;  %v1735_v56 = vld [vmem:[%s1951_s12 + $0x4] ss:$12 sps:$4 sm:$0xff]   ;;  %v1741_v0 = vld [vmem:[%s1951_s12 + $0x34] ss:$12 sps:$4 sm:$0xff]  }
  0x43   : > { %1638 = vmatprep.subr.bf16.mxu1 %v1717_v41  ;;  %v1736_v57 = vld [vmem:[%s1951_s12 + $0x8] ss:$12 sps:$4 sm:$0xff]   ;;  %v1731_v58 = vld [vmem:[%s1949_s11] sm:$0xff]   ;;  %826 = vmatprep.mubr.bf16.mxu0 %v1735_v56  ;;  %v1746_v4 = vld [vmem:[%s1951_s12 + $0x4c] ss:$12 sps:$4 sm:$0xff]  }
  0x44   : > { %1559 = vmatpush3.bf16.msra.mxu0 %v1716_v40  ;;  %1650 = vmatprep.mubr.bf16.mxu1 %v1736_v57  ;;  %v1733_v59 = vld [vmem:[%s1951_s12] ss:$12 sps:$4 sm:$0xff]   ;;  %v1738_v60 = vld [vmem:[%s1951_s12 + $0x1c] ss:$12 sps:$4 sm:$0xff]   ;;  %v1744_v62 = vld [vmem:[%s1951_s12 + $0x38] ss:$12 sps:$4 sm:$0xff]  }
  0x45   : > { %1560 = vmatprep.subr.bf16.mxu0 %v1718_v42  ;;  %v1737_v61 = vld [vmem:[%s1951_s12 + $0x20] ss:$12 sps:$4 sm:$0xff]   ;;  %v1740_v63 = vld [vmem:[%s1951_s12 + $0x18] ss:$12 sps:$4 sm:$0xff]   ;;  %v1752_v2 = vld [vmem:[%s1951_s12 + $0x68] ss:$12 sps:$4 sm:$0xff]  }
  0x46   : > { %1639 = vmatpush3.bf16.msra.mxu1 %v1717_v41  ;;  %v1753_v5 = vld [vmem:[%s1951_s12 + $0x80] ss:$12 sps:$4 sm:$0xff]   ;;  %v1760_v6 = vld [vmem:[%s1951_s12 + $0x98] ss:$12 sps:$4 sm:$0xff]   ;;  %v1748_v7 = vld [vmem:[%s1951_s12 + $0x48] ss:$12 sps:$4 sm:$0xff]  }
  0x47   : > { %1640 = vmatprep.subr.bf16.mxu1 %v1720_v44  ;;  %v1749_v8 = vld [vmem:[%s1951_s12 + $0x64] ss:$12 sps:$4 sm:$0xff]   ;;  %v1751_v10 = vld [vmem:[%s1951_s12 + $0x60] ss:$12 sps:$4 sm:$0xff]   ;;  %v1754_v11 = vld [vmem:[%s1951_s12 + $0x7c] ss:$12 sps:$4 sm:$0xff]  }
  0x48   : > { %1561 = vmatpush3.bf16.msra.mxu0 %v1719_v43  ;;  %v1761_v9 = vld [vmem:[%s1951_s12 + $0xb0] ss:$12 sps:$4 sm:$0xff]   ;;  %v1756_v12 = vld [vmem:[%s1951_s12 + $0x78] ss:$12 sps:$4 sm:$0xff]   ;;  %v1757_v13 = vld [vmem:[%s1951_s12 + $0x94] ss:$12 sps:$4 sm:$0xff]  }
  0x49   : > { %1562 = vmatprep.subr.bf16.mxu0 %v1721_v45  ;;  %v1759_v14 = vld [vmem:[%s1951_s12 + $0x90] ss:$12 sps:$4 sm:$0xff]   ;;  %v1762_v15 = vld [vmem:[%s1951_s12 + $0xac] ss:$12 sps:$4 sm:$0xff]   ;;  %v1764_v16 = vld [vmem:[%s1951_s12 + $0xa8] ss:$12 sps:$4 sm:$0xff]  }
  0x4a   : > { %1641 = vmatpush3.bf16.msra.mxu1 %v1720_v44  ;;  %v426_v22 = vld [vmem:[#allocation2 + $0x30] sm:$0xff]  ;;  %v427_v30 = vld [vmem:[#allocation2] sm:$0xff]  ;;  %v428_v37 = vld [vmem:[#allocation2 + $0x58] sm:$0xff] }
  0x4b   : > { %1642 = vmatprep.subr.bf16.mxu1 %v1723_v46  ;;  %v429_v44 = vld [vmem:[#allocation2 + $0x18] sm:$0xff] }
  0x4c   : > { %1563 = vmatpush3.bf16.msra.mxu0 %v1722_v47 }
  0x4d   : > { %1564 = vmatprep.subr.bf16.mxu0 %v1724_v48 }
  0x4e   : > { %1643 = vmatpush3.bf16.msra.mxu1 %v1723_v46 }
  0x4f   : > { %1644 = vmatprep.subr.bf16.mxu1 %v1726_v49 }
  0x50   : > { %1565 = vmatpush3.bf16.msra.mxu0 %v1725_v50 }
  0x51   : > { %1566 = vmatprep.subr.bf16.mxu0 %v1727_v51 }
  0x52   : > { %1645 = vmatpush3.bf16.msra.mxu1 %v1726_v49 }
  0x53   : > { %1646 = vmatprep.subr.bf16.mxu1 %v1729_v53 }
  0x54   : > { %1567 = vmatpush3.bf16.msra.mxu0 %v1728_v52  ;;  %v430_v52 = vld [vmem:[#allocation2 + $0x50] sm:$0xff] }
  0x55   : > { %1568 = vmatprep.subr.bf16.mxu0 %v1730_v54 }
  0x56   : > { %1647 = vmatpush3.bf16.msra.mxu1 %v1729_v53 }
  0x57   : > { %1648 = vmatprep.subr.bf16.mxu1 %v1732_v55 }
  0x58   : > { %1569 = vmatpush3.bf16.msra.mxu0 %v1731_v58 }
  0x5a   : > { %1649 = vmatpush3.bf16.msra.mxu1 %v1732_v55 }
  0x5b   : > { %827 = vmatmul.mubr.bf16.vlgmr.msra.gmra.mxu0 %v1733_v59  ;;  %v431_v59 = vld [vmem:[#allocation2 + $0x68] sm:$0xff] }
  0x5c   : > { %834 = vmatprep.mubr.bf16.mxu0 %v1738_v60 }
  0x5d   : > { %1651 = vmatmul.mubr.bf16.vlgmr.msra.gmra.mxu1 %v1737_v61 }
  0x5e   : > { %1654 = vmatprep.mubr.bf16.mxu1 %v1744_v62 }
  0x63   : > { %835 = vmatmul.mubr.bf16.gmra.mxu0 %v1740_v63 }
  0x64   : > { %842 = vmatprep.mubr.bf16.mxu0 %v1741_v0 }
  0x65   : > { %1655 = vmatmul.mubr.bf16.gmra.mxu1 %v1745_v1  ;;  %v432_v1 = vld [vmem:[#allocation2 + $0x8] sm:$0xff] }
  0x66   : > { %1658 = vmatprep.mubr.bf16.mxu1 %v1752_v2 }
  0x6b   : > { %843 = vmatmul.mubr.bf16.gmra.mxu0 %v1743_v3 }
  0x6c   : > { %850 = vmatprep.mubr.bf16.mxu0 %v1746_v4 }
  0x6d   : > { %1659 = vmatmul.mubr.bf16.gmra.mxu1 %v1753_v5 }
  0x6e   : > { %1662 = vmatprep.mubr.bf16.mxu1 %v1760_v6 }
  0x73   : > { %851 = vmatmul.mubr.bf16.gmra.mxu0 %v1748_v7 }
  0x74   : > { %858 = vmatprep.mubr.bf16.mxu0 %v1749_v8  ;;  %v433_v8 = vld [vmem:[#allocation2 + $0x48] sm:$0xff] }
  0x75   : > { %1663 = vmatmul.mubr.bf16.gmra.mxu1 %v1761_v9 }
  0x7b   : > { %859 = vmatmul.mubr.bf16.gmra.mxu0 %v1751_v10 }
  0x7c   : > { %866 = vmatprep.mubr.bf16.mxu0 %v1754_v11 }
  0x83   : > { %867 = vmatmul.mubr.bf16.gmra.mxu0 %v1756_v12 }
  0x84   : > { %874 = vmatprep.mubr.bf16.mxu0 %v1757_v13 }
  0x8b   : > { %875 = vmatmul.mubr.bf16.gmra.mxu0 %v1759_v14 }
  0x8c   : > { %882 = vmatprep.mubr.bf16.mxu0 %v1762_v15 }
  0x93   : > { %883 = vmatmul.mubr.bf16.gmra.mxu0 %v1764_v16  ;;  %v434_v16 = vld [vmem:[#allocation2 + $0x40] sm:$0xff] }
 0x11b   : > { %v1570_v17 = vpop.f32.mrf.mxu0 }
 0x11d   : > { %v1571_v18 = vpop.f32.mrf.mxu0  ;;  %v1652_v19 = vpop.f32.mrf.mxu1 }
 0x11e   : > { %v1572_v20 = vadd.f32 %v1571_v18, %v1570_v17 }
 0x11f   : > { %v1573_v21 = vpop.f32.mrf.mxu0  ;;  %v925_v23 = vpop.f32.mrf.mxu1 }
 0x120   : > { %v926_v24 = vadd.f32 %v1572_v20, %v925_v23  ;;  %v435_v23 = vld [vmem:[#allocation2 + $0x20] sm:$0xff] }
 0x121   : > { %v1574_v25 = vpop.f32.mrf.mxu0  ;;  %v1653_v26 = vpop.f32.mrf.mxu1 }
 0x122   : > { %v988_v27 = vadd.f32 %v926_v24, %v426_v22  ;;  %v1575_v28 = vadd.f32 %v1574_v25, %v1573_v21 }
 0x123   : > { %v1576_v29 = vpop.f32.mrf.mxu0  ;;  %v928_v31 = vpop.f32.mrf.mxu1 }
 0x124   : > { %1004 = vst [vmem:[#allocation2 + $0x30] sm:$0xff] %v988_v27  ;;  %v929_v32 = vadd.f32 %v1575_v28, %v928_v31 }
 0x125   : > { %v1577_v33 = vpop.f32.mrf.mxu0  ;;  %v1656_v34 = vpop.f32.mrf.mxu1 }
 0x126   : > { %v989_v35 = vadd.f32 %v929_v32, %v427_v30  ;;  %v1578_v36 = vadd.f32 %v1577_v33, %v1576_v29  ;;  %v436_v29 = vld [vmem:[#allocation2 + $0x10] sm:$0xff] }
 0x127   : > { %v1579_v38 = vpop.f32.mrf.mxu0  ;;  %v941_v41 = vpop.f32.mrf.mxu1 }
 0x128   : > { %1005 = vst [vmem:[#allocation2] sm:$0xff] %v989_v35  ;;  %v934_v39 = vadd.f32 %v1652_v19, %v1578_v36  ;;  %v437_v36 = vld [vmem:[#allocation2 + $0x38] sm:$0xff] }
 0x129   : > { %v1580_v40 = vpop.f32.mrf.mxu0  ;;  %v1657_v48 = vpop.f32.mrf.mxu1 }
 0x12a   : > { %v990_v42 = vadd.f32 %v934_v39, %v428_v37  ;;  %v1581_v43 = vadd.f32 %v1580_v40, %v1579_v38 }
 0x12b   : > { %v1582_v45 = vpop.f32.mrf.mxu0  ;;  %v944_v55 = vpop.f32.mrf.mxu1 }
 0x12c   : > { %1006 = vst [vmem:[#allocation2 + $0x58] sm:$0xff] %v990_v42  ;;  %v937_v46 = vadd.f32 %v1653_v26, %v1581_v43 }
 0x12d   : > { %v1583_v47 = vpop.f32.mrf.mxu0  ;;  %v1660_v62 = vpop.f32.mrf.mxu1 }
 0x12e   : > { %v991_v49 = vadd.f32 %v937_v46, %v429_v44  ;;  %v1584_v50 = vadd.f32 %v1583_v47, %v1582_v45  ;;  %v438_v44 = vld [vmem:[#allocation2 + $0x60] sm:$0xff] }
 0x12f   : > { %v1585_v51 = vpop.f32.mrf.mxu0  ;;  %v957_v5 = vpop.f32.mrf.mxu1 }
 0x130   : > { %1007 = vst [vmem:[#allocation2 + $0x18] sm:$0xff] %v991_v49  ;;  %v942_v53 = vadd.f32 %v1584_v50, %v941_v41 }
 0x131   : > { %v1586_v54 = vpop.f32.mrf.mxu0  ;;  %v1661_v12 = vpop.f32.mrf.mxu1 }
 0x132   : > { %v992_v56 = vadd.f32 %v942_v53, %v430_v52  ;;  %v1587_v57 = vadd.f32 %v1586_v54, %v1585_v51  ;;  %v439_v51 = vld [vmem:[#allocation2 + $0x70] sm:$0xff] }
 0x133   : > { %v1588_v58 = vpop.f32.mrf.mxu0  ;;  %v960_v19 = vpop.f32.mrf.mxu1 }
 0x134   : > { %1008 = vst [vmem:[#allocation2 + $0x50] sm:$0xff] %v992_v56  ;;  %v945_v60 = vadd.f32 %v1587_v57, %v944_v55  ;;  %v440_v56 = vld [vmem:[#allocation2 + $0x78] sm:$0xff] }
 0x135   : > { %v1589_v61 = vpop.f32.mrf.mxu0  ;;  %v1664_v26 = vpop.f32.mrf.mxu1 }
 0x136   : > { %v993_v63 = vadd.f32 %v945_v60, %v431_v59  ;;  %v1590_v0 = vadd.f32 %v1589_v61, %v1588_v58 }
 0x137   : > { %v1591_v2 = vpop.f32.mrf.mxu0  ;;  %v973_v33 = vpop.f32.mrf.mxu1 }
 0x138   : > { %1009 = vst [vmem:[#allocation2 + $0x68] sm:$0xff] %v993_v63  ;;  %v950_v3 = vadd.f32 %v1656_v34, %v1590_v0 }
 0x139   : > { %v1592_v4 = vpop.f32.mrf.mxu0  ;;  %v1665_v40 = vpop.f32.mrf.mxu1 }
 0x13a   : > { %v994_v6 = vadd.f32 %v950_v3, %v432_v1  ;;  %v1593_v7 = vadd.f32 %v1592_v4, %v1591_v2 }
 0x13b   : > { %v1594_v9 = vpop.f32.mrf.mxu0  ;;  %v976_v47 = vpop.f32.mrf.mxu1 }
 0x13c   : > { %1010 = vst [vmem:[#allocation2 + $0x8] sm:$0xff] %v994_v6  ;;  %v953_v10 = vadd.f32 %v1657_v48, %v1593_v7 }
 0x13d   : > { %v1595_v11 = vpop.f32.mrf.mxu0 }
 0x13e   : > { %v995_v13 = vadd.f32 %v953_v10, %v433_v8  ;;  %v1596_v14 = vadd.f32 %v1595_v11, %v1594_v9 }
 0x13f   : > { %v1597_v15 = vpop.f32.mrf.mxu0 }
 0x140   : > { %1011 = vst [vmem:[#allocation2 + $0x48] sm:$0xff] %v995_v13  ;;  %v958_v17 = vadd.f32 %v1596_v14, %v957_v5 }
 0x141   : > { %v1598_v18 = vpop.f32.mrf.mxu0 }
 0x142   : > { %v996_v20 = vadd.f32 %v958_v17, %v434_v16  ;;  %v1599_v21 = vadd.f32 %v1598_v18, %v1597_v15 }
 0x143   : > { %v1600_v22 = vpop.f32.mrf.mxu0 }
 0x144   : > { %1012 = vst [vmem:[#allocation2 + $0x40] sm:$0xff] %v996_v20  ;;  %v961_v24 = vadd.f32 %v1599_v21, %v960_v19 }
 0x145   : > { %v1601_v25 = vpop.f32.mrf.mxu0 }
 0x146   : > { %v997_v27 = vadd.f32 %v961_v24, %v435_v23  ;;  %v1602_v28 = vadd.f32 %v1601_v25, %v1600_v22 }
 0x147   : > { %v1603_v30 = vpop.f32.mrf.mxu0 }
 0x148   : > { %1013 = vst [vmem:[#allocation2 + $0x20] sm:$0xff] %v997_v27  ;;  %v966_v31 = vadd.f32 %v1660_v62, %v1602_v28  ;;  %v441_v62 = vld [vmem:[#allocation2 + $0x28] sm:$0xff] }
 0x149   : > { %v1604_v32 = vpop.f32.mrf.mxu0 }
 0x14a   : > { %v998_v34 = vadd.f32 %v966_v31, %v436_v29  ;;  %v1605_v35 = vadd.f32 %v1604_v32, %v1603_v30 }
 0x14b   : > { %v1606_v37 = vpop.f32.mrf.mxu0 }
 0x14c   : > { %1014 = vst [vmem:[#allocation2 + $0x10] sm:$0xff] %v998_v34  ;;  %v969_v38 = vadd.f32 %v1661_v12, %v1605_v35 }
 0x14d   : > { %v1607_v39 = vpop.f32.mrf.mxu0 }
 0x14e   : > { %v999_v41 = vadd.f32 %v969_v38, %v437_v36  ;;  %v1608_v42 = vadd.f32 %v1607_v39, %v1606_v37 }
 0x14f   : > { %v1609_v43 = vpop.f32.mrf.mxu0 }
 0x150   : > { %1015 = vst [vmem:[#allocation2 + $0x38] sm:$0xff] %v999_v41  ;;  %v974_v45 = vadd.f32 %v1608_v42, %v973_v33 }
 0x151   : > { %v1610_v46 = vpop.f32.mrf.mxu0 }
 0x152   : > { %v1000_v48 = vadd.f32 %v974_v45, %v438_v44  ;;  %v1611_v49 = vadd.f32 %v1610_v46, %v1609_v43 }
 0x153   : > { %v1612_v50 = vpop.f32.mrf.mxu0 }
 0x154   : > { %1016 = vst [vmem:[#allocation2 + $0x60] sm:$0xff] %v1000_v48  ;;  %v977_v52 = vadd.f32 %v1611_v49, %v976_v47 }
 0x155   : > { %v1613_v53 = vpop.f32.mrf.mxu0 }
 0x156   : > { %v1001_v54 = vadd.f32 %v977_v52, %v439_v51  ;;  %v1614_v55 = vadd.f32 %v1613_v53, %v1612_v50 }
 0x157   : > { %v1615_v57 = vpop.f32.mrf.mxu0 }
 0x158   : > { %1017 = vst [vmem:[#allocation2 + $0x70] sm:$0xff] %v1001_v54  ;;  %v982_v58 = vadd.f32 %v1664_v26, %v1614_v55 }
 0x159   : > { %v1616_v59 = vpop.f32.mrf.mxu0 }
 0x15a   : > { %v1002_v60 = vadd.f32 %v982_v58, %v440_v56  ;;  %v1617_v61 = vadd.f32 %v1616_v59, %v1615_v57 }
 0x15c   : > { %1018 = vst [vmem:[#allocation2 + $0x78] sm:$0xff] %v1002_v60  ;;  %v985_v63 = vadd.f32 %v1665_v40, %v1617_v61  ;;  %1023 = sbr.rel (%p1429_p11) target bundleno = 379 (0x17b), region = 70 }
 0x15e   : > { %v1003_v0 = vadd.f32 %v985_v63, %v441_v62 }
 0x160   : > { %1019 = vst [vmem:[#allocation2 + $0x28] sm:$0xff] %v1003_v0 }
 0x161   : > { %v1024_v1 = vld [vmem:[#allocation2 + $0x30] sm:$0xff]  ;;  %v1025_v2 = vld [vmem:[#allocation2] sm:$0xff]  ;;  %v1026_v7 = vld [vmem:[#allocation2 + $0x58] sm:$0xff] }
 0x162   : > { %v2006_v3 = vld [vmem:[%s2089_s2] ss:$0 sm:$0xff]  ;;  %v1027_v8 = vld [vmem:[#allocation2 + $0x18] sm:$0xff]  ;;  %v1540_v13 = vld [vmem:[%s2090_s3 + $0x8] sm:$0xff]  }
 0x163   : > { %v1047_v4 = vadd.f32 %v2006_v3, %v1024_v1  ;;  %v1048_v5 = vadd.f32 %v2006_v3, %v1025_v2  ;;  %v1469_v6 = vld [vmem:[%s2090_s3] sm:$0xff]   ;;  %v1049_v11 = vadd.f32 %v2006_v3, %v1026_v7  ;;  %v1050_v12 = vadd.f32 %v2006_v3, %v1027_v8  ;;  %v1028_v14 = vld [vmem:[#allocation2 + $0x50] sm:$0xff]  ;;  %v1029_v15 = vld [vmem:[#allocation2 + $0x68] sm:$0xff] }
 0x164   : > { %v1470_v9 = vunpack.c.l.bf16 %v1469_v6  ;;  %v1471_v10 = vunpack.c.h.bf16 %v1469_v6  ;;  %v1474_v16 = vunpack.c.l.bf16 %v1540_v13  ;;  %v1475_v17 = vunpack.c.h.bf16 %v1540_v13  ;;  %v1541_v20 = vld [vmem:[%s2090_s3 + $0x10] sm:$0xff]   ;;  %v1030_v21 = vld [vmem:[#allocation2 + $0x8] sm:$0xff]  ;;  %v1542_v27 = vld [vmem:[%s2090_s3 + $0x18] sm:$0xff]  }
 0x165   : > { %v1051_v18 = vadd.f32 %v2006_v3, %v1028_v14  ;;  %v1052_v19 = vadd.f32 %v2006_v3, %v1029_v15  ;;  %v1031_v22 = vld [vmem:[#allocation2 + $0x48] sm:$0xff]  ;;  %v1478_v25 = vunpack.c.l.bf16 %v1541_v20  ;;  %v1479_v26 = vunpack.c.h.bf16 %v1541_v20  ;;  %v1032_v32 = vld [vmem:[#allocation2 + $0x40] sm:$0xff]  ;;  %v1034_v43 = vld [vmem:[#allocation2 + $0x10] sm:$0xff] }
 0x166   : > { %v1095_v23 = vadd.f32 %v1470_v9, %v1047_v4  ;;  %v1096_v24 = vadd.f32 %v1471_v10, %v1048_v5  ;;  %v1097_v28 = vadd.f32 %v1474_v16, %v1049_v11  ;;  %v1098_v29 = vadd.f32 %v1475_v17, %v1050_v12  ;;  %v1033_v37 = vld [vmem:[#allocation2 + $0x20] sm:$0xff]  ;;  %v1035_v48 = vld [vmem:[#allocation2 + $0x38] sm:$0xff]  ;;  %v1544_v49 = vld [vmem:[%s2090_s3 + $0x28] sm:$0xff]  }
 0x167   : > { %v1053_v30 = vadd.f32 %v2006_v3, %v1030_v21  ;;  %v1054_v31 = vadd.f32 %v2006_v3, %v1031_v22  ;;  %v1099_v35 = vadd.f32 %v1478_v25, %v1051_v18  ;;  %v1100_v36 = vadd.f32 %v1479_v26, %v1052_v19  ;;  %v1543_v42 = vld [vmem:[%s2090_s3 + $0x20] sm:$0xff]   ;;  %v1037_v59 = vld [vmem:[#allocation2 + $0x70] sm:$0xff]  ;;  %v1038_v6 = vld [vmem:[#allocation2 + $0x78] sm:$0xff] }
 0x168   : > { %v1111_v33 = vmax.f32 %v1095_v23, 0.0  ;;  %v1112_v34 = vmax.f32 %v1096_v24, 0.0  ;;  %v1113_v38 = vmax.f32 %v1097_v28, 0.0  ;;  %v1114_v39 = vmax.f32 %v1098_v29, 0.0  ;;  %v1036_v54 = vld [vmem:[#allocation2 + $0x60] sm:$0xff]  ;;  %v1545_v60 = vld [vmem:[%s2090_s3 + $0x30] sm:$0xff]  }
 0x169   : > { %v1482_v40 = vunpack.c.l.bf16 %v1542_v27  ;;  %v1483_v41 = vunpack.c.h.bf16 %v1542_v27  ;;  %v1115_v45 = vmax.f32 %v1099_v35, 0.0  ;;  %v1116_v46 = vmax.f32 %v1100_v36, 0.0  ;;  %v1039_v7 = vld [vmem:[#allocation2 + $0x28] sm:$0xff]  ;;  %v1546_v12 = vld [vmem:[%s2090_s3 + $0x38] sm:$0xff]  }
 0x16a   : > { %v1503_v44 = vpack.c.bf16 %v1112_v34, %v1111_v33  ;;  %v1055_v47 = vadd.f32 %v2006_v3, %v1032_v32  ;;  %v1508_v50 = vpack.c.bf16 %v1114_v39, %v1113_v38  ;;  %v1056_v53 = vadd.f32 %v2006_v3, %v1033_v37 }
 0x16b   : > { %v1101_v51 = vadd.f32 %v1482_v40, %v1053_v30  ;;  %v1102_v52 = vadd.f32 %v1483_v41, %v1054_v31  ;;  %v1513_v55 = vpack.c.bf16 %v1116_v46, %v1115_v45  ;;  %v1486_v56 = vunpack.c.l.bf16 %v1543_v42 }
 0x16c   : > { %1504 = vst [vmem:[%s2091_s4] sm:$0xff] %v1503_v44   ;;  %v1487_v57 = vunpack.c.h.bf16 %v1543_v42  ;;  %v1057_v58 = vadd.f32 %v2006_v3, %v1034_v43  ;;  %1547 = vst [vmem:[%s2091_s4 + $0x8] sm:$0xff] %v1508_v50   ;;  %v1058_v63 = vadd.f32 %v2006_v3, %v1035_v48  ;;  %v1490_v0 = vunpack.c.l.bf16 %v1544_v49 }
 0x16d   : > { %v1117_v61 = vmax.f32 %v1101_v51, 0.0  ;;  %v1118_v62 = vmax.f32 %v1102_v52, 0.0  ;;  %1548 = vst [vmem:[%s2091_s4 + $0x10] sm:$0xff] %v1513_v55   ;;  %v1103_v1 = vadd.f32 %v1486_v56, %v1055_v47  ;;  %v1491_v4 = vunpack.c.h.bf16 %v1544_v49 }
 0x16e   : > { %v1104_v2 = vadd.f32 %v1487_v57, %v1056_v53  ;;  %v1059_v5 = vadd.f32 %v2006_v3, %v1036_v54  ;;  %v1105_v9 = vadd.f32 %v1490_v0, %v1057_v58  ;;  %v1060_v10 = vadd.f32 %v2006_v3, %v1037_v59 }
 0x16f   : > { %v1518_v8 = vpack.c.bf16 %v1118_v62, %v1117_v61  ;;  %v1494_v11 = vunpack.c.l.bf16 %v1545_v60  ;;  %v1119_v13 = vmax.f32 %v1103_v1, 0.0  ;;  %v1106_v15 = vadd.f32 %v1491_v4, %v1058_v63 }
 0x170   : > { %v1120_v14 = vmax.f32 %v1104_v2, 0.0  ;;  %v1495_v16 = vunpack.c.h.bf16 %v1545_v60  ;;  %v1121_v17 = vmax.f32 %v1105_v9, 0.0  ;;  %v1061_v19 = vadd.f32 %v2006_v3, %v1038_v6 }
 0x171   : > { %1549 = vst [vmem:[%s2091_s4 + $0x18] sm:$0xff] %v1518_v8   ;;  %v1107_v18 = vadd.f32 %v1494_v11, %v1059_v5  ;;  %v1062_v20 = vadd.f32 %v2006_v3, %v1039_v7  ;;  %v1122_v22 = vmax.f32 %v1106_v15, 0.0  ;;  %v1498_v24 = vunpack.c.l.bf16 %v1546_v12 }
 0x172   : > { %v1523_v21 = vpack.c.bf16 %v1120_v14, %v1119_v13  ;;  %v1108_v23 = vadd.f32 %v1495_v16, %v1060_v10  ;;  %v1499_v26 = vunpack.c.h.bf16 %v1546_v12 }
 0x173   : > { %v1123_v25 = vmax.f32 %v1107_v18, 0.0  ;;  %v1528_v27 = vpack.c.bf16 %v1122_v22, %v1121_v17  ;;  %v1109_v29 = vadd.f32 %v1498_v24, %v1061_v19 }
 0x174   : > { %1550 = vst [vmem:[%s2091_s4 + $0x20] sm:$0xff] %v1523_v21   ;;  %v1124_v28 = vmax.f32 %v1108_v23, 0.0  ;;  %v1110_v30 = vadd.f32 %v1499_v26, %v1062_v20 }
 0x175   : > { %1551 = vst [vmem:[%s2091_s4 + $0x28] sm:$0xff] %v1528_v27   ;;  %v1125_v3 = vmax.f32 %v1109_v29, 0.0 }
 0x176   : > { %v1533_v31 = vpack.c.bf16 %v1124_v28, %v1123_v25  ;;  %v1126_v32 = vmax.f32 %v1110_v30, 0.0 }
 0x178   : > { %1552 = vst [vmem:[%s2091_s4 + $0x30] sm:$0xff] %v1533_v31   ;;  %v1538_v33 = vpack.c.bf16 %v1126_v32, %v1125_v3 }
 0x17a   : > { %1553 = vst [vmem:[%s2091_s4 + $0x38] sm:$0xff] %v1538_v33  }
 0x17b PF: > { %s14_s19 = sadd.s32 1, %s1803_s19   ;;  %s2092_s15 = smov %s1791_s16 }
 0x17c   : > { %p11_p12 = scmp.ge.s32.totalorder %s14_s19, 11   ;;  %s2093_s16 = smov %s1866_s23 }
 0x17d   : > { %s2094_s17 = smov %s1799_s18  ;;  %s2095_s18 = smov %s2097_s20 }
 0x17e   :  { %13 = sbr.rel (!%p11_p12) target bundleno = 3 (0x3), region = 120 }

// kernel: forward.15
= control target key start
LH: loop header
LB: loop body
LE: loop exit
PB: predicated region body
PF: predicated region fallthrough
CT: control target
= control target key end

     0   :  { %s705_s1 = inlined_call_operand.vmem [shape: bf16[128,128], index: 1, kind: input, shape index: {}]   ;;  %s706_s0 = inlined_call_operand.vmem [shape: bf16[128,128], index: 0, kind: input, shape index: {}]   ;;  %s707_s2 = inlined_call_operand.vmem [shape: f32[1,128], index: 2, kind: input, shape index: {}]   ;;  %s708_s3 = inlined_call_operand.vmem [shape: bf16[128,128], index: 3, kind: output, shape index: {}]  }
   0x1   :  { %v594_v0 = vld [vmem:[%s705_s1 + $0x38] sm:$0xff]   ;;  %v595_v1 = vld [vmem:[%s705_s1 + $0x30] sm:$0xff]   ;;  %v596_v2 = vld [vmem:[%s705_s1 + $0x28] sm:$0xff]  }
   0x2   :  { %546 = vmatprep.subr.bf16.mxu0 %v594_v0  ;;  %578 = vmatprep.subr.bf16.mxu1 %v594_v0  ;;  %v597_v3 = vld [vmem:[%s705_s1 + $0x20] sm:$0xff]   ;;  %v598_v6 = vld [vmem:[%s705_s1 + $0x18] sm:$0xff]   ;;  %v599_v7 = vld [vmem:[%s705_s1 + $0x10] sm:$0xff]  }
   0x3   :  { %547 = vmatpush3.bf16.msra.mxu0 %v594_v0  ;;  %586 = vmatpush3.bf16.msra.mxu1 %v594_v0  ;;  %v602_v4 = vld [vmem:[%s706_s0] sm:$0xff]   ;;  %v600_v8 = vld [vmem:[%s705_s1 + $0x8] sm:$0xff]   ;;  %v606_v12 = vld [vmem:[%s706_s0 + $0x10] sm:$0xff]  }
   0x4   :  { %548 = vmatprep.subr.bf16.mxu0 %v595_v1  ;;  %579 = vmatprep.subr.bf16.mxu1 %v595_v1  ;;  %v603_v5 = vld [vmem:[%s706_s0 + $0x20] sm:$0xff]   ;;  %v604_v10 = vld [vmem:[%s706_s0 + $0x8] sm:$0xff]   ;;  %v607_v13 = vld [vmem:[%s706_s0 + $0x30] sm:$0xff]  }
   0x5   :  { %562 = vmatprep.mubr.bf16.mxu0 %v602_v4  ;;  %570 = vmatprep.mubr.bf16.mxu1 %v603_v5  ;;  %v601_v9 = vld [vmem:[%s705_s1] sm:$0xff]   ;;  %v605_v11 = vld [vmem:[%s706_s0 + $0x28] sm:$0xff]   ;;  %v608_v14 = vld [vmem:[%s706_s0 + $0x18] sm:$0xff]  }
   0x6   :  { %v609_v15 = vld [vmem:[%s706_s0 + $0x38] sm:$0xff]   ;;  %v450_v18 = vld [vmem:[%s707_s2] ss:$0 sm:$0xff] }
   0x7   :  { %549 = vmatpush3.bf16.msra.mxu0 %v595_v1  ;;  %587 = vmatpush3.bf16.msra.mxu1 %v595_v1 }
   0x8   :  { %550 = vmatprep.subr.bf16.mxu0 %v596_v2  ;;  %580 = vmatprep.subr.bf16.mxu1 %v596_v2 }
   0xb   :  { %551 = vmatpush3.bf16.msra.mxu0 %v596_v2  ;;  %588 = vmatpush3.bf16.msra.mxu1 %v596_v2 }
   0xc   :  { %552 = vmatprep.subr.bf16.mxu0 %v597_v3  ;;  %581 = vmatprep.subr.bf16.mxu1 %v597_v3 }
   0xf   :  { %553 = vmatpush3.bf16.msra.mxu0 %v597_v3  ;;  %589 = vmatpush3.bf16.msra.mxu1 %v597_v3 }
  0x10   :  { %554 = vmatprep.subr.bf16.mxu0 %v598_v6  ;;  %582 = vmatprep.subr.bf16.mxu1 %v598_v6 }
  0x13   :  { %555 = vmatpush3.bf16.msra.mxu0 %v598_v6  ;;  %590 = vmatpush3.bf16.msra.mxu1 %v598_v6 }
  0x14   :  { %556 = vmatprep.subr.bf16.mxu0 %v599_v7  ;;  %583 = vmatprep.subr.bf16.mxu1 %v599_v7 }
  0x17   :  { %557 = vmatpush3.bf16.msra.mxu0 %v599_v7  ;;  %591 = vmatpush3.bf16.msra.mxu1 %v599_v7 }
  0x18   :  { %558 = vmatprep.subr.bf16.mxu0 %v600_v8  ;;  %584 = vmatprep.subr.bf16.mxu1 %v600_v8 }
  0x1b   :  { %559 = vmatpush3.bf16.msra.mxu0 %v600_v8  ;;  %592 = vmatpush3.bf16.msra.mxu1 %v600_v8 }
  0x1c   :  { %560 = vmatprep.subr.bf16.mxu0 %v601_v9  ;;  %585 = vmatprep.subr.bf16.mxu1 %v601_v9 }
  0x1f   :  { %561 = vmatpush3.bf16.msra.mxu0 %v601_v9  ;;  %593 = vmatpush3.bf16.msra.mxu1 %v601_v9 }
  0x22   :  { %563 = vmatmul.mubr.bf16.vlgmr.msra.gmra.mxu0 %v604_v10  ;;  %571 = vmatmul.mubr.bf16.vlgmr.msra.gmra.mxu1 %v605_v11 }
  0x23   :  { %566 = vmatprep.mubr.bf16.mxu0 %v606_v12  ;;  %574 = vmatprep.mubr.bf16.mxu1 %v607_v13 }
  0x2a   :  { %567 = vmatmul.mubr.bf16.gmra.mxu0 %v608_v14  ;;  %575 = vmatmul.mubr.bf16.gmra.mxu1 %v609_v15 }
  0xe2   :  { %v564_v16 = vpop.f32.mrf.mxu0  ;;  %v572_v17 = vpop.f32.mrf.mxu1 }
  0xe3   :  { %v336_v23 = vadd.f32 %v564_v16, %v450_v18  ;;  %v344_v24 = vadd.f32 %v572_v17, %v450_v18 }
  0xe4   :  { %v213_v19 = vpop.f32.mrf.mxu0  ;;  %v245_v20 = vpop.f32.mrf.mxu1 }
  0xe5   :  { %v334_v27 = vadd.f32 %v450_v18, %v213_v19  ;;  %v342_v28 = vadd.f32 %v450_v18, %v245_v20 }
  0xe6   :  { %v565_v21 = vpop.f32.mrf.mxu0  ;;  %v573_v22 = vpop.f32.mrf.mxu1 }
  0xe7   :  { %v337_v25 = vadd.f32 %v565_v21, %v450_v18  ;;  %v345_v26 = vadd.f32 %v573_v22, %v450_v18 }
  0xe8   :  { %v216_v29 = vpop.f32.mrf.mxu0  ;;  %v248_v30 = vpop.f32.mrf.mxu1 }
  0xe9   :  { %v491_v31 = vpack.c.bf16 %v337_v25, %v336_v23  ;;  %v511_v32 = vpack.c.bf16 %v345_v26, %v344_v24  ;;  %v335_v33 = vadd.f32 %v450_v18, %v216_v29  ;;  %v343_v34 = vadd.f32 %v450_v18, %v248_v30 }
  0xea   :  { %v568_v35 = vpop.f32.mrf.mxu0  ;;  %v576_v36 = vpop.f32.mrf.mxu1 }
  0xeb   :  { %523 = vst [vmem:[%s708_s3 + $0x8] sm:$0xff] %v491_v31   ;;  %527 = vst [vmem:[%s708_s3 + $0x28] sm:$0xff] %v511_v32   ;;  %v486_v37 = vpack.c.bf16 %v335_v33, %v334_v27  ;;  %v506_v38 = vpack.c.bf16 %v343_v34, %v342_v28  ;;  %v340_v43 = vadd.f32 %v568_v35, %v450_v18 }
  0xec   :  { %v229_v39 = vpop.f32.mrf.mxu0  ;;  %v261_v40 = vpop.f32.mrf.mxu1  ;;  %v348_v44 = vadd.f32 %v576_v36, %v450_v18 }
  0xed   :  { %487 = vst [vmem:[%s708_s3] sm:$0xff] %v486_v37   ;;  %526 = vst [vmem:[%s708_s3 + $0x20] sm:$0xff] %v506_v38   ;;  %v338_v47 = vadd.f32 %v450_v18, %v229_v39  ;;  %v346_v48 = vadd.f32 %v450_v18, %v261_v40 }
  0xee   :  { %v569_v41 = vpop.f32.mrf.mxu0  ;;  %v577_v42 = vpop.f32.mrf.mxu1 }
  0xef   :  { %v341_v45 = vadd.f32 %v569_v41, %v450_v18  ;;  %v349_v46 = vadd.f32 %v577_v42, %v450_v18 }
  0xf0   :  { %v232_v49 = vpop.f32.mrf.mxu0  ;;  %v264_v50 = vpop.f32.mrf.mxu1 }
  0xf1   :  { %v501_v51 = vpack.c.bf16 %v341_v45, %v340_v43  ;;  %v521_v52 = vpack.c.bf16 %v349_v46, %v348_v44  ;;  %v339_v53 = vadd.f32 %v450_v18, %v232_v49  ;;  %v347_v54 = vadd.f32 %v450_v18, %v264_v50 }
  0xf3   :  { %525 = vst [vmem:[%s708_s3 + $0x18] sm:$0xff] %v501_v51   ;;  %529 = vst [vmem:[%s708_s3 + $0x38] sm:$0xff] %v521_v52   ;;  %v496_v55 = vpack.c.bf16 %v339_v53, %v338_v47  ;;  %v516_v56 = vpack.c.bf16 %v347_v54, %v346_v48 }
  0xf5   :  { %524 = vst [vmem:[%s708_s3 + $0x10] sm:$0xff] %v496_v55   ;;  %528 = vst [vmem:[%s708_s3 + $0x30] sm:$0xff] %v516_v56  }

// kernel: forward.17
= control target key start
LH: loop header
LB: loop body
LE: loop exit
PB: predicated region body
PF: predicated region fallthrough
CT: control target
= control target key end

     0   :  { %s1883_s12 = smov 0   ;;  %s1885_s13 = smov 0   ;;  %s2219_s0 = inlined_call_operand.vmem [shape: bf16[128,3456], index: 0, kind: input, shape index: {}]   ;;  %s2220_s1 = inlined_call_operand.vmem [shape: bf16[3456,256], index: 1, kind: input, shape index: {}]   ;;  %s2221_s2 = inlined_call_operand.vmem [shape: f32[1,256], index: 2, kind: input, shape index: {}]   ;;  %s2222_s3 = inlined_call_operand.vmem [shape: bf16[128,256], index: 3, kind: output, shape index: {}]  }
   0x1   :  { %s1887_s14 = smov 0   ;;  %s1889_s15 = smov 0  }
   0x2   :  { %s1891_s16 = smov 0  }
   0x3 LB: > { %s25_s17 = sadd.s32 1, %s1855_s15  ;;  %p48_p1 = scmp.ne.s32.totalorder %s1847_s13, %s1843_s12  ;;  %s1859_s16 = sphi %s1891_s16, %s13_s16   ;;  %s1855_s15 = sphi %s1889_s15, %s2226_s15   ;;  %s1851_s14 = sphi %s1887_s14, %s2225_s14   ;;  %s1847_s13 = sphi %s1885_s13, %s2224_s13   ;;  %s1843_s12 = sphi %s1883_s12, %s2223_s12  }
   0x4   : > { %p26_p0 = scmp.ge.s32.totalorder %s25_s17, 9  ;;  %p49_p2 = scmp.eq.s32.totalorder %s1859_s16, 0 }
   0x5   : > { %s41_s19 = sadd.s32 1, %s1847_s13  ;;  %p1524_p5 = scmp.ge.s32.totalorder %s1859_s16, 9 }
   0x6   : > { %s2228_s17 = smov (%p26_p0, %s25_s17), 0  ;;  %p50_p3 = por %p49_p2, %p48_p1 }
   0x7   : > { %s37_s18 = ssub.s32 %s1855_s15, %s2228_s17  ;;  %164 = sbr.rel (%p1524_p5) target bundleno = 35 (0x23), region = 20 }
   0x8   : > { %p39_p4 = scmp.eq.s32.totalorder %s37_s18, 0 }
   0xa   : > { %s1918_s20 = scalar_select %p39_p4, %s1847_s13, %s41_s19  }
   0xc   : > { %167 = sbr.rel (!%p50_p3) target bundleno = 35 (0x23), region = 24  ;;  %s169_s21 = sand.u32 (%p50_p3), 1, %s1847_s13  }
   0xd   : > { %s1655_s22 = smul.u32 (%p50_p3), 12, %s1855_s15 }
   0xe   : > { %s1673_s23 = smul.u32 (%p50_p3), 192, %s169_s21 }
   0xf   : > { %s1926_s26 = scalar_lea.vmem (%p50_p3), %s2219_s0, %s1655_s22 }
  0x10   : > { %v192_v0 = vld [vmem:[%s1926_s26] sm:$0xff] (%p50_p3)  ;;  %v194_v1 = vld [vmem:[%s1926_s26 + $0x6c] sm:$0xff] (%p50_p3)  ;;  %v196_v2 = vld [vmem:[%s1926_s26 + $0xd8] sm:$0xff] (%p50_p3)  ;;  %s1931_s27 = scalar_lea.vmem (%p50_p3), [#allocation3], %s1673_s23 }
  0x11   : > { %193 = vst [vmem:[%s1931_s27] sm:$0xff] %v192_v0  ;;  %195 = vst [vmem:[%s1931_s27 + $0xc] sm:$0xff] %v194_v1  ;;  %v198_v3 = vld [vmem:[%s1926_s26 + $0x144] sm:$0xff]  ;;  %v200_v4 = vld [vmem:[%s1926_s26 + $0x1b0] sm:$0xff] }
  0x12   : > { %197 = vst [vmem:[%s1931_s27 + $0x18] sm:$0xff] %v196_v2  ;;  %v202_v5 = vld [vmem:[%s1926_s26 + $0x21c] sm:$0xff]  ;;  %199 = vst [vmem:[%s1931_s27 + $0x24] sm:$0xff] %v198_v3  ;;  %v204_v6 = vld [vmem:[%s1926_s26 + $0x288] sm:$0xff] }
  0x13   : > { %201 = vst [vmem:[%s1931_s27 + $0x30] sm:$0xff] %v200_v4  ;;  %203 = vst [vmem:[%s1931_s27 + $0x3c] sm:$0xff] %v202_v5  ;;  %v206_v7 = vld [vmem:[%s1926_s26 + $0x2f4] sm:$0xff]  ;;  %v208_v8 = vld [vmem:[%s1926_s26 + $0x360] sm:$0xff] }
  0x14   : > { %205 = vst [vmem:[%s1931_s27 + $0x48] sm:$0xff] %v204_v6  ;;  %207 = vst [vmem:[%s1931_s27 + $0x54] sm:$0xff] %v206_v7  ;;  %v210_v9 = vld [vmem:[%s1926_s26 + $0x3cc] sm:$0xff]  ;;  %v212_v10 = vld [vmem:[%s1926_s26 + $0x438] sm:$0xff] }
  0x15   : > { %209 = vst [vmem:[%s1931_s27 + $0x60] sm:$0xff] %v208_v8  ;;  %v214_v11 = vld [vmem:[%s1926_s26 + $0x4a4] sm:$0xff]  ;;  %211 = vst [vmem:[%s1931_s27 + $0x6c] sm:$0xff] %v210_v9  ;;  %v216_v12 = vld [vmem:[%s1926_s26 + $0x510] sm:$0xff] }
  0x16   : > { %213 = vst [vmem:[%s1931_s27 + $0x78] sm:$0xff] %v212_v10  ;;  %215 = vst [vmem:[%s1931_s27 + $0x84] sm:$0xff] %v214_v11  ;;  %v218_v13 = vld [vmem:[%s1926_s26 + $0x57c] sm:$0xff]  ;;  %v220_v14 = vld [vmem:[%s1926_s26 + $0x5e8] sm:$0xff] }
  0x17   : > { %217 = vst [vmem:[%s1931_s27 + $0x90] sm:$0xff] %v216_v12  ;;  %219 = vst [vmem:[%s1931_s27 + $0x9c] sm:$0xff] %v218_v13  ;;  %v222_v15 = vld [vmem:[%s1926_s26 + $0x654] sm:$0xff]  ;;  %v1526_v16 = vld [vmem:[%s1926_s26 + $0x8] sm:$0xf] }
  0x18   : > { %221 = vst [vmem:[%s1931_s27 + $0xa8] sm:$0xff] %v220_v14  ;;  %v1528_v17 = vld [vmem:[%s1926_s26 + $0x74] sm:$0xf]  ;;  %223 = vst [vmem:[%s1931_s27 + $0xb4] sm:$0xff] %v222_v15  ;;  %v1530_v18 = vld [vmem:[%s1926_s26 + $0xe0] sm:$0xf] }
  0x19   : > { %1527 = vst [vmem:[%s1931_s27 + $0x8] sm:$0xf] %v1526_v16  ;;  %1529 = vst [vmem:[%s1931_s27 + $0x14] sm:$0xf] %v1528_v17  ;;  %v1532_v19 = vld [vmem:[%s1926_s26 + $0x14c] sm:$0xf] }
  0x1a   : > { %v1534_v20 = vld [vmem:[%s1926_s26 + $0x1b8] sm:$0xf]  ;;  %1531 = vst [vmem:[%s1931_s27 + $0x20] sm:$0xf] %v1530_v18  ;;  %1533 = vst [vmem:[%s1931_s27 + $0x2c] sm:$0xf] %v1532_v19 }
  0x1b   : > { %1535 = vst [vmem:[%s1931_s27 + $0x38] sm:$0xf] %v1534_v20  ;;  %v1536_v21 = vld [vmem:[%s1926_s26 + $0x224] sm:$0xf]  ;;  %v1538_v22 = vld [vmem:[%s1926_s26 + $0x290] sm:$0xf] }
  0x1c   : > { %v1540_v23 = vld [vmem:[%s1926_s26 + $0x2fc] sm:$0xf]  ;;  %1537 = vst [vmem:[%s1931_s27 + $0x44] sm:$0xf] %v1536_v21  ;;  %1539 = vst [vmem:[%s1931_s27 + $0x50] sm:$0xf] %v1538_v22 }
  0x1d   : > { %1541 = vst [vmem:[%s1931_s27 + $0x5c] sm:$0xf] %v1540_v23  ;;  %v1542_v24 = vld [vmem:[%s1926_s26 + $0x368] sm:$0xf]  ;;  %v1544_v25 = vld [vmem:[%s1926_s26 + $0x3d4] sm:$0xf] }
  0x1e   : > { %v1546_v26 = vld [vmem:[%s1926_s26 + $0x440] sm:$0xf]  ;;  %1543 = vst [vmem:[%s1931_s27 + $0x68] sm:$0xf] %v1542_v24  ;;  %1545 = vst [vmem:[%s1931_s27 + $0x74] sm:$0xf] %v1544_v25 }
  0x1f   : > { %1547 = vst [vmem:[%s1931_s27 + $0x80] sm:$0xf] %v1546_v26  ;;  %v1548_v27 = vld [vmem:[%s1926_s26 + $0x4ac] sm:$0xf]  ;;  %v1550_v28 = vld [vmem:[%s1926_s26 + $0x518] sm:$0xf] }
  0x20   : > { %v1552_v29 = vld [vmem:[%s1926_s26 + $0x584] sm:$0xf]  ;;  %1549 = vst [vmem:[%s1931_s27 + $0x8c] sm:$0xf] %v1548_v27  ;;  %1551 = vst [vmem:[%s1931_s27 + $0x98] sm:$0xf] %v1550_v28 }
  0x21   : > { %1553 = vst [vmem:[%s1931_s27 + $0xa4] sm:$0xf] %v1552_v29  ;;  %v1554_v30 = vld [vmem:[%s1926_s26 + $0x5f0] sm:$0xf]  ;;  %v1556_v31 = vld [vmem:[%s1926_s26 + $0x65c] sm:$0xf] }
  0x22   : > { %1555 = vst [vmem:[%s1931_s27 + $0xb0] sm:$0xf] %v1554_v30  ;;  %1557 = vst [vmem:[%s1931_s27 + $0xbc] sm:$0xf] %v1556_v31 }
  0x23 PF: > { %p1558_p6 = scmp.ge.s32.totalorder %s1859_s16, 1  ;;  %p283_p7 = scmp.lt.s32.totalorder %s1859_s16, 10 }
  0x25   : > { %p284_p8 = pnand %p1558_p6, %p283_p7 }
  0x26   : > { %s290_s28 = sand.u32 (!%p284_p8), 1, %s1843_s12   ;;  %s334_s29 = smul.u32 (!%p284_p8), 48, %s1851_s14 }
  0x27   : > { %287 = sbr.rel (%p284_p8) target bundleno = 423 (0x1a7), region = 54  ;;  %p1561_p10 = scmp.ne.s32.totalorder (!%p284_p8), %s1851_s14, 0 }
  0x28   : > { %s1674_s30 = smul.u32 (!%p284_p8), 192, %s290_s28  ;;  %p336_p9 = scmp.lt.s32.totalorder (!%p284_p8), %s334_s29, 431 }
  0x2a   : > { %s2003_s8 = scalar_lea.vmem (!%p284_p8), [#allocation3], %s1674_s30 }
  0x2c   : > { %s2230_s29 = smov (!%p336_p9, %s334_s29), 431  ;;  %367 = sbr.rel (%p1561_p10) target bundleno = 66 (0x42), region = 62 }
  0x2d   : > { %s1656_s4 = sshll.u32 %s2230_s29, 3 }
  0x2e   : > { %s2001_s7 = scalar_lea.vmem %s2220_s1, %s1656_s4 }
  0x31   : > { %v1861_v32 = vmov 0.0  }
  0x32   : > { %368 = vst [vmem:[#allocation2 + $0xb0] sm:$0xff] %v1861_v32  ;;  %369 = vst [vmem:[#allocation2] sm:$0xff] %v1861_v32 }
  0x33   : > { %370 = vst [vmem:[#allocation2 + $0xd8] sm:$0xff] %v1861_v32  ;;  %371 = vst [vmem:[#allocation2 + $0x18] sm:$0xff] %v1861_v32 }
  0x34   : > { %372 = vst [vmem:[#allocation2 + $0x50] sm:$0xff] %v1861_v32  ;;  %373 = vst [vmem:[#allocation2 + $0x68] sm:$0xff] %v1861_v32 }
  0x35   : > { %374 = vst [vmem:[#allocation2 + $0x30] sm:$0xff] %v1861_v32  ;;  %375 = vst [vmem:[#allocation2 + $0x48] sm:$0xff] %v1861_v32 }
  0x36   : > { %376 = vst [vmem:[#allocation2 + $0x80] sm:$0xff] %v1861_v32  ;;  %377 = vst [vmem:[#allocation2 + $0x88] sm:$0xff] %v1861_v32 }
  0x37   : > { %378 = vst [vmem:[#allocation2 + $0xe8] sm:$0xff] %v1861_v32  ;;  %379 = vst [vmem:[#allocation2 + $0xb8] sm:$0xff] %v1861_v32 }
  0x38   : > { %380 = vst [vmem:[#allocation2 + $0x60] sm:$0xff] %v1861_v32  ;;  %381 = vst [vmem:[#allocation2 + $0xf0] sm:$0xff] %v1861_v32 }
  0x39   : > { %382 = vst [vmem:[#allocation2 + $0x8] sm:$0xff] %v1861_v32  ;;  %383 = vst [vmem:[#allocation2 + $0x78] sm:$0xff] %v1861_v32 }
  0x3a   : > { %384 = vst [vmem:[#allocation2 + $0x38] sm:$0xff] %v1861_v32  ;;  %385 = vst [vmem:[#allocation2 + $0x58] sm:$0xff] %v1861_v32 }
  0x3b   : > { %386 = vst [vmem:[#allocation2 + $0x40] sm:$0xff] %v1861_v32  ;;  %387 = vst [vmem:[#allocation2 + $0xc8] sm:$0xff] %v1861_v32 }
  0x3c   : > { %388 = vst [vmem:[#allocation2 + $0xe0] sm:$0xff] %v1861_v32  ;;  %389 = vst [vmem:[#allocation2 + $0x90] sm:$0xff] %v1861_v32 }
  0x3d   : > { %390 = vst [vmem:[#allocation2 + $0x70] sm:$0xff] %v1861_v32  ;;  %391 = vst [vmem:[#allocation2 + $0xc0] sm:$0xff] %v1861_v32 }
  0x3e   : > { %392 = vst [vmem:[#allocation2 + $0xa8] sm:$0xff] %v1861_v32  ;;  %393 = vst [vmem:[#allocation2 + $0xd0] sm:$0xff] %v1861_v32 }
  0x3f   : > { %394 = vst [vmem:[#allocation2 + $0x10] sm:$0xff] %v1861_v32  ;;  %395 = vst [vmem:[#allocation2 + $0x28] sm:$0xff] %v1861_v32 }
  0x40   : > { %396 = vst [vmem:[#allocation2 + $0xa0] sm:$0xff] %v1861_v32  ;;  %397 = vst [vmem:[#allocation2 + $0xf8] sm:$0xff] %v1861_v32 }
  0x41   : > { %398 = vst [vmem:[#allocation2 + $0x20] sm:$0xff] %v1861_v32  ;;  %399 = vst [vmem:[#allocation2 + $0x98] sm:$0xff] %v1861_v32 }
  0x42 PF: > { %v1717_v33 = vld [vmem:[%s2001_s7 + $0x74] ss:$8 sps:$4 sm:$0xff]   ;;  %v1719_v34 = vld [vmem:[%s2001_s7 + $0x70] ss:$8 sps:$4 sm:$0xff]   ;;  %v1862_v35 = vmov 0   ;;  %p1634_p11 = scmp.ne.s32.totalorder %s1851_s14, 8 }
  0x43   : > { %1025 = vmatprep.mubr.bf16.mxu1 %v1862_v35  ;;  %880 = vmatprep.subr.bf16.mxu0 %v1717_v33  ;;  %v1720_v36 = vld [vmem:[%s2001_s7 + $0x64] ss:$8 sps:$4 sm:$0xff]   ;;  %v1722_v37 = vld [vmem:[%s2001_s7 + $0x60] ss:$8 sps:$4 sm:$0xff]   ;;  %v1723_v38 = vld [vmem:[%s2001_s7 + $0x54] ss:$8 sps:$4 sm:$0xff]  }
  0x44   : > { %881 = vmatpush1.bf16.msra.mxu0 %v1719_v34  ;;  %v1725_v39 = vld [vmem:[%s2001_s7 + $0x50] ss:$8 sps:$4 sm:$0xff]   ;;  %v1726_v40 = vld [vmem:[%s2001_s7 + $0x44] ss:$8 sps:$4 sm:$0xff]   ;;  %v1738_v41 = vld [vmem:[%s2001_s7 + $0x174] ss:$8 sps:$4 sm:$0xff]  }
  0x45   : > { %882 = vmatprep.subr.bf16.mxu0 %v1720_v36  ;;  %v1740_v42 = vld [vmem:[%s2001_s7 + $0x170] ss:$8 sps:$4 sm:$0xff]   ;;  %v1728_v43 = vld [vmem:[%s2001_s7 + $0x40] ss:$8 sps:$4 sm:$0xff]   ;;  %v1729_v44 = vld [vmem:[%s2001_s7 + $0x34] ss:$8 sps:$4 sm:$0xff]   ;;  %993 = vmatprep.subr.bf16.mxu1 %v1738_v41 }
  0x46   : > { %v1744_v45 = vld [vmem:[%s2001_s7 + $0x164] ss:$8 sps:$4 sm:$0xff]   ;;  %994 = vmatpush1.bf16.msra.mxu1 %v1740_v42  ;;  %v1746_v46 = vld [vmem:[%s2001_s7 + $0x160] ss:$8 sps:$4 sm:$0xff]   ;;  %v1731_v47 = vld [vmem:[%s2001_s7 + $0x30] ss:$8 sps:$4 sm:$0xff]  }
  0x47   : > { %995 = vmatprep.subr.bf16.mxu1 %v1744_v45  ;;  %v1750_v48 = vld [vmem:[%s2001_s7 + $0x154] ss:$8 sps:$4 sm:$0xff]   ;;  %v1732_v49 = vld [vmem:[%s2001_s7 + $0x24] ss:$8 sps:$4 sm:$0xff]   ;;  %v1752_v50 = vld [vmem:[%s2001_s7 + $0x150] ss:$8 sps:$4 sm:$0xff]  }
  0x48   : > { %883 = vmatpush1.bf16.msra.mxu0 %v1722_v37  ;;  %v1756_v51 = vld [vmem:[%s2001_s7 + $0x144] ss:$8 sps:$4 sm:$0xff]   ;;  %v1734_v52 = vld [vmem:[%s2001_s7 + $0x20] ss:$8 sps:$4 sm:$0xff]   ;;  %v1735_v53 = vld [vmem:[%s2001_s7 + $0x14] ss:$8 sps:$4 sm:$0xff]  }
  0x49   : > { %884 = vmatprep.subr.bf16.mxu0 %v1723_v38  ;;  %v1758_v54 = vld [vmem:[%s2001_s7 + $0x140] ss:$8 sps:$4 sm:$0xff]   ;;  %v1762_v55 = vld [vmem:[%s2001_s7 + $0x134] ss:$8 sps:$4 sm:$0xff]   ;;  %v1737_v56 = vld [vmem:[%s2001_s7 + $0x10] ss:$8 sps:$4 sm:$0xff]  }
  0x4a   : > { %996 = vmatpush1.bf16.msra.mxu1 %v1746_v46  ;;  %v1741_v57 = vld [vmem:[%s2001_s7 + $0x4] ss:$8 sps:$4 sm:$0xff]   ;;  %v1764_v58 = vld [vmem:[%s2001_s7 + $0x130] ss:$8 sps:$4 sm:$0xff]   ;;  %v1743_v60 = vld [vmem:[%s2001_s7] ss:$8 sps:$4 sm:$0xff]  }
  0x4b   : > { %997 = vmatprep.subr.bf16.mxu1 %v1750_v48  ;;  %v1768_v59 = vld [vmem:[%s2001_s7 + $0x124] ss:$8 sps:$4 sm:$0xff]   ;;  %v1747_v61 = vld [vmem:[%s2001_s7 + $0xf4] ss:$8 sps:$4 sm:$0xff]   ;;  %v1770_v62 = vld [vmem:[%s2001_s7 + $0x120] ss:$8 sps:$4 sm:$0xff]  }
  0x4c   : > { %885 = vmatpush1.bf16.msra.mxu0 %v1725_v39  ;;  %v1774_v63 = vld [vmem:[%s2001_s7 + $0x114] ss:$8 sps:$4 sm:$0xff]   ;;  %v1749_v0 = vld [vmem:[%s2001_s7 + $0xf0] ss:$8 sps:$4 sm:$0xff]   ;;  %v1753_v1 = vld [vmem:[%s2001_s7 + $0xe4] ss:$8 sps:$4 sm:$0xff]  }
  0x4d   : > { %886 = vmatprep.subr.bf16.mxu0 %v1726_v40  ;;  %v1776_v2 = vld [vmem:[%s2001_s7 + $0x110] ss:$8 sps:$4 sm:$0xff]   ;;  %v1780_v3 = vld [vmem:[%s2001_s7 + $0x104] ss:$8 sps:$4 sm:$0xff]   ;;  %v1755_v5 = vld [vmem:[%s2001_s7 + $0xe0] ss:$8 sps:$4 sm:$0xff]  }
  0x4e   : > { %998 = vmatpush1.bf16.msra.mxu1 %v1752_v50  ;;  %v1792_v4 = vld [vmem:[%s2003_s8 + $0x4] ss:$12 sps:$4 sm:$0xff]   ;;  %v1759_v6 = vld [vmem:[%s2001_s7 + $0xd4] ss:$8 sps:$4 sm:$0xff]   ;;  %v1782_v7 = vld [vmem:[%s2001_s7 + $0x100] ss:$8 sps:$4 sm:$0xff]  }
  0x4f   : > { %999 = vmatprep.subr.bf16.mxu1 %v1756_v51  ;;  %912 = vmatprep.mubr.bf16.mxu0 %v1792_v4  ;;  %v1761_v8 = vld [vmem:[%s2001_s7 + $0xd0] ss:$8 sps:$4 sm:$0xff]   ;;  %v1765_v9 = vld [vmem:[%s2001_s7 + $0xc4] ss:$8 sps:$4 sm:$0xff]   ;;  %v1786_v10 = vld [vmem:[%s2003_s8 + $0x8] ss:$12 sps:$4 sm:$0xff]  }
  0x50   : > { %887 = vmatpush1.bf16.msra.mxu0 %v1728_v43  ;;  %v1767_v11 = vld [vmem:[%s2001_s7 + $0xc0] ss:$8 sps:$4 sm:$0xff]   ;;  %v1771_v12 = vld [vmem:[%s2001_s7 + $0xb4] ss:$8 sps:$4 sm:$0xff]   ;;  %v1773_v13 = vld [vmem:[%s2001_s7 + $0xb0] ss:$8 sps:$4 sm:$0xff]  }
  0x51   : > { %888 = vmatprep.subr.bf16.mxu0 %v1729_v44  ;;  %v1777_v14 = vld [vmem:[%s2001_s7 + $0xa4] ss:$8 sps:$4 sm:$0xff]   ;;  %v1779_v16 = vld [vmem:[%s2001_s7 + $0xa0] ss:$8 sps:$4 sm:$0xff]   ;;  %v1783_v17 = vld [vmem:[%s2001_s7 + $0x94] ss:$8 sps:$4 sm:$0xff]  }
  0x52   : > { %1000 = vmatpush1.bf16.msra.mxu1 %v1758_v54  ;;  %v1793_v15 = vld [vmem:[%s2003_s8 + $0x20] ss:$12 sps:$4 sm:$0xff]   ;;  %v1785_v18 = vld [vmem:[%s2001_s7 + $0x90] ss:$8 sps:$4 sm:$0xff]   ;;  %v1794_v23 = vld [vmem:[%s2003_s8 + $0x1c] ss:$12 sps:$4 sm:$0xff]  }
  0x53   : > { %1001 = vmatprep.subr.bf16.mxu1 %v1762_v55  ;;  %v1787_v19 = vld [vmem:[%s2001_s7 + $0x84] ss:$8 sps:$4 sm:$0xff]   ;;  %v1789_v21 = vld [vmem:[%s2001_s7 + $0x80] ss:$8 sps:$4 sm:$0xff]   ;;  %v1801_v24 = vld [vmem:[%s2003_s8 + $0x50] ss:$12 sps:$4 sm:$0xff]  }
  0x54   : > { %889 = vmatpush1.bf16.msra.mxu0 %v1731_v47  ;;  %v1797_v20 = vld [vmem:[%s2003_s8 + $0x38] ss:$12 sps:$4 sm:$0xff]   ;;  %v1790_v22 = vld [vmem:[%s2003_s8] ss:$12 sps:$4 sm:$0xff]   ;;  %v1805_v27 = vld [vmem:[%s2003_s8 + $0x68] ss:$12 sps:$4 sm:$0xff]  }
  0x55   : > { %890 = vmatprep.subr.bf16.mxu0 %v1732_v49  ;;  %v1796_v25 = vld [vmem:[%s2003_s8 + $0x18] ss:$12 sps:$4 sm:$0xff]   ;;  %v1798_v26 = vld [vmem:[%s2003_s8 + $0x34] ss:$12 sps:$4 sm:$0xff]   ;;  %v1800_v28 = vld [vmem:[%s2003_s8 + $0x30] ss:$12 sps:$4 sm:$0xff]  }
  0x56   : > { %1002 = vmatpush1.bf16.msra.mxu1 %v1764_v58  ;;  %v1802_v29 = vld [vmem:[%s2003_s8 + $0x4c] ss:$12 sps:$4 sm:$0xff]   ;;  %v1804_v31 = vld [vmem:[%s2003_s8 + $0x48] ss:$12 sps:$4 sm:$0xff]   ;;  %v1806_v32 = vld [vmem:[%s2003_s8 + $0x64] ss:$12 sps:$4 sm:$0xff]  }
  0x57   : > { %1003 = vmatprep.subr.bf16.mxu1 %v1768_v59  ;;  %v1809_v30 = vld [vmem:[%s2003_s8 + $0x80] ss:$12 sps:$4 sm:$0xff]   ;;  %v1813_v33 = vld [vmem:[%s2003_s8 + $0x98] ss:$12 sps:$4 sm:$0xff]   ;;  %v1810_v36 = vld [vmem:[%s2003_s8 + $0x7c] ss:$12 sps:$4 sm:$0xff]  }
  0x58   : > { %891 = vmatpush1.bf16.msra.mxu0 %v1734_v52  ;;  %v1808_v34 = vld [vmem:[%s2003_s8 + $0x60] ss:$12 sps:$4 sm:$0xff]   ;;  %v1817_v37 = vld [vmem:[%s2003_s8 + $0xb0] ss:$12 sps:$4 sm:$0xff]   ;;  %v1812_v38 = vld [vmem:[%s2003_s8 + $0x78] ss:$12 sps:$4 sm:$0xff]  }
  0x59   : > { %892 = vmatprep.subr.bf16.mxu0 %v1735_v53  ;;  %v1814_v39 = vld [vmem:[%s2003_s8 + $0x94] ss:$12 sps:$4 sm:$0xff]   ;;  %v1816_v40 = vld [vmem:[%s2003_s8 + $0x90] ss:$12 sps:$4 sm:$0xff]   ;;  %v1818_v41 = vld [vmem:[%s2003_s8 + $0xac] ss:$12 sps:$4 sm:$0xff]  }
  0x5a   : > { %1004 = vmatpush1.bf16.msra.mxu1 %v1770_v62  ;;  %v1820_v42 = vld [vmem:[%s2003_s8 + $0xa8] ss:$12 sps:$4 sm:$0xff]   ;;  %v402_v62 = vld [vmem:[#allocation2 + $0xd8] sm:$0xff] }
  0x5b   : > { %1005 = vmatprep.subr.bf16.mxu1 %v1774_v63  ;;  %v400_v53 = vld [vmem:[#allocation2 + $0xb0] sm:$0xff] }
  0x5c   : > { %893 = vmatpush1.bf16.msra.mxu0 %v1737_v56 }
  0x5d   : > { %894 = vmatprep.subr.bf16.mxu0 %v1741_v57  ;;  %v401_v57 = vld [vmem:[#allocation2] sm:$0xff] }
  0x5e   : > { %1006 = vmatpush1.bf16.msra.mxu1 %v1776_v2 }
  0x5f   : > { %1007 = vmatprep.subr.bf16.mxu1 %v1780_v3  ;;  %v403_v3 = vld [vmem:[#allocation2 + $0x18] sm:$0xff] }
  0x60   : > { %895 = vmatpush1.bf16.msra.mxu0 %v1743_v60 }
  0x61   : > { %896 = vmatprep.subr.bf16.mxu0 %v1747_v61 }
  0x62   : > { %1008 = vmatpush1.bf16.msra.mxu1 %v1782_v7 }
  0x64   : > { %897 = vmatpush2.bf16.msra.mxu0 %v1749_v0 }
  0x65   : > { %898 = vmatprep.subr.bf16.mxu0 %v1753_v1  ;;  %1026 = vmatmul.mubr.bf16.vlgmr.msra.gmra.mxu1 %v1786_v10 }
  0x66   : > { %1035 = vmatprep.mubr.bf16.mxu1 %v1862_v35 }
  0x68   : > { %899 = vmatpush2.bf16.msra.mxu0 %v1755_v5 }
  0x69   : > { %900 = vmatprep.subr.bf16.mxu0 %v1759_v6 }
  0x6c   : > { %901 = vmatpush2.bf16.msra.mxu0 %v1761_v8  ;;  %v404_v8 = vld [vmem:[#allocation2 + $0x50] sm:$0xff] }
  0x6d   : > { %902 = vmatprep.subr.bf16.mxu0 %v1765_v9  ;;  %1036 = vmatmul.mubr.bf16.gmra.mxu1 %v1793_v15 }
  0x6e   : > { %1045 = vmatprep.mubr.bf16.mxu1 %v1862_v35 }
  0x70   : > { %903 = vmatpush2.bf16.msra.mxu0 %v1767_v11 }
  0x71   : > { %904 = vmatprep.subr.bf16.mxu0 %v1771_v12 }
  0x74   : > { %905 = vmatpush2.bf16.msra.mxu0 %v1773_v13  ;;  %v405_v13 = vld [vmem:[#allocation2 + $0x68] sm:$0xff] }
  0x75   : > { %906 = vmatprep.subr.bf16.mxu0 %v1777_v14  ;;  %1046 = vmatmul.mubr.bf16.gmra.mxu1 %v1797_v20 }
  0x76   : > { %1055 = vmatprep.mubr.bf16.mxu1 %v1862_v35 }
  0x78   : > { %907 = vmatpush2.bf16.msra.mxu0 %v1779_v16 }
  0x79   : > { %908 = vmatprep.subr.bf16.mxu0 %v1783_v17 }
  0x7c   : > { %909 = vmatpush2.bf16.msra.mxu0 %v1785_v18  ;;  %v406_v18 = vld [vmem:[#allocation2 + $0x30] sm:$0xff] }
  0x7d   : > { %910 = vmatprep.subr.bf16.mxu0 %v1787_v19  ;;  %1056 = vmatmul.mubr.bf16.gmra.mxu1 %v1801_v24 }
  0x7e   : > { %1065 = vmatprep.mubr.bf16.mxu1 %v1862_v35 }
  0x80   : > { %911 = vmatpush2.bf16.msra.mxu0 %v1789_v21 }
  0x83   : > { %913 = vmatmul.mubr.bf16.vlgmr.msra.gmra.mxu0 %v1790_v22 }
  0x84   : > { %922 = vmatprep.mubr.bf16.mxu0 %v1794_v23  ;;  %v407_v23 = vld [vmem:[#allocation2 + $0x48] sm:$0xff] }
  0x85   : > { %1066 = vmatmul.mubr.bf16.gmra.mxu1 %v1805_v27 }
  0x86   : > { %1075 = vmatprep.mubr.bf16.mxu1 %v1862_v35 }
  0x8b   : > { %923 = vmatmul.mubr.bf16.gmra.mxu0 %v1796_v25 }
  0x8c   : > { %932 = vmatprep.mubr.bf16.mxu0 %v1798_v26 }
  0x8d   : > { %1076 = vmatmul.mubr.bf16.gmra.mxu1 %v1809_v30 }
  0x8e   : > { %1085 = vmatprep.mubr.bf16.mxu1 %v1862_v35 }
  0x93   : > { %933 = vmatmul.mubr.bf16.gmra.mxu0 %v1800_v28  ;;  %v408_v28 = vld [vmem:[#allocation2 + $0x80] sm:$0xff] }
  0x94   : > { %942 = vmatprep.mubr.bf16.mxu0 %v1802_v29 }
  0x95   : > { %1086 = vmatmul.mubr.bf16.gmra.mxu1 %v1813_v33  ;;  %v409_v33 = vld [vmem:[#allocation2 + $0x88] sm:$0xff] }
  0x96   : > { %1095 = vmatprep.mubr.bf16.mxu1 %v1862_v35 }
  0x9b   : > { %943 = vmatmul.mubr.bf16.gmra.mxu0 %v1804_v31 }
  0x9c   : > { %952 = vmatprep.mubr.bf16.mxu0 %v1806_v32 }
  0x9d   : > { %1096 = vmatmul.mubr.bf16.gmra.mxu1 %v1817_v37 }
  0xa3   : > { %953 = vmatmul.mubr.bf16.gmra.mxu0 %v1808_v34 }
  0xa4   : > { %962 = vmatprep.mubr.bf16.mxu0 %v1810_v36 }
  0xab   : > { %963 = vmatmul.mubr.bf16.gmra.mxu0 %v1812_v38 }
  0xac   : > { %972 = vmatprep.mubr.bf16.mxu0 %v1814_v39  ;;  %v410_v39 = vld [vmem:[#allocation2 + $0xe8] sm:$0xff] }
  0xb3   : > { %973 = vmatmul.mubr.bf16.gmra.mxu0 %v1816_v40 }
  0xb4   : > { %982 = vmatprep.mubr.bf16.mxu0 %v1818_v41 }
  0xbb   : > { %983 = vmatmul.mubr.bf16.gmra.mxu0 %v1820_v42 }
 0x125   : > { %v1027_v43 = vpop.f32.mrf.mxu1 }
 0x127   : > { %v1029_v44 = vpop.f32.mrf.mxu1 }
 0x129   : > { %v1031_v45 = vpop.f32.mrf.mxu1 }
 0x12b   : > { %v1033_v35 = vpop.f32.mrf.mxu1 }
 0x12d   : > { %v1037_v46 = vpop.f32.mrf.mxu1 }
 0x12f   : > { %v1039_v47 = vpop.f32.mrf.mxu1 }
 0x131   : > { %v1041_v48 = vpop.f32.mrf.mxu1 }
 0x133   : > { %v1043_v49 = vpop.f32.mrf.mxu1 }
 0x135   : > { %v1047_v50 = vpop.f32.mrf.mxu1 }
 0x137   : > { %v1049_v51 = vpop.f32.mrf.mxu1 }
 0x139   : > { %v1051_v52 = vpop.f32.mrf.mxu1 }
 0x13b   : > { %v2086_v55 = vpop.f32.mrf.mxu1 }
 0x13d   : > { %v2088_v59 = vpop.f32.mrf.mxu1 }
 0x13f   : > { %v2090_v0 = vpop.f32.mrf.mxu1 }
 0x141   : > { %v2092_v5 = vpop.f32.mrf.mxu1 }
 0x143   : > { %v914_v54 = vpop.f32.mrf.mxu0  ;;  %v2094_v10 = vpop.f32.mrf.mxu1 }
 0x144   : > { %v1028_v56 = vadd.f32 %v1027_v43, %v914_v54  ;;  %v411_v43 = vld [vmem:[#allocation2 + $0xb8] sm:$0xff] }
 0x145   : > { %v916_v58 = vpop.f32.mrf.mxu0  ;;  %v2096_v15 = vpop.f32.mrf.mxu1 }
 0x146   : > { %v1106_v60 = vadd.f32 %v1028_v56, %v400_v53  ;;  %v1030_v61 = vadd.f32 %v1029_v44, %v916_v58  ;;  %v413_v53 = vld [vmem:[#allocation2 + $0xf0] sm:$0xff] }
 0x147   : > { %v918_v63 = vpop.f32.mrf.mxu0  ;;  %v2098_v20 = vpop.f32.mrf.mxu1 }
 0x148   : > { %1138 = vst [vmem:[#allocation2 + $0xb0] sm:$0xff] %v1106_v60  ;;  %v1107_v1 = vadd.f32 %v1030_v61, %v401_v57  ;;  %v1032_v2 = vadd.f32 %v1031_v45, %v918_v63  ;;  %v414_v57 = vld [vmem:[#allocation2 + $0x8] sm:$0xff] }
 0x149   : > { %v920_v4 = vpop.f32.mrf.mxu0  ;;  %v2100_v25 = vpop.f32.mrf.mxu1 }
 0x14a   : > { %1139 = vst [vmem:[#allocation2] sm:$0xff] %v1107_v1  ;;  %v1108_v6 = vadd.f32 %v1032_v2, %v402_v62  ;;  %v1034_v7 = vadd.f32 %v1033_v35, %v920_v4  ;;  %v416_v2 = vld [vmem:[#allocation2 + $0x38] sm:$0xff] }
 0x14b   : > { %v924_v9 = vpop.f32.mrf.mxu0  ;;  %v2102_v30 = vpop.f32.mrf.mxu1 }
 0x14c   : > { %1140 = vst [vmem:[#allocation2 + $0xd8] sm:$0xff] %v1108_v6  ;;  %v1109_v11 = vadd.f32 %v1034_v7, %v403_v3  ;;  %v1038_v12 = vadd.f32 %v1037_v46, %v924_v9 }
 0x14d   : > { %v926_v14 = vpop.f32.mrf.mxu0  ;;  %v2104_v36 = vpop.f32.mrf.mxu1 }
 0x14e   : > { %1141 = vst [vmem:[#allocation2 + $0x18] sm:$0xff] %v1109_v11  ;;  %v1110_v16 = vadd.f32 %v1038_v12, %v404_v8  ;;  %v1040_v17 = vadd.f32 %v1039_v47, %v926_v14  ;;  %v412_v47 = vld [vmem:[#allocation2 + $0x60] sm:$0xff] }
 0x14f   : > { %v928_v19 = vpop.f32.mrf.mxu0  ;;  %v1079_v45 = vpop.f32.mrf.mxu1  ;;  %v418_v11 = vld [vmem:[#allocation2 + $0x40] sm:$0xff] }
 0x150   : > { %1142 = vst [vmem:[#allocation2 + $0x50] sm:$0xff] %v1110_v16  ;;  %v1111_v21 = vadd.f32 %v1040_v17, %v405_v13  ;;  %v1042_v22 = vadd.f32 %v1041_v48, %v928_v19  ;;  %v420_v19 = vld [vmem:[#allocation2 + $0xe0] sm:$0xff] }
 0x151   : > { %v930_v24 = vpop.f32.mrf.mxu0  ;;  %v1081_v54 = vpop.f32.mrf.mxu1 }
 0x152   : > { %1143 = vst [vmem:[#allocation2 + $0x68] sm:$0xff] %v1111_v21  ;;  %v1112_v26 = vadd.f32 %v1042_v22, %v406_v18  ;;  %v1044_v27 = vadd.f32 %v1043_v49, %v930_v24 }
 0x153   : > { %v934_v29 = vpop.f32.mrf.mxu0  ;;  %v1083_v63 = vpop.f32.mrf.mxu1 }
 0x154   : > { %1144 = vst [vmem:[#allocation2 + $0x30] sm:$0xff] %v1112_v26  ;;  %v1113_v31 = vadd.f32 %v1044_v27, %v407_v23  ;;  %v1048_v32 = vadd.f32 %v1047_v50, %v934_v29 }
 0x155   : > { %v936_v34 = vpop.f32.mrf.mxu0  ;;  %v1087_v8 = vpop.f32.mrf.mxu1 }
 0x156   : > { %1145 = vst [vmem:[#allocation2 + $0x48] sm:$0xff] %v1113_v31  ;;  %v1114_v37 = vadd.f32 %v1048_v32, %v408_v28  ;;  %v1050_v38 = vadd.f32 %v1049_v51, %v936_v34 }
 0x157   : > { %v938_v40 = vpop.f32.mrf.mxu0  ;;  %v1089_v17 = vpop.f32.mrf.mxu1 }
 0x158   : > { %1146 = vst [vmem:[#allocation2 + $0x80] sm:$0xff] %v1114_v37  ;;  %v1115_v41 = vadd.f32 %v1050_v38, %v409_v33  ;;  %v1052_v42 = vadd.f32 %v1051_v52, %v938_v40  ;;  %v423_v33 = vld [vmem:[#allocation2 + $0xc0] sm:$0xff] }
 0x159   : > { %v940_v44 = vpop.f32.mrf.mxu0  ;;  %v1091_v26 = vpop.f32.mrf.mxu1 }
 0x15a   : > { %1147 = vst [vmem:[#allocation2 + $0x88] sm:$0xff] %v1115_v41  ;;  %v1116_v35 = vadd.f32 %v1052_v42, %v410_v39  ;;  %v1054_v46 = vadd.f32 %v2086_v55, %v940_v44  ;;  %v415_v55 = vld [vmem:[#allocation2 + $0x78] sm:$0xff]  ;;  %v424_v39 = vld [vmem:[#allocation2 + $0xa8] sm:$0xff]  ;;  %v425_v42 = vld [vmem:[#allocation2 + $0xd0] sm:$0xff] }
 0x15b   : > { %v944_v48 = vpop.f32.mrf.mxu0 }
 0x15c   : > { %1148 = vst [vmem:[#allocation2 + $0xe8] sm:$0xff] %v1116_v35  ;;  %v1117_v49 = vadd.f32 %v1054_v46, %v411_v43  ;;  %v1058_v50 = vadd.f32 %v2088_v59, %v944_v48  ;;  %v426_v46 = vld [vmem:[#allocation2 + $0x10] sm:$0xff] }
 0x15d   : > { %v946_v51 = vpop.f32.mrf.mxu0 }
 0x15e   : > { %1149 = vst [vmem:[#allocation2 + $0xb8] sm:$0xff] %v1117_v49  ;;  %v1118_v56 = vadd.f32 %v1058_v50, %v412_v47  ;;  %v1060_v52 = vadd.f32 %v2090_v0, %v946_v51  ;;  %v417_v0 = vld [vmem:[#allocation2 + $0x58] sm:$0xff] }
 0x15f   : > { %v948_v58 = vpop.f32.mrf.mxu0 }
 0x160   : > { %1150 = vst [vmem:[#allocation2 + $0x60] sm:$0xff] %v1118_v56  ;;  %v1119_v60 = vadd.f32 %v1060_v52, %v413_v53  ;;  %v1062_v61 = vadd.f32 %v2092_v5, %v948_v58  ;;  %v427_v53 = vld [vmem:[#allocation2 + $0x28] sm:$0xff]  ;;  %v428_v52 = vld [vmem:[#allocation2 + $0xa0] sm:$0xff] }
 0x161   : > { %v950_v62 = vpop.f32.mrf.mxu0 }
 0x162   : > { %1151 = vst [vmem:[#allocation2 + $0xf0] sm:$0xff] %v1119_v60  ;;  %v1120_v1 = vadd.f32 %v1062_v61, %v414_v57  ;;  %v1064_v59 = vadd.f32 %v2094_v10, %v950_v62  ;;  %v419_v10 = vld [vmem:[#allocation2 + $0xc8] sm:$0xff] }
 0x163   : > { %v954_v3 = vpop.f32.mrf.mxu0 }
 0x164   : > { %1152 = vst [vmem:[#allocation2 + $0x8] sm:$0xff] %v1120_v1  ;;  %v1121_v4 = vadd.f32 %v1064_v59, %v415_v55  ;;  %v1068_v6 = vadd.f32 %v2096_v15, %v954_v3  ;;  %v429_v55 = vld [vmem:[#allocation2 + $0xf8] sm:$0xff]  ;;  %v430_v59 = vld [vmem:[#allocation2 + $0x20] sm:$0xff] }
 0x165   : > { %v956_v7 = vpop.f32.mrf.mxu0 }
 0x166   : > { %1153 = vst [vmem:[#allocation2 + $0x78] sm:$0xff] %v1121_v4  ;;  %v1122_v9 = vadd.f32 %v1068_v6, %v416_v2  ;;  %v1070_v5 = vadd.f32 %v2098_v20, %v956_v7  ;;  %v421_v20 = vld [vmem:[#allocation2 + $0x90] sm:$0xff] }
 0x167   : > { %v958_v12 = vpop.f32.mrf.mxu0 }
 0x168   : > { %1154 = vst [vmem:[#allocation2 + $0x38] sm:$0xff] %v1122_v9  ;;  %v1123_v13 = vadd.f32 %v1070_v5, %v417_v0  ;;  %v1072_v14 = vadd.f32 %v2100_v25, %v958_v12  ;;  %v422_v25 = vld [vmem:[#allocation2 + $0x70] sm:$0xff]  ;;  %v431_v0 = vld [vmem:[#allocation2 + $0x98] sm:$0xff] }
 0x169   : > { %v960_v16 = vpop.f32.mrf.mxu0 }
 0x16a   : > { %1155 = vst [vmem:[#allocation2 + $0x58] sm:$0xff] %v1123_v13  ;;  %v1124_v18 = vadd.f32 %v1072_v14, %v418_v11  ;;  %v1074_v15 = vadd.f32 %v2102_v30, %v960_v16  ;;  %v1093_v30 = vpop.f32.mrf.mxu1 }
 0x16b   : > { %v964_v21 = vpop.f32.mrf.mxu0 }
 0x16c   : > { %1156 = vst [vmem:[#allocation2 + $0x40] sm:$0xff] %v1124_v18  ;;  %v1125_v22 = vadd.f32 %v1074_v15, %v419_v10  ;;  %v1078_v23 = vadd.f32 %v2104_v36, %v964_v21  ;;  %v1097_v44 = vpop.f32.mrf.mxu1 }
 0x16d   : > { %v966_v24 = vpop.f32.mrf.mxu0 }
 0x16e   : > { %1157 = vst [vmem:[#allocation2 + $0xc8] sm:$0xff] %v1125_v22  ;;  %v1126_v27 = vadd.f32 %v1078_v23, %v420_v19  ;;  %v1080_v28 = vadd.f32 %v1079_v45, %v966_v24  ;;  %v1099_v50 = vpop.f32.mrf.mxu1 }
 0x16f   : > { %v968_v29 = vpop.f32.mrf.mxu0 }
 0x170   : > { %1158 = vst [vmem:[#allocation2 + $0xe0] sm:$0xff] %v1126_v27  ;;  %v1127_v31 = vadd.f32 %v1080_v28, %v421_v20  ;;  %v1082_v32 = vadd.f32 %v1081_v54, %v968_v29  ;;  %v1101_v61 = vpop.f32.mrf.mxu1 }
 0x171   : > { %v970_v34 = vpop.f32.mrf.mxu0 }
 0x172   : > { %1159 = vst [vmem:[#allocation2 + $0x90] sm:$0xff] %v1127_v31  ;;  %v1128_v37 = vadd.f32 %v1082_v32, %v422_v25  ;;  %v1084_v38 = vadd.f32 %v1083_v63, %v970_v34  ;;  %v1103_v6 = vpop.f32.mrf.mxu1 }
 0x173   : > { %v974_v40 = vpop.f32.mrf.mxu0 }
 0x174   : > { %1160 = vst [vmem:[#allocation2 + $0x70] sm:$0xff] %v1128_v37  ;;  %v1129_v36 = vadd.f32 %v1084_v38, %v423_v33  ;;  %v1088_v41 = vadd.f32 %v1087_v8, %v974_v40 }
 0x175   : > { %v976_v43 = vpop.f32.mrf.mxu0 }
 0x176   : > { %1161 = vst [vmem:[#allocation2 + $0xc0] sm:$0xff] %v1129_v36  ;;  %v1130_v45 = vadd.f32 %v1088_v41, %v424_v39  ;;  %v1090_v35 = vadd.f32 %v1089_v17, %v976_v43 }
 0x177   : > { %v978_v47 = vpop.f32.mrf.mxu0 }
 0x178   : > { %1162 = vst [vmem:[#allocation2 + $0xa8] sm:$0xff] %v1130_v45  ;;  %v1131_v48 = vadd.f32 %v1090_v35, %v425_v42  ;;  %v1092_v49 = vadd.f32 %v1091_v26, %v978_v47 }
 0x179   : > { %v980_v51 = vpop.f32.mrf.mxu0 }
 0x17a   : > { %1163 = vst [vmem:[#allocation2 + $0xd0] sm:$0xff] %v1131_v48  ;;  %v1132_v54 = vadd.f32 %v1092_v49, %v426_v46  ;;  %v1094_v56 = vadd.f32 %v1093_v30, %v980_v51 }
 0x17b   : > { %v984_v57 = vpop.f32.mrf.mxu0 }
 0x17c   : > { %1164 = vst [vmem:[#allocation2 + $0x10] sm:$0xff] %v1132_v54  ;;  %v1133_v58 = vadd.f32 %v1094_v56, %v427_v53  ;;  %v1098_v60 = vadd.f32 %v1097_v44, %v984_v57 }
 0x17d   : > { %v986_v62 = vpop.f32.mrf.mxu0 }
 0x17e   : > { %1165 = vst [vmem:[#allocation2 + $0x28] sm:$0xff] %v1133_v58  ;;  %v1134_v63 = vadd.f32 %v1098_v60, %v428_v52  ;;  %v1100_v1 = vadd.f32 %v1099_v50, %v986_v62 }
 0x17f   : > { %v988_v2 = vpop.f32.mrf.mxu0 }
 0x180   : > { %1166 = vst [vmem:[#allocation2 + $0xa0] sm:$0xff] %v1134_v63  ;;  %v1135_v3 = vadd.f32 %v1100_v1, %v429_v55  ;;  %v1102_v4 = vadd.f32 %v1101_v61, %v988_v2 }
 0x181   : > { %v990_v7 = vpop.f32.mrf.mxu0 }
 0x182   : > { %1167 = vst [vmem:[#allocation2 + $0xf8] sm:$0xff] %v1135_v3  ;;  %v1136_v8 = vadd.f32 %v1102_v4, %v430_v59  ;;  %v1104_v9 = vadd.f32 %v1103_v6, %v990_v7  ;;  %1173 = sbr.rel (%p1634_p11) target bundleno = 423 (0x1a7), region = 66 }
 0x184   : > { %1168 = vst [vmem:[#allocation2 + $0x20] sm:$0xff] %v1136_v8  ;;  %v1137_v5 = vadd.f32 %v1104_v9, %v431_v0 }
 0x186   : > { %1169 = vst [vmem:[#allocation2 + $0x98] sm:$0xff] %v1137_v5 }
 0x187   : > { %v1208_v11 = vlaneseq  ;;  %v1206_v13 = vld [vmem:[%s2221_s2] sm:$0x3]  ;;  %v1174_v14 = vld [vmem:[#allocation2 + $0xb0] sm:$0xff]  ;;  %v1176_v18 = vld [vmem:[#allocation2 + $0xd8] sm:$0xff] }
 0x188   : > { %v1175_v10 = vld [vmem:[#allocation2] sm:$0xff]  ;;  %v1177_v15 = vld [vmem:[#allocation2 + $0x18] sm:$0xff]  ;;  %v1178_v19 = vld [vmem:[#allocation2 + $0x50] sm:$0xff] }
 0x189   : > { %v1209_v12 = vshrl.u32 %v1208_v11, 7  ;;  %v1179_v23 = vld [vmem:[#allocation2 + $0x68] sm:$0xff]  ;;  %v1180_v20 = vld [vmem:[#allocation2 + $0x30] sm:$0xff]  ;;  %v1182_v34 = vld [vmem:[#allocation2 + $0x80] sm:$0xff] }
 0x18a   : > { %v1181_v24 = vld [vmem:[#allocation2 + $0x48] sm:$0xff]  ;;  %v1185_v41 = vld [vmem:[#allocation2 + $0xb8] sm:$0xff]  ;;  %v1186_v35 = vld [vmem:[#allocation2 + $0x60] sm:$0xff] }
 0x18b   : > { %v1210_v16 = vsub.s32 0, %v1209_v12  ;;  %v1214_v17 = vsub.s32 1, %v1209_v12  ;;  %v1183_v30 = vld [vmem:[#allocation2 + $0x88] sm:$0xff]  ;;  %v1187_v46 = vld [vmem:[#allocation2 + $0xf0] sm:$0xff]  ;;  %v1189_v51 = vld [vmem:[#allocation2 + $0x78] sm:$0xff] }
 0x18c   : > { %v1184_v36 = vld [vmem:[#allocation2 + $0xe8] sm:$0xff]  ;;  %v1190_v58 = vld [vmem:[#allocation2 + $0x38] sm:$0xff]  ;;  %v1192_v4 = vld [vmem:[#allocation2 + $0x40] sm:$0xff] }
 0x18d   : > { %v2120_v21 = vrot.slane %v1206_v13, %v1210_v16  ;;  %v2122_v22 = vrot.slane %v1206_v13, %v1214_v17  ;;  %v1188_v53 = vld [vmem:[#allocation2 + $0x8] sm:$0xff]  ;;  %v1191_v63 = vld [vmem:[#allocation2 + $0x58] sm:$0xff]  ;;  %v1194_v5 = vld [vmem:[#allocation2 + $0xe0] sm:$0xff] }
 0x18e   : > { %v1193_v6 = vld [vmem:[#allocation2 + $0xc8] sm:$0xff]  ;;  %v1195_v11 = vld [vmem:[#allocation2 + $0x90] sm:$0xff]  ;;  %v1197_v17 = vld [vmem:[#allocation2 + $0xc0] sm:$0xff] }
 0x18f   : > { %v1218_v26 = vadd.f32 %v2120_v21, %v1174_v14  ;;  %v1219_v27 = vadd.f32 %v2122_v22, %v1175_v10  ;;  %v1220_v28 = vadd.f32 %v2120_v21, %v1176_v18  ;;  %v1221_v25 = vadd.f32 %v2122_v22, %v1177_v15  ;;  %v1196_v16 = vld [vmem:[#allocation2 + $0x70] sm:$0xff] }
 0x190   : > { %v1222_v29 = vadd.f32 %v2120_v21, %v1178_v19  ;;  %v1223_v31 = vadd.f32 %v2122_v22, %v1179_v23  ;;  %v1224_v32 = vadd.f32 %v2120_v21, %v1180_v20  ;;  %v1225_v33 = vadd.f32 %v2122_v22, %v1181_v24  ;;  %v1198_v20 = vld [vmem:[#allocation2 + $0xa8] sm:$0xff] }
 0x191   : > { %v1250_v37 = vmax.f32 %v1218_v26, 0.0  ;;  %v1251_v38 = vmax.f32 %v1219_v27, 0.0  ;;  %v1252_v39 = vmax.f32 %v1220_v28, 0.0  ;;  %v1253_v40 = vmax.f32 %v1221_v25, 0.0  ;;  %v1199_v25 = vld [vmem:[#allocation2 + $0xd0] sm:$0xff] }
 0x192   : > { %v1254_v42 = vmax.f32 %v1222_v29, 0.0  ;;  %v1255_v43 = vmax.f32 %v1223_v31, 0.0  ;;  %v1256_v44 = vmax.f32 %v1224_v32, 0.0  ;;  %v1257_v45 = vmax.f32 %v1225_v33, 0.0 }
 0x193   : > { %v1657_v47 = vpack.c.bf16 %v1251_v38, %v1250_v37  ;;  %v1658_v48 = vpack.c.bf16 %v1253_v40, %v1252_v39  ;;  %v1226_v49 = vadd.f32 %v2120_v21, %v1182_v34  ;;  %v1227_v50 = vadd.f32 %v2122_v22, %v1183_v30  ;;  %v1200_v34 = vld [vmem:[#allocation2 + $0x10] sm:$0xff]  ;;  %v1201_v30 = vld [vmem:[#allocation2 + $0x28] sm:$0xff] }
 0x194   : > { %v1659_v54 = vpack.c.bf16 %v1255_v43, %v1254_v42  ;;  %v1660_v56 = vpack.c.bf16 %v1257_v45, %v1256_v44  ;;  %v1228_v52 = vadd.f32 %v2120_v21, %v1184_v36  ;;  %v1229_v57 = vadd.f32 %v2122_v22, %v1185_v41  ;;  %v1202_v36 = vld [vmem:[#allocation2 + $0xa0] sm:$0xff]  ;;  %v1203_v41 = vld [vmem:[#allocation2 + $0xf8] sm:$0xff] }
 0x195   : > { %1378 = vst [vmem:[%s2222_s3] sm:$0xff] %v1657_v47  ;;  %1379 = vst [vmem:[%s2222_s3 + $0x8] sm:$0xff] %v1658_v48  ;;  %v1258_v60 = vmax.f32 %v1226_v49, 0.0  ;;  %v1259_v61 = vmax.f32 %v1227_v50, 0.0  ;;  %v1230_v55 = vadd.f32 %v2120_v21, %v1186_v35  ;;  %v1231_v62 = vadd.f32 %v2122_v22, %v1187_v46  ;;  %v1204_v35 = vld [vmem:[#allocation2 + $0x20] sm:$0xff]  ;;  %v1205_v46 = vld [vmem:[#allocation2 + $0x98] sm:$0xff] }
 0x196   : > { %1380 = vst [vmem:[%s2222_s3 + $0x10] sm:$0xff] %v1659_v54  ;;  %1381 = vst [vmem:[%s2222_s3 + $0x18] sm:$0xff] %v1660_v56  ;;  %v1260_v1 = vmax.f32 %v1228_v52, 0.0  ;;  %v1261_v59 = vmax.f32 %v1229_v57, 0.0  ;;  %v1232_v2 = vadd.f32 %v2120_v21, %v1188_v53  ;;  %v1233_v3 = vadd.f32 %v2122_v22, %v1189_v51 }
 0x197   : > { %v1661_v0 = vpack.c.bf16 %v1259_v61, %v1258_v60  ;;  %v1262_v7 = vmax.f32 %v1230_v55, 0.0  ;;  %v1263_v8 = vmax.f32 %v1231_v62, 0.0  ;;  %v1234_v9 = vadd.f32 %v2120_v21, %v1190_v58 }
 0x198   : > { %v1662_v12 = vpack.c.bf16 %v1261_v59, %v1260_v1  ;;  %v1264_v13 = vmax.f32 %v1232_v2, 0.0  ;;  %v1265_v14 = vmax.f32 %v1233_v3, 0.0  ;;  %v1235_v10 = vadd.f32 %v2122_v22, %v1191_v63 }
 0x199   : > { %1382 = vst [vmem:[%s2222_s3 + $0x20] sm:$0xff] %v1661_v0  ;;  %v1663_v18 = vpack.c.bf16 %v1263_v8, %v1262_v7  ;;  %v1266_v15 = vmax.f32 %v1234_v9, 0.0  ;;  %v1236_v19 = vadd.f32 %v2120_v21, %v1192_v4  ;;  %v1237_v23 = vadd.f32 %v2122_v22, %v1193_v6 }
 0x19a   : > { %1383 = vst [vmem:[%s2222_s3 + $0x28] sm:$0xff] %v1662_v12  ;;  %v1664_v24 = vpack.c.bf16 %v1265_v14, %v1264_v13  ;;  %v1267_v26 = vmax.f32 %v1235_v10, 0.0  ;;  %v1238_v27 = vadd.f32 %v2120_v21, %v1194_v5  ;;  %v1239_v28 = vadd.f32 %v2122_v22, %v1195_v11 }
 0x19b   : > { %1384 = vst [vmem:[%s2222_s3 + $0x30] sm:$0xff] %v1663_v18  ;;  %v1268_v29 = vmax.f32 %v1236_v19, 0.0  ;;  %v1269_v31 = vmax.f32 %v1237_v23, 0.0  ;;  %v1240_v32 = vadd.f32 %v2120_v21, %v1196_v16  ;;  %v1241_v33 = vadd.f32 %v2122_v22, %v1197_v17 }
 0x19c   : > { %1385 = vst [vmem:[%s2222_s3 + $0x38] sm:$0xff] %v1664_v24  ;;  %v1665_v37 = vpack.c.bf16 %v1267_v26, %v1266_v15  ;;  %v1270_v38 = vmax.f32 %v1238_v27, 0.0  ;;  %v1271_v39 = vmax.f32 %v1239_v28, 0.0  ;;  %v1242_v40 = vadd.f32 %v2120_v21, %v1198_v20 }
 0x19d   : > { %v1666_v42 = vpack.c.bf16 %v1269_v31, %v1268_v29  ;;  %v1272_v43 = vmax.f32 %v1240_v32, 0.0  ;;  %v1273_v44 = vmax.f32 %v1241_v33, 0.0  ;;  %v1243_v45 = vadd.f32 %v2122_v22, %v1199_v25 }
 0x19e   : > { %1386 = vst [vmem:[%s2222_s3 + $0x40] sm:$0xff] %v1665_v37  ;;  %v1667_v47 = vpack.c.bf16 %v1271_v39, %v1270_v38  ;;  %v1274_v48 = vmax.f32 %v1242_v40, 0.0  ;;  %v1244_v49 = vadd.f32 %v2120_v21, %v1200_v34  ;;  %v1245_v50 = vadd.f32 %v2122_v22, %v1201_v30 }
 0x19f   : > { %1387 = vst [vmem:[%s2222_s3 + $0x48] sm:$0xff] %v1666_v42  ;;  %v1668_v53 = vpack.c.bf16 %v1273_v44, %v1272_v43  ;;  %v1275_v51 = vmax.f32 %v1243_v45, 0.0  ;;  %v1246_v54 = vadd.f32 %v2120_v21, %v1202_v36  ;;  %v1247_v56 = vadd.f32 %v2122_v22, %v1203_v41 }
 0x1a0   : > { %1388 = vst [vmem:[%s2222_s3 + $0x50] sm:$0xff] %v1667_v47  ;;  %v1276_v52 = vmax.f32 %v1244_v49, 0.0  ;;  %v1277_v57 = vmax.f32 %v1245_v50, 0.0  ;;  %v1248_v58 = vadd.f32 %v2120_v21, %v1204_v35  ;;  %v1249_v60 = vadd.f32 %v2122_v22, %v1205_v46 }
 0x1a1   : > { %1389 = vst [vmem:[%s2222_s3 + $0x58] sm:$0xff] %v1668_v53  ;;  %v1669_v61 = vpack.c.bf16 %v1275_v51, %v1274_v48  ;;  %v1278_v55 = vmax.f32 %v1246_v54, 0.0  ;;  %v1279_v62 = vmax.f32 %v1247_v56, 0.0 }
 0x1a2   : > { %v1670_v63 = vpack.c.bf16 %v1277_v57, %v1276_v52  ;;  %v1280_v1 = vmax.f32 %v1248_v58, 0.0  ;;  %v1281_v59 = vmax.f32 %v1249_v60, 0.0 }
 0x1a3   : > { %1390 = vst [vmem:[%s2222_s3 + $0x60] sm:$0xff] %v1669_v61  ;;  %v1671_v2 = vpack.c.bf16 %v1279_v62, %v1278_v55 }
 0x1a4   : > { %1391 = vst [vmem:[%s2222_s3 + $0x68] sm:$0xff] %v1670_v63  ;;  %v1672_v21 = vpack.c.bf16 %v1281_v59, %v1280_v1 }
 0x1a5   : > { %1392 = vst [vmem:[%s2222_s3 + $0x70] sm:$0xff] %v1671_v2 }
 0x1a6   : > { %1393 = vst [vmem:[%s2222_s3 + $0x78] sm:$0xff] %v1672_v21 }
 0x1a7 PF: > { %s13_s16 = sadd.s32 1, %s1859_s16   ;;  %s2223_s12 = smov %s1847_s13 }
 0x1a8   : > { %p10_p12 = scmp.ge.s32.totalorder %s13_s16, 11   ;;  %s2224_s13 = smov %s1918_s20 }
 0x1a9   : > { %s2225_s14 = smov %s1855_s15  ;;  %s2226_s15 = smov %s2228_s17 }
 0x1aa   :  { %12 = sbr.rel (!%p10_p12) target bundleno = 3 (0x3), region = 113 }

// kernel: forward.18
= control target key start
LH: loop header
LB: loop body
LE: loop exit
PB: predicated region body
PF: predicated region fallthrough
CT: control target
= control target key end

     0   :  { %v720_v1 = vmov 0   ;;  %v457_v25 = vlaneseq  ;;  %s908_s1 = inlined_call_operand.vmem [shape: bf16[128,256], index: 1, kind: input, shape index: {}]   ;;  %s909_s0 = inlined_call_operand.vmem [shape: bf16[128,128], index: 0, kind: input, shape index: {}]   ;;  %s910_s2 = inlined_call_operand.vmem [shape: f32[1,256], index: 2, kind: input, shape index: {}]   ;;  %s911_s3 = inlined_call_operand.vmem [shape: bf16[128,256], index: 3, kind: output, shape index: {}]  }
   0x1   :  { %v688_v0 = vld [vmem:[%s908_s1 + $0x74] ss:$8 sps:$4 sm:$0xff]   ;;  %275 = vmatprep.mubr.bf16.mxu0 %v720_v1  ;;  %315 = vmatprep.mubr.bf16.mxu1 %v720_v1  ;;  %v690_v2 = vld [vmem:[%s908_s1 + $0x70] ss:$8 sps:$4 sm:$0xff]   ;;  %v691_v3 = vld [vmem:[%s908_s1 + $0x64] ss:$8 sps:$4 sm:$0xff]  }
   0x2   :  { %243 = vmatprep.subr.bf16.mxu0 %v688_v0  ;;  %671 = vmatprep.subr.bf16.mxu1 %v688_v0  ;;  %v693_v4 = vld [vmem:[%s908_s1 + $0x60] ss:$8 sps:$4 sm:$0xff]   ;;  %v694_v5 = vld [vmem:[%s908_s1 + $0x54] ss:$8 sps:$4 sm:$0xff]   ;;  %v696_v6 = vld [vmem:[%s908_s1 + $0x50] ss:$8 sps:$4 sm:$0xff]  }
   0x3   :  { %244 = vmatpush1.bf16.msra.mxu0 %v690_v2  ;;  %679 = vmatpush1.bf16.msra.mxu1 %v690_v2  ;;  %v697_v7 = vld [vmem:[%s908_s1 + $0x44] ss:$8 sps:$4 sm:$0xff]   ;;  %v699_v8 = vld [vmem:[%s908_s1 + $0x40] ss:$8 sps:$4 sm:$0xff]   ;;  %v700_v9 = vld [vmem:[%s908_s1 + $0x34] ss:$8 sps:$4 sm:$0xff]  }
   0x4   :  { %245 = vmatprep.subr.bf16.mxu0 %v691_v3  ;;  %672 = vmatprep.subr.bf16.mxu1 %v691_v3  ;;  %v702_v10 = vld [vmem:[%s908_s1 + $0x30] ss:$8 sps:$4 sm:$0xff]   ;;  %v703_v11 = vld [vmem:[%s908_s1 + $0x24] ss:$8 sps:$4 sm:$0xff]   ;;  %v705_v12 = vld [vmem:[%s908_s1 + $0x20] ss:$8 sps:$4 sm:$0xff]  }
   0x5   :  { %v706_v13 = vld [vmem:[%s908_s1 + $0x14] ss:$8 sps:$4 sm:$0xff]   ;;  %v708_v14 = vld [vmem:[%s908_s1 + $0x10] ss:$8 sps:$4 sm:$0xff]   ;;  %v709_v15 = vld [vmem:[%s908_s1 + $0x4] ss:$8 sps:$4 sm:$0xff]  }
   0x6   :  { %v711_v16 = vld [vmem:[%s908_s1] ss:$8 sps:$4 sm:$0xff]   ;;  %v716_v21 = vld [vmem:[%s909_s0 + $0x10] sm:$0xff]   ;;  %v718_v23 = vld [vmem:[%s909_s0 + $0x18] sm:$0xff]   ;;  %v458_v26 = vshrl.u32 %v457_v25, 7 }
   0x7   :  { %246 = vmatpush1.bf16.msra.mxu0 %v693_v4  ;;  %680 = vmatpush1.bf16.msra.mxu1 %v693_v4  ;;  %v712_v17 = vld [vmem:[%s909_s0] sm:$0xff]   ;;  %v714_v19 = vld [vmem:[%s909_s0 + $0x8] sm:$0xff]   ;;  %v717_v22 = vld [vmem:[%s909_s0 + $0x30] sm:$0xff]  }
   0x8   :  { %247 = vmatprep.subr.bf16.mxu0 %v694_v5  ;;  %673 = vmatprep.subr.bf16.mxu1 %v694_v5  ;;  %v713_v18 = vld [vmem:[%s909_s0 + $0x20] sm:$0xff]   ;;  %v715_v20 = vld [vmem:[%s909_s0 + $0x28] sm:$0xff]   ;;  %v719_v24 = vld [vmem:[%s909_s0 + $0x38] sm:$0xff]   ;;  %v459_v27 = vsub.s32 0, %v458_v26  ;;  %v463_v28 = vsub.s32 1, %v458_v26 }
   0x9   :  { %v455_v29 = vld [vmem:[%s910_s2] sm:$0x3] }
   0xa   :  { %v824_v30 = vrot.slane %v455_v29, %v459_v27  ;;  %v826_v31 = vrot.slane %v455_v29, %v463_v28 }
   0xb   :  { %248 = vmatpush1.bf16.msra.mxu0 %v696_v6  ;;  %681 = vmatpush1.bf16.msra.mxu1 %v696_v6 }
   0xc   :  { %249 = vmatprep.subr.bf16.mxu0 %v697_v7  ;;  %674 = vmatprep.subr.bf16.mxu1 %v697_v7 }
   0xf   :  { %250 = vmatpush1.bf16.msra.mxu0 %v699_v8  ;;  %682 = vmatpush1.bf16.msra.mxu1 %v699_v8 }
  0x10   :  { %251 = vmatprep.subr.bf16.mxu0 %v700_v9  ;;  %675 = vmatprep.subr.bf16.mxu1 %v700_v9 }
  0x13   :  { %252 = vmatpush1.bf16.msra.mxu0 %v702_v10  ;;  %683 = vmatpush1.bf16.msra.mxu1 %v702_v10 }
  0x14   :  { %253 = vmatprep.subr.bf16.mxu0 %v703_v11  ;;  %676 = vmatprep.subr.bf16.mxu1 %v703_v11 }
  0x17   :  { %254 = vmatpush1.bf16.msra.mxu0 %v705_v12  ;;  %684 = vmatpush1.bf16.msra.mxu1 %v705_v12 }
  0x18   :  { %255 = vmatprep.subr.bf16.mxu0 %v706_v13  ;;  %677 = vmatprep.subr.bf16.mxu1 %v706_v13 }
  0x1b   :  { %256 = vmatpush1.bf16.msra.mxu0 %v708_v14  ;;  %685 = vmatpush1.bf16.msra.mxu1 %v708_v14 }
  0x1c   :  { %257 = vmatprep.subr.bf16.mxu0 %v709_v15  ;;  %678 = vmatprep.subr.bf16.mxu1 %v709_v15 }
  0x1f   :  { %258 = vmatpush1.bf16.msra.mxu0 %v711_v16  ;;  %686 = vmatpush1.bf16.msra.mxu1 %v711_v16 }
  0x22   :  { %276 = vmatmul.mubr.bf16.vlgmr.msra.gmra.mxu0 %v712_v17  ;;  %316 = vmatmul.mubr.bf16.vlgmr.msra.gmra.mxu1 %v713_v18 }
  0x23   :  { %285 = vmatprep.mubr.bf16.mxu0 %v720_v1  ;;  %325 = vmatprep.mubr.bf16.mxu1 %v720_v1 }
  0x2a   :  { %286 = vmatmul.mubr.bf16.gmra.mxu0 %v714_v19  ;;  %326 = vmatmul.mubr.bf16.gmra.mxu1 %v715_v20 }
  0x2b   :  { %295 = vmatprep.mubr.bf16.mxu0 %v720_v1  ;;  %335 = vmatprep.mubr.bf16.mxu1 %v720_v1 }
  0x32   :  { %296 = vmatmul.mubr.bf16.gmra.mxu0 %v716_v21  ;;  %336 = vmatmul.mubr.bf16.gmra.mxu1 %v717_v22 }
  0x33   :  { %305 = vmatprep.mubr.bf16.mxu0 %v720_v1  ;;  %345 = vmatprep.mubr.bf16.mxu1 %v720_v1 }
  0x3a   :  { %306 = vmatmul.mubr.bf16.gmra.mxu0 %v718_v23  ;;  %346 = vmatmul.mubr.bf16.gmra.mxu1 %v719_v24 }
  0xe2   :  { %v277_v32 = vpop.f32.mrf.mxu0  ;;  %v317_v33 = vpop.f32.mrf.mxu1 }
  0xe3   :  { %v467_v36 = vadd.f32 %v824_v30, %v277_v32  ;;  %v483_v37 = vadd.f32 %v824_v30, %v317_v33 }
  0xe4   :  { %v279_v34 = vpop.f32.mrf.mxu0  ;;  %v319_v35 = vpop.f32.mrf.mxu1 }
  0xe5   :  { %v468_v38 = vadd.f32 %v826_v31, %v279_v34  ;;  %v484_v39 = vadd.f32 %v826_v31, %v319_v35 }
  0xe6   :  { %v281_v40 = vpop.f32.mrf.mxu0  ;;  %v321_v41 = vpop.f32.mrf.mxu1 }
  0xe7   :  { %v655_v42 = vpack.c.bf16 %v468_v38, %v467_v36  ;;  %v663_v43 = vpack.c.bf16 %v484_v39, %v483_v37  ;;  %v469_v46 = vadd.f32 %v824_v30, %v281_v40  ;;  %v485_v47 = vadd.f32 %v824_v30, %v321_v41 }
  0xe8   :  { %v283_v44 = vpop.f32.mrf.mxu0  ;;  %v323_v45 = vpop.f32.mrf.mxu1 }
  0xe9   :  { %595 = vst [vmem:[%s911_s3] sm:$0xff] %v655_v42  ;;  %603 = vst [vmem:[%s911_s3 + $0x40] sm:$0xff] %v663_v43  ;;  %v470_v48 = vadd.f32 %v826_v31, %v283_v44  ;;  %v486_v49 = vadd.f32 %v826_v31, %v323_v45 }
  0xea   :  { %v287_v50 = vpop.f32.mrf.mxu0  ;;  %v327_v51 = vpop.f32.mrf.mxu1 }
  0xeb   :  { %v656_v52 = vpack.c.bf16 %v470_v48, %v469_v46  ;;  %v664_v53 = vpack.c.bf16 %v486_v49, %v485_v47  ;;  %v471_v56 = vadd.f32 %v824_v30, %v287_v50  ;;  %v487_v57 = vadd.f32 %v824_v30, %v327_v51 }
  0xec   :  { %v289_v54 = vpop.f32.mrf.mxu0  ;;  %v329_v55 = vpop.f32.mrf.mxu1 }
  0xed   :  { %596 = vst [vmem:[%s911_s3 + $0x8] sm:$0xff] %v656_v52  ;;  %604 = vst [vmem:[%s911_s3 + $0x48] sm:$0xff] %v664_v53  ;;  %v472_v58 = vadd.f32 %v826_v31, %v289_v54  ;;  %v488_v59 = vadd.f32 %v826_v31, %v329_v55 }
  0xee   :  { %v291_v60 = vpop.f32.mrf.mxu0  ;;  %v331_v61 = vpop.f32.mrf.mxu1 }
  0xef   :  { %v657_v62 = vpack.c.bf16 %v472_v58, %v471_v56  ;;  %v665_v63 = vpack.c.bf16 %v488_v59, %v487_v57  ;;  %v473_v2 = vadd.f32 %v824_v30, %v291_v60  ;;  %v489_v3 = vadd.f32 %v824_v30, %v331_v61 }
  0xf0   :  { %v293_v0 = vpop.f32.mrf.mxu0  ;;  %v333_v1 = vpop.f32.mrf.mxu1 }
  0xf1   :  { %597 = vst [vmem:[%s911_s3 + $0x10] sm:$0xff] %v657_v62  ;;  %605 = vst [vmem:[%s911_s3 + $0x50] sm:$0xff] %v665_v63  ;;  %v474_v4 = vadd.f32 %v826_v31, %v293_v0  ;;  %v490_v5 = vadd.f32 %v826_v31, %v333_v1 }
  0xf2   :  { %v297_v6 = vpop.f32.mrf.mxu0  ;;  %v337_v7 = vpop.f32.mrf.mxu1 }
  0xf3   :  { %v658_v8 = vpack.c.bf16 %v474_v4, %v473_v2  ;;  %v666_v9 = vpack.c.bf16 %v490_v5, %v489_v3  ;;  %v475_v12 = vadd.f32 %v824_v30, %v297_v6  ;;  %v491_v13 = vadd.f32 %v824_v30, %v337_v7 }
  0xf4   :  { %v299_v10 = vpop.f32.mrf.mxu0  ;;  %v339_v11 = vpop.f32.mrf.mxu1 }
  0xf5   :  { %598 = vst [vmem:[%s911_s3 + $0x18] sm:$0xff] %v658_v8  ;;  %606 = vst [vmem:[%s911_s3 + $0x58] sm:$0xff] %v666_v9  ;;  %v476_v14 = vadd.f32 %v826_v31, %v299_v10  ;;  %v492_v15 = vadd.f32 %v826_v31, %v339_v11 }
  0xf6   :  { %v301_v16 = vpop.f32.mrf.mxu0  ;;  %v341_v17 = vpop.f32.mrf.mxu1 }
  0xf7   :  { %v659_v18 = vpack.c.bf16 %v476_v14, %v475_v12  ;;  %v667_v19 = vpack.c.bf16 %v492_v15, %v491_v13  ;;  %v477_v22 = vadd.f32 %v824_v30, %v301_v16  ;;  %v493_v23 = vadd.f32 %v824_v30, %v341_v17 }
  0xf8   :  { %v303_v20 = vpop.f32.mrf.mxu0  ;;  %v343_v21 = vpop.f32.mrf.mxu1 }
  0xf9   :  { %599 = vst [vmem:[%s911_s3 + $0x20] sm:$0xff] %v659_v18  ;;  %607 = vst [vmem:[%s911_s3 + $0x60] sm:$0xff] %v667_v19  ;;  %v478_v24 = vadd.f32 %v826_v31, %v303_v20  ;;  %v494_v25 = vadd.f32 %v826_v31, %v343_v21 }
  0xfa   :  { %v307_v26 = vpop.f32.mrf.mxu0  ;;  %v347_v27 = vpop.f32.mrf.mxu1 }
  0xfb   :  { %v660_v28 = vpack.c.bf16 %v478_v24, %v477_v22  ;;  %v668_v29 = vpack.c.bf16 %v494_v25, %v493_v23  ;;  %v479_v34 = vadd.f32 %v824_v30, %v307_v26  ;;  %v495_v35 = vadd.f32 %v824_v30, %v347_v27 }
  0xfc   :  { %v309_v32 = vpop.f32.mrf.mxu0  ;;  %v349_v33 = vpop.f32.mrf.mxu1 }
  0xfd   :  { %600 = vst [vmem:[%s911_s3 + $0x28] sm:$0xff] %v660_v28  ;;  %608 = vst [vmem:[%s911_s3 + $0x68] sm:$0xff] %v668_v29  ;;  %v480_v36 = vadd.f32 %v826_v31, %v309_v32  ;;  %v496_v37 = vadd.f32 %v826_v31, %v349_v33 }
  0xfe   :  { %v311_v38 = vpop.f32.mrf.mxu0  ;;  %v351_v39 = vpop.f32.mrf.mxu1 }
  0xff   :  { %v661_v40 = vpack.c.bf16 %v480_v36, %v479_v34  ;;  %v669_v41 = vpack.c.bf16 %v496_v37, %v495_v35  ;;  %v481_v44 = vadd.f32 %v824_v30, %v311_v38  ;;  %v497_v45 = vadd.f32 %v824_v30, %v351_v39 }
 0x100   :  { %v313_v42 = vpop.f32.mrf.mxu0  ;;  %v353_v43 = vpop.f32.mrf.mxu1 }
 0x101   :  { %601 = vst [vmem:[%s911_s3 + $0x30] sm:$0xff] %v661_v40  ;;  %609 = vst [vmem:[%s911_s3 + $0x70] sm:$0xff] %v669_v41  ;;  %v482_v46 = vadd.f32 %v826_v31, %v313_v42  ;;  %v498_v47 = vadd.f32 %v826_v31, %v353_v43 }
 0x103   :  { %v662_v48 = vpack.c.bf16 %v482_v46, %v481_v44  ;;  %v670_v49 = vpack.c.bf16 %v498_v47, %v497_v45 }
 0x105   :  { %602 = vst [vmem:[%s911_s3 + $0x38] sm:$0xff] %v662_v48  ;;  %610 = vst [vmem:[%s911_s3 + $0x78] sm:$0xff] %v670_v49 }

// kernel: forward.19
= control target key start
LH: loop header
LB: loop body
LE: loop exit
PB: predicated region body
PF: predicated region fallthrough
CT: control target
= control target key end

     0   :  { %s2058_s15 = smov 0   ;;  %s2060_s16 = smov 0   ;;  %s2442_s0 = inlined_call_operand.vmem [shape: bf16[128,6912], index: 0, kind: input, shape index: {}]   ;;  %s2443_s1 = inlined_call_operand.vmem [shape: bf16[6912,256], index: 1, kind: input, shape index: {}]   ;;  %s2444_s2 = inlined_call_operand.vmem [shape: f32[1,256], index: 2, kind: input, shape index: {}]   ;;  %s2445_s3 = inlined_call_operand.vmem [shape: bf16[128,256], index: 3, kind: input, shape index: {}]   ;;  %s2446_s4 = inlined_call_operand.vmem [shape: bf16[128,256], index: 4, kind: output, shape index: {}]  }
   0x1   :  { %s2062_s17 = smov 0   ;;  %s2064_s18 = smov 0  }
   0x2   :  { %s2066_s19 = smov 0  }
   0x3 LB: > { %s26_s20 = sadd.s32 1, %s2025_s18  ;;  %p49_p1 = scmp.ne.s32.totalorder %s2017_s16, %s2013_s15  ;;  %s2029_s19 = sphi %s2066_s19, %s14_s19   ;;  %s2025_s18 = sphi %s2064_s18, %s2450_s18   ;;  %s2021_s17 = sphi %s2062_s17, %s2449_s17   ;;  %s2017_s16 = sphi %s2060_s16, %s2448_s16   ;;  %s2013_s15 = sphi %s2058_s15, %s2447_s15  }
   0x4   : > { %p27_p0 = scmp.ge.s32.totalorder %s26_s20, 18  ;;  %p50_p2 = scmp.eq.s32.totalorder %s2029_s19, 0 }
   0x5   : > { %s42_s22 = sadd.s32 1, %s2017_s16  ;;  %p1694_p5 = scmp.ge.s32.totalorder %s2029_s19, 18 }
   0x6   : > { %s2452_s20 = smov (%p27_p0, %s26_s20), 0  ;;  %p51_p3 = por %p50_p2, %p49_p1 }
   0x7   : > { %s38_s21 = ssub.s32 %s2025_s18, %s2452_s20  ;;  %208 = sbr.rel (%p1694_p5) target bundleno = 35 (0x23), region = 24 }
   0x8   : > { %p40_p4 = scmp.eq.s32.totalorder %s38_s21, 0 }
   0xa   : > { %s2093_s23 = scalar_select %p40_p4, %s2017_s16, %s42_s22  }
   0xc   : > { %211 = sbr.rel (!%p51_p3) target bundleno = 35 (0x23), region = 28  ;;  %s213_s24 = sand.u32 (%p51_p3), 1, %s2017_s16  }
   0xd   : > { %s1825_s25 = smul.u32 (%p51_p3), 12, %s2025_s18 }
   0xe   : > { %s1843_s26 = smul.u32 (%p51_p3), 192, %s213_s24 }
   0xf   : > { %s2101_s29 = scalar_lea.vmem (%p51_p3), %s2442_s0, %s1825_s25 }
  0x10   : > { %v236_v0 = vld [vmem:[%s2101_s29] sm:$0xff] (%p51_p3)  ;;  %v238_v1 = vld [vmem:[%s2101_s29 + $0xd8] sm:$0xff] (%p51_p3)  ;;  %v240_v2 = vld [vmem:[%s2101_s29 + $0x1b0] sm:$0xff] (%p51_p3)  ;;  %s2106_s30 = scalar_lea.vmem (%p51_p3), [#allocation3], %s1843_s26 }
  0x11   : > { %237 = vst [vmem:[%s2106_s30] sm:$0xff] %v236_v0  ;;  %239 = vst [vmem:[%s2106_s30 + $0xc] sm:$0xff] %v238_v1  ;;  %v242_v3 = vld [vmem:[%s2101_s29 + $0x288] sm:$0xff]  ;;  %v244_v4 = vld [vmem:[%s2101_s29 + $0x360] sm:$0xff] }
  0x12   : > { %241 = vst [vmem:[%s2106_s30 + $0x18] sm:$0xff] %v240_v2  ;;  %v246_v5 = vld [vmem:[%s2101_s29 + $0x438] sm:$0xff]  ;;  %243 = vst [vmem:[%s2106_s30 + $0x24] sm:$0xff] %v242_v3  ;;  %v248_v6 = vld [vmem:[%s2101_s29 + $0x510] sm:$0xff] }
  0x13   : > { %245 = vst [vmem:[%s2106_s30 + $0x30] sm:$0xff] %v244_v4  ;;  %247 = vst [vmem:[%s2106_s30 + $0x3c] sm:$0xff] %v246_v5  ;;  %v250_v7 = vld [vmem:[%s2101_s29 + $0x5e8] sm:$0xff]  ;;  %v252_v8 = vld [vmem:[%s2101_s29 + $0x6c0] sm:$0xff] }
  0x14   : > { %249 = vst [vmem:[%s2106_s30 + $0x48] sm:$0xff] %v248_v6  ;;  %251 = vst [vmem:[%s2106_s30 + $0x54] sm:$0xff] %v250_v7  ;;  %v254_v9 = vld [vmem:[%s2101_s29 + $0x798] sm:$0xff]  ;;  %v256_v10 = vld [vmem:[%s2101_s29 + $0x870] sm:$0xff] }
  0x15   : > { %253 = vst [vmem:[%s2106_s30 + $0x60] sm:$0xff] %v252_v8  ;;  %v258_v11 = vld [vmem:[%s2101_s29 + $0x948] sm:$0xff]  ;;  %255 = vst [vmem:[%s2106_s30 + $0x6c] sm:$0xff] %v254_v9  ;;  %v260_v12 = vld [vmem:[%s2101_s29 + $0xa20] sm:$0xff] }
  0x16   : > { %257 = vst [vmem:[%s2106_s30 + $0x78] sm:$0xff] %v256_v10  ;;  %259 = vst [vmem:[%s2106_s30 + $0x84] sm:$0xff] %v258_v11  ;;  %v262_v13 = vld [vmem:[%s2101_s29 + $0xaf8] sm:$0xff]  ;;  %v264_v14 = vld [vmem:[%s2101_s29 + $0xbd0] sm:$0xff] }
  0x17   : > { %261 = vst [vmem:[%s2106_s30 + $0x90] sm:$0xff] %v260_v12  ;;  %263 = vst [vmem:[%s2106_s30 + $0x9c] sm:$0xff] %v262_v13  ;;  %v266_v15 = vld [vmem:[%s2101_s29 + $0xca8] sm:$0xff]  ;;  %v1698_v17 = vld [vmem:[%s2101_s29 + $0xe0] sm:$0xf] }
  0x18   : > { %265 = vst [vmem:[%s2106_s30 + $0xa8] sm:$0xff] %v264_v14  ;;  %v1696_v16 = vld [vmem:[%s2101_s29 + $0x8] sm:$0xf]  ;;  %267 = vst [vmem:[%s2106_s30 + $0xb4] sm:$0xff] %v266_v15  ;;  %v1700_v18 = vld [vmem:[%s2101_s29 + $0x1b8] sm:$0xf] }
  0x19   : > { %1697 = vst [vmem:[%s2106_s30 + $0x8] sm:$0xf] %v1696_v16  ;;  %1699 = vst [vmem:[%s2106_s30 + $0x14] sm:$0xf] %v1698_v17  ;;  %v1702_v19 = vld [vmem:[%s2101_s29 + $0x290] sm:$0xf] }
  0x1a   : > { %v1704_v20 = vld [vmem:[%s2101_s29 + $0x368] sm:$0xf]  ;;  %1701 = vst [vmem:[%s2106_s30 + $0x20] sm:$0xf] %v1700_v18  ;;  %1703 = vst [vmem:[%s2106_s30 + $0x2c] sm:$0xf] %v1702_v19 }
  0x1b   : > { %1705 = vst [vmem:[%s2106_s30 + $0x38] sm:$0xf] %v1704_v20  ;;  %v1706_v21 = vld [vmem:[%s2101_s29 + $0x440] sm:$0xf]  ;;  %v1708_v22 = vld [vmem:[%s2101_s29 + $0x518] sm:$0xf] }
  0x1c   : > { %v1710_v23 = vld [vmem:[%s2101_s29 + $0x5f0] sm:$0xf]  ;;  %1707 = vst [vmem:[%s2106_s30 + $0x44] sm:$0xf] %v1706_v21  ;;  %1709 = vst [vmem:[%s2106_s30 + $0x50] sm:$0xf] %v1708_v22 }
  0x1d   : > { %1711 = vst [vmem:[%s2106_s30 + $0x5c] sm:$0xf] %v1710_v23  ;;  %v1712_v24 = vld [vmem:[%s2101_s29 + $0x6c8] sm:$0xf]  ;;  %v1714_v25 = vld [vmem:[%s2101_s29 + $0x7a0] sm:$0xf] }
  0x1e   : > { %v1716_v26 = vld [vmem:[%s2101_s29 + $0x878] sm:$0xf]  ;;  %1713 = vst [vmem:[%s2106_s30 + $0x68] sm:$0xf] %v1712_v24  ;;  %1715 = vst [vmem:[%s2106_s30 + $0x74] sm:$0xf] %v1714_v25 }
  0x1f   : > { %1717 = vst [vmem:[%s2106_s30 + $0x80] sm:$0xf] %v1716_v26  ;;  %v1718_v27 = vld [vmem:[%s2101_s29 + $0x950] sm:$0xf]  ;;  %v1720_v28 = vld [vmem:[%s2101_s29 + $0xa28] sm:$0xf] }
  0x20   : > { %v1722_v29 = vld [vmem:[%s2101_s29 + $0xb00] sm:$0xf]  ;;  %1719 = vst [vmem:[%s2106_s30 + $0x8c] sm:$0xf] %v1718_v27  ;;  %1721 = vst [vmem:[%s2106_s30 + $0x98] sm:$0xf] %v1720_v28 }
  0x21   : > { %1723 = vst [vmem:[%s2106_s30 + $0xa4] sm:$0xf] %v1722_v29  ;;  %v1724_v30 = vld [vmem:[%s2101_s29 + $0xbd8] sm:$0xf]  ;;  %v1726_v31 = vld [vmem:[%s2101_s29 + $0xcb0] sm:$0xf] }
  0x22   : > { %1725 = vst [vmem:[%s2106_s30 + $0xb0] sm:$0xf] %v1724_v30  ;;  %1727 = vst [vmem:[%s2106_s30 + $0xbc] sm:$0xf] %v1726_v31 }
  0x23 PF: > { %p1728_p6 = scmp.ge.s32.totalorder %s2029_s19, 1  ;;  %p327_p7 = scmp.lt.s32.totalorder %s2029_s19, 19 }
  0x25   : > { %p328_p8 = pnand %p1728_p6, %p327_p7 }
  0x26   : > { %s334_s5 = sand.u32 (!%p328_p8), 1, %s2013_s15   ;;  %s390_s6 = smul.u32 (!%p328_p8), 48, %s2021_s17 }
  0x27   : > { %331 = sbr.rel (%p328_p8) target bundleno = 438 (0x1b6), region = 58  ;;  %p1731_p10 = scmp.ne.s32.totalorder (!%p328_p8), %s2021_s17, 0 }
  0x28   : > { %s1844_s7 = smul.u32 (!%p328_p8), 192, %s334_s5  ;;  %p392_p9 = scmp.lt.s32.totalorder (!%p328_p8), %s390_s6, 863 }
  0x2a   : > { %s2178_s12 = scalar_lea.vmem (!%p328_p8), [#allocation3], %s1844_s7 }
  0x2c   : > { %s2454_s6 = smov (!%p392_p9, %s390_s6), 863  ;;  %435 = sbr.rel (%p1731_p10) target bundleno = 66 (0x42), region = 66 }
  0x2d   : > { %s1826_s8 = sshll.u32 %s2454_s6, 3 }
  0x2e   : > { %s2176_s11 = scalar_lea.vmem %s2443_s1, %s1826_s8 }
  0x31   : > { %v2031_v32 = vmov 0.0  }
  0x32   : > { %436 = vst [vmem:[#allocation2 + $0xb0] sm:$0xff] %v2031_v32  ;;  %437 = vst [vmem:[#allocation2] sm:$0xff] %v2031_v32 }
  0x33   : > { %438 = vst [vmem:[#allocation2 + $0xd8] sm:$0xff] %v2031_v32  ;;  %439 = vst [vmem:[#allocation2 + $0x18] sm:$0xff] %v2031_v32 }
  0x34   : > { %440 = vst [vmem:[#allocation2 + $0x50] sm:$0xff] %v2031_v32  ;;  %441 = vst [vmem:[#allocation2 + $0x68] sm:$0xff] %v2031_v32 }
  0x35   : > { %442 = vst [vmem:[#allocation2 + $0x30] sm:$0xff] %v2031_v32  ;;  %443 = vst [vmem:[#allocation2 + $0x48] sm:$0xff] %v2031_v32 }
  0x36   : > { %444 = vst [vmem:[#allocation2 + $0x80] sm:$0xff] %v2031_v32  ;;  %445 = vst [vmem:[#allocation2 + $0x88] sm:$0xff] %v2031_v32 }
  0x37   : > { %446 = vst [vmem:[#allocation2 + $0xe8] sm:$0xff] %v2031_v32  ;;  %447 = vst [vmem:[#allocation2 + $0xb8] sm:$0xff] %v2031_v32 }
  0x38   : > { %448 = vst [vmem:[#allocation2 + $0x60] sm:$0xff] %v2031_v32  ;;  %449 = vst [vmem:[#allocation2 + $0xf0] sm:$0xff] %v2031_v32 }
  0x39   : > { %450 = vst [vmem:[#allocation2 + $0x8] sm:$0xff] %v2031_v32  ;;  %451 = vst [vmem:[#allocation2 + $0x78] sm:$0xff] %v2031_v32 }
  0x3a   : > { %452 = vst [vmem:[#allocation2 + $0x38] sm:$0xff] %v2031_v32  ;;  %453 = vst [vmem:[#allocation2 + $0x58] sm:$0xff] %v2031_v32 }
  0x3b   : > { %454 = vst [vmem:[#allocation2 + $0x40] sm:$0xff] %v2031_v32  ;;  %455 = vst [vmem:[#allocation2 + $0xc8] sm:$0xff] %v2031_v32 }
  0x3c   : > { %456 = vst [vmem:[#allocation2 + $0xe0] sm:$0xff] %v2031_v32  ;;  %457 = vst [vmem:[#allocation2 + $0x90] sm:$0xff] %v2031_v32 }
  0x3d   : > { %458 = vst [vmem:[#allocation2 + $0x70] sm:$0xff] %v2031_v32  ;;  %459 = vst [vmem:[#allocation2 + $0xc0] sm:$0xff] %v2031_v32 }
  0x3e   : > { %460 = vst [vmem:[#allocation2 + $0xa8] sm:$0xff] %v2031_v32  ;;  %461 = vst [vmem:[#allocation2 + $0xd0] sm:$0xff] %v2031_v32 }
  0x3f   : > { %462 = vst [vmem:[#allocation2 + $0x10] sm:$0xff] %v2031_v32  ;;  %463 = vst [vmem:[#allocation2 + $0x28] sm:$0xff] %v2031_v32 }
  0x40   : > { %464 = vst [vmem:[#allocation2 + $0xa0] sm:$0xff] %v2031_v32  ;;  %465 = vst [vmem:[#allocation2 + $0xf8] sm:$0xff] %v2031_v32 }
  0x41   : > { %466 = vst [vmem:[#allocation2 + $0x20] sm:$0xff] %v2031_v32  ;;  %467 = vst [vmem:[#allocation2 + $0x98] sm:$0xff] %v2031_v32 }
  0x42 PF: > { %v1887_v33 = vld [vmem:[%s2176_s11 + $0x74] ss:$8 sps:$4 sm:$0xff]   ;;  %v1889_v34 = vld [vmem:[%s2176_s11 + $0x70] ss:$8 sps:$4 sm:$0xff]   ;;  %v2032_v35 = vmov 0   ;;  %p1804_p11 = scmp.ne.s32.totalorder %s2021_s17, 17 }
  0x43   : > { %1093 = vmatprep.mubr.bf16.mxu1 %v2032_v35  ;;  %948 = vmatprep.subr.bf16.mxu0 %v1887_v33  ;;  %v1890_v36 = vld [vmem:[%s2176_s11 + $0x64] ss:$8 sps:$4 sm:$0xff]   ;;  %v1892_v37 = vld [vmem:[%s2176_s11 + $0x60] ss:$8 sps:$4 sm:$0xff]   ;;  %v1893_v38 = vld [vmem:[%s2176_s11 + $0x54] ss:$8 sps:$4 sm:$0xff]  }
  0x44   : > { %949 = vmatpush1.bf16.msra.mxu0 %v1889_v34  ;;  %v1895_v39 = vld [vmem:[%s2176_s11 + $0x50] ss:$8 sps:$4 sm:$0xff]   ;;  %v1896_v40 = vld [vmem:[%s2176_s11 + $0x44] ss:$8 sps:$4 sm:$0xff]   ;;  %v1908_v41 = vld [vmem:[%s2176_s11 + $0x174] ss:$8 sps:$4 sm:$0xff]  }
  0x45   : > { %950 = vmatprep.subr.bf16.mxu0 %v1890_v36  ;;  %v1910_v42 = vld [vmem:[%s2176_s11 + $0x170] ss:$8 sps:$4 sm:$0xff]   ;;  %v1898_v43 = vld [vmem:[%s2176_s11 + $0x40] ss:$8 sps:$4 sm:$0xff]   ;;  %v1899_v44 = vld [vmem:[%s2176_s11 + $0x34] ss:$8 sps:$4 sm:$0xff]   ;;  %1061 = vmatprep.subr.bf16.mxu1 %v1908_v41 }
  0x46   : > { %v1914_v45 = vld [vmem:[%s2176_s11 + $0x164] ss:$8 sps:$4 sm:$0xff]   ;;  %1062 = vmatpush1.bf16.msra.mxu1 %v1910_v42  ;;  %v1916_v46 = vld [vmem:[%s2176_s11 + $0x160] ss:$8 sps:$4 sm:$0xff]   ;;  %v1901_v47 = vld [vmem:[%s2176_s11 + $0x30] ss:$8 sps:$4 sm:$0xff]  }
  0x47   : > { %1063 = vmatprep.subr.bf16.mxu1 %v1914_v45  ;;  %v1920_v48 = vld [vmem:[%s2176_s11 + $0x154] ss:$8 sps:$4 sm:$0xff]   ;;  %v1902_v49 = vld [vmem:[%s2176_s11 + $0x24] ss:$8 sps:$4 sm:$0xff]   ;;  %v1922_v50 = vld [vmem:[%s2176_s11 + $0x150] ss:$8 sps:$4 sm:$0xff]  }
  0x48   : > { %951 = vmatpush1.bf16.msra.mxu0 %v1892_v37  ;;  %v1926_v51 = vld [vmem:[%s2176_s11 + $0x144] ss:$8 sps:$4 sm:$0xff]   ;;  %v1904_v52 = vld [vmem:[%s2176_s11 + $0x20] ss:$8 sps:$4 sm:$0xff]   ;;  %v1905_v53 = vld [vmem:[%s2176_s11 + $0x14] ss:$8 sps:$4 sm:$0xff]  }
  0x49   : > { %952 = vmatprep.subr.bf16.mxu0 %v1893_v38  ;;  %v1928_v54 = vld [vmem:[%s2176_s11 + $0x140] ss:$8 sps:$4 sm:$0xff]   ;;  %v1932_v55 = vld [vmem:[%s2176_s11 + $0x134] ss:$8 sps:$4 sm:$0xff]   ;;  %v1907_v56 = vld [vmem:[%s2176_s11 + $0x10] ss:$8 sps:$4 sm:$0xff]  }
  0x4a   : > { %1064 = vmatpush1.bf16.msra.mxu1 %v1916_v46  ;;  %v1911_v57 = vld [vmem:[%s2176_s11 + $0x4] ss:$8 sps:$4 sm:$0xff]   ;;  %v1934_v58 = vld [vmem:[%s2176_s11 + $0x130] ss:$8 sps:$4 sm:$0xff]   ;;  %v1913_v60 = vld [vmem:[%s2176_s11] ss:$8 sps:$4 sm:$0xff]  }
  0x4b   : > { %1065 = vmatprep.subr.bf16.mxu1 %v1920_v48  ;;  %v1938_v59 = vld [vmem:[%s2176_s11 + $0x124] ss:$8 sps:$4 sm:$0xff]   ;;  %v1917_v61 = vld [vmem:[%s2176_s11 + $0xf4] ss:$8 sps:$4 sm:$0xff]   ;;  %v1940_v62 = vld [vmem:[%s2176_s11 + $0x120] ss:$8 sps:$4 sm:$0xff]  }
  0x4c   : > { %953 = vmatpush1.bf16.msra.mxu0 %v1895_v39  ;;  %v1944_v63 = vld [vmem:[%s2176_s11 + $0x114] ss:$8 sps:$4 sm:$0xff]   ;;  %v1919_v0 = vld [vmem:[%s2176_s11 + $0xf0] ss:$8 sps:$4 sm:$0xff]   ;;  %v1923_v1 = vld [vmem:[%s2176_s11 + $0xe4] ss:$8 sps:$4 sm:$0xff]  }
  0x4d   : > { %954 = vmatprep.subr.bf16.mxu0 %v1896_v40  ;;  %v1946_v2 = vld [vmem:[%s2176_s11 + $0x110] ss:$8 sps:$4 sm:$0xff]   ;;  %v1950_v3 = vld [vmem:[%s2176_s11 + $0x104] ss:$8 sps:$4 sm:$0xff]   ;;  %v1925_v5 = vld [vmem:[%s2176_s11 + $0xe0] ss:$8 sps:$4 sm:$0xff]  }
  0x4e   : > { %1066 = vmatpush1.bf16.msra.mxu1 %v1922_v50  ;;  %v1962_v4 = vld [vmem:[%s2178_s12 + $0x4] ss:$12 sps:$4 sm:$0xff]   ;;  %v1929_v6 = vld [vmem:[%s2176_s11 + $0xd4] ss:$8 sps:$4 sm:$0xff]   ;;  %v1952_v7 = vld [vmem:[%s2176_s11 + $0x100] ss:$8 sps:$4 sm:$0xff]  }
  0x4f   : > { %1067 = vmatprep.subr.bf16.mxu1 %v1926_v51  ;;  %980 = vmatprep.mubr.bf16.mxu0 %v1962_v4  ;;  %v1931_v8 = vld [vmem:[%s2176_s11 + $0xd0] ss:$8 sps:$4 sm:$0xff]   ;;  %v1935_v9 = vld [vmem:[%s2176_s11 + $0xc4] ss:$8 sps:$4 sm:$0xff]   ;;  %v1956_v10 = vld [vmem:[%s2178_s12 + $0x8] ss:$12 sps:$4 sm:$0xff]  }
  0x50   : > { %955 = vmatpush1.bf16.msra.mxu0 %v1898_v43  ;;  %v1937_v11 = vld [vmem:[%s2176_s11 + $0xc0] ss:$8 sps:$4 sm:$0xff]   ;;  %v1941_v12 = vld [vmem:[%s2176_s11 + $0xb4] ss:$8 sps:$4 sm:$0xff]   ;;  %v1943_v13 = vld [vmem:[%s2176_s11 + $0xb0] ss:$8 sps:$4 sm:$0xff]  }
  0x51   : > { %956 = vmatprep.subr.bf16.mxu0 %v1899_v44  ;;  %v1947_v14 = vld [vmem:[%s2176_s11 + $0xa4] ss:$8 sps:$4 sm:$0xff]   ;;  %v1949_v16 = vld [vmem:[%s2176_s11 + $0xa0] ss:$8 sps:$4 sm:$0xff]   ;;  %v1953_v17 = vld [vmem:[%s2176_s11 + $0x94] ss:$8 sps:$4 sm:$0xff]  }
  0x52   : > { %1068 = vmatpush1.bf16.msra.mxu1 %v1928_v54  ;;  %v1963_v15 = vld [vmem:[%s2178_s12 + $0x20] ss:$12 sps:$4 sm:$0xff]   ;;  %v1955_v18 = vld [vmem:[%s2176_s11 + $0x90] ss:$8 sps:$4 sm:$0xff]   ;;  %v1964_v23 = vld [vmem:[%s2178_s12 + $0x1c] ss:$12 sps:$4 sm:$0xff]  }
  0x53   : > { %1069 = vmatprep.subr.bf16.mxu1 %v1932_v55  ;;  %v1957_v19 = vld [vmem:[%s2176_s11 + $0x84] ss:$8 sps:$4 sm:$0xff]   ;;  %v1959_v21 = vld [vmem:[%s2176_s11 + $0x80] ss:$8 sps:$4 sm:$0xff]   ;;  %v1971_v24 = vld [vmem:[%s2178_s12 + $0x50] ss:$12 sps:$4 sm:$0xff]  }
  0x54   : > { %957 = vmatpush1.bf16.msra.mxu0 %v1901_v47  ;;  %v1967_v20 = vld [vmem:[%s2178_s12 + $0x38] ss:$12 sps:$4 sm:$0xff]   ;;  %v1960_v22 = vld [vmem:[%s2178_s12] ss:$12 sps:$4 sm:$0xff]   ;;  %v1975_v27 = vld [vmem:[%s2178_s12 + $0x68] ss:$12 sps:$4 sm:$0xff]  }
  0x55   : > { %958 = vmatprep.subr.bf16.mxu0 %v1902_v49  ;;  %v1966_v25 = vld [vmem:[%s2178_s12 + $0x18] ss:$12 sps:$4 sm:$0xff]   ;;  %v1968_v26 = vld [vmem:[%s2178_s12 + $0x34] ss:$12 sps:$4 sm:$0xff]   ;;  %v1970_v28 = vld [vmem:[%s2178_s12 + $0x30] ss:$12 sps:$4 sm:$0xff]  }
  0x56   : > { %1070 = vmatpush1.bf16.msra.mxu1 %v1934_v58  ;;  %v1972_v29 = vld [vmem:[%s2178_s12 + $0x4c] ss:$12 sps:$4 sm:$0xff]   ;;  %v1974_v31 = vld [vmem:[%s2178_s12 + $0x48] ss:$12 sps:$4 sm:$0xff]   ;;  %v1976_v32 = vld [vmem:[%s2178_s12 + $0x64] ss:$12 sps:$4 sm:$0xff]  }
  0x57   : > { %1071 = vmatprep.subr.bf16.mxu1 %v1938_v59  ;;  %v1979_v30 = vld [vmem:[%s2178_s12 + $0x80] ss:$12 sps:$4 sm:$0xff]   ;;  %v1983_v33 = vld [vmem:[%s2178_s12 + $0x98] ss:$12 sps:$4 sm:$0xff]   ;;  %v1980_v36 = vld [vmem:[%s2178_s12 + $0x7c] ss:$12 sps:$4 sm:$0xff]  }
  0x58   : > { %959 = vmatpush1.bf16.msra.mxu0 %v1904_v52  ;;  %v1978_v34 = vld [vmem:[%s2178_s12 + $0x60] ss:$12 sps:$4 sm:$0xff]   ;;  %v1987_v37 = vld [vmem:[%s2178_s12 + $0xb0] ss:$12 sps:$4 sm:$0xff]   ;;  %v1982_v38 = vld [vmem:[%s2178_s12 + $0x78] ss:$12 sps:$4 sm:$0xff]  }
  0x59   : > { %960 = vmatprep.subr.bf16.mxu0 %v1905_v53  ;;  %v1984_v39 = vld [vmem:[%s2178_s12 + $0x94] ss:$12 sps:$4 sm:$0xff]   ;;  %v1986_v40 = vld [vmem:[%s2178_s12 + $0x90] ss:$12 sps:$4 sm:$0xff]   ;;  %v1988_v41 = vld [vmem:[%s2178_s12 + $0xac] ss:$12 sps:$4 sm:$0xff]  }
  0x5a   : > { %1072 = vmatpush1.bf16.msra.mxu1 %v1940_v62  ;;  %v1990_v42 = vld [vmem:[%s2178_s12 + $0xa8] ss:$12 sps:$4 sm:$0xff]   ;;  %v470_v62 = vld [vmem:[#allocation2 + $0xd8] sm:$0xff] }
  0x5b   : > { %1073 = vmatprep.subr.bf16.mxu1 %v1944_v63  ;;  %v468_v53 = vld [vmem:[#allocation2 + $0xb0] sm:$0xff] }
  0x5c   : > { %961 = vmatpush1.bf16.msra.mxu0 %v1907_v56 }
  0x5d   : > { %962 = vmatprep.subr.bf16.mxu0 %v1911_v57  ;;  %v469_v57 = vld [vmem:[#allocation2] sm:$0xff] }
  0x5e   : > { %1074 = vmatpush1.bf16.msra.mxu1 %v1946_v2 }
  0x5f   : > { %1075 = vmatprep.subr.bf16.mxu1 %v1950_v3  ;;  %v471_v3 = vld [vmem:[#allocation2 + $0x18] sm:$0xff] }
  0x60   : > { %963 = vmatpush1.bf16.msra.mxu0 %v1913_v60 }
  0x61   : > { %964 = vmatprep.subr.bf16.mxu0 %v1917_v61 }
  0x62   : > { %1076 = vmatpush1.bf16.msra.mxu1 %v1952_v7 }
  0x64   : > { %965 = vmatpush2.bf16.msra.mxu0 %v1919_v0 }
  0x65   : > { %966 = vmatprep.subr.bf16.mxu0 %v1923_v1  ;;  %1094 = vmatmul.mubr.bf16.vlgmr.msra.gmra.mxu1 %v1956_v10 }
  0x66   : > { %1103 = vmatprep.mubr.bf16.mxu1 %v2032_v35 }
  0x68   : > { %967 = vmatpush2.bf16.msra.mxu0 %v1925_v5 }
  0x69   : > { %968 = vmatprep.subr.bf16.mxu0 %v1929_v6 }
  0x6c   : > { %969 = vmatpush2.bf16.msra.mxu0 %v1931_v8  ;;  %v472_v8 = vld [vmem:[#allocation2 + $0x50] sm:$0xff] }
  0x6d   : > { %970 = vmatprep.subr.bf16.mxu0 %v1935_v9  ;;  %1104 = vmatmul.mubr.bf16.gmra.mxu1 %v1963_v15 }
  0x6e   : > { %1113 = vmatprep.mubr.bf16.mxu1 %v2032_v35 }
  0x70   : > { %971 = vmatpush2.bf16.msra.mxu0 %v1937_v11 }
  0x71   : > { %972 = vmatprep.subr.bf16.mxu0 %v1941_v12 }
  0x74   : > { %973 = vmatpush2.bf16.msra.mxu0 %v1943_v13  ;;  %v473_v13 = vld [vmem:[#allocation2 + $0x68] sm:$0xff] }
  0x75   : > { %974 = vmatprep.subr.bf16.mxu0 %v1947_v14  ;;  %1114 = vmatmul.mubr.bf16.gmra.mxu1 %v1967_v20 }
  0x76   : > { %1123 = vmatprep.mubr.bf16.mxu1 %v2032_v35 }
  0x78   : > { %975 = vmatpush2.bf16.msra.mxu0 %v1949_v16 }
  0x79   : > { %976 = vmatprep.subr.bf16.mxu0 %v1953_v17 }
  0x7c   : > { %977 = vmatpush2.bf16.msra.mxu0 %v1955_v18  ;;  %v474_v18 = vld [vmem:[#allocation2 + $0x30] sm:$0xff] }
  0x7d   : > { %978 = vmatprep.subr.bf16.mxu0 %v1957_v19  ;;  %1124 = vmatmul.mubr.bf16.gmra.mxu1 %v1971_v24 }
  0x7e   : > { %1133 = vmatprep.mubr.bf16.mxu1 %v2032_v35 }
  0x80   : > { %979 = vmatpush2.bf16.msra.mxu0 %v1959_v21 }
  0x83   : > { %981 = vmatmul.mubr.bf16.vlgmr.msra.gmra.mxu0 %v1960_v22 }
  0x84   : > { %990 = vmatprep.mubr.bf16.mxu0 %v1964_v23  ;;  %v475_v23 = vld [vmem:[#allocation2 + $0x48] sm:$0xff] }
  0x85   : > { %1134 = vmatmul.mubr.bf16.gmra.mxu1 %v1975_v27 }
  0x86   : > { %1143 = vmatprep.mubr.bf16.mxu1 %v2032_v35 }
  0x8b   : > { %991 = vmatmul.mubr.bf16.gmra.mxu0 %v1966_v25 }
  0x8c   : > { %1000 = vmatprep.mubr.bf16.mxu0 %v1968_v26 }
  0x8d   : > { %1144 = vmatmul.mubr.bf16.gmra.mxu1 %v1979_v30 }
  0x8e   : > { %1153 = vmatprep.mubr.bf16.mxu1 %v2032_v35 }
  0x93   : > { %1001 = vmatmul.mubr.bf16.gmra.mxu0 %v1970_v28  ;;  %v476_v28 = vld [vmem:[#allocation2 + $0x80] sm:$0xff] }
  0x94   : > { %1010 = vmatprep.mubr.bf16.mxu0 %v1972_v29 }
  0x95   : > { %1154 = vmatmul.mubr.bf16.gmra.mxu1 %v1983_v33  ;;  %v477_v33 = vld [vmem:[#allocation2 + $0x88] sm:$0xff] }
  0x96   : > { %1163 = vmatprep.mubr.bf16.mxu1 %v2032_v35 }
  0x9b   : > { %1011 = vmatmul.mubr.bf16.gmra.mxu0 %v1974_v31 }
  0x9c   : > { %1020 = vmatprep.mubr.bf16.mxu0 %v1976_v32 }
  0x9d   : > { %1164 = vmatmul.mubr.bf16.gmra.mxu1 %v1987_v37 }
  0xa3   : > { %1021 = vmatmul.mubr.bf16.gmra.mxu0 %v1978_v34 }
  0xa4   : > { %1030 = vmatprep.mubr.bf16.mxu0 %v1980_v36 }
  0xab   : > { %1031 = vmatmul.mubr.bf16.gmra.mxu0 %v1982_v38 }
  0xac   : > { %1040 = vmatprep.mubr.bf16.mxu0 %v1984_v39  ;;  %v478_v39 = vld [vmem:[#allocation2 + $0xe8] sm:$0xff] }
  0xb3   : > { %1041 = vmatmul.mubr.bf16.gmra.mxu0 %v1986_v40 }
  0xb4   : > { %1050 = vmatprep.mubr.bf16.mxu0 %v1988_v41 }
  0xbb   : > { %1051 = vmatmul.mubr.bf16.gmra.mxu0 %v1990_v42 }
 0x125   : > { %v1095_v43 = vpop.f32.mrf.mxu1 }
 0x127   : > { %v1097_v44 = vpop.f32.mrf.mxu1 }
 0x129   : > { %v1099_v45 = vpop.f32.mrf.mxu1 }
 0x12b   : > { %v1101_v35 = vpop.f32.mrf.mxu1 }
 0x12d   : > { %v1105_v46 = vpop.f32.mrf.mxu1 }
 0x12f   : > { %v1107_v47 = vpop.f32.mrf.mxu1 }
 0x131   : > { %v1109_v48 = vpop.f32.mrf.mxu1 }
 0x133   : > { %v1111_v49 = vpop.f32.mrf.mxu1 }
 0x135   : > { %v1115_v50 = vpop.f32.mrf.mxu1 }
 0x137   : > { %v1117_v51 = vpop.f32.mrf.mxu1 }
 0x139   : > { %v1119_v52 = vpop.f32.mrf.mxu1 }
 0x13b   : > { %v2261_v55 = vpop.f32.mrf.mxu1 }
 0x13d   : > { %v2263_v59 = vpop.f32.mrf.mxu1 }
 0x13f   : > { %v2265_v0 = vpop.f32.mrf.mxu1 }
 0x141   : > { %v2267_v5 = vpop.f32.mrf.mxu1 }
 0x143   : > { %v982_v54 = vpop.f32.mrf.mxu0  ;;  %v2269_v10 = vpop.f32.mrf.mxu1 }
 0x144   : > { %v1096_v56 = vadd.f32 %v1095_v43, %v982_v54  ;;  %v479_v43 = vld [vmem:[#allocation2 + $0xb8] sm:$0xff] }
 0x145   : > { %v984_v58 = vpop.f32.mrf.mxu0  ;;  %v2271_v15 = vpop.f32.mrf.mxu1 }
 0x146   : > { %v1174_v60 = vadd.f32 %v1096_v56, %v468_v53  ;;  %v1098_v61 = vadd.f32 %v1097_v44, %v984_v58  ;;  %v481_v53 = vld [vmem:[#allocation2 + $0xf0] sm:$0xff] }
 0x147   : > { %v986_v63 = vpop.f32.mrf.mxu0  ;;  %v2273_v20 = vpop.f32.mrf.mxu1 }
 0x148   : > { %1206 = vst [vmem:[#allocation2 + $0xb0] sm:$0xff] %v1174_v60  ;;  %v1175_v1 = vadd.f32 %v1098_v61, %v469_v57  ;;  %v1100_v2 = vadd.f32 %v1099_v45, %v986_v63  ;;  %v482_v57 = vld [vmem:[#allocation2 + $0x8] sm:$0xff] }
 0x149   : > { %v988_v4 = vpop.f32.mrf.mxu0  ;;  %v2275_v25 = vpop.f32.mrf.mxu1 }
 0x14a   : > { %1207 = vst [vmem:[#allocation2] sm:$0xff] %v1175_v1  ;;  %v1176_v6 = vadd.f32 %v1100_v2, %v470_v62  ;;  %v1102_v7 = vadd.f32 %v1101_v35, %v988_v4  ;;  %v484_v2 = vld [vmem:[#allocation2 + $0x38] sm:$0xff] }
 0x14b   : > { %v992_v9 = vpop.f32.mrf.mxu0  ;;  %v2277_v30 = vpop.f32.mrf.mxu1 }
 0x14c   : > { %1208 = vst [vmem:[#allocation2 + $0xd8] sm:$0xff] %v1176_v6  ;;  %v1177_v11 = vadd.f32 %v1102_v7, %v471_v3  ;;  %v1106_v12 = vadd.f32 %v1105_v46, %v992_v9 }
 0x14d   : > { %v994_v14 = vpop.f32.mrf.mxu0  ;;  %v2279_v36 = vpop.f32.mrf.mxu1 }
 0x14e   : > { %1209 = vst [vmem:[#allocation2 + $0x18] sm:$0xff] %v1177_v11  ;;  %v1178_v16 = vadd.f32 %v1106_v12, %v472_v8  ;;  %v1108_v17 = vadd.f32 %v1107_v47, %v994_v14  ;;  %v480_v47 = vld [vmem:[#allocation2 + $0x60] sm:$0xff] }
 0x14f   : > { %v996_v19 = vpop.f32.mrf.mxu0  ;;  %v1147_v45 = vpop.f32.mrf.mxu1  ;;  %v486_v11 = vld [vmem:[#allocation2 + $0x40] sm:$0xff] }
 0x150   : > { %1210 = vst [vmem:[#allocation2 + $0x50] sm:$0xff] %v1178_v16  ;;  %v1179_v21 = vadd.f32 %v1108_v17, %v473_v13  ;;  %v1110_v22 = vadd.f32 %v1109_v48, %v996_v19  ;;  %v488_v19 = vld [vmem:[#allocation2 + $0xe0] sm:$0xff] }
 0x151   : > { %v998_v24 = vpop.f32.mrf.mxu0  ;;  %v1149_v54 = vpop.f32.mrf.mxu1 }
 0x152   : > { %1211 = vst [vmem:[#allocation2 + $0x68] sm:$0xff] %v1179_v21  ;;  %v1180_v26 = vadd.f32 %v1110_v22, %v474_v18  ;;  %v1112_v27 = vadd.f32 %v1111_v49, %v998_v24 }
 0x153   : > { %v1002_v29 = vpop.f32.mrf.mxu0  ;;  %v1151_v63 = vpop.f32.mrf.mxu1 }
 0x154   : > { %1212 = vst [vmem:[#allocation2 + $0x30] sm:$0xff] %v1180_v26  ;;  %v1181_v31 = vadd.f32 %v1112_v27, %v475_v23  ;;  %v1116_v32 = vadd.f32 %v1115_v50, %v1002_v29 }
 0x155   : > { %v1004_v34 = vpop.f32.mrf.mxu0  ;;  %v1155_v8 = vpop.f32.mrf.mxu1 }
 0x156   : > { %1213 = vst [vmem:[#allocation2 + $0x48] sm:$0xff] %v1181_v31  ;;  %v1182_v37 = vadd.f32 %v1116_v32, %v476_v28  ;;  %v1118_v38 = vadd.f32 %v1117_v51, %v1004_v34 }
 0x157   : > { %v1006_v40 = vpop.f32.mrf.mxu0  ;;  %v1157_v17 = vpop.f32.mrf.mxu1 }
 0x158   : > { %1214 = vst [vmem:[#allocation2 + $0x80] sm:$0xff] %v1182_v37  ;;  %v1183_v41 = vadd.f32 %v1118_v38, %v477_v33  ;;  %v1120_v42 = vadd.f32 %v1119_v52, %v1006_v40  ;;  %v491_v33 = vld [vmem:[#allocation2 + $0xc0] sm:$0xff] }
 0x159   : > { %v1008_v44 = vpop.f32.mrf.mxu0  ;;  %v1159_v26 = vpop.f32.mrf.mxu1 }
 0x15a   : > { %1215 = vst [vmem:[#allocation2 + $0x88] sm:$0xff] %v1183_v41  ;;  %v1184_v35 = vadd.f32 %v1120_v42, %v478_v39  ;;  %v1122_v46 = vadd.f32 %v2261_v55, %v1008_v44  ;;  %v483_v55 = vld [vmem:[#allocation2 + $0x78] sm:$0xff]  ;;  %v492_v39 = vld [vmem:[#allocation2 + $0xa8] sm:$0xff]  ;;  %v493_v42 = vld [vmem:[#allocation2 + $0xd0] sm:$0xff] }
 0x15b   : > { %v1012_v48 = vpop.f32.mrf.mxu0 }
 0x15c   : > { %1216 = vst [vmem:[#allocation2 + $0xe8] sm:$0xff] %v1184_v35  ;;  %v1185_v49 = vadd.f32 %v1122_v46, %v479_v43  ;;  %v1126_v50 = vadd.f32 %v2263_v59, %v1012_v48  ;;  %v494_v46 = vld [vmem:[#allocation2 + $0x10] sm:$0xff] }
 0x15d   : > { %v1014_v51 = vpop.f32.mrf.mxu0 }
 0x15e   : > { %1217 = vst [vmem:[#allocation2 + $0xb8] sm:$0xff] %v1185_v49  ;;  %v1186_v56 = vadd.f32 %v1126_v50, %v480_v47  ;;  %v1128_v52 = vadd.f32 %v2265_v0, %v1014_v51  ;;  %v485_v0 = vld [vmem:[#allocation2 + $0x58] sm:$0xff] }
 0x15f   : > { %v1016_v58 = vpop.f32.mrf.mxu0 }
 0x160   : > { %1218 = vst [vmem:[#allocation2 + $0x60] sm:$0xff] %v1186_v56  ;;  %v1187_v60 = vadd.f32 %v1128_v52, %v481_v53  ;;  %v1130_v61 = vadd.f32 %v2267_v5, %v1016_v58  ;;  %v495_v53 = vld [vmem:[#allocation2 + $0x28] sm:$0xff]  ;;  %v496_v52 = vld [vmem:[#allocation2 + $0xa0] sm:$0xff] }
 0x161   : > { %v1018_v62 = vpop.f32.mrf.mxu0 }
 0x162   : > { %1219 = vst [vmem:[#allocation2 + $0xf0] sm:$0xff] %v1187_v60  ;;  %v1188_v1 = vadd.f32 %v1130_v61, %v482_v57  ;;  %v1132_v59 = vadd.f32 %v2269_v10, %v1018_v62  ;;  %v487_v10 = vld [vmem:[#allocation2 + $0xc8] sm:$0xff] }
 0x163   : > { %v1022_v3 = vpop.f32.mrf.mxu0 }
 0x164   : > { %1220 = vst [vmem:[#allocation2 + $0x8] sm:$0xff] %v1188_v1  ;;  %v1189_v4 = vadd.f32 %v1132_v59, %v483_v55  ;;  %v1136_v6 = vadd.f32 %v2271_v15, %v1022_v3  ;;  %v497_v55 = vld [vmem:[#allocation2 + $0xf8] sm:$0xff]  ;;  %v498_v59 = vld [vmem:[#allocation2 + $0x20] sm:$0xff] }
 0x165   : > { %v1024_v7 = vpop.f32.mrf.mxu0 }
 0x166   : > { %1221 = vst [vmem:[#allocation2 + $0x78] sm:$0xff] %v1189_v4  ;;  %v1190_v9 = vadd.f32 %v1136_v6, %v484_v2  ;;  %v1138_v5 = vadd.f32 %v2273_v20, %v1024_v7  ;;  %v489_v20 = vld [vmem:[#allocation2 + $0x90] sm:$0xff] }
 0x167   : > { %v1026_v12 = vpop.f32.mrf.mxu0 }
 0x168   : > { %1222 = vst [vmem:[#allocation2 + $0x38] sm:$0xff] %v1190_v9  ;;  %v1191_v13 = vadd.f32 %v1138_v5, %v485_v0  ;;  %v1140_v14 = vadd.f32 %v2275_v25, %v1026_v12  ;;  %v490_v25 = vld [vmem:[#allocation2 + $0x70] sm:$0xff]  ;;  %v499_v0 = vld [vmem:[#allocation2 + $0x98] sm:$0xff] }
 0x169   : > { %v1028_v16 = vpop.f32.mrf.mxu0 }
 0x16a   : > { %1223 = vst [vmem:[#allocation2 + $0x58] sm:$0xff] %v1191_v13  ;;  %v1192_v18 = vadd.f32 %v1140_v14, %v486_v11  ;;  %v1142_v15 = vadd.f32 %v2277_v30, %v1028_v16  ;;  %v1161_v30 = vpop.f32.mrf.mxu1 }
 0x16b   : > { %v1032_v21 = vpop.f32.mrf.mxu0 }
 0x16c   : > { %1224 = vst [vmem:[#allocation2 + $0x40] sm:$0xff] %v1192_v18  ;;  %v1193_v22 = vadd.f32 %v1142_v15, %v487_v10  ;;  %v1146_v23 = vadd.f32 %v2279_v36, %v1032_v21  ;;  %v1165_v44 = vpop.f32.mrf.mxu1 }
 0x16d   : > { %v1034_v24 = vpop.f32.mrf.mxu0 }
 0x16e   : > { %1225 = vst [vmem:[#allocation2 + $0xc8] sm:$0xff] %v1193_v22  ;;  %v1194_v27 = vadd.f32 %v1146_v23, %v488_v19  ;;  %v1148_v28 = vadd.f32 %v1147_v45, %v1034_v24  ;;  %v1167_v50 = vpop.f32.mrf.mxu1 }
 0x16f   : > { %v1036_v29 = vpop.f32.mrf.mxu0 }
 0x170   : > { %1226 = vst [vmem:[#allocation2 + $0xe0] sm:$0xff] %v1194_v27  ;;  %v1195_v31 = vadd.f32 %v1148_v28, %v489_v20  ;;  %v1150_v32 = vadd.f32 %v1149_v54, %v1036_v29  ;;  %v1169_v61 = vpop.f32.mrf.mxu1 }
 0x171   : > { %v1038_v34 = vpop.f32.mrf.mxu0 }
 0x172   : > { %1227 = vst [vmem:[#allocation2 + $0x90] sm:$0xff] %v1195_v31  ;;  %v1196_v37 = vadd.f32 %v1150_v32, %v490_v25  ;;  %v1152_v38 = vadd.f32 %v1151_v63, %v1038_v34  ;;  %v1171_v6 = vpop.f32.mrf.mxu1 }
 0x173   : > { %v1042_v40 = vpop.f32.mrf.mxu0 }
 0x174   : > { %1228 = vst [vmem:[#allocation2 + $0x70] sm:$0xff] %v1196_v37  ;;  %v1197_v36 = vadd.f32 %v1152_v38, %v491_v33  ;;  %v1156_v41 = vadd.f32 %v1155_v8, %v1042_v40 }
 0x175   : > { %v1044_v43 = vpop.f32.mrf.mxu0 }
 0x176   : > { %1229 = vst [vmem:[#allocation2 + $0xc0] sm:$0xff] %v1197_v36  ;;  %v1198_v45 = vadd.f32 %v1156_v41, %v492_v39  ;;  %v1158_v35 = vadd.f32 %v1157_v17, %v1044_v43 }
 0x177   : > { %v1046_v47 = vpop.f32.mrf.mxu0 }
 0x178   : > { %1230 = vst [vmem:[#allocation2 + $0xa8] sm:$0xff] %v1198_v45  ;;  %v1199_v48 = vadd.f32 %v1158_v35, %v493_v42  ;;  %v1160_v49 = vadd.f32 %v1159_v26, %v1046_v47 }
 0x179   : > { %v1048_v51 = vpop.f32.mrf.mxu0 }
 0x17a   : > { %1231 = vst [vmem:[#allocation2 + $0xd0] sm:$0xff] %v1199_v48  ;;  %v1200_v54 = vadd.f32 %v1160_v49, %v494_v46  ;;  %v1162_v56 = vadd.f32 %v1161_v30, %v1048_v51 }
 0x17b   : > { %v1052_v57 = vpop.f32.mrf.mxu0 }
 0x17c   : > { %1232 = vst [vmem:[#allocation2 + $0x10] sm:$0xff] %v1200_v54  ;;  %v1201_v58 = vadd.f32 %v1162_v56, %v495_v53  ;;  %v1166_v60 = vadd.f32 %v1165_v44, %v1052_v57 }
 0x17d   : > { %v1054_v62 = vpop.f32.mrf.mxu0 }
 0x17e   : > { %1233 = vst [vmem:[#allocation2 + $0x28] sm:$0xff] %v1201_v58  ;;  %v1202_v63 = vadd.f32 %v1166_v60, %v496_v52  ;;  %v1168_v1 = vadd.f32 %v1167_v50, %v1054_v62 }
 0x17f   : > { %v1056_v2 = vpop.f32.mrf.mxu0 }
 0x180   : > { %1234 = vst [vmem:[#allocation2 + $0xa0] sm:$0xff] %v1202_v63  ;;  %v1203_v3 = vadd.f32 %v1168_v1, %v497_v55  ;;  %v1170_v4 = vadd.f32 %v1169_v61, %v1056_v2 }
 0x181   : > { %v1058_v7 = vpop.f32.mrf.mxu0 }
 0x182   : > { %1235 = vst [vmem:[#allocation2 + $0xf8] sm:$0xff] %v1203_v3  ;;  %v1204_v8 = vadd.f32 %v1170_v4, %v498_v59  ;;  %v1172_v9 = vadd.f32 %v1171_v6, %v1058_v7  ;;  %1241 = sbr.rel (%p1804_p11) target bundleno = 438 (0x1b6), region = 70 }
 0x184   : > { %1236 = vst [vmem:[#allocation2 + $0x20] sm:$0xff] %v1204_v8  ;;  %v1205_v5 = vadd.f32 %v1172_v9, %v499_v0 }
 0x186   : > { %1237 = vst [vmem:[#allocation2 + $0x98] sm:$0xff] %v1205_v5 }
 0x187   : > { %v1276_v11 = vlaneseq  ;;  %v1318_v12 = vld [vmem:[%s2445_s3] sm:$0xff]  ;;  %v1319_v14 = vld [vmem:[%s2445_s3 + $0x8] sm:$0xff]  ;;  %v1242_v10 = vld [vmem:[#allocation2 + $0xb0] sm:$0xff] }
 0x188   : > { %v1243_v16 = vld [vmem:[#allocation2] sm:$0xff]  ;;  %v1320_v18 = vld [vmem:[%s2445_s3 + $0x10] sm:$0xff]  ;;  %v1334_v21 = vunpack.c.l.bf16 %v1318_v12  ;;  %v1335_v22 = vunpack.c.h.bf16 %v1318_v12  ;;  %v1244_v23 = vld [vmem:[#allocation2 + $0xd8] sm:$0xff]  ;;  %v1336_v26 = vunpack.c.l.bf16 %v1319_v14  ;;  %v1337_v27 = vunpack.c.h.bf16 %v1319_v14 }
 0x189   : > { %v1277_v13 = vshrl.u32 %v1276_v11, 7  ;;  %v1274_v17 = vld [vmem:[%s2444_s2] sm:$0x3]  ;;  %v1245_v20 = vld [vmem:[#allocation2 + $0x18] sm:$0xff]  ;;  %v1246_v28 = vld [vmem:[#allocation2 + $0x50] sm:$0xff]  ;;  %v1338_v29 = vunpack.c.l.bf16 %v1320_v18  ;;  %v1339_v31 = vunpack.c.h.bf16 %v1320_v18 }
 0x18a   : > { %v1321_v24 = vld [vmem:[%s2445_s3 + $0x18] sm:$0xff]  ;;  %v1247_v25 = vld [vmem:[#allocation2 + $0x68] sm:$0xff]  ;;  %v1322_v32 = vld [vmem:[%s2445_s3 + $0x20] sm:$0xff] }
 0x18b   : > { %v1278_v15 = vsub.s32 0, %v1277_v13  ;;  %v1282_v19 = vsub.s32 1, %v1277_v13  ;;  %v1248_v30 = vld [vmem:[#allocation2 + $0x30] sm:$0xff]  ;;  %v1249_v37 = vld [vmem:[#allocation2 + $0x48] sm:$0xff]  ;;  %v1340_v38 = vunpack.c.l.bf16 %v1321_v24  ;;  %v1341_v39 = vunpack.c.h.bf16 %v1321_v24  ;;  %v1250_v61 = vld [vmem:[#allocation2 + $0x80] sm:$0xff] }
 0x18c   : > { %v1323_v40 = vld [vmem:[%s2445_s3 + $0x28] sm:$0xff]  ;;  %v1342_v36 = vunpack.c.l.bf16 %v1322_v32  ;;  %v1343_v41 = vunpack.c.h.bf16 %v1322_v32  ;;  %v1253_v3 = vld [vmem:[#allocation2 + $0xb8] sm:$0xff]  ;;  %v1254_v8 = vld [vmem:[#allocation2 + $0x60] sm:$0xff] }
 0x18d   : > { %v2310_v33 = vrot.slane %v1274_v17, %v1278_v15  ;;  %v2312_v34 = vrot.slane %v1274_v17, %v1282_v19  ;;  %v1344_v42 = vunpack.c.l.bf16 %v1323_v40  ;;  %v1345_v43 = vunpack.c.h.bf16 %v1323_v40  ;;  %v1251_v55 = vld [vmem:[#allocation2 + $0x88] sm:$0xff]  ;;  %v1255_v9 = vld [vmem:[#allocation2 + $0xf0] sm:$0xff]  ;;  %v1257_v19 = vld [vmem:[#allocation2 + $0x78] sm:$0xff] }
 0x18e   : > { %v1252_v2 = vld [vmem:[#allocation2 + $0xe8] sm:$0xff]  ;;  %v1324_v14 = vld [vmem:[%s2445_s3 + $0x30] sm:$0xff] }
 0x18f   : > { %v1286_v44 = vadd.f32 %v2310_v33, %v1242_v10  ;;  %v1287_v45 = vadd.f32 %v2312_v34, %v1243_v16  ;;  %v1288_v35 = vadd.f32 %v2310_v33, %v1244_v23  ;;  %v1289_v46 = vadd.f32 %v2312_v34, %v1245_v20  ;;  %v1256_v15 = vld [vmem:[#allocation2 + $0x8] sm:$0xff] }
 0x190   : > { %v1290_v47 = vadd.f32 %v2310_v33, %v1246_v28  ;;  %v1291_v48 = vadd.f32 %v2312_v34, %v1247_v25  ;;  %v1292_v49 = vadd.f32 %v2310_v33, %v1248_v30  ;;  %v1293_v50 = vadd.f32 %v2312_v34, %v1249_v37  ;;  %v1325_v25 = vld [vmem:[%s2445_s3 + $0x38] sm:$0xff] }
 0x191   : > { %v1366_v53 = vadd.f32 %v1334_v21, %v1286_v44  ;;  %v1367_v51 = vadd.f32 %v1335_v22, %v1287_v45  ;;  %v1368_v54 = vadd.f32 %v1336_v26, %v1288_v35  ;;  %v1369_v56 = vadd.f32 %v1337_v27, %v1289_v46  ;;  %v1260_v46 = vld [vmem:[#allocation2 + $0x40] sm:$0xff] }
 0x192   : > { %v1370_v52 = vadd.f32 %v1338_v29, %v1290_v47  ;;  %v1371_v57 = vadd.f32 %v1339_v31, %v1291_v48  ;;  %v1372_v58 = vadd.f32 %v1340_v38, %v1292_v49  ;;  %v1373_v60 = vadd.f32 %v1341_v39, %v1293_v50  ;;  %v1258_v29 = vld [vmem:[#allocation2 + $0x38] sm:$0xff]  ;;  %v1261_v47 = vld [vmem:[#allocation2 + $0xc8] sm:$0xff] }
 0x193   : > { %v1398_v62 = vmax.f32 %v1366_v53, 0.0  ;;  %v1399_v63 = vmax.f32 %v1367_v51, 0.0  ;;  %v1400_v1 = vmax.f32 %v1368_v54, 0.0  ;;  %v1401_v59 = vmax.f32 %v1369_v56, 0.0  ;;  %v1259_v38 = vld [vmem:[#allocation2 + $0x58] sm:$0xff]  ;;  %v1327_v48 = vld [vmem:[%s2445_s3 + $0x48] sm:$0xff] }
 0x194   : > { %v1402_v4 = vmax.f32 %v1370_v52, 0.0  ;;  %v1403_v6 = vmax.f32 %v1371_v57, 0.0  ;;  %v1404_v0 = vmax.f32 %v1372_v58, 0.0  ;;  %v1405_v7 = vmax.f32 %v1373_v60, 0.0  ;;  %v1262_v58 = vld [vmem:[#allocation2 + $0xe0] sm:$0xff]  ;;  %v1263_v60 = vld [vmem:[#allocation2 + $0x90] sm:$0xff] }
 0x195   : > { %v1827_v5 = vpack.c.bf16 %v1399_v63, %v1398_v62  ;;  %v1828_v11 = vpack.c.bf16 %v1401_v59, %v1400_v1  ;;  %v1294_v12 = vadd.f32 %v2310_v33, %v1250_v61  ;;  %v1295_v13 = vadd.f32 %v2312_v34, %v1251_v55  ;;  %v1328_v1 = vld [vmem:[%s2445_s3 + $0x50] sm:$0xff] }
 0x196   : > { %v1829_v10 = vpack.c.bf16 %v1403_v6, %v1402_v4  ;;  %v1830_v16 = vpack.c.bf16 %v1405_v7, %v1404_v0  ;;  %v1296_v17 = vadd.f32 %v2310_v33, %v1252_v2  ;;  %v1297_v18 = vadd.f32 %v2312_v34, %v1253_v3  ;;  %v1264_v6 = vld [vmem:[#allocation2 + $0x70] sm:$0xff] }
 0x197   : > { %1526 = vst [vmem:[%s2446_s4] sm:$0xff] %v1827_v5  ;;  %1527 = vst [vmem:[%s2446_s4 + $0x8] sm:$0xff] %v1828_v11  ;;  %v1374_v21 = vadd.f32 %v1342_v36, %v1294_v12  ;;  %v1375_v22 = vadd.f32 %v1343_v41, %v1295_v13  ;;  %v1298_v23 = vadd.f32 %v2310_v33, %v1254_v8  ;;  %v1346_v27 = vunpack.c.l.bf16 %v1324_v14  ;;  %v1265_v5 = vld [vmem:[#allocation2 + $0xc0] sm:$0xff]  ;;  %v1329_v11 = vld [vmem:[%s2445_s3 + $0x58] sm:$0xff] }
 0x198   : > { %v1299_v20 = vadd.f32 %v2312_v34, %v1255_v9  ;;  %1528 = vst [vmem:[%s2446_s4 + $0x10] sm:$0xff] %v1829_v10  ;;  %1529 = vst [vmem:[%s2446_s4 + $0x18] sm:$0xff] %v1830_v16  ;;  %v1376_v24 = vadd.f32 %v1344_v42, %v1296_v17  ;;  %v1377_v26 = vadd.f32 %v1345_v43, %v1297_v18  ;;  %v1347_v28 = vunpack.c.h.bf16 %v1324_v14  ;;  %v1326_v42 = vld [vmem:[%s2445_s3 + $0x40] sm:$0xff]  ;;  %v1266_v16 = vld [vmem:[#allocation2 + $0xa8] sm:$0xff] }
 0x199   : > { %v1406_v31 = vmax.f32 %v1374_v21, 0.0  ;;  %v1407_v32 = vmax.f32 %v1375_v22, 0.0  ;;  %v1300_v30 = vadd.f32 %v2310_v33, %v1256_v15  ;;  %v1301_v37 = vadd.f32 %v2312_v34, %v1257_v19  ;;  %v1267_v21 = vld [vmem:[#allocation2 + $0xd0] sm:$0xff]  ;;  %v1330_v22 = vld [vmem:[%s2445_s3 + $0x60] sm:$0xff] }
 0x19a   : > { %v1408_v39 = vmax.f32 %v1376_v24, 0.0  ;;  %v1409_v40 = vmax.f32 %v1377_v26, 0.0  ;;  %v1378_v36 = vadd.f32 %v1346_v27, %v1298_v23  ;;  %v1379_v41 = vadd.f32 %v1347_v28, %v1299_v20 }
 0x19b   : > { %v1831_v43 = vpack.c.bf16 %v1407_v32, %v1406_v31  ;;  %v1348_v44 = vunpack.c.l.bf16 %v1325_v25  ;;  %v1349_v45 = vunpack.c.h.bf16 %v1325_v25  ;;  %v1302_v35 = vadd.f32 %v2310_v33, %v1258_v29  ;;  %v1268_v31 = vld [vmem:[#allocation2 + $0x10] sm:$0xff]  ;;  %v1269_v32 = vld [vmem:[#allocation2 + $0x28] sm:$0xff] }
 0x19c   : > { %v1832_v49 = vpack.c.bf16 %v1409_v40, %v1408_v39  ;;  %v1410_v50 = vmax.f32 %v1378_v36, 0.0  ;;  %v1411_v53 = vmax.f32 %v1379_v41, 0.0  ;;  %v1303_v51 = vadd.f32 %v2312_v34, %v1259_v38  ;;  %v1331_v40 = vld [vmem:[%s2445_s3 + $0x68] sm:$0xff] }
 0x19d   : > { %1530 = vst [vmem:[%s2446_s4 + $0x20] sm:$0xff] %v1831_v43  ;;  %v1380_v54 = vadd.f32 %v1348_v44, %v1300_v30  ;;  %v1381_v56 = vadd.f32 %v1349_v45, %v1301_v37  ;;  %v1350_v52 = vunpack.c.l.bf16 %v1326_v42  ;;  %v1351_v57 = vunpack.c.h.bf16 %v1326_v42  ;;  %v1270_v44 = vld [vmem:[#allocation2 + $0xa0] sm:$0xff]  ;;  %v1271_v45 = vld [vmem:[#allocation2 + $0xf8] sm:$0xff] }
 0x19e   : > { %1531 = vst [vmem:[%s2446_s4 + $0x28] sm:$0xff] %v1832_v49  ;;  %v1833_v61 = vpack.c.bf16 %v1411_v53, %v1410_v50  ;;  %v1304_v55 = vadd.f32 %v2310_v33, %v1260_v46  ;;  %v1305_v62 = vadd.f32 %v2312_v34, %v1261_v47  ;;  %v1352_v63 = vunpack.c.l.bf16 %v1327_v48  ;;  %v1332_v49 = vld [vmem:[%s2445_s3 + $0x70] sm:$0xff] }
 0x19f   : > { %v1412_v59 = vmax.f32 %v1380_v54, 0.0  ;;  %v1413_v2 = vmax.f32 %v1381_v56, 0.0  ;;  %v1382_v3 = vadd.f32 %v1350_v52, %v1302_v35  ;;  %v1383_v4 = vadd.f32 %v1351_v57, %v1303_v51  ;;  %v1272_v56 = vld [vmem:[#allocation2 + $0x20] sm:$0xff]  ;;  %v1273_v52 = vld [vmem:[#allocation2 + $0x98] sm:$0xff] }
 0x1a0   : > { %1532 = vst [vmem:[%s2446_s4 + $0x30] sm:$0xff] %v1833_v61  ;;  %v1353_v0 = vunpack.c.h.bf16 %v1327_v48  ;;  %v1384_v7 = vadd.f32 %v1352_v63, %v1304_v55  ;;  %v1306_v8 = vadd.f32 %v2310_v33, %v1262_v58  ;;  %v1307_v9 = vadd.f32 %v2312_v34, %v1263_v60  ;;  %v1333_v55 = vld [vmem:[%s2445_s3 + $0x78] sm:$0xff] }
 0x1a1   : > { %v1834_v12 = vpack.c.bf16 %v1413_v2, %v1412_v59  ;;  %v1414_v13 = vmax.f32 %v1382_v3, 0.0  ;;  %v1415_v14 = vmax.f32 %v1383_v4, 0.0  ;;  %v1354_v10 = vunpack.c.l.bf16 %v1328_v1 }
 0x1a2   : > { %v1385_v17 = vadd.f32 %v1353_v0, %v1305_v62  ;;  %v1416_v18 = vmax.f32 %v1384_v7, 0.0  ;;  %v1355_v15 = vunpack.c.h.bf16 %v1328_v1  ;;  %v1308_v19 = vadd.f32 %v2310_v33, %v1264_v6 }
 0x1a3   : > { %1533 = vst [vmem:[%s2446_s4 + $0x38] sm:$0xff] %v1834_v12  ;;  %v1835_v23 = vpack.c.bf16 %v1415_v14, %v1414_v13  ;;  %v1386_v20 = vadd.f32 %v1354_v10, %v1306_v8  ;;  %v1309_v24 = vadd.f32 %v2312_v34, %v1265_v5  ;;  %v1356_v26 = vunpack.c.l.bf16 %v1329_v11 }
 0x1a4   : > { %v1417_v27 = vmax.f32 %v1385_v17, 0.0  ;;  %v1387_v28 = vadd.f32 %v1355_v15, %v1307_v9  ;;  %v1357_v25 = vunpack.c.h.bf16 %v1329_v11  ;;  %v1310_v29 = vadd.f32 %v2310_v33, %v1266_v16 }
 0x1a5   : > { %1534 = vst [vmem:[%s2446_s4 + $0x40] sm:$0xff] %v1835_v23  ;;  %v1418_v30 = vmax.f32 %v1386_v20, 0.0  ;;  %v1388_v37 = vadd.f32 %v1356_v26, %v1308_v19  ;;  %v1311_v38 = vadd.f32 %v2312_v34, %v1267_v21  ;;  %v1358_v39 = vunpack.c.l.bf16 %v1330_v22 }
 0x1a6   : > { %v1836_v36 = vpack.c.bf16 %v1417_v27, %v1416_v18  ;;  %v1419_v41 = vmax.f32 %v1387_v28, 0.0  ;;  %v1389_v42 = vadd.f32 %v1357_v25, %v1309_v24  ;;  %v1359_v43 = vunpack.c.h.bf16 %v1330_v22 }
 0x1a7   : > { %v1420_v35 = vmax.f32 %v1388_v37, 0.0  ;;  %v1390_v46 = vadd.f32 %v1358_v39, %v1310_v29  ;;  %v1312_v47 = vadd.f32 %v2310_v33, %v1268_v31  ;;  %v1313_v48 = vadd.f32 %v2312_v34, %v1269_v32 }
 0x1a8   : > { %1535 = vst [vmem:[%s2446_s4 + $0x48] sm:$0xff] %v1836_v36  ;;  %v1837_v50 = vpack.c.bf16 %v1419_v41, %v1418_v30  ;;  %v1421_v53 = vmax.f32 %v1389_v42, 0.0  ;;  %v1391_v51 = vadd.f32 %v1359_v43, %v1311_v38  ;;  %v1360_v54 = vunpack.c.l.bf16 %v1331_v40 }
 0x1a9   : > { %v1422_v57 = vmax.f32 %v1390_v46, 0.0  ;;  %v1361_v58 = vunpack.c.h.bf16 %v1331_v40  ;;  %v1314_v60 = vadd.f32 %v2310_v33, %v1270_v44  ;;  %v1315_v61 = vadd.f32 %v2312_v34, %v1271_v45 }
 0x1aa   : > { %1536 = vst [vmem:[%s2446_s4 + $0x50] sm:$0xff] %v1837_v50  ;;  %v1838_v62 = vpack.c.bf16 %v1421_v53, %v1420_v35  ;;  %v1423_v63 = vmax.f32 %v1391_v51, 0.0  ;;  %v1392_v1 = vadd.f32 %v1360_v54, %v1312_v47  ;;  %v1362_v59 = vunpack.c.l.bf16 %v1332_v49 }
 0x1ab   : > { %v1393_v2 = vadd.f32 %v1361_v58, %v1313_v48  ;;  %v1363_v3 = vunpack.c.h.bf16 %v1332_v49  ;;  %v1316_v4 = vadd.f32 %v2310_v33, %v1272_v56  ;;  %v1317_v6 = vadd.f32 %v2312_v34, %v1273_v52 }
 0x1ac   : > { %1537 = vst [vmem:[%s2446_s4 + $0x58] sm:$0xff] %v1838_v62  ;;  %v1839_v0 = vpack.c.bf16 %v1423_v63, %v1422_v57  ;;  %v1424_v7 = vmax.f32 %v1392_v1, 0.0  ;;  %v1394_v8 = vadd.f32 %v1362_v59, %v1314_v60  ;;  %v1364_v9 = vunpack.c.l.bf16 %v1333_v55 }
 0x1ad   : > { %v1425_v5 = vmax.f32 %v1393_v2, 0.0  ;;  %v1395_v11 = vadd.f32 %v1363_v3, %v1315_v61  ;;  %v1365_v12 = vunpack.c.h.bf16 %v1333_v55 }
 0x1ae   : > { %1538 = vst [vmem:[%s2446_s4 + $0x60] sm:$0xff] %v1839_v0  ;;  %v1426_v13 = vmax.f32 %v1394_v8, 0.0  ;;  %v1396_v14 = vadd.f32 %v1364_v9, %v1316_v4 }
 0x1af   : > { %v1840_v33 = vpack.c.bf16 %v1425_v5, %v1424_v7  ;;  %v1427_v10 = vmax.f32 %v1395_v11, 0.0  ;;  %v1397_v34 = vadd.f32 %v1365_v12, %v1317_v6 }
 0x1b0   : > { %v1428_v16 = vmax.f32 %v1396_v14, 0.0 }
 0x1b1   : > { %1539 = vst [vmem:[%s2446_s4 + $0x68] sm:$0xff] %v1840_v33  ;;  %v1841_v17 = vpack.c.bf16 %v1427_v10, %v1426_v13  ;;  %v1429_v18 = vmax.f32 %v1397_v34, 0.0 }
 0x1b3   : > { %1540 = vst [vmem:[%s2446_s4 + $0x70] sm:$0xff] %v1841_v17  ;;  %v1842_v15 = vpack.c.bf16 %v1429_v18, %v1428_v16 }
 0x1b5   : > { %1541 = vst [vmem:[%s2446_s4 + $0x78] sm:$0xff] %v1842_v15 }
 0x1b6 PF: > { %s14_s19 = sadd.s32 1, %s2029_s19   ;;  %s2447_s15 = smov %s2017_s16 }
 0x1b7   : > { %p11_p12 = scmp.ge.s32.totalorder %s14_s19, 20   ;;  %s2448_s16 = smov %s2093_s23 }
 0x1b8   : > { %s2449_s17 = smov %s2025_s18  ;;  %s2450_s18 = smov %s2452_s20 }
 0x1b9   :  { %13 = sbr.rel (!%p11_p12) target bundleno = 3 (0x3), region = 120 }

// kernel: forward.20
= control target key start
LH: loop header
LB: loop body
LE: loop exit
PB: predicated region body
PF: predicated region fallthrough
CT: control target
= control target key end

     0   :  { %s2911_s12 = smov 0   ;;  %s2913_s13 = smov 0   ;;  %s3669_s0 = inlined_call_operand.vmem [shape: bf16[128,6912], index: 0, kind: input, shape index: {}]   ;;  %s3670_s1 = inlined_call_operand.vmem [shape: bf16[6912,512], index: 1, kind: input, shape index: {}]   ;;  %s3671_s2 = inlined_call_operand.vmem [shape: f32[1,512], index: 2, kind: input, shape index: {}]   ;;  %s3672_s3 = inlined_call_operand.vmem [shape: bf16[128,512], index: 3, kind: output, shape index: {}]  }
   0x1   :  { %s2915_s14 = smov 0   ;;  %s2917_s15 = smov 0  }
   0x2   :  { %s2919_s16 = smov 0  }
   0x3 LB: > { %s25_s17 = sadd.s32 1, %s2883_s15  ;;  %p48_p1 = scmp.ne.s32.totalorder %s2875_s13, %s2871_s12  ;;  %s2887_s16 = sphi %s2919_s16, %s13_s16   ;;  %s2883_s15 = sphi %s2917_s15, %s3676_s15   ;;  %s2879_s14 = sphi %s2915_s14, %s3675_s14   ;;  %s2875_s13 = sphi %s2913_s13, %s3674_s13   ;;  %s2871_s12 = sphi %s2911_s12, %s3673_s12  }
   0x4   : > { %p26_p0 = scmp.ge.s32.totalorder %s25_s17, 18  ;;  %p49_p2 = scmp.eq.s32.totalorder %s2887_s16, 0 }
   0x5   : > { %s41_s19 = sadd.s32 1, %s2875_s13  ;;  %p2384_p5 = scmp.ge.s32.totalorder %s2887_s16, 18 }
   0x6   : > { %s3678_s17 = smov (%p26_p0, %s25_s17), 0  ;;  %p50_p3 = por %p49_p2, %p48_p1 }
   0x7   : > { %s37_s18 = ssub.s32 %s2883_s15, %s3678_s17  ;;  %164 = sbr.rel (%p2384_p5) target bundleno = 35 (0x23), region = 20 }
   0x8   : > { %p39_p4 = scmp.eq.s32.totalorder %s37_s18, 0 }
   0xa   : > { %s2946_s20 = scalar_select %p39_p4, %s2875_s13, %s41_s19  }
   0xc   : > { %167 = sbr.rel (!%p50_p3) target bundleno = 35 (0x23), region = 24  ;;  %s169_s21 = sand.u32 (%p50_p3), 1, %s2875_s13  }
   0xd   : > { %s2579_s22 = smul.u32 (%p50_p3), 12, %s2883_s15 }
   0xe   : > { %s2629_s23 = smul.u32 (%p50_p3), 192, %s169_s21 }
   0xf   : > { %s2954_s26 = scalar_lea.vmem (%p50_p3), %s3669_s0, %s2579_s22 }
  0x10   : > { %v192_v0 = vld [vmem:[%s2954_s26] sm:$0xff] (%p50_p3)  ;;  %v194_v1 = vld [vmem:[%s2954_s26 + $0xd8] sm:$0xff] (%p50_p3)  ;;  %v196_v2 = vld [vmem:[%s2954_s26 + $0x1b0] sm:$0xff] (%p50_p3)  ;;  %s2959_s27 = scalar_lea.vmem (%p50_p3), [#allocation3], %s2629_s23 }
  0x11   : > { %193 = vst [vmem:[%s2959_s27] sm:$0xff] %v192_v0  ;;  %195 = vst [vmem:[%s2959_s27 + $0xc] sm:$0xff] %v194_v1  ;;  %v198_v3 = vld [vmem:[%s2954_s26 + $0x288] sm:$0xff]  ;;  %v200_v4 = vld [vmem:[%s2954_s26 + $0x360] sm:$0xff] }
  0x12   : > { %197 = vst [vmem:[%s2959_s27 + $0x18] sm:$0xff] %v196_v2  ;;  %v202_v5 = vld [vmem:[%s2954_s26 + $0x438] sm:$0xff]  ;;  %199 = vst [vmem:[%s2959_s27 + $0x24] sm:$0xff] %v198_v3  ;;  %v204_v6 = vld [vmem:[%s2954_s26 + $0x510] sm:$0xff] }
  0x13   : > { %201 = vst [vmem:[%s2959_s27 + $0x30] sm:$0xff] %v200_v4  ;;  %203 = vst [vmem:[%s2959_s27 + $0x3c] sm:$0xff] %v202_v5  ;;  %v206_v7 = vld [vmem:[%s2954_s26 + $0x5e8] sm:$0xff]  ;;  %v208_v8 = vld [vmem:[%s2954_s26 + $0x6c0] sm:$0xff] }
  0x14   : > { %205 = vst [vmem:[%s2959_s27 + $0x48] sm:$0xff] %v204_v6  ;;  %207 = vst [vmem:[%s2959_s27 + $0x54] sm:$0xff] %v206_v7  ;;  %v210_v9 = vld [vmem:[%s2954_s26 + $0x798] sm:$0xff]  ;;  %v212_v10 = vld [vmem:[%s2954_s26 + $0x870] sm:$0xff] }
  0x15   : > { %209 = vst [vmem:[%s2959_s27 + $0x60] sm:$0xff] %v208_v8  ;;  %v214_v11 = vld [vmem:[%s2954_s26 + $0x948] sm:$0xff]  ;;  %211 = vst [vmem:[%s2959_s27 + $0x6c] sm:$0xff] %v210_v9  ;;  %v216_v12 = vld [vmem:[%s2954_s26 + $0xa20] sm:$0xff] }
  0x16   : > { %213 = vst [vmem:[%s2959_s27 + $0x78] sm:$0xff] %v212_v10  ;;  %215 = vst [vmem:[%s2959_s27 + $0x84] sm:$0xff] %v214_v11  ;;  %v218_v13 = vld [vmem:[%s2954_s26 + $0xaf8] sm:$0xff]  ;;  %v220_v14 = vld [vmem:[%s2954_s26 + $0xbd0] sm:$0xff] }
  0x17   : > { %217 = vst [vmem:[%s2959_s27 + $0x90] sm:$0xff] %v216_v12  ;;  %219 = vst [vmem:[%s2959_s27 + $0x9c] sm:$0xff] %v218_v13  ;;  %v222_v15 = vld [vmem:[%s2954_s26 + $0xca8] sm:$0xff]  ;;  %v2388_v17 = vld [vmem:[%s2954_s26 + $0xe0] sm:$0xf] }
  0x18   : > { %221 = vst [vmem:[%s2959_s27 + $0xa8] sm:$0xff] %v220_v14  ;;  %v2386_v16 = vld [vmem:[%s2954_s26 + $0x8] sm:$0xf]  ;;  %223 = vst [vmem:[%s2959_s27 + $0xb4] sm:$0xff] %v222_v15  ;;  %v2390_v18 = vld [vmem:[%s2954_s26 + $0x1b8] sm:$0xf] }
  0x19   : > { %2387 = vst [vmem:[%s2959_s27 + $0x8] sm:$0xf] %v2386_v16  ;;  %2389 = vst [vmem:[%s2959_s27 + $0x14] sm:$0xf] %v2388_v17  ;;  %v2392_v19 = vld [vmem:[%s2954_s26 + $0x290] sm:$0xf] }
  0x1a   : > { %v2394_v20 = vld [vmem:[%s2954_s26 + $0x368] sm:$0xf]  ;;  %2391 = vst [vmem:[%s2959_s27 + $0x20] sm:$0xf] %v2390_v18  ;;  %2393 = vst [vmem:[%s2959_s27 + $0x2c] sm:$0xf] %v2392_v19 }
  0x1b   : > { %2395 = vst [vmem:[%s2959_s27 + $0x38] sm:$0xf] %v2394_v20  ;;  %v2396_v21 = vld [vmem:[%s2954_s26 + $0x440] sm:$0xf]  ;;  %v2398_v22 = vld [vmem:[%s2954_s26 + $0x518] sm:$0xf] }
  0x1c   : > { %v2400_v23 = vld [vmem:[%s2954_s26 + $0x5f0] sm:$0xf]  ;;  %2397 = vst [vmem:[%s2959_s27 + $0x44] sm:$0xf] %v2396_v21  ;;  %2399 = vst [vmem:[%s2959_s27 + $0x50] sm:$0xf] %v2398_v22 }
  0x1d   : > { %2401 = vst [vmem:[%s2959_s27 + $0x5c] sm:$0xf] %v2400_v23  ;;  %v2402_v24 = vld [vmem:[%s2954_s26 + $0x6c8] sm:$0xf]  ;;  %v2404_v25 = vld [vmem:[%s2954_s26 + $0x7a0] sm:$0xf] }
  0x1e   : > { %v2406_v26 = vld [vmem:[%s2954_s26 + $0x878] sm:$0xf]  ;;  %2403 = vst [vmem:[%s2959_s27 + $0x68] sm:$0xf] %v2402_v24  ;;  %2405 = vst [vmem:[%s2959_s27 + $0x74] sm:$0xf] %v2404_v25 }
  0x1f   : > { %2407 = vst [vmem:[%s2959_s27 + $0x80] sm:$0xf] %v2406_v26  ;;  %v2408_v27 = vld [vmem:[%s2954_s26 + $0x950] sm:$0xf]  ;;  %v2410_v28 = vld [vmem:[%s2954_s26 + $0xa28] sm:$0xf] }
  0x20   : > { %v2412_v29 = vld [vmem:[%s2954_s26 + $0xb00] sm:$0xf]  ;;  %2409 = vst [vmem:[%s2959_s27 + $0x8c] sm:$0xf] %v2408_v27  ;;  %2411 = vst [vmem:[%s2959_s27 + $0x98] sm:$0xf] %v2410_v28 }
  0x21   : > { %2413 = vst [vmem:[%s2959_s27 + $0xa4] sm:$0xf] %v2412_v29  ;;  %v2414_v30 = vld [vmem:[%s2954_s26 + $0xbd8] sm:$0xf]  ;;  %v2416_v31 = vld [vmem:[%s2954_s26 + $0xcb0] sm:$0xf] }
  0x22   : > { %2415 = vst [vmem:[%s2959_s27 + $0xb0] sm:$0xf] %v2414_v30  ;;  %2417 = vst [vmem:[%s2959_s27 + $0xbc] sm:$0xf] %v2416_v31 }
  0x23 PF: > { %p2418_p6 = scmp.ge.s32.totalorder %s2887_s16, 1  ;;  %p283_p7 = scmp.lt.s32.totalorder %s2887_s16, 19 }
  0x25   : > { %p284_p8 = pnand %p2418_p6, %p283_p7 }
  0x26   : > { %s290_s28 = sand.u32 (!%p284_p8), 1, %s2871_s12   ;;  %s334_s29 = smul.u32 (!%p284_p8), 48, %s2879_s14 }
  0x27   : > { %287 = sbr.rel (%p284_p8) target bundleno = 508 (0x1fc), region = 54  ;;  %p2421_p10 = scmp.ne.s32.totalorder (!%p284_p8), %s2879_s14, 0 }
  0x28   : > { %s2630_s30 = smul.u32 (!%p284_p8), 192, %s290_s28  ;;  %p336_p9 = scmp.lt.s32.totalorder (!%p284_p8), %s334_s29, 863 }
  0x2a   : > { %s3031_s8 = scalar_lea.vmem (!%p284_p8), [#allocation3], %s2630_s30 }
  0x2c   : > { %s3680_s29 = smov (!%p336_p9, %s334_s29), 863  ;;  %367 = sbr.rel (%p2421_p10) target bundleno = 82 (0x52), region = 62 }
  0x2d   : > { %s2580_s4 = sshll.u32 %s3680_s29, 4 }
  0x2e   : > { %s3029_s7 = scalar_lea.vmem %s3670_s1, %s2580_s4 }
  0x31   : > { %v2889_v32 = vmov 0.0  }
  0x32   : > { %368 = vst [vmem:[#allocation2 + $0xb0] sm:$0xff] %v2889_v32  ;;  %369 = vst [vmem:[#allocation2 + $0x1b0] sm:$0xff] %v2889_v32 }
  0x33   : > { %370 = vst [vmem:[#allocation2 + $0xd8] sm:$0xff] %v2889_v32  ;;  %371 = vst [vmem:[#allocation2 + $0x18] sm:$0xff] %v2889_v32 }
  0x34   : > { %372 = vst [vmem:[#allocation2 + $0x50] sm:$0xff] %v2889_v32  ;;  %373 = vst [vmem:[#allocation2 + $0x168] sm:$0xff] %v2889_v32 }
  0x35   : > { %374 = vst [vmem:[#allocation2 + $0x130] sm:$0xff] %v2889_v32  ;;  %375 = vst [vmem:[#allocation2 + $0x48] sm:$0xff] %v2889_v32 }
  0x36   : > { %376 = vst [vmem:[#allocation2 + $0x180] sm:$0xff] %v2889_v32  ;;  %377 = vst [vmem:[#allocation2 + $0x110] sm:$0xff] %v2889_v32 }
  0x37   : > { %378 = vst [vmem:[#allocation2 + $0x118] sm:$0xff] %v2889_v32  ;;  %379 = vst [vmem:[#allocation2 + $0x98] sm:$0xff] %v2889_v32 }
  0x38   : > { %380 = vst [vmem:[#allocation2 + $0x120] sm:$0xff] %v2889_v32  ;;  %381 = vst [vmem:[#allocation2 + $0x150] sm:$0xff] %v2889_v32 }
  0x39   : > { %382 = vst [vmem:[#allocation2 + $0x108] sm:$0xff] %v2889_v32  ;;  %383 = vst [vmem:[#allocation2 + $0x60] sm:$0xff] %v2889_v32 }
  0x3a   : > { %384 = vst [vmem:[#allocation2 + $0xe0] sm:$0xff] %v2889_v32  ;;  %385 = vst [vmem:[#allocation2 + $0x188] sm:$0xff] %v2889_v32 }
  0x3b   : > { %386 = vst [vmem:[#allocation2 + $0x138] sm:$0xff] %v2889_v32  ;;  %387 = vst [vmem:[#allocation2 + $0x140] sm:$0xff] %v2889_v32 }
  0x3c   : > { %388 = vst [vmem:[#allocation2 + $0x80] sm:$0xff] %v2889_v32  ;;  %389 = vst [vmem:[#allocation2 + $0x1a8] sm:$0xff] %v2889_v32 }
  0x3d   : > { %390 = vst [vmem:[#allocation2 + $0x1b8] sm:$0xff] %v2889_v32  ;;  %391 = vst [vmem:[#allocation2 + $0x28] sm:$0xff] %v2889_v32 }
  0x3e   : > { %392 = vst [vmem:[#allocation2 + $0x1e8] sm:$0xff] %v2889_v32  ;;  %393 = vst [vmem:[#allocation2 + $0xf8] sm:$0xff] %v2889_v32 }
  0x3f   : > { %394 = vst [vmem:[#allocation2 + $0x160] sm:$0xff] %v2889_v32  ;;  %395 = vst [vmem:[#allocation2 + $0x30] sm:$0xff] %v2889_v32 }
  0x40   : > { %396 = vst [vmem:[#allocation2 + $0x1e0] sm:$0xff] %v2889_v32  ;;  %397 = vst [vmem:[#allocation2] sm:$0xff] %v2889_v32 }
  0x41   : > { %398 = vst [vmem:[#allocation2 + $0xf0] sm:$0xff] %v2889_v32  ;;  %399 = vst [vmem:[#allocation2 + $0x8] sm:$0xff] %v2889_v32 }
  0x42   : > { %400 = vst [vmem:[#allocation2 + $0x148] sm:$0xff] %v2889_v32  ;;  %401 = vst [vmem:[#allocation2 + $0x1d0] sm:$0xff] %v2889_v32 }
  0x43   : > { %402 = vst [vmem:[#allocation2 + $0x100] sm:$0xff] %v2889_v32  ;;  %403 = vst [vmem:[#allocation2 + $0xc8] sm:$0xff] %v2889_v32 }
  0x44   : > { %404 = vst [vmem:[#allocation2 + $0x40] sm:$0xff] %v2889_v32  ;;  %405 = vst [vmem:[#allocation2 + $0x1f8] sm:$0xff] %v2889_v32 }
  0x45   : > { %406 = vst [vmem:[#allocation2 + $0x20] sm:$0xff] %v2889_v32  ;;  %407 = vst [vmem:[#allocation2 + $0x128] sm:$0xff] %v2889_v32 }
  0x46   : > { %408 = vst [vmem:[#allocation2 + $0x1a0] sm:$0xff] %v2889_v32  ;;  %409 = vst [vmem:[#allocation2 + $0x1f0] sm:$0xff] %v2889_v32 }
  0x47   : > { %410 = vst [vmem:[#allocation2 + $0xe8] sm:$0xff] %v2889_v32  ;;  %411 = vst [vmem:[#allocation2 + $0x78] sm:$0xff] %v2889_v32 }
  0x48   : > { %412 = vst [vmem:[#allocation2 + $0x70] sm:$0xff] %v2889_v32  ;;  %413 = vst [vmem:[#allocation2 + $0x90] sm:$0xff] %v2889_v32 }
  0x49   : > { %414 = vst [vmem:[#allocation2 + $0x1d8] sm:$0xff] %v2889_v32  ;;  %415 = vst [vmem:[#allocation2 + $0xd0] sm:$0xff] %v2889_v32 }
  0x4a   : > { %416 = vst [vmem:[#allocation2 + $0xb8] sm:$0xff] %v2889_v32  ;;  %417 = vst [vmem:[#allocation2 + $0x88] sm:$0xff] %v2889_v32 }
  0x4b   : > { %418 = vst [vmem:[#allocation2 + $0xa8] sm:$0xff] %v2889_v32  ;;  %419 = vst [vmem:[#allocation2 + $0x1c8] sm:$0xff] %v2889_v32 }
  0x4c   : > { %420 = vst [vmem:[#allocation2 + $0x170] sm:$0xff] %v2889_v32  ;;  %421 = vst [vmem:[#allocation2 + $0x178] sm:$0xff] %v2889_v32 }
  0x4d   : > { %422 = vst [vmem:[#allocation2 + $0x68] sm:$0xff] %v2889_v32  ;;  %423 = vst [vmem:[#allocation2 + $0x190] sm:$0xff] %v2889_v32 }
  0x4e   : > { %424 = vst [vmem:[#allocation2 + $0x198] sm:$0xff] %v2889_v32  ;;  %425 = vst [vmem:[#allocation2 + $0x38] sm:$0xff] %v2889_v32 }
  0x4f   : > { %426 = vst [vmem:[#allocation2 + $0xc0] sm:$0xff] %v2889_v32  ;;  %427 = vst [vmem:[#allocation2 + $0x1c0] sm:$0xff] %v2889_v32 }
  0x50   : > { %428 = vst [vmem:[#allocation2 + $0x158] sm:$0xff] %v2889_v32  ;;  %429 = vst [vmem:[#allocation2 + $0x10] sm:$0xff] %v2889_v32 }
  0x51   : > { %430 = vst [vmem:[#allocation2 + $0x58] sm:$0xff] %v2889_v32  ;;  %431 = vst [vmem:[#allocation2 + $0xa0] sm:$0xff] %v2889_v32 }
  0x52 PF: > { %v2673_v33 = vld [vmem:[%s3029_s7 + $0xe4] ss:$16 sps:$4 sm:$0xff]   ;;  %v2890_v35 = vmov 0   ;;  %v2677_v36 = vld [vmem:[%s3029_s7 + $0xe0] ss:$16 sps:$4 sm:$0xff]   ;;  %p2542_p11 = scmp.ne.s32.totalorder %s2879_s14, 17 }
  0x53   : > { %v2675_v34 = vld [vmem:[%s3029_s7 + $0x2e4] ss:$16 sps:$4 sm:$0xff]   ;;  %1377 = vmatprep.mubr.bf16.mxu1 %v2890_v35  ;;  %1232 = vmatprep.subr.bf16.mxu0 %v2673_v33  ;;  %v2678_v37 = vld [vmem:[%s3029_s7 + $0x2e0] ss:$16 sps:$4 sm:$0xff]   ;;  %v2726_v3 = vld [vmem:[%s3029_s7 + $0xec] ss:$16 sps:$4 sm:$0xff]  }
  0x54   : > { %1345 = vmatprep.subr.bf16.mxu1 %v2675_v34  ;;  %v2679_v38 = vld [vmem:[%s3029_s7 + $0xc4] ss:$16 sps:$4 sm:$0xff]   ;;  %1233 = vmatpush1.bf16.msra.mxu0 %v2677_v36  ;;  %v2683_v40 = vld [vmem:[%s3029_s7 + $0xc0] ss:$16 sps:$4 sm:$0xff]   ;;  %v2724_v5 = vld [vmem:[%s3029_s7 + $0xe8] ss:$16 sps:$4 sm:$0xff]  }
  0x55   : > { %1346 = vmatpush1.bf16.msra.mxu1 %v2678_v37  ;;  %v2681_v39 = vld [vmem:[%s3029_s7 + $0x2c4] ss:$16 sps:$4 sm:$0xff]   ;;  %1234 = vmatprep.subr.bf16.mxu0 %v2679_v38  ;;  %v2684_v41 = vld [vmem:[%s3029_s7 + $0x2c0] ss:$16 sps:$4 sm:$0xff]   ;;  %v2732_v8 = vld [vmem:[%s3029_s7 + $0xcc] ss:$16 sps:$4 sm:$0xff]  }
  0x56   : > { %1347 = vmatprep.subr.bf16.mxu1 %v2681_v39  ;;  %v2685_v42 = vld [vmem:[%s3029_s7 + $0xa4] ss:$16 sps:$4 sm:$0xff]   ;;  %v2689_v44 = vld [vmem:[%s3029_s7 + $0xa0] ss:$16 sps:$4 sm:$0xff]   ;;  %v2730_v9 = vld [vmem:[%s3029_s7 + $0xc8] ss:$16 sps:$4 sm:$0xff]  }
  0x57   : > { %v2687_v43 = vld [vmem:[%s3029_s7 + $0x2a4] ss:$16 sps:$4 sm:$0xff]   ;;  %v2690_v45 = vld [vmem:[%s3029_s7 + $0x2a0] ss:$16 sps:$4 sm:$0xff]   ;;  %v2739_v12 = vld [vmem:[%s3029_s7 + $0xac] ss:$16 sps:$4 sm:$0xff]  }
  0x58   : > { %1235 = vmatpush1.bf16.msra.mxu0 %v2683_v40  ;;  %v2691_v46 = vld [vmem:[%s3029_s7 + $0x84] ss:$16 sps:$4 sm:$0xff]   ;;  %v2695_v48 = vld [vmem:[%s3029_s7 + $0x80] ss:$16 sps:$4 sm:$0xff]   ;;  %v2737_v14 = vld [vmem:[%s3029_s7 + $0xa8] ss:$16 sps:$4 sm:$0xff]  }
  0x59   : > { %1348 = vmatpush1.bf16.msra.mxu1 %v2684_v41  ;;  %1236 = vmatprep.subr.bf16.mxu0 %v2685_v42  ;;  %v2693_v47 = vld [vmem:[%s3029_s7 + $0x284] ss:$16 sps:$4 sm:$0xff]   ;;  %v2696_v49 = vld [vmem:[%s3029_s7 + $0x280] ss:$16 sps:$4 sm:$0xff]   ;;  %v2745_v17 = vld [vmem:[%s3029_s7 + $0x8c] ss:$16 sps:$4 sm:$0xff]  }
  0x5a   : > { %1349 = vmatprep.subr.bf16.mxu1 %v2687_v43  ;;  %v2697_v50 = vld [vmem:[%s3029_s7 + $0x64] ss:$16 sps:$4 sm:$0xff]   ;;  %v2701_v52 = vld [vmem:[%s3029_s7 + $0x60] ss:$16 sps:$4 sm:$0xff]   ;;  %v2743_v18 = vld [vmem:[%s3029_s7 + $0x88] ss:$16 sps:$4 sm:$0xff]  }
  0x5b   : > { %v2699_v51 = vld [vmem:[%s3029_s7 + $0x264] ss:$16 sps:$4 sm:$0xff]   ;;  %v2702_v53 = vld [vmem:[%s3029_s7 + $0x260] ss:$16 sps:$4 sm:$0xff]   ;;  %v2752_v21 = vld [vmem:[%s3029_s7 + $0x6c] ss:$16 sps:$4 sm:$0xff]  }
  0x5c   : > { %1237 = vmatpush1.bf16.msra.mxu0 %v2689_v44  ;;  %v2703_v54 = vld [vmem:[%s3029_s7 + $0x44] ss:$16 sps:$4 sm:$0xff]   ;;  %v2707_v56 = vld [vmem:[%s3029_s7 + $0x40] ss:$16 sps:$4 sm:$0xff]   ;;  %v2750_v23 = vld [vmem:[%s3029_s7 + $0x68] ss:$16 sps:$4 sm:$0xff]  }
  0x5d   : > { %1350 = vmatpush1.bf16.msra.mxu1 %v2690_v45  ;;  %1238 = vmatprep.subr.bf16.mxu0 %v2691_v46  ;;  %v2705_v55 = vld [vmem:[%s3029_s7 + $0x244] ss:$16 sps:$4 sm:$0xff]   ;;  %v2708_v57 = vld [vmem:[%s3029_s7 + $0x240] ss:$16 sps:$4 sm:$0xff]   ;;  %v2758_v27 = vld [vmem:[%s3029_s7 + $0x4c] ss:$16 sps:$4 sm:$0xff]  }
  0x5e   : > { %1351 = vmatprep.subr.bf16.mxu1 %v2693_v47  ;;  %v2709_v58 = vld [vmem:[%s3029_s7 + $0x24] ss:$16 sps:$4 sm:$0xff]   ;;  %v2713_v60 = vld [vmem:[%s3029_s7 + $0x20] ss:$16 sps:$4 sm:$0xff]   ;;  %v2756_v28 = vld [vmem:[%s3029_s7 + $0x48] ss:$16 sps:$4 sm:$0xff]  }
  0x5f   : > { %v2711_v59 = vld [vmem:[%s3029_s7 + $0x224] ss:$16 sps:$4 sm:$0xff]   ;;  %v2714_v61 = vld [vmem:[%s3029_s7 + $0x220] ss:$16 sps:$4 sm:$0xff]   ;;  %v2765_v31 = vld [vmem:[%s3029_s7 + $0x2c] ss:$16 sps:$4 sm:$0xff]  }
  0x60   : > { %1239 = vmatpush1.bf16.msra.mxu0 %v2695_v48  ;;  %v2715_v62 = vld [vmem:[%s3029_s7 + $0x4] ss:$16 sps:$4 sm:$0xff]   ;;  %v2719_v0 = vld [vmem:[%s3029_s7] ss:$16 sps:$4 sm:$0xff]   ;;  %v2763_v33 = vld [vmem:[%s3029_s7 + $0x28] ss:$16 sps:$4 sm:$0xff]  }
  0x61   : > { %1352 = vmatpush1.bf16.msra.mxu1 %v2696_v49  ;;  %1240 = vmatprep.subr.bf16.mxu0 %v2697_v50  ;;  %v2717_v63 = vld [vmem:[%s3029_s7 + $0x204] ss:$16 sps:$4 sm:$0xff]   ;;  %v2720_v1 = vld [vmem:[%s3029_s7 + $0x200] ss:$16 sps:$4 sm:$0xff]   ;;  %v2771_v37 = vld [vmem:[%s3029_s7 + $0xc] ss:$16 sps:$4 sm:$0xff]  }
  0x62   : > { %1353 = vmatprep.subr.bf16.mxu1 %v2699_v51  ;;  %v2721_v2 = vld [vmem:[%s3029_s7 + $0x1e4] ss:$16 sps:$4 sm:$0xff]   ;;  %v2727_v6 = vld [vmem:[%s3029_s7 + $0x1e0] ss:$16 sps:$4 sm:$0xff]   ;;  %v2769_v38 = vld [vmem:[%s3029_s7 + $0x8] ss:$16 sps:$4 sm:$0xff]  }
  0x63   : > { %v3134_v4 = vld [vmem:[%s3031_s8 + $0x8] ss:$12 sps:$4 sm:$0xff]   ;;  %v2733_v10 = vld [vmem:[%s3029_s7 + $0x1c0] ss:$16 sps:$4 sm:$0xff]   ;;  %v3160_v22 = vld [vmem:[%s3031_s8 + $0x38] ss:$12 sps:$4 sm:$0xff]  }
  0x64   : > { %1241 = vmatpush1.bf16.msra.mxu0 %v2701_v52  ;;  %v2728_v7 = vld [vmem:[%s3029_s7 + $0x1c4] ss:$16 sps:$4 sm:$0xff]   ;;  %v3147_v13 = vld [vmem:[%s3031_s8 + $0x20] ss:$12 sps:$4 sm:$0xff]   ;;  %v3177_v32 = vld [vmem:[%s3031_s8 + $0x50] ss:$12 sps:$4 sm:$0xff]  }
  0x65   : > { %1354 = vmatpush1.bf16.msra.mxu1 %v2702_v53  ;;  %1242 = vmatprep.subr.bf16.mxu0 %v2703_v54  ;;  %v2734_v11 = vld [vmem:[%s3029_s7 + $0x1a4] ss:$16 sps:$4 sm:$0xff]   ;;  %v2740_v15 = vld [vmem:[%s3029_s7 + $0x1a0] ss:$16 sps:$4 sm:$0xff]   ;;  %v2779_v40 = vld [vmem:[%s3029_s7 + $0x1ec] ss:$16 sps:$4 sm:$0xff]  }
  0x66   : > { %1355 = vmatprep.subr.bf16.mxu1 %v2705_v55  ;;  %v2741_v16 = vld [vmem:[%s3029_s7 + $0x184] ss:$16 sps:$4 sm:$0xff]   ;;  %v2746_v19 = vld [vmem:[%s3029_s7 + $0x180] ss:$16 sps:$4 sm:$0xff]   ;;  %v3188_v41 = vld [vmem:[%s3029_s7 + $0x2ec] ss:$16 sps:$4 sm:$0xff]  }
  0x67   : > { %v2747_v20 = vld [vmem:[%s3029_s7 + $0x164] ss:$16 sps:$4 sm:$0xff]   ;;  %v2753_v24 = vld [vmem:[%s3029_s7 + $0x160] ss:$16 sps:$4 sm:$0xff]   ;;  %v2777_v44 = vld [vmem:[%s3029_s7 + $0x1e8] ss:$16 sps:$4 sm:$0xff]  }
  0x68   : > { %1243 = vmatpush1.bf16.msra.mxu0 %v2707_v56  ;;  %v3165_v25 = vld [vmem:[%s3031_s8 + $0x4] ss:$12 sps:$4 sm:$0xff]   ;;  %v3191_v42 = vld [vmem:[%s3031_s8] ss:$12 sps:$4 sm:$0xff]   ;;  %v3195_v43 = vld [vmem:[%s3031_s8 + $0x68] ss:$12 sps:$4 sm:$0xff]  }
  0x69   : > { %1356 = vmatpush1.bf16.msra.mxu1 %v2708_v57  ;;  %1244 = vmatprep.subr.bf16.mxu0 %v2709_v58  ;;  %v2754_v26 = vld [vmem:[%s3029_s7 + $0x144] ss:$16 sps:$4 sm:$0xff]   ;;  %v2759_v29 = vld [vmem:[%s3029_s7 + $0x140] ss:$16 sps:$4 sm:$0xff]   ;;  %v3199_v45 = vld [vmem:[%s3029_s7 + $0x2e8] ss:$16 sps:$4 sm:$0xff]  }
  0x6a   : > { %1357 = vmatprep.subr.bf16.mxu1 %v2711_v59  ;;  %1264 = vmatprep.mubr.bf16.mxu0 %v3165_v25  ;;  %v2760_v30 = vld [vmem:[%s3029_s7 + $0x124] ss:$16 sps:$4 sm:$0xff]   ;;  %v2766_v34 = vld [vmem:[%s3029_s7 + $0x120] ss:$16 sps:$4 sm:$0xff]   ;;  %v2785_v46 = vld [vmem:[%s3029_s7 + $0x1cc] ss:$16 sps:$4 sm:$0xff]  }
  0x6b   : > { %v2767_v36 = vld [vmem:[%s3029_s7 + $0x104] ss:$16 sps:$4 sm:$0xff]   ;;  %v2772_v39 = vld [vmem:[%s3029_s7 + $0x100] ss:$16 sps:$4 sm:$0xff]   ;;  %v3204_v47 = vld [vmem:[%s3031_s8 + $0x1c] ss:$12 sps:$4 sm:$0xff]  }
  0x6c   : > { %1245 = vmatpush1.bf16.msra.mxu0 %v2713_v60  ;;  %v2783_v48 = vld [vmem:[%s3029_s7 + $0x1c8] ss:$16 sps:$4 sm:$0xff]   ;;  %v3208_v49 = vld [vmem:[%s3029_s7 + $0x2cc] ss:$16 sps:$4 sm:$0xff]   ;;  %v3232_v56 = vld [vmem:[%s3031_s8 + $0x34] ss:$12 sps:$4 sm:$0xff]  }
  0x6d   : > { %1358 = vmatpush1.bf16.msra.mxu1 %v2714_v61  ;;  %1246 = vmatprep.subr.bf16.mxu0 %v2715_v62  ;;  %v2792_v50 = vld [vmem:[%s3029_s7 + $0x1ac] ss:$16 sps:$4 sm:$0xff]   ;;  %v3215_v51 = vld [vmem:[%s3029_s7 + $0x2c8] ss:$16 sps:$4 sm:$0xff]  }
  0x6e   : > { %1359 = vmatprep.subr.bf16.mxu1 %v2717_v63  ;;  %v3219_v52 = vld [vmem:[%s3029_s7 + $0x2ac] ss:$16 sps:$4 sm:$0xff]   ;;  %v3223_v53 = vld [vmem:[%s3031_s8 + $0x18] ss:$12 sps:$4 sm:$0xff]  }
  0x6f   : > { %v3227_v54 = vld [vmem:[%s3031_s8 + $0x80] ss:$12 sps:$4 sm:$0xff]   ;;  %v2790_v55 = vld [vmem:[%s3029_s7 + $0x1a8] ss:$16 sps:$4 sm:$0xff]   ;;  %v3249_v62 = vld [vmem:[%s3031_s8 + $0x30] ss:$12 sps:$4 sm:$0xff]  }
  0x70   : > { %1247 = vmatpush1.bf16.msra.mxu0 %v2719_v0  ;;  %v2798_v57 = vld [vmem:[%s3029_s7 + $0x18c] ss:$16 sps:$4 sm:$0xff]   ;;  %v3237_v58 = vld [vmem:[%s3029_s7 + $0x2a8] ss:$16 sps:$4 sm:$0xff]  }
  0x71   : > { %1360 = vmatpush1.bf16.msra.mxu1 %v2720_v1  ;;  %1248 = vmatprep.subr.bf16.mxu0 %v2721_v2  ;;  %v3242_v59 = vld [vmem:[%s3029_s7 + $0x28c] ss:$16 sps:$4 sm:$0xff]   ;;  %v2796_v60 = vld [vmem:[%s3029_s7 + $0x188] ss:$16 sps:$4 sm:$0xff]  }
  0x72   : > { %1458 = vmatprep.subr.bf16.mxu1 %v2726_v3  ;;  %v2805_v61 = vld [vmem:[%s3029_s7 + $0x16c] ss:$16 sps:$4 sm:$0xff]   ;;  %v3253_v63 = vld [vmem:[%s3029_s7 + $0x288] ss:$16 sps:$4 sm:$0xff]  }
  0x73   : > { %v3256_v0 = vld [vmem:[%s3031_s8 + $0x98] ss:$12 sps:$4 sm:$0xff]   ;;  %v2811_v3 = vld [vmem:[%s3029_s7 + $0x14c] ss:$16 sps:$4 sm:$0xff]  }
  0x74   : > { %1378 = vmatmul.mubr.bf16.vlgmr.msra.gmra.mxu1 %v3134_v4  ;;  %1249 = vmatpush2.bf16.msra.mxu0 %v2727_v6  ;;  %v2803_v1 = vld [vmem:[%s3029_s7 + $0x168] ss:$16 sps:$4 sm:$0xff]  }
  0x75   : > { %1459 = vmatpush1.bf16.msra.mxu1 %v2724_v5  ;;  %1250 = vmatprep.subr.bf16.mxu0 %v2728_v7  ;;  %v3261_v2 = vld [vmem:[%s3031_s8 + $0x4c] ss:$12 sps:$4 sm:$0xff]  }
  0x76   : > { %1460 = vmatprep.subr.bf16.mxu1 %v2732_v8  ;;  %1387 = vmatprep.mubr.bf16.mxu1 %v2890_v35  ;;  %v2830_v5 = vld [vmem:[%s3029_s7 + $0x26c] ss:$16 sps:$4 sm:$0xff]   ;;  %v2828_v6 = vld [vmem:[%s3029_s7 + $0x268] ss:$16 sps:$4 sm:$0xff]  }
  0x77   : > { %v2809_v7 = vld [vmem:[%s3029_s7 + $0x148] ss:$16 sps:$4 sm:$0xff]   ;;  %v2836_v8 = vld [vmem:[%s3029_s7 + $0x24c] ss:$16 sps:$4 sm:$0xff]  }
  0x78   : > { %1251 = vmatpush2.bf16.msra.mxu0 %v2733_v10  ;;  %v2814_v10 = vld [vmem:[%s3031_s8 + $0x48] ss:$12 sps:$4 sm:$0xff]  }
  0x79   : > { %1461 = vmatpush1.bf16.msra.mxu1 %v2730_v9  ;;  %1252 = vmatprep.subr.bf16.mxu0 %v2734_v11  ;;  %v2818_v9 = vld [vmem:[%s3029_s7 + $0x12c] ss:$16 sps:$4 sm:$0xff]  }
  0x7a   : > { %1462 = vmatprep.subr.bf16.mxu1 %v2739_v12  ;;  %v3276_v11 = vld [vmem:[%s3031_s8 + $0xb0] ss:$12 sps:$4 sm:$0xff]   ;;  %v2816_v12 = vld [vmem:[%s3029_s7 + $0x128] ss:$16 sps:$4 sm:$0xff]  }
  0x7c   : > { %1388 = vmatmul.mubr.bf16.gmra.mxu1 %v3147_v13  ;;  %1253 = vmatpush2.bf16.msra.mxu0 %v2740_v15  ;;  %v2824_v15 = vld [vmem:[%s3029_s7 + $0x10c] ss:$16 sps:$4 sm:$0xff]  }
  0x7d   : > { %1463 = vmatpush1.bf16.msra.mxu1 %v2737_v14  ;;  %1254 = vmatprep.subr.bf16.mxu0 %v2741_v16  ;;  %v2825_v14 = vld [vmem:[%s3031_s8 + $0x64] ss:$12 sps:$4 sm:$0xff]   ;;  %v2834_v16 = vld [vmem:[%s3029_s7 + $0x248] ss:$16 sps:$4 sm:$0xff]  }
  0x7e   : > { %1464 = vmatprep.subr.bf16.mxu1 %v2745_v17  ;;  %1397 = vmatprep.mubr.bf16.mxu1 %v2890_v35  ;;  %v2842_v17 = vld [vmem:[%s3029_s7 + $0x22c] ss:$16 sps:$4 sm:$0xff]  }
  0x80   : > { %1255 = vmatpush2.bf16.msra.mxu0 %v2746_v19  ;;  %v2840_v19 = vld [vmem:[%s3029_s7 + $0x228] ss:$16 sps:$4 sm:$0xff]  }
  0x81   : > { %1465 = vmatpush1.bf16.msra.mxu1 %v2743_v18  ;;  %1256 = vmatprep.subr.bf16.mxu0 %v2747_v20  ;;  %v2822_v18 = vld [vmem:[%s3029_s7 + $0x108] ss:$16 sps:$4 sm:$0xff]   ;;  %v2827_v20 = vld [vmem:[%s3031_s8 + $0x60] ss:$12 sps:$4 sm:$0xff]  }
  0x82   : > { %1466 = vmatprep.subr.bf16.mxu1 %v2752_v21  ;;  %v2831_v21 = vld [vmem:[%s3031_s8 + $0x7c] ss:$12 sps:$4 sm:$0xff]  }
  0x84   : > { %1398 = vmatmul.mubr.bf16.gmra.mxu1 %v3160_v22  ;;  %1257 = vmatpush2.bf16.msra.mxu0 %v2753_v24  ;;  %v2846_v24 = vld [vmem:[%s3029_s7 + $0x208] ss:$16 sps:$4 sm:$0xff]  }
  0x85   : > { %1467 = vmatpush1.bf16.msra.mxu1 %v2750_v23  ;;  %1258 = vmatprep.subr.bf16.mxu0 %v2754_v26  ;;  %v2848_v23 = vld [vmem:[%s3029_s7 + $0x20c] ss:$16 sps:$4 sm:$0xff]   ;;  %v2837_v26 = vld [vmem:[%s3031_s8 + $0x94] ss:$12 sps:$4 sm:$0xff]  }
  0x86   : > { %1468 = vmatprep.subr.bf16.mxu1 %v2758_v27  ;;  %1407 = vmatprep.mubr.bf16.mxu1 %v2890_v35  ;;  %v2839_v27 = vld [vmem:[%s3031_s8 + $0x90] ss:$12 sps:$4 sm:$0xff]  }
  0x88   : > { %1259 = vmatpush2.bf16.msra.mxu0 %v2759_v29  ;;  %v2845_v29 = vld [vmem:[%s3031_s8 + $0xa8] ss:$12 sps:$4 sm:$0xff]  }
  0x89   : > { %1469 = vmatpush1.bf16.msra.mxu1 %v2756_v28  ;;  %1260 = vmatprep.subr.bf16.mxu0 %v2760_v30  ;;  %v2843_v28 = vld [vmem:[%s3031_s8 + $0xac] ss:$12 sps:$4 sm:$0xff]  }
  0x8a   : > { %1470 = vmatprep.subr.bf16.mxu1 %v2765_v31 }
  0x8c   : > { %1408 = vmatmul.mubr.bf16.gmra.mxu1 %v3177_v32  ;;  %1261 = vmatpush2.bf16.msra.mxu0 %v2766_v34 }
  0x8d   : > { %1471 = vmatpush1.bf16.msra.mxu1 %v2763_v33  ;;  %1262 = vmatprep.subr.bf16.mxu0 %v2767_v36 }
  0x8e   : > { %1472 = vmatprep.subr.bf16.mxu1 %v2771_v37  ;;  %1417 = vmatprep.mubr.bf16.mxu1 %v2890_v35 }
  0x90   : > { %1263 = vmatpush2.bf16.msra.mxu0 %v2772_v39 }
  0x91   : > { %1473 = vmatpush1.bf16.msra.mxu1 %v2769_v38  ;;  %1571 = vmatprep.subr.bf16.mxu0 %v3188_v41 }
  0x92   : > { %1474 = vmatprep.subr.bf16.mxu1 %v2779_v40 }
  0x93   : > { %1265 = vmatmul.mubr.bf16.vlgmr.msra.gmra.mxu0 %v3191_v42 }
  0x94   : > { %1418 = vmatmul.mubr.bf16.gmra.mxu1 %v3195_v43  ;;  %1572 = vmatpush1.bf16.msra.mxu0 %v3199_v45 }
  0x95   : > { %1475 = vmatpush2.bf16.msra.mxu1 %v2777_v44  ;;  %1274 = vmatprep.mubr.bf16.mxu0 %v3204_v47 }
  0x96   : > { %1476 = vmatprep.subr.bf16.mxu1 %v2785_v46  ;;  %1427 = vmatprep.mubr.bf16.mxu1 %v2890_v35 }
  0x97   : > { %1573 = vmatprep.subr.bf16.mxu0 %v3208_v49 }
  0x98   : > { %1574 = vmatpush1.bf16.msra.mxu0 %v3215_v51 }
  0x99   : > { %1477 = vmatpush2.bf16.msra.mxu1 %v2783_v48  ;;  %1575 = vmatprep.subr.bf16.mxu0 %v3219_v52 }
  0x9a   : > { %1478 = vmatprep.subr.bf16.mxu1 %v2792_v50 }
  0x9b   : > { %1275 = vmatmul.mubr.bf16.gmra.mxu0 %v3223_v53 }
  0x9c   : > { %1428 = vmatmul.mubr.bf16.gmra.mxu1 %v3227_v54  ;;  %1284 = vmatprep.mubr.bf16.mxu0 %v3232_v56 }
  0x9d   : > { %1479 = vmatpush2.bf16.msra.mxu1 %v2790_v55  ;;  %1437 = vmatprep.mubr.bf16.mxu1 %v2890_v35 }
  0x9e   : > { %1480 = vmatprep.subr.bf16.mxu1 %v2798_v57  ;;  %1576 = vmatpush1.bf16.msra.mxu0 %v3237_v58  ;;  %v437_v57 = vld [vmem:[#allocation2 + $0x168] sm:$0xff] }
  0x9f   : > { %1577 = vmatprep.subr.bf16.mxu0 %v3242_v59 }
  0xa1   : > { %1481 = vmatpush2.bf16.msra.mxu1 %v2796_v60 }
  0xa2   : > { %1482 = vmatprep.subr.bf16.mxu1 %v2805_v61  ;;  %1578 = vmatpush1.bf16.msra.mxu0 %v3253_v63 }
  0xa3   : > { %1285 = vmatmul.mubr.bf16.gmra.mxu0 %v3249_v62  ;;  %1579 = vmatprep.subr.bf16.mxu0 %v2830_v5 }
  0xa4   : > { %1438 = vmatmul.mubr.bf16.gmra.mxu1 %v3256_v0  ;;  %1294 = vmatprep.mubr.bf16.mxu0 %v3261_v2 }
  0xa5   : > { %1483 = vmatpush2.bf16.msra.mxu1 %v2803_v1  ;;  %1447 = vmatprep.mubr.bf16.mxu1 %v2890_v35 }
  0xa6   : > { %1484 = vmatprep.subr.bf16.mxu1 %v2811_v3  ;;  %1580 = vmatpush1.bf16.msra.mxu0 %v2828_v6  ;;  %v441_v3 = vld [vmem:[#allocation2 + $0x110] sm:$0xff] }
  0xa7   : > { %1581 = vmatprep.subr.bf16.mxu0 %v2836_v8 }
  0xa9   : > { %1485 = vmatpush2.bf16.msra.mxu1 %v2809_v7 }
  0xaa   : > { %1486 = vmatprep.subr.bf16.mxu1 %v2818_v9  ;;  %1582 = vmatpush1.bf16.msra.mxu0 %v2834_v16  ;;  %v444_v9 = vld [vmem:[#allocation2 + $0x120] sm:$0xff] }
  0xab   : > { %1295 = vmatmul.mubr.bf16.gmra.mxu0 %v2814_v10  ;;  %1583 = vmatprep.subr.bf16.mxu0 %v2842_v17 }
  0xac   : > { %1448 = vmatmul.mubr.bf16.gmra.mxu1 %v3276_v11  ;;  %1304 = vmatprep.mubr.bf16.mxu0 %v2825_v14 }
  0xad   : > { %1487 = vmatpush2.bf16.msra.mxu1 %v2816_v12  ;;  %1490 = vmatprep.mubr.bf16.mxu1 %v3165_v25  ;;  %v2833_v25 = vld [vmem:[%s3031_s8 + $0x78] ss:$12 sps:$4 sm:$0xff]  }
  0xae   : > { %1488 = vmatprep.subr.bf16.mxu1 %v2824_v15  ;;  %1584 = vmatpush1.bf16.msra.mxu0 %v2840_v19  ;;  %v445_v15 = vld [vmem:[#allocation2 + $0x150] sm:$0xff] }
  0xaf   : > { %1585 = vmatprep.subr.bf16.mxu0 %v2848_v23 }
  0xb1   : > { %1489 = vmatpush2.bf16.msra.mxu1 %v2822_v18 }
  0xb2   : > { %2613 = vmatprep.subr.bf16.mxu1 %v3188_v41  ;;  %1586 = vmatpush1.bf16.msra.mxu0 %v2846_v24 }
  0xb3   : > { %1305 = vmatmul.mubr.bf16.gmra.mxu0 %v2827_v20 }
  0xb4   : > { %1491 = vmatmul.mubr.bf16.vlgmr.msra.gmra.mxu1 %v3191_v42  ;;  %1314 = vmatprep.mubr.bf16.mxu0 %v2831_v21 }
  0xb5   : > { %2621 = vmatpush1.bf16.msra.mxu1 %v3199_v45  ;;  %1500 = vmatprep.mubr.bf16.mxu1 %v3204_v47  ;;  %v433_v47 = vld [vmem:[#allocation2 + $0x1b0] sm:$0xff] }
  0xb6   : > { %2614 = vmatprep.subr.bf16.mxu1 %v3208_v49 }
  0xb9   : > { %2622 = vmatpush1.bf16.msra.mxu1 %v3215_v51 }
  0xba   : > { %2615 = vmatprep.subr.bf16.mxu1 %v3219_v52  ;;  %v436_v52 = vld [vmem:[#allocation2 + $0x50] sm:$0xff] }
  0xbb   : > { %1315 = vmatmul.mubr.bf16.gmra.mxu0 %v2833_v25 }
  0xbc   : > { %1501 = vmatmul.mubr.bf16.gmra.mxu1 %v3223_v53  ;;  %1324 = vmatprep.mubr.bf16.mxu0 %v2837_v26 }
  0xbd   : > { %1510 = vmatprep.mubr.bf16.mxu1 %v3232_v56  ;;  %2623 = vmatpush1.bf16.msra.mxu1 %v3237_v58 }
  0xbe   : > { %2616 = vmatprep.subr.bf16.mxu1 %v3242_v59 }
  0xc1   : > { %2624 = vmatpush1.bf16.msra.mxu1 %v3253_v63 }
  0xc2   : > { %2617 = vmatprep.subr.bf16.mxu1 %v2830_v5 }
  0xc3   : > { %1325 = vmatmul.mubr.bf16.gmra.mxu0 %v2839_v27 }
  0xc4   : > { %1511 = vmatmul.mubr.bf16.gmra.mxu1 %v3249_v62  ;;  %1334 = vmatprep.mubr.bf16.mxu0 %v2843_v28  ;;  %v440_v62 = vld [vmem:[#allocation2 + $0x180] sm:$0xff] }
  0xc5   : > { %1520 = vmatprep.mubr.bf16.mxu1 %v3261_v2  ;;  %2625 = vmatpush1.bf16.msra.mxu1 %v2828_v6 }
  0xc6   : > { %2618 = vmatprep.subr.bf16.mxu1 %v2836_v8 }
  0xc9   : > { %2626 = vmatpush1.bf16.msra.mxu1 %v2834_v16 }
  0xca   : > { %2619 = vmatprep.subr.bf16.mxu1 %v2842_v17 }
  0xcb   : > { %1335 = vmatmul.mubr.bf16.gmra.mxu0 %v2845_v29 }
  0xcc   : > { %1521 = vmatmul.mubr.bf16.gmra.mxu1 %v2814_v10  ;;  %1603 = vmatprep.mubr.bf16.mxu0 %v2890_v35 }
  0xcd   : > { %1530 = vmatprep.mubr.bf16.mxu1 %v2825_v14  ;;  %2627 = vmatpush1.bf16.msra.mxu1 %v2840_v19 }
  0xce   : > { %2620 = vmatprep.subr.bf16.mxu1 %v2848_v23 }
  0xd1   : > { %2628 = vmatpush1.bf16.msra.mxu1 %v2846_v24 }
  0xd3   : > { %1604 = vmatmul.mubr.bf16.vlgmr.msra.gmra.mxu0 %v3134_v4 }
  0xd4   : > { %1531 = vmatmul.mubr.bf16.gmra.mxu1 %v2827_v20  ;;  %1613 = vmatprep.mubr.bf16.mxu0 %v2890_v35  ;;  %v448_v20 = vld [vmem:[#allocation2 + $0xe0] sm:$0xff] }
  0xd5   : > { %1540 = vmatprep.mubr.bf16.mxu1 %v2831_v21 }
  0xdb   : > { %1614 = vmatmul.mubr.bf16.gmra.mxu0 %v3147_v13 }
  0xdc   : > { %1541 = vmatmul.mubr.bf16.gmra.mxu1 %v2833_v25  ;;  %1623 = vmatprep.mubr.bf16.mxu0 %v2890_v35 }
  0xdd   : > { %1550 = vmatprep.mubr.bf16.mxu1 %v2837_v26  ;;  %v449_v26 = vld [vmem:[#allocation2 + $0x188] sm:$0xff] }
  0xe3   : > { %1624 = vmatmul.mubr.bf16.gmra.mxu0 %v3160_v22 }
  0xe4   : > { %1551 = vmatmul.mubr.bf16.gmra.mxu1 %v2839_v27  ;;  %1633 = vmatprep.mubr.bf16.mxu0 %v2890_v35 }
  0xe5   : > { %1560 = vmatprep.mubr.bf16.mxu1 %v2843_v28 }
  0xeb   : > { %1634 = vmatmul.mubr.bf16.gmra.mxu0 %v3177_v32 }
  0xec   : > { %1561 = vmatmul.mubr.bf16.gmra.mxu1 %v2845_v29  ;;  %1643 = vmatprep.mubr.bf16.mxu0 %v2890_v35 }
  0xed   : > { %1663 = vmatprep.mubr.bf16.mxu1 %v2890_v35 }
  0xf3   : > { %1644 = vmatmul.mubr.bf16.gmra.mxu0 %v3195_v43  ;;  %v432_v43 = vld [vmem:[#allocation2 + $0xb0] sm:$0xff] }
  0xf4   : > { %1664 = vmatmul.mubr.bf16.vlgmr.msra.gmra.mxu1 %v3256_v0  ;;  %1653 = vmatprep.mubr.bf16.mxu0 %v2890_v35 }
  0xf5   : > { %1673 = vmatprep.mubr.bf16.mxu1 %v2890_v35 }
  0xfb   : > { %1654 = vmatmul.mubr.bf16.gmra.mxu0 %v3227_v54 }
  0xfc   : > { %1674 = vmatmul.mubr.bf16.gmra.mxu1 %v3276_v11 }
 0x134   : > { %v1379_v4 = vpop.f32.mrf.mxu1 }
 0x136   : > { %v1381_v13 = vpop.f32.mrf.mxu1 }
 0x138   : > { %v1383_v22 = vpop.f32.mrf.mxu1 }
 0x13a   : > { %v1385_v30 = vpop.f32.mrf.mxu1 }
 0x13c   : > { %v1389_v31 = vpop.f32.mrf.mxu1 }
 0x13e   : > { %v1391_v32 = vpop.f32.mrf.mxu1 }
 0x140   : > { %v1393_v33 = vpop.f32.mrf.mxu1 }
 0x142   : > { %v1395_v34 = vpop.f32.mrf.mxu1 }
 0x144   : > { %v1399_v36 = vpop.f32.mrf.mxu1 }
 0x146   : > { %v3326_v37 = vpop.f32.mrf.mxu1 }
 0x148   : > { %v3328_v38 = vpop.f32.mrf.mxu1 }
 0x14a   : > { %v3330_v39 = vpop.f32.mrf.mxu1 }
 0x14c   : > { %v3332_v35 = vpop.f32.mrf.mxu1 }
 0x14e   : > { %v3334_v40 = vpop.f32.mrf.mxu1 }
 0x150   : > { %v3336_v41 = vpop.f32.mrf.mxu1 }
 0x152   : > { %v3338_v42 = vpop.f32.mrf.mxu1 }
 0x153   : > { %v1266_v44 = vpop.f32.mrf.mxu0 }
 0x154   : > { %v3340_v45 = vpop.f32.mrf.mxu1  ;;  %v1380_v46 = vadd.f32 %v1379_v4, %v1266_v44 }
 0x155   : > { %v1268_v48 = vpop.f32.mrf.mxu0 }
 0x156   : > { %v3342_v49 = vpop.f32.mrf.mxu1  ;;  %v1684_v50 = vadd.f32 %v1380_v46, %v432_v43  ;;  %v1382_v51 = vadd.f32 %v1381_v13, %v1268_v48  ;;  %v452_v13 = vld [vmem:[#allocation2 + $0x80] sm:$0xff]  ;;  %v456_v46 = vld [vmem:[#allocation2 + $0x1e8] sm:$0xff] }
 0x157   : > { %v1270_v53 = vpop.f32.mrf.mxu0 }
 0x158   : > { %v3344_v54 = vpop.f32.mrf.mxu1  ;;  %1748 = vst [vmem:[#allocation2 + $0xb0] sm:$0xff] %v1684_v50  ;;  %v1685_v55 = vadd.f32 %v1382_v51, %v433_v47  ;;  %v1384_v56 = vadd.f32 %v1383_v22, %v1270_v53  ;;  %v457_v51 = vld [vmem:[#allocation2 + $0xf8] sm:$0xff] }
 0x159   : > { %v1272_v58 = vpop.f32.mrf.mxu0 }
 0x15a   : > { %v3346_v59 = vpop.f32.mrf.mxu1  ;;  %1749 = vst [vmem:[#allocation2 + $0x1b0] sm:$0xff] %v1685_v55  ;;  %v1688_v60 = vadd.f32 %v1384_v56, %v436_v52  ;;  %v1386_v61 = vadd.f32 %v1385_v30, %v1272_v58  ;;  %v460_v56 = vld [vmem:[#allocation2 + $0x1e0] sm:$0xff] }
 0x15b   : > { %v1276_v63 = vpop.f32.mrf.mxu0 }
 0x15c   : > { %v3348_v0 = vpop.f32.mrf.mxu1  ;;  %1752 = vst [vmem:[#allocation2 + $0x50] sm:$0xff] %v1688_v60  ;;  %v1689_v1 = vadd.f32 %v1386_v61, %v437_v57  ;;  %v1390_v2 = vadd.f32 %v1389_v31, %v1276_v63  ;;  %v461_v61 = vld [vmem:[#allocation2] sm:$0xff] }
 0x15d   : > { %v1278_v5 = vpop.f32.mrf.mxu0 }
 0x15e   : > { %v3350_v6 = vpop.f32.mrf.mxu1  ;;  %1753 = vst [vmem:[#allocation2 + $0x168] sm:$0xff] %v1689_v1  ;;  %v1692_v7 = vadd.f32 %v1390_v2, %v440_v62  ;;  %v1392_v8 = vadd.f32 %v1391_v32, %v1278_v5  ;;  %v464_v2 = vld [vmem:[#allocation2 + $0x148] sm:$0xff] }
 0x15f   : > { %v1280_v10 = vpop.f32.mrf.mxu0 }
 0x160   : > { %v3352_v11 = vpop.f32.mrf.mxu1  ;;  %1756 = vst [vmem:[#allocation2 + $0x180] sm:$0xff] %v1692_v7  ;;  %v1693_v12 = vadd.f32 %v1392_v8, %v441_v3  ;;  %v1394_v14 = vadd.f32 %v1393_v33, %v1280_v10  ;;  %v453_v33 = vld [vmem:[#allocation2 + $0x1a8] sm:$0xff]  ;;  %v465_v8 = vld [vmem:[#allocation2 + $0x1d0] sm:$0xff] }
 0x161   : > { %v1282_v16 = vpop.f32.mrf.mxu0 }
 0x162   : > { %v3354_v17 = vpop.f32.mrf.mxu1  ;;  %1757 = vst [vmem:[#allocation2 + $0x110] sm:$0xff] %v1693_v12  ;;  %v1696_v18 = vadd.f32 %v1394_v14, %v444_v9  ;;  %v1396_v19 = vadd.f32 %v1395_v34, %v1282_v16  ;;  %v468_v14 = vld [vmem:[#allocation2 + $0x40] sm:$0xff] }
 0x163   : > { %v1286_v21 = vpop.f32.mrf.mxu0 }
 0x164   : > { %v3356_v23 = vpop.f32.mrf.mxu1  ;;  %1760 = vst [vmem:[#allocation2 + $0x120] sm:$0xff] %v1696_v18  ;;  %v1697_v24 = vadd.f32 %v1396_v19, %v445_v15  ;;  %v1400_v25 = vadd.f32 %v1399_v36, %v1286_v21  ;;  %v469_v19 = vld [vmem:[#allocation2 + $0x1f8] sm:$0xff] }
 0x165   : > { %v1288_v27 = vpop.f32.mrf.mxu0 }
 0x166   : > { %v3358_v28 = vpop.f32.mrf.mxu1  ;;  %1761 = vst [vmem:[#allocation2 + $0x150] sm:$0xff] %v1697_v24  ;;  %v1700_v29 = vadd.f32 %v1400_v25, %v448_v20  ;;  %v1402_v4 = vadd.f32 %v3326_v37, %v1288_v27  ;;  %v472_v25 = vld [vmem:[#allocation2 + $0x1a0] sm:$0xff] }
 0x167   : > { %v1290_v22 = vpop.f32.mrf.mxu0 }
 0x168   : > { %v3361_v30 = vpop.f32.mrf.mxu1  ;;  %1764 = vst [vmem:[#allocation2 + $0xe0] sm:$0xff] %v1700_v29  ;;  %v1701_v31 = vadd.f32 %v1402_v4, %v449_v26  ;;  %v1404_v32 = vadd.f32 %v3328_v38, %v1290_v22  ;;  %v473_v4 = vld [vmem:[#allocation2 + $0x1f0] sm:$0xff] }
 0x169   : > { %v1292_v34 = vpop.f32.mrf.mxu0 }
 0x16a   : > { %v3364_v43 = vpop.f32.mrf.mxu1  ;;  %1765 = vst [vmem:[#allocation2 + $0x188] sm:$0xff] %v1701_v31  ;;  %v1704_v36 = vadd.f32 %v1404_v32, %v452_v13  ;;  %v1406_v44 = vadd.f32 %v3330_v39, %v1292_v34  ;;  %v476_v32 = vld [vmem:[#allocation2 + $0x70] sm:$0xff] }
 0x16b   : > { %v1296_v47 = vpop.f32.mrf.mxu0 }
 0x16c   : > { %v3367_v48 = vpop.f32.mrf.mxu1  ;;  %1768 = vst [vmem:[#allocation2 + $0x80] sm:$0xff] %v1704_v36  ;;  %v1705_v37 = vadd.f32 %v1406_v44, %v453_v33  ;;  %v1410_v50 = vadd.f32 %v3332_v35, %v1296_v47  ;;  %v477_v44 = vld [vmem:[#allocation2 + $0x90] sm:$0xff] }
 0x16d   : > { %v1298_v52 = vpop.f32.mrf.mxu0 }
 0x16e   : > { %v3370_v53 = vpop.f32.mrf.mxu1  ;;  %1769 = vst [vmem:[#allocation2 + $0x1a8] sm:$0xff] %v1705_v37  ;;  %v1708_v38 = vadd.f32 %v1410_v50, %v456_v46  ;;  %v1412_v55 = vadd.f32 %v3334_v40, %v1298_v52  ;;  %v480_v50 = vld [vmem:[#allocation2 + $0xb8] sm:$0xff] }
 0x16f   : > { %v1300_v57 = vpop.f32.mrf.mxu0 }
 0x170   : > { %v3373_v58 = vpop.f32.mrf.mxu1  ;;  %1772 = vst [vmem:[#allocation2 + $0x1e8] sm:$0xff] %v1708_v38  ;;  %v1709_v39 = vadd.f32 %v1412_v55, %v457_v51  ;;  %v1414_v60 = vadd.f32 %v3336_v41, %v1300_v57  ;;  %v481_v55 = vld [vmem:[#allocation2 + $0x88] sm:$0xff] }
 0x171   : > { %v1302_v62 = vpop.f32.mrf.mxu0 }
 0x172   : > { %v3376_v63 = vpop.f32.mrf.mxu1  ;;  %1773 = vst [vmem:[#allocation2 + $0xf8] sm:$0xff] %v1709_v39  ;;  %v1712_v35 = vadd.f32 %v1414_v60, %v460_v56  ;;  %v1416_v1 = vadd.f32 %v3338_v42, %v1302_v62  ;;  %v484_v60 = vld [vmem:[#allocation2 + $0x170] sm:$0xff] }
 0x173   : > { %v1306_v3 = vpop.f32.mrf.mxu0 }
 0x174   : > { %v3379_v5 = vpop.f32.mrf.mxu1  ;;  %1776 = vst [vmem:[#allocation2 + $0x1e0] sm:$0xff] %v1712_v35  ;;  %v1713_v40 = vadd.f32 %v1416_v1, %v461_v61  ;;  %v1420_v7 = vadd.f32 %v3340_v45, %v1306_v3  ;;  %v485_v1 = vld [vmem:[#allocation2 + $0x178] sm:$0xff] }
 0x175   : > { %v1308_v9 = vpop.f32.mrf.mxu0 }
 0x176   : > { %v3382_v10 = vpop.f32.mrf.mxu1  ;;  %1777 = vst [vmem:[#allocation2] sm:$0xff] %v1713_v40  ;;  %v1716_v41 = vadd.f32 %v1420_v7, %v464_v2  ;;  %v1422_v12 = vadd.f32 %v3342_v49, %v1308_v9  ;;  %v488_v7 = vld [vmem:[#allocation2 + $0x198] sm:$0xff] }
 0x177   : > { %v1310_v15 = vpop.f32.mrf.mxu0 }
 0x178   : > { %v3385_v16 = vpop.f32.mrf.mxu1  ;;  %1780 = vst [vmem:[#allocation2 + $0x148] sm:$0xff] %v1716_v41  ;;  %v1717_v42 = vadd.f32 %v1422_v12, %v465_v8  ;;  %v1424_v18 = vadd.f32 %v3344_v54, %v1310_v15  ;;  %v489_v12 = vld [vmem:[#allocation2 + $0x38] sm:$0xff] }
 0x179   : > { %v1312_v20 = vpop.f32.mrf.mxu0 }
 0x17a   : > { %v3388_v21 = vpop.f32.mrf.mxu1  ;;  %1781 = vst [vmem:[#allocation2 + $0x1d0] sm:$0xff] %v1717_v42  ;;  %v1720_v45 = vadd.f32 %v1424_v18, %v468_v14  ;;  %v1426_v24 = vadd.f32 %v3346_v59, %v1312_v20  ;;  %v492_v18 = vld [vmem:[#allocation2 + $0x158] sm:$0xff] }
 0x17b   : > { %v1316_v26 = vpop.f32.mrf.mxu0 }
 0x17c   : > { %v3391_v27 = vpop.f32.mrf.mxu1  ;;  %1784 = vst [vmem:[#allocation2 + $0x40] sm:$0xff] %v1720_v45  ;;  %v1721_v49 = vadd.f32 %v1426_v24, %v469_v19  ;;  %v1430_v29 = vadd.f32 %v3348_v0, %v1316_v26  ;;  %v493_v24 = vld [vmem:[#allocation2 + $0x10] sm:$0xff] }
 0x17d   : > { %v1318_v13 = vpop.f32.mrf.mxu0 }
 0x17e   : > { %v3394_v22 = vpop.f32.mrf.mxu1  ;;  %1785 = vst [vmem:[#allocation2 + $0x1f8] sm:$0xff] %v1721_v49  ;;  %v1724_v54 = vadd.f32 %v1430_v29, %v472_v25  ;;  %v1432_v31 = vadd.f32 %v3350_v6, %v1318_v13 }
 0x17f   : > { %v1320_v33 = vpop.f32.mrf.mxu0 }
 0x180   : > { %v3397_v34 = vpop.f32.mrf.mxu1  ;;  %1788 = vst [vmem:[#allocation2 + $0x1a0] sm:$0xff] %v1724_v54  ;;  %v1725_v59 = vadd.f32 %v1432_v31, %v473_v4  ;;  %v1434_v36 = vadd.f32 %v3352_v11, %v1320_v33  ;;  %v434_v4 = vld [vmem:[#allocation2 + $0xd8] sm:$0xff] }
 0x181   : > { %v1322_v46 = vpop.f32.mrf.mxu0 }
 0x182   : > { %v3400_v47 = vpop.f32.mrf.mxu1  ;;  %1789 = vst [vmem:[#allocation2 + $0x1f0] sm:$0xff] %v1725_v59  ;;  %v1728_v0 = vadd.f32 %v1434_v36, %v476_v32  ;;  %v1436_v37 = vadd.f32 %v3354_v17, %v1322_v46  ;;  %v435_v32 = vld [vmem:[#allocation2 + $0x18] sm:$0xff] }
 0x183   : > { %v1326_v51 = vpop.f32.mrf.mxu0 }
 0x184   : > { %v3403_v52 = vpop.f32.mrf.mxu1  ;;  %1792 = vst [vmem:[#allocation2 + $0x70] sm:$0xff] %v1728_v0  ;;  %v1729_v6 = vadd.f32 %v1436_v37, %v477_v44  ;;  %v1440_v38 = vadd.f32 %v3356_v23, %v1326_v51  ;;  %v438_v44 = vld [vmem:[#allocation2 + $0x130] sm:$0xff] }
 0x185   : > { %v1328_v56 = vpop.f32.mrf.mxu0 }
 0x186   : > { %v3406_v57 = vpop.f32.mrf.mxu1  ;;  %1793 = vst [vmem:[#allocation2 + $0x90] sm:$0xff] %v1729_v6  ;;  %v1732_v11 = vadd.f32 %v1440_v38, %v480_v50  ;;  %v1442_v39 = vadd.f32 %v3358_v28, %v1328_v56  ;;  %v439_v50 = vld [vmem:[#allocation2 + $0x48] sm:$0xff] }
 0x187   : > { %v1330_v61 = vpop.f32.mrf.mxu0 }
 0x188   : > { %v3409_v62 = vpop.f32.mrf.mxu1  ;;  %1796 = vst [vmem:[#allocation2 + $0xb8] sm:$0xff] %v1732_v11  ;;  %v1733_v17 = vadd.f32 %v1442_v39, %v481_v55  ;;  %v1444_v35 = vadd.f32 %v3361_v30, %v1330_v61  ;;  %v442_v55 = vld [vmem:[#allocation2 + $0x118] sm:$0xff] }
 0x189   : > { %v1332_v2 = vpop.f32.mrf.mxu0 }
 0x18a   : > { %v3412_v3 = vpop.f32.mrf.mxu1  ;;  %1797 = vst [vmem:[#allocation2 + $0x88] sm:$0xff] %v1733_v17  ;;  %v1736_v23 = vadd.f32 %v1444_v35, %v484_v60  ;;  %v1446_v40 = vadd.f32 %v3364_v43, %v1332_v2  ;;  %v443_v60 = vld [vmem:[#allocation2 + $0x98] sm:$0xff] }
 0x18b   : > { %v1336_v8 = vpop.f32.mrf.mxu0 }
 0x18c   : > { %v3415_v9 = vpop.f32.mrf.mxu1  ;;  %1800 = vst [vmem:[#allocation2 + $0x170] sm:$0xff] %v1736_v23  ;;  %v1737_v28 = vadd.f32 %v1446_v40, %v485_v1  ;;  %v1450_v41 = vadd.f32 %v3367_v48, %v1336_v8  ;;  %v446_v1 = vld [vmem:[#allocation2 + $0x108] sm:$0xff] }
 0x18d   : > { %v1338_v14 = vpop.f32.mrf.mxu0 }
 0x18e   : > { %v3418_v15 = vpop.f32.mrf.mxu1  ;;  %1801 = vst [vmem:[#allocation2 + $0x178] sm:$0xff] %v1737_v28  ;;  %v1740_v30 = vadd.f32 %v1450_v41, %v488_v7  ;;  %v1452_v42 = vadd.f32 %v3370_v53, %v1338_v14  ;;  %v447_v7 = vld [vmem:[#allocation2 + $0x60] sm:$0xff] }
 0x18f   : > { %v1340_v19 = vpop.f32.mrf.mxu0 }
 0x190   : > { %v3421_v20 = vpop.f32.mrf.mxu1  ;;  %1804 = vst [vmem:[#allocation2 + $0x198] sm:$0xff] %v1740_v30  ;;  %v1741_v43 = vadd.f32 %v1452_v42, %v489_v12  ;;  %v1454_v45 = vadd.f32 %v3373_v58, %v1340_v19  ;;  %v450_v12 = vld [vmem:[#allocation2 + $0x138] sm:$0xff] }
 0x191   : > { %v1342_v25 = vpop.f32.mrf.mxu0 }
 0x192   : > { %v3424_v26 = vpop.f32.mrf.mxu1  ;;  %1805 = vst [vmem:[#allocation2 + $0x38] sm:$0xff] %v1741_v43  ;;  %v1744_v48 = vadd.f32 %v1454_v45, %v492_v18  ;;  %v1456_v49 = vadd.f32 %v3376_v63, %v1342_v25  ;;  %v451_v18 = vld [vmem:[#allocation2 + $0x140] sm:$0xff] }
 0x193   : > { %v1605_v53 = vpop.f32.mrf.mxu0 }
 0x194   : > { %v3427_v29 = vpop.f32.mrf.mxu1  ;;  %1808 = vst [vmem:[#allocation2 + $0x158] sm:$0xff] %v1744_v48  ;;  %v1745_v13 = vadd.f32 %v1456_v49, %v493_v24  ;;  %v1606_v54 = vadd.f32 %v1605_v53, %v3379_v5  ;;  %v454_v24 = vld [vmem:[#allocation2 + $0x1b8] sm:$0xff] }
 0x195   : > { %v1607_v58 = vpop.f32.mrf.mxu0 }
 0x196   : > { %v3430_v31 = vpop.f32.mrf.mxu1  ;;  %1809 = vst [vmem:[#allocation2 + $0x10] sm:$0xff] %v1745_v13  ;;  %v1686_v33 = vadd.f32 %v1606_v54, %v434_v4  ;;  %v1608_v59 = vadd.f32 %v1607_v58, %v3382_v10  ;;  %v455_v4 = vld [vmem:[#allocation2 + $0x28] sm:$0xff] }
 0x197   : > { %v1609_v63 = vpop.f32.mrf.mxu0 }
 0x198   : > { %v3433_v36 = vpop.f32.mrf.mxu1  ;;  %1750 = vst [vmem:[#allocation2 + $0xd8] sm:$0xff] %v1686_v33  ;;  %v1687_v46 = vadd.f32 %v1608_v59, %v435_v32  ;;  %v1610_v0 = vadd.f32 %v1609_v63, %v3385_v16  ;;  %v458_v32 = vld [vmem:[#allocation2 + $0x160] sm:$0xff] }
 0x199   : > { %v1611_v5 = vpop.f32.mrf.mxu0 }
 0x19a   : > { %v3436_v37 = vpop.f32.mrf.mxu1  ;;  %1751 = vst [vmem:[#allocation2 + $0x18] sm:$0xff] %v1687_v46  ;;  %v1690_v51 = vadd.f32 %v1610_v0, %v438_v44  ;;  %v1612_v6 = vadd.f32 %v1611_v5, %v3388_v21  ;;  %v459_v44 = vld [vmem:[#allocation2 + $0x30] sm:$0xff] }
 0x19b   : > { %v1615_v10 = vpop.f32.mrf.mxu0 }
 0x19c   : > { %v3439_v38 = vpop.f32.mrf.mxu1  ;;  %1754 = vst [vmem:[#allocation2 + $0x130] sm:$0xff] %v1690_v51  ;;  %v1691_v56 = vadd.f32 %v1612_v6, %v439_v50  ;;  %v1616_v11 = vadd.f32 %v1615_v10, %v3391_v27  ;;  %v462_v50 = vld [vmem:[#allocation2 + $0xf0] sm:$0xff] }
 0x19d   : > { %v1617_v16 = vpop.f32.mrf.mxu0 }
 0x19e   : > { %v3442_v39 = vpop.f32.mrf.mxu1  ;;  %1755 = vst [vmem:[#allocation2 + $0x48] sm:$0xff] %v1691_v56  ;;  %v1694_v61 = vadd.f32 %v1616_v11, %v442_v55  ;;  %v1618_v17 = vadd.f32 %v1617_v16, %v3394_v22  ;;  %v463_v55 = vld [vmem:[#allocation2 + $0x8] sm:$0xff]  ;;  %v466_v11 = vld [vmem:[#allocation2 + $0x100] sm:$0xff] }
 0x19f   : > { %v1619_v21 = vpop.f32.mrf.mxu0  ;;  %v482_v16 = vld [vmem:[#allocation2 + $0xa8] sm:$0xff] }
 0x1a0   : > { %v3445_v35 = vpop.f32.mrf.mxu1  ;;  %1758 = vst [vmem:[#allocation2 + $0x118] sm:$0xff] %v1694_v61  ;;  %v1695_v2 = vadd.f32 %v1618_v17, %v443_v60  ;;  %v1620_v23 = vadd.f32 %v1619_v21, %v3397_v34  ;;  %v467_v21 = vld [vmem:[#allocation2 + $0xc8] sm:$0xff] }
 0x1a1   : > { %v1621_v27 = vpop.f32.mrf.mxu0 }
 0x1a2   : > { %v3448_v40 = vpop.f32.mrf.mxu1  ;;  %1759 = vst [vmem:[#allocation2 + $0x98] sm:$0xff] %v1695_v2  ;;  %v1698_v8 = vadd.f32 %v1620_v23, %v446_v1  ;;  %v1622_v28 = vadd.f32 %v1621_v27, %v3400_v47 }
 0x1a3   : > { %v1625_v14 = vpop.f32.mrf.mxu0 }
 0x1a4   : > { %v1552_v41 = vpop.f32.mrf.mxu1  ;;  %1762 = vst [vmem:[#allocation2 + $0x108] sm:$0xff] %v1698_v8  ;;  %v1699_v22 = vadd.f32 %v1622_v28, %v447_v7  ;;  %v1626_v30 = vadd.f32 %v1625_v14, %v3403_v52  ;;  %v486_v14 = vld [vmem:[#allocation2 + $0x68] sm:$0xff] }
 0x1a5   : > { %v1627_v19 = vpop.f32.mrf.mxu0 }
 0x1a6   : > { %v1554_v42 = vpop.f32.mrf.mxu1  ;;  %1763 = vst [vmem:[#allocation2 + $0x60] sm:$0xff] %v1699_v22  ;;  %v1702_v34 = vadd.f32 %v1626_v30, %v450_v12  ;;  %v1628_v43 = vadd.f32 %v1627_v19, %v3406_v57  ;;  %v471_v19 = vld [vmem:[#allocation2 + $0x128] sm:$0xff] }
 0x1a7   : > { %v1629_v25 = vpop.f32.mrf.mxu0 }
 0x1a8   : > { %v1556_v45 = vpop.f32.mrf.mxu1  ;;  %1766 = vst [vmem:[#allocation2 + $0x138] sm:$0xff] %v1702_v34  ;;  %v1703_v48 = vadd.f32 %v1628_v43, %v451_v18  ;;  %v1630_v47 = vadd.f32 %v1629_v25, %v3409_v62  ;;  %v487_v43 = vld [vmem:[#allocation2 + $0x190] sm:$0xff] }
 0x1a9   : > { %v1631_v53 = vpop.f32.mrf.mxu0 }
 0x1aa   : > { %v3454_v49 = vpop.f32.mrf.mxu1  ;;  %1767 = vst [vmem:[#allocation2 + $0x140] sm:$0xff] %v1703_v48  ;;  %v1706_v52 = vadd.f32 %v1630_v47, %v454_v24  ;;  %v1632_v13 = vadd.f32 %v1631_v53, %v3412_v3  ;;  %v474_v47 = vld [vmem:[#allocation2 + $0xe8] sm:$0xff]  ;;  %v490_v53 = vld [vmem:[#allocation2 + $0xc0] sm:$0xff] }
 0x1ab   : > { %v1635_v58 = vpop.f32.mrf.mxu0 }
 0x1ac   : > { %v3457_v54 = vpop.f32.mrf.mxu1  ;;  %1770 = vst [vmem:[#allocation2 + $0x1b8] sm:$0xff] %v1706_v52  ;;  %v1707_v57 = vadd.f32 %v1632_v13, %v455_v4  ;;  %v1636_v33 = vadd.f32 %v1635_v58, %v3415_v9  ;;  %v475_v58 = vld [vmem:[#allocation2 + $0x78] sm:$0xff] }
 0x1ad   : > { %v1637_v62 = vpop.f32.mrf.mxu0 }
 0x1ae   : > { %v3460_v59 = vpop.f32.mrf.mxu1  ;;  %1771 = vst [vmem:[#allocation2 + $0x28] sm:$0xff] %v1707_v57  ;;  %v1710_v63 = vadd.f32 %v1636_v33, %v458_v32  ;;  %v1638_v46 = vadd.f32 %v1637_v62, %v3418_v15  ;;  %v491_v33 = vld [vmem:[#allocation2 + $0x1c0] sm:$0xff] }
 0x1af   : > { %v1639_v3 = vpop.f32.mrf.mxu0 }
 0x1b0   : > { %v3463_v0 = vpop.f32.mrf.mxu1  ;;  %1774 = vst [vmem:[#allocation2 + $0x160] sm:$0xff] %v1710_v63  ;;  %v1711_v5 = vadd.f32 %v1638_v46, %v459_v44  ;;  %v1640_v51 = vadd.f32 %v1639_v3, %v3421_v20  ;;  %v483_v20 = vld [vmem:[#allocation2 + $0x1c8] sm:$0xff]  ;;  %v478_v46 = vld [vmem:[#allocation2 + $0x1d8] sm:$0xff] }
 0x1b1   : > { %v1641_v9 = vpop.f32.mrf.mxu0  ;;  %v494_v3 = vld [vmem:[#allocation2 + $0x58] sm:$0xff] }
 0x1b2   : > { %v3466_v6 = vpop.f32.mrf.mxu1  ;;  %1775 = vst [vmem:[#allocation2 + $0x30] sm:$0xff] %v1711_v5  ;;  %v1714_v10 = vadd.f32 %v1640_v51, %v462_v50  ;;  %v1642_v56 = vadd.f32 %v1641_v9, %v3424_v26  ;;  %v470_v26 = vld [vmem:[#allocation2 + $0x20] sm:$0xff]  ;;  %v479_v9 = vld [vmem:[#allocation2 + $0xd0] sm:$0xff] }
 0x1b3   : > { %v1645_v60 = vpop.f32.mrf.mxu0 }
 0x1b4   : > { %v1665_v15 = vpop.f32.mrf.mxu1  ;;  %1778 = vst [vmem:[#allocation2 + $0xf0] sm:$0xff] %v1714_v10  ;;  %v1715_v61 = vadd.f32 %v1642_v56, %v463_v55  ;;  %v1646_v17 = vadd.f32 %v1645_v60, %v3427_v29  ;;  %v495_v56 = vld [vmem:[#allocation2 + $0xa0] sm:$0xff] }
 0x1b5   : > { %v1666_v1 = vadd.f32 %v1665_v15, %v1552_v41  ;;  %v1647_v2 = vpop.f32.mrf.mxu0 }
 0x1b6   : > { %v1667_v23 = vpop.f32.mrf.mxu1  ;;  %1779 = vst [vmem:[#allocation2 + $0x8] sm:$0xff] %v1715_v61  ;;  %v1718_v7 = vadd.f32 %v1646_v17, %v466_v11  ;;  %v1648_v8 = vadd.f32 %v1647_v2, %v3430_v31 }
 0x1b7   : > { %v1734_v27 = vadd.f32 %v1666_v1, %v482_v16  ;;  %v1668_v28 = vadd.f32 %v1667_v23, %v1554_v42  ;;  %v1649_v12 = vpop.f32.mrf.mxu0 }
 0x1b8   : > { %v1669_v22 = vpop.f32.mrf.mxu1  ;;  %1782 = vst [vmem:[#allocation2 + $0x100] sm:$0xff] %v1718_v7  ;;  %v1719_v30 = vadd.f32 %v1648_v8, %v467_v21  ;;  %v1650_v29 = vadd.f32 %v1649_v12, %v3433_v36 }
 0x1b9   : > { %1798 = vst [vmem:[#allocation2 + $0xa8] sm:$0xff] %v1734_v27  ;;  %v1735_v18 = vadd.f32 %v1668_v28, %v483_v20  ;;  %v1670_v41 = vadd.f32 %v1669_v22, %v1556_v45  ;;  %v1651_v34 = vpop.f32.mrf.mxu0 }
 0x1ba   : > { %v1671_v24 = vpop.f32.mrf.mxu1  ;;  %1783 = vst [vmem:[#allocation2 + $0xc8] sm:$0xff] %v1719_v30  ;;  %v1722_v25 = vadd.f32 %v1650_v29, %v470_v26  ;;  %v1652_v42 = vadd.f32 %v1651_v34, %v3436_v37 }
 0x1bb   : > { %1799 = vst [vmem:[#allocation2 + $0x1c8] sm:$0xff] %v1735_v18  ;;  %v1738_v31 = vadd.f32 %v1670_v41, %v486_v14  ;;  %v1672_v48 = vadd.f32 %v1671_v24, %v3454_v49  ;;  %v1655_v4 = vpop.f32.mrf.mxu0 }
 0x1bc   : > { %v1675_v52 = vpop.f32.mrf.mxu1  ;;  %1786 = vst [vmem:[#allocation2 + $0x20] sm:$0xff] %v1722_v25  ;;  %v1723_v36 = vadd.f32 %v1652_v42, %v471_v19  ;;  %v1656_v13 = vadd.f32 %v1655_v4, %v3439_v38 }
 0x1bd   : > { %1802 = vst [vmem:[#allocation2 + $0x68] sm:$0xff] %v1738_v31  ;;  %v1739_v45 = vadd.f32 %v1672_v48, %v487_v43  ;;  %v1676_v32 = vadd.f32 %v1675_v52, %v3457_v54  ;;  %v1657_v57 = vpop.f32.mrf.mxu0 }
 0x1be   : > { %v1677_v44 = vpop.f32.mrf.mxu1  ;;  %1787 = vst [vmem:[#allocation2 + $0x128] sm:$0xff] %v1723_v36  ;;  %v1726_v37 = vadd.f32 %v1656_v13, %v474_v47  ;;  %v1658_v62 = vadd.f32 %v1657_v57, %v3442_v39 }
 0x1bf   : > { %1803 = vst [vmem:[#allocation2 + $0x190] sm:$0xff] %v1739_v45  ;;  %v1742_v49 = vadd.f32 %v1676_v32, %v490_v53  ;;  %v1678_v63 = vadd.f32 %v1677_v44, %v3460_v59  ;;  %v1659_v50 = vpop.f32.mrf.mxu0 }
 0x1c0   : > { %v1679_v5 = vpop.f32.mrf.mxu1  ;;  %1790 = vst [vmem:[#allocation2 + $0xe8] sm:$0xff] %v1726_v37  ;;  %v1727_v38 = vadd.f32 %v1658_v62, %v475_v58  ;;  %v1660_v51 = vadd.f32 %v1659_v50, %v3445_v35 }
 0x1c1   : > { %1806 = vst [vmem:[#allocation2 + $0xc0] sm:$0xff] %v1742_v49  ;;  %v1743_v54 = vadd.f32 %v1678_v63, %v491_v33  ;;  %v1680_v55 = vadd.f32 %v1679_v5, %v3463_v0  ;;  %v1661_v10 = vpop.f32.mrf.mxu0 }
 0x1c2   : > { %v1681_v11 = vpop.f32.mrf.mxu1  ;;  %1791 = vst [vmem:[#allocation2 + $0x78] sm:$0xff] %v1727_v38  ;;  %v1730_v39 = vadd.f32 %v1660_v51, %v478_v46  ;;  %v1662_v60 = vadd.f32 %v1661_v10, %v3448_v40 }
 0x1c3   : > { %1807 = vst [vmem:[#allocation2 + $0x1c0] sm:$0xff] %v1743_v54  ;;  %v1746_v59 = vadd.f32 %v1680_v55, %v494_v3  ;;  %v1682_v16 = vadd.f32 %v1681_v11, %v3466_v6  ;;  %1815 = sbr.rel (%p2542_p11) target bundleno = 508 (0x1fc), region = 66 }
 0x1c4   : > { %1794 = vst [vmem:[#allocation2 + $0x1d8] sm:$0xff] %v1730_v39  ;;  %v1731_v15 = vadd.f32 %v1662_v60, %v479_v9 }
 0x1c5   : > { %1810 = vst [vmem:[#allocation2 + $0x58] sm:$0xff] %v1746_v59  ;;  %v1747_v61 = vadd.f32 %v1682_v16, %v495_v56 }
 0x1c6   : > { %1795 = vst [vmem:[#allocation2 + $0xd0] sm:$0xff] %v1731_v15 }
 0x1c7   : > { %1811 = vst [vmem:[#allocation2 + $0xa0] sm:$0xff] %v1747_v61 }
 0x1c8   : > { %v1882_v35 = vlaneseq  ;;  %v1880_v17 = vld [vmem:[%s3671_s2] sm:$0xf]  ;;  %v1816_v1 = vld [vmem:[#allocation2 + $0xb0] sm:$0xff]  ;;  %v1818_v23 = vld [vmem:[#allocation2 + $0xd8] sm:$0xff] }
 0x1c9   : > { %v1817_v21 = vld [vmem:[#allocation2 + $0x1b0] sm:$0xff]  ;;  %v1819_v7 = vld [vmem:[#allocation2 + $0x18] sm:$0xff]  ;;  %v1821_v14 = vld [vmem:[#allocation2 + $0x168] sm:$0xff] }
 0x1ca   : > { %v1883_v0 = vshrl.u32 %v1882_v35, 7  ;;  %v1820_v27 = vld [vmem:[#allocation2 + $0x50] sm:$0xff]  ;;  %v1823_v30 = vld [vmem:[#allocation2 + $0x48] sm:$0xff]  ;;  %v1824_v31 = vld [vmem:[#allocation2 + $0x180] sm:$0xff] }
 0x1cb   : > { %v1822_v22 = vld [vmem:[#allocation2 + $0x130] sm:$0xff]  ;;  %v1826_v52 = vld [vmem:[#allocation2 + $0x118] sm:$0xff]  ;;  %v1828_v57 = vld [vmem:[#allocation2 + $0x120] sm:$0xff] }
 0x1cc   : > { %v1884_v40 = vsub.s32 0, %v1883_v0  ;;  %v1888_v2 = vsub.s32 1, %v1883_v0  ;;  %v1892_v6 = vsub.s32 2, %v1883_v0  ;;  %v1896_v20 = vsub.s32 3, %v1883_v0  ;;  %v1825_v42 = vld [vmem:[#allocation2 + $0x110] sm:$0xff]  ;;  %v1827_v36 = vld [vmem:[#allocation2 + $0x98] sm:$0xff] }
 0x1cd   : > { %v1829_v33 = vld [vmem:[#allocation2 + $0x150] sm:$0xff]  ;;  %v1830_v63 = vld [vmem:[#allocation2 + $0x108] sm:$0xff]  ;;  %v1831_v46 = vld [vmem:[#allocation2 + $0x60] sm:$0xff] }
 0x1ce   : > { %v3486_v8 = vrot.slane %v1880_v17, %v1884_v40  ;;  %v3488_v28 = vrot.slane %v1880_v17, %v1888_v2  ;;  %v3490_v26 = vrot.slane %v1880_v17, %v1892_v6  ;;  %v3492_v12 = vrot.slane %v1880_v17, %v1896_v20  ;;  %v1832_v54 = vld [vmem:[#allocation2 + $0xe0] sm:$0xff]  ;;  %v1833_v56 = vld [vmem:[#allocation2 + $0x188] sm:$0xff]  ;;  %v1834_v16 = vld [vmem:[#allocation2 + $0x138] sm:$0xff] }
 0x1cf   : > { %v1835_v15 = vld [vmem:[#allocation2 + $0x140] sm:$0xff] }
 0x1d0   : > { %v1902_v18 = vadd.f32 %v3486_v8, %v1816_v1  ;;  %v1903_v29 = vadd.f32 %v3488_v28, %v1817_v21  ;;  %v1904_v41 = vadd.f32 %v3490_v26, %v1818_v23  ;;  %v1905_v19 = vadd.f32 %v3492_v12, %v1819_v7  ;;  %v1836_v1 = vld [vmem:[#allocation2 + $0x80] sm:$0xff]  ;;  %v1837_v21 = vld [vmem:[#allocation2 + $0x1a8] sm:$0xff]  ;;  %v1838_v23 = vld [vmem:[#allocation2 + $0x1b8] sm:$0xff] }
 0x1d1   : > { %v1906_v34 = vadd.f32 %v3486_v8, %v1820_v27  ;;  %v1907_v43 = vadd.f32 %v3488_v28, %v1821_v14  ;;  %v1908_v24 = vadd.f32 %v3490_v26, %v1822_v22  ;;  %v1909_v25 = vadd.f32 %v3492_v12, %v1823_v30  ;;  %v1839_v7 = vld [vmem:[#allocation2 + $0x28] sm:$0xff] }
 0x1d2   : > { %v1966_v48 = vmax.f32 %v1902_v18, 0.0  ;;  %v1967_v47 = vmax.f32 %v1903_v29, 0.0  ;;  %v1968_v4 = vmax.f32 %v1904_v41, 0.0  ;;  %v1969_v53 = vmax.f32 %v1905_v19, 0.0  ;;  %v1840_v18 = vld [vmem:[#allocation2 + $0x1e8] sm:$0xff] }
 0x1d3   : > { %v1970_v45 = vmax.f32 %v1906_v34, 0.0  ;;  %v1971_v13 = vmax.f32 %v1907_v43, 0.0  ;;  %v1972_v32 = vmax.f32 %v1908_v24, 0.0  ;;  %v1973_v58 = vmax.f32 %v1909_v25, 0.0  ;;  %v1841_v43 = vld [vmem:[#allocation2 + $0xf8] sm:$0xff] }
 0x1d4   : > { %v2581_v44 = vpack.c.bf16 %v1967_v47, %v1966_v48  ;;  %v2582_v37 = vpack.c.bf16 %v1969_v53, %v1968_v4  ;;  %v1910_v49 = vadd.f32 %v3486_v8, %v1824_v31  ;;  %v1911_v62 = vadd.f32 %v3488_v28, %v1825_v42  ;;  %v1842_v48 = vld [vmem:[#allocation2 + $0x160] sm:$0xff]  ;;  %v1843_v47 = vld [vmem:[#allocation2 + $0x30] sm:$0xff] }
 0x1d5   : > { %v2583_v50 = vpack.c.bf16 %v1971_v13, %v1970_v45  ;;  %v2584_v3 = vpack.c.bf16 %v1973_v58, %v1972_v32  ;;  %v1912_v5 = vadd.f32 %v3490_v26, %v1826_v52  ;;  %v1913_v38 = vadd.f32 %v3492_v12, %v1827_v36  ;;  %v1844_v45 = vld [vmem:[#allocation2 + $0x1e0] sm:$0xff] }
 0x1d6   : > { %2222 = vst [vmem:[%s3672_s3] sm:$0xff] %v2581_v44  ;;  %2223 = vst [vmem:[%s3672_s3 + $0x8] sm:$0xff] %v2582_v37  ;;  %v1974_v51 = vmax.f32 %v1910_v49, 0.0  ;;  %v1975_v55 = vmax.f32 %v1911_v62, 0.0  ;;  %v1914_v9 = vadd.f32 %v3486_v8, %v1828_v57  ;;  %v1915_v10 = vadd.f32 %v3488_v28, %v1829_v33  ;;  %v1845_v13 = vld [vmem:[#allocation2] sm:$0xff]  ;;  %v1846_v44 = vld [vmem:[#allocation2 + $0xf0] sm:$0xff] }
 0x1d7   : > { %2224 = vst [vmem:[%s3672_s3 + $0x10] sm:$0xff] %v2583_v50  ;;  %2225 = vst [vmem:[%s3672_s3 + $0x18] sm:$0xff] %v2584_v3  ;;  %v1976_v11 = vmax.f32 %v1912_v5, 0.0  ;;  %v1977_v39 = vmax.f32 %v1913_v38, 0.0  ;;  %v1916_v59 = vadd.f32 %v3490_v26, %v1830_v63  ;;  %v1917_v60 = vadd.f32 %v3492_v12, %v1831_v46  ;;  %v1847_v37 = vld [vmem:[#allocation2 + $0x8] sm:$0xff] }
 0x1d8   : > { %v2585_v61 = vpack.c.bf16 %v1975_v55, %v1974_v51  ;;  %v1978_v35 = vmax.f32 %v1914_v9, 0.0  ;;  %v1979_v0 = vmax.f32 %v1915_v10, 0.0  ;;  %v1918_v17 = vadd.f32 %v3486_v8, %v1832_v54  ;;  %v1848_v50 = vld [vmem:[#allocation2 + $0x148] sm:$0xff]  ;;  %v1849_v51 = vld [vmem:[#allocation2 + $0x1d0] sm:$0xff] }
 0x1d9   : > { %v2586_v40 = vpack.c.bf16 %v1977_v39, %v1976_v11  ;;  %v1980_v2 = vmax.f32 %v1916_v59, 0.0  ;;  %v1981_v6 = vmax.f32 %v1917_v60, 0.0  ;;  %v1919_v20 = vadd.f32 %v3488_v28, %v1833_v56  ;;  %v1850_v11 = vld [vmem:[#allocation2 + $0x100] sm:$0xff]  ;;  %v1851_v39 = vld [vmem:[#allocation2 + $0xc8] sm:$0xff] }
 0x1da   : > { %2226 = vst [vmem:[%s3672_s3 + $0x20] sm:$0xff] %v2585_v61  ;;  %v2587_v27 = vpack.c.bf16 %v1979_v0, %v1978_v35  ;;  %v1982_v14 = vmax.f32 %v1918_v17, 0.0  ;;  %v1920_v22 = vadd.f32 %v3490_v26, %v1834_v16  ;;  %v1921_v30 = vadd.f32 %v3492_v12, %v1835_v15  ;;  %v1852_v61 = vld [vmem:[#allocation2 + $0x40] sm:$0xff]  ;;  %v1853_v35 = vld [vmem:[#allocation2 + $0x1f8] sm:$0xff] }
 0x1db   : > { %2227 = vst [vmem:[%s3672_s3 + $0x28] sm:$0xff] %v2586_v40  ;;  %v2588_v29 = vpack.c.bf16 %v1981_v6, %v1980_v2  ;;  %v1983_v41 = vmax.f32 %v1919_v20, 0.0  ;;  %v1922_v19 = vadd.f32 %v3486_v8, %v1836_v1  ;;  %v1923_v34 = vadd.f32 %v3488_v28, %v1837_v21  ;;  %v1854_v40 = vld [vmem:[#allocation2 + $0x20] sm:$0xff]  ;;  %v1855_v2 = vld [vmem:[#allocation2 + $0x128] sm:$0xff] }
 0x1dc   : > { %2228 = vst [vmem:[%s3672_s3 + $0x30] sm:$0xff] %v2587_v27  ;;  %v1984_v24 = vmax.f32 %v1920_v22, 0.0  ;;  %v1985_v25 = vmax.f32 %v1921_v30, 0.0  ;;  %v1924_v31 = vadd.f32 %v3490_v26, %v1838_v23  ;;  %v1925_v42 = vadd.f32 %v3492_v12, %v1839_v7  ;;  %v1856_v27 = vld [vmem:[#allocation2 + $0x1a0] sm:$0xff] }
 0x1dd   : > { %2229 = vst [vmem:[%s3672_s3 + $0x38] sm:$0xff] %v2588_v29  ;;  %v2589_v4 = vpack.c.bf16 %v1983_v41, %v1982_v14  ;;  %v1986_v53 = vmax.f32 %v1922_v19, 0.0  ;;  %v1987_v52 = vmax.f32 %v1923_v34, 0.0  ;;  %v1926_v36 = vadd.f32 %v3486_v8, %v1840_v18  ;;  %v1857_v29 = vld [vmem:[#allocation2 + $0x1f0] sm:$0xff] }
 0x1de   : > { %v2590_v32 = vpack.c.bf16 %v1985_v25, %v1984_v24  ;;  %v1988_v58 = vmax.f32 %v1924_v31, 0.0  ;;  %v1989_v57 = vmax.f32 %v1925_v42, 0.0  ;;  %v1927_v33 = vadd.f32 %v3488_v28, %v1841_v43  ;;  %v1858_v24 = vld [vmem:[#allocation2 + $0xe8] sm:$0xff]  ;;  %v1859_v25 = vld [vmem:[#allocation2 + $0x78] sm:$0xff] }
 0x1df   : > { %2230 = vst [vmem:[%s3672_s3 + $0x40] sm:$0xff] %v2589_v4  ;;  %v2591_v49 = vpack.c.bf16 %v1987_v52, %v1986_v53  ;;  %v1990_v62 = vmax.f32 %v1926_v36, 0.0  ;;  %v1928_v63 = vadd.f32 %v3490_v26, %v1842_v48  ;;  %v1929_v46 = vadd.f32 %v3492_v12, %v1843_v47  ;;  %v1860_v4 = vld [vmem:[#allocation2 + $0x70] sm:$0xff] }
 0x1e0   : > { %2231 = vst [vmem:[%s3672_s3 + $0x48] sm:$0xff] %v2590_v32  ;;  %v2592_v3 = vpack.c.bf16 %v1989_v57, %v1988_v58  ;;  %v1991_v5 = vmax.f32 %v1927_v33, 0.0  ;;  %v1930_v38 = vadd.f32 %v3486_v8, %v1844_v45  ;;  %v1931_v54 = vadd.f32 %v3488_v28, %v1845_v13  ;;  %v1861_v53 = vld [vmem:[#allocation2 + $0x90] sm:$0xff]  ;;  %v1862_v32 = vld [vmem:[#allocation2 + $0x1d8] sm:$0xff] }
 0x1e1   : > { %2232 = vst [vmem:[%s3672_s3 + $0x50] sm:$0xff] %v2591_v49  ;;  %v1992_v55 = vmax.f32 %v1928_v63, 0.0  ;;  %v1993_v9 = vmax.f32 %v1929_v46, 0.0  ;;  %v1932_v10 = vadd.f32 %v3490_v26, %v1846_v44  ;;  %v1933_v56 = vadd.f32 %v3492_v12, %v1847_v37  ;;  %v1863_v58 = vld [vmem:[#allocation2 + $0xd0] sm:$0xff]  ;;  %v1864_v49 = vld [vmem:[#allocation2 + $0xb8] sm:$0xff] }
 0x1e2   : > { %2233 = vst [vmem:[%s3672_s3 + $0x58] sm:$0xff] %v2592_v3  ;;  %v2593_v59 = vpack.c.bf16 %v1991_v5, %v1990_v62  ;;  %v1994_v60 = vmax.f32 %v1930_v38, 0.0  ;;  %v1995_v16 = vmax.f32 %v1931_v54, 0.0  ;;  %v1934_v15 = vadd.f32 %v3486_v8, %v1848_v50  ;;  %v1865_v3 = vld [vmem:[#allocation2 + $0x88] sm:$0xff] }
 0x1e3   : > { %v2594_v0 = vpack.c.bf16 %v1993_v9, %v1992_v55  ;;  %v1996_v17 = vmax.f32 %v1932_v10, 0.0  ;;  %v1997_v1 = vmax.f32 %v1933_v56, 0.0  ;;  %v1935_v21 = vadd.f32 %v3488_v28, %v1849_v51  ;;  %v1866_v55 = vld [vmem:[#allocation2 + $0xa8] sm:$0xff] }
 0x1e4   : > { %2234 = vst [vmem:[%s3672_s3 + $0x60] sm:$0xff] %v2593_v59  ;;  %v2595_v6 = vpack.c.bf16 %v1995_v16, %v1994_v60  ;;  %v1998_v20 = vmax.f32 %v1934_v15, 0.0  ;;  %v1936_v23 = vadd.f32 %v3490_v26, %v1850_v11  ;;  %v1937_v7 = vadd.f32 %v3492_v12, %v1851_v39  ;;  %v1867_v9 = vld [vmem:[#allocation2 + $0x1c8] sm:$0xff]  ;;  %v1868_v59 = vld [vmem:[#allocation2 + $0x170] sm:$0xff]  ;;  %v1869_v60 = vld [vmem:[#allocation2 + $0x178] sm:$0xff] }
 0x1e5   : > { %2235 = vst [vmem:[%s3672_s3 + $0x68] sm:$0xff] %v2594_v0  ;;  %v2596_v14 = vpack.c.bf16 %v1997_v1, %v1996_v17  ;;  %v1999_v22 = vmax.f32 %v1935_v21, 0.0  ;;  %v1938_v30 = vadd.f32 %v3486_v8, %v1852_v61  ;;  %v1939_v18 = vadd.f32 %v3488_v28, %v1853_v35  ;;  %v1870_v0 = vld [vmem:[#allocation2 + $0x68] sm:$0xff]  ;;  %v1871_v17 = vld [vmem:[#allocation2 + $0x190] sm:$0xff] }
 0x1e6   : > { %2236 = vst [vmem:[%s3672_s3 + $0x70] sm:$0xff] %v2595_v6  ;;  %v2000_v41 = vmax.f32 %v1936_v23, 0.0  ;;  %v2001_v19 = vmax.f32 %v1937_v7, 0.0  ;;  %v1940_v34 = vadd.f32 %v3490_v26, %v1854_v40  ;;  %v1941_v43 = vadd.f32 %v3492_v12, %v1855_v2  ;;  %v1872_v6 = vld [vmem:[#allocation2 + $0x198] sm:$0xff] }
 0x1e7   : > { %2237 = vst [vmem:[%s3672_s3 + $0x78] sm:$0xff] %v2596_v14  ;;  %v2597_v31 = vpack.c.bf16 %v1999_v22, %v1998_v20  ;;  %v2002_v42 = vmax.f32 %v1938_v30, 0.0  ;;  %v2003_v48 = vmax.f32 %v1939_v18, 0.0  ;;  %v1942_v47 = vadd.f32 %v3486_v8, %v1856_v27  ;;  %v1873_v14 = vld [vmem:[#allocation2 + $0x38] sm:$0xff] }
 0x1e8   : > { %v2598_v52 = vpack.c.bf16 %v2001_v19, %v2000_v41  ;;  %v2004_v36 = vmax.f32 %v1940_v34, 0.0  ;;  %v2005_v45 = vmax.f32 %v1941_v43, 0.0  ;;  %v1943_v13 = vadd.f32 %v3488_v28, %v1857_v29  ;;  %v1874_v41 = vld [vmem:[#allocation2 + $0xc0] sm:$0xff] }
 0x1e9   : > { %2238 = vst [vmem:[%s3672_s3 + $0x80] sm:$0xff] %v2597_v31  ;;  %v2599_v57 = vpack.c.bf16 %v2003_v48, %v2002_v42  ;;  %v2006_v33 = vmax.f32 %v1942_v47, 0.0  ;;  %v1944_v44 = vadd.f32 %v3490_v26, %v1858_v24  ;;  %v1945_v37 = vadd.f32 %v3492_v12, %v1859_v25  ;;  %v1875_v19 = vld [vmem:[#allocation2 + $0x1c0] sm:$0xff]  ;;  %v1876_v31 = vld [vmem:[#allocation2 + $0x158] sm:$0xff]  ;;  %v1877_v42 = vld [vmem:[#allocation2 + $0x10] sm:$0xff] }
 0x1ea   : > { %2239 = vst [vmem:[%s3672_s3 + $0x88] sm:$0xff] %v2598_v52  ;;  %v2600_v62 = vpack.c.bf16 %v2005_v45, %v2004_v36  ;;  %v2007_v63 = vmax.f32 %v1943_v13, 0.0  ;;  %v1946_v46 = vadd.f32 %v3486_v8, %v1860_v4  ;;  %v1947_v50 = vadd.f32 %v3488_v28, %v1861_v53  ;;  %v1878_v52 = vld [vmem:[#allocation2 + $0x58] sm:$0xff]  ;;  %v1879_v36 = vld [vmem:[#allocation2 + $0xa0] sm:$0xff] }
 0x1eb   : > { %2240 = vst [vmem:[%s3672_s3 + $0x90] sm:$0xff] %v2599_v57  ;;  %v2008_v5 = vmax.f32 %v1944_v44, 0.0  ;;  %v2009_v38 = vmax.f32 %v1945_v37, 0.0  ;;  %v1948_v54 = vadd.f32 %v3490_v26, %v1862_v32  ;;  %v1949_v51 = vadd.f32 %v3492_v12, %v1863_v58 }
 0x1ec   : > { %2241 = vst [vmem:[%s3672_s3 + $0x98] sm:$0xff] %v2600_v62  ;;  %v2601_v10 = vpack.c.bf16 %v2007_v63, %v2006_v33  ;;  %v2010_v56 = vmax.f32 %v1946_v46, 0.0  ;;  %v2011_v11 = vmax.f32 %v1947_v50, 0.0  ;;  %v1950_v39 = vadd.f32 %v3486_v8, %v1864_v49 }
 0x1ed   : > { %v2602_v16 = vpack.c.bf16 %v2009_v38, %v2008_v5  ;;  %v2012_v15 = vmax.f32 %v1948_v54, 0.0  ;;  %v2013_v61 = vmax.f32 %v1949_v51, 0.0  ;;  %v1951_v35 = vadd.f32 %v3488_v28, %v1865_v3 }
 0x1ee   : > { %2242 = vst [vmem:[%s3672_s3 + $0xa0] sm:$0xff] %v2601_v10  ;;  %v2603_v1 = vpack.c.bf16 %v2011_v11, %v2010_v56  ;;  %v2014_v21 = vmax.f32 %v1950_v39, 0.0  ;;  %v1952_v40 = vadd.f32 %v3490_v26, %v1866_v55  ;;  %v1953_v2 = vadd.f32 %v3492_v12, %v1867_v9 }
 0x1ef   : > { %2243 = vst [vmem:[%s3672_s3 + $0xa8] sm:$0xff] %v2602_v16  ;;  %v2604_v20 = vpack.c.bf16 %v2013_v61, %v2012_v15  ;;  %v2015_v23 = vmax.f32 %v1951_v35, 0.0  ;;  %v1954_v7 = vadd.f32 %v3486_v8, %v1868_v59  ;;  %v1955_v27 = vadd.f32 %v3488_v28, %v1869_v60 }
 0x1f0   : > { %2244 = vst [vmem:[%s3672_s3 + $0xb0] sm:$0xff] %v2603_v1  ;;  %v2016_v22 = vmax.f32 %v1952_v40, 0.0  ;;  %v2017_v30 = vmax.f32 %v1953_v2, 0.0  ;;  %v1956_v18 = vadd.f32 %v3490_v26, %v1870_v0  ;;  %v1957_v29 = vadd.f32 %v3492_v12, %v1871_v17 }
 0x1f1   : > { %2245 = vst [vmem:[%s3672_s3 + $0xb8] sm:$0xff] %v2604_v20  ;;  %v2605_v34 = vpack.c.bf16 %v2015_v23, %v2014_v21  ;;  %v2018_v43 = vmax.f32 %v1954_v7, 0.0  ;;  %v2019_v24 = vmax.f32 %v1955_v27, 0.0  ;;  %v1958_v25 = vadd.f32 %v3486_v8, %v1872_v6 }
 0x1f2   : > { %v2606_v48 = vpack.c.bf16 %v2017_v30, %v2016_v22  ;;  %v2020_v47 = vmax.f32 %v1956_v18, 0.0  ;;  %v2021_v4 = vmax.f32 %v1957_v29, 0.0  ;;  %v1959_v53 = vadd.f32 %v3488_v28, %v1873_v14 }
 0x1f3   : > { %2246 = vst [vmem:[%s3672_s3 + $0xc0] sm:$0xff] %v2605_v34  ;;  %v2607_v45 = vpack.c.bf16 %v2019_v24, %v2018_v43  ;;  %v2022_v13 = vmax.f32 %v1958_v25, 0.0  ;;  %v1960_v32 = vadd.f32 %v3490_v26, %v1874_v41  ;;  %v1961_v58 = vadd.f32 %v3492_v12, %v1875_v19 }
 0x1f4   : > { %2247 = vst [vmem:[%s3672_s3 + $0xc8] sm:$0xff] %v2606_v48  ;;  %v2608_v57 = vpack.c.bf16 %v2021_v4, %v2020_v47  ;;  %v2023_v33 = vmax.f32 %v1959_v53, 0.0  ;;  %v1962_v44 = vadd.f32 %v3486_v8, %v1876_v31  ;;  %v1963_v37 = vadd.f32 %v3488_v28, %v1877_v42 }
 0x1f5   : > { %2248 = vst [vmem:[%s3672_s3 + $0xd0] sm:$0xff] %v2607_v45  ;;  %v2024_v49 = vmax.f32 %v1960_v32, 0.0  ;;  %v2025_v62 = vmax.f32 %v1961_v58, 0.0  ;;  %v1964_v63 = vadd.f32 %v3490_v26, %v1878_v52  ;;  %v1965_v46 = vadd.f32 %v3492_v12, %v1879_v36 }
 0x1f6   : > { %2249 = vst [vmem:[%s3672_s3 + $0xd8] sm:$0xff] %v2608_v57  ;;  %v2609_v50 = vpack.c.bf16 %v2023_v33, %v2022_v13  ;;  %v2026_v3 = vmax.f32 %v1962_v44, 0.0  ;;  %v2027_v5 = vmax.f32 %v1963_v37, 0.0 }
 0x1f7   : > { %v2610_v8 = vpack.c.bf16 %v2025_v62, %v2024_v49  ;;  %v2028_v38 = vmax.f32 %v1964_v63, 0.0  ;;  %v2029_v28 = vmax.f32 %v1965_v46, 0.0 }
 0x1f8   : > { %2250 = vst [vmem:[%s3672_s3 + $0xe0] sm:$0xff] %v2609_v50  ;;  %v2611_v54 = vpack.c.bf16 %v2027_v5, %v2026_v3 }
 0x1f9   : > { %2251 = vst [vmem:[%s3672_s3 + $0xe8] sm:$0xff] %v2610_v8  ;;  %v2612_v26 = vpack.c.bf16 %v2029_v28, %v2028_v38 }
 0x1fa   : > { %2252 = vst [vmem:[%s3672_s3 + $0xf0] sm:$0xff] %v2611_v54 }
 0x1fb   : > { %2253 = vst [vmem:[%s3672_s3 + $0xf8] sm:$0xff] %v2612_v26 }
 0x1fc PF: > { %s13_s16 = sadd.s32 1, %s2887_s16   ;;  %s3673_s12 = smov %s2875_s13 }
 0x1fd   : > { %p10_p12 = scmp.ge.s32.totalorder %s13_s16, 20   ;;  %s3674_s13 = smov %s2946_s20 }
 0x1fe   : > { %s3675_s14 = smov %s2883_s15  ;;  %s3676_s15 = smov %s3678_s17 }
 0x1ff   :  { %12 = sbr.rel (!%p10_p12) target bundleno = 3 (0x3), region = 113 }

// kernel: forward.21
= control target key start
LH: loop header
LB: loop body
LE: loop exit
PB: predicated region body
PF: predicated region fallthrough
CT: control target
= control target key end

     0   :  { %s2056_s1 = inlined_call_operand.vmem [shape: bf16[256,512], index: 1, kind: input, shape index: {}]   ;;  %s2057_s0 = inlined_call_operand.vmem [shape: bf16[128,256], index: 0, kind: input, shape index: {}]   ;;  %s2058_s2 = inlined_call_operand.vmem [shape: f32[1,512], index: 2, kind: input, shape index: {}]   ;;  %s2059_s3 = inlined_call_operand.vmem [shape: bf16[128,512], index: 3, kind: output, shape index: {}]  }
   0x1   :  { %v1505_v0 = vld [vmem:[%s2056_s1 + $0xe4] ss:$16 sps:$4 sm:$0xff]   ;;  %v1507_v1 = vld [vmem:[%s2056_s1 + $0xec] ss:$16 sps:$4 sm:$0xff]   ;;  %v1509_v2 = vld [vmem:[%s2056_s1 + $0xe0] ss:$16 sps:$4 sm:$0xff]  }
   0x2   :  { %626 = vmatprep.subr.bf16.mxu0 %v1505_v0  ;;  %v1510_v3 = vld [vmem:[%s2056_s1 + $0xe8] ss:$16 sps:$4 sm:$0xff]   ;;  %739 = vmatprep.subr.bf16.mxu1 %v1507_v1  ;;  %v1511_v4 = vld [vmem:[%s2056_s1 + $0xc4] ss:$16 sps:$4 sm:$0xff]   ;;  %v1513_v5 = vld [vmem:[%s2056_s1 + $0xcc] ss:$16 sps:$4 sm:$0xff]  }
   0x3   :  { %627 = vmatpush1.bf16.msra.mxu0 %v1509_v2  ;;  %740 = vmatpush1.bf16.msra.mxu1 %v1510_v3  ;;  %v1515_v6 = vld [vmem:[%s2056_s1 + $0xc0] ss:$16 sps:$4 sm:$0xff]   ;;  %v1516_v7 = vld [vmem:[%s2056_s1 + $0xc8] ss:$16 sps:$4 sm:$0xff]   ;;  %v1517_v8 = vld [vmem:[%s2056_s1 + $0xa4] ss:$16 sps:$4 sm:$0xff]  }
   0x4   :  { %628 = vmatprep.subr.bf16.mxu0 %v1511_v4  ;;  %741 = vmatprep.subr.bf16.mxu1 %v1513_v5  ;;  %v1519_v9 = vld [vmem:[%s2056_s1 + $0xac] ss:$16 sps:$4 sm:$0xff]   ;;  %v1521_v10 = vld [vmem:[%s2056_s1 + $0xa0] ss:$16 sps:$4 sm:$0xff]   ;;  %v1522_v11 = vld [vmem:[%s2056_s1 + $0xa8] ss:$16 sps:$4 sm:$0xff]  }
   0x5   :  { %v1523_v12 = vld [vmem:[%s2056_s1 + $0x84] ss:$16 sps:$4 sm:$0xff]   ;;  %v1525_v13 = vld [vmem:[%s2056_s1 + $0x8c] ss:$16 sps:$4 sm:$0xff]   ;;  %v1527_v14 = vld [vmem:[%s2056_s1 + $0x80] ss:$16 sps:$4 sm:$0xff]  }
   0x6   :  { %v1528_v15 = vld [vmem:[%s2056_s1 + $0x88] ss:$16 sps:$4 sm:$0xff]   ;;  %v1529_v16 = vld [vmem:[%s2056_s1 + $0x64] ss:$16 sps:$4 sm:$0xff]   ;;  %v1531_v17 = vld [vmem:[%s2056_s1 + $0x6c] ss:$16 sps:$4 sm:$0xff]  }
   0x7   :  { %629 = vmatpush1.bf16.msra.mxu0 %v1515_v6  ;;  %742 = vmatpush1.bf16.msra.mxu1 %v1516_v7  ;;  %v1533_v18 = vld [vmem:[%s2056_s1 + $0x60] ss:$16 sps:$4 sm:$0xff]   ;;  %v1534_v19 = vld [vmem:[%s2056_s1 + $0x68] ss:$16 sps:$4 sm:$0xff]   ;;  %v1535_v20 = vld [vmem:[%s2056_s1 + $0x44] ss:$16 sps:$4 sm:$0xff]  }
   0x8   :  { %630 = vmatprep.subr.bf16.mxu0 %v1517_v8  ;;  %743 = vmatprep.subr.bf16.mxu1 %v1519_v9  ;;  %v1537_v21 = vld [vmem:[%s2056_s1 + $0x4c] ss:$16 sps:$4 sm:$0xff]   ;;  %v1539_v22 = vld [vmem:[%s2056_s1 + $0x40] ss:$16 sps:$4 sm:$0xff]   ;;  %v1540_v23 = vld [vmem:[%s2056_s1 + $0x48] ss:$16 sps:$4 sm:$0xff]  }
   0x9   :  { %v1541_v24 = vld [vmem:[%s2056_s1 + $0x24] ss:$16 sps:$4 sm:$0xff]   ;;  %v1543_v25 = vld [vmem:[%s2056_s1 + $0x2c] ss:$16 sps:$4 sm:$0xff]   ;;  %v1545_v26 = vld [vmem:[%s2056_s1 + $0x20] ss:$16 sps:$4 sm:$0xff]  }
   0xa   :  { %v1546_v27 = vld [vmem:[%s2056_s1 + $0x28] ss:$16 sps:$4 sm:$0xff]   ;;  %v1547_v28 = vld [vmem:[%s2056_s1 + $0x4] ss:$16 sps:$4 sm:$0xff]   ;;  %v1549_v29 = vld [vmem:[%s2056_s1 + $0xc] ss:$16 sps:$4 sm:$0xff]  }
   0xb   :  { %631 = vmatpush1.bf16.msra.mxu0 %v1521_v10  ;;  %744 = vmatpush1.bf16.msra.mxu1 %v1522_v11  ;;  %v1551_v30 = vld [vmem:[%s2056_s1] ss:$16 sps:$4 sm:$0xff]   ;;  %v1552_v31 = vld [vmem:[%s2056_s1 + $0x8] ss:$16 sps:$4 sm:$0xff]   ;;  %v1553_v32 = vld [vmem:[%s2056_s1 + $0x1e4] ss:$16 sps:$4 sm:$0xff]  }
   0xc   :  { %632 = vmatprep.subr.bf16.mxu0 %v1523_v12  ;;  %745 = vmatprep.subr.bf16.mxu1 %v1525_v13  ;;  %v1555_v33 = vld [vmem:[%s2056_s1 + $0x1ec] ss:$16 sps:$4 sm:$0xff]   ;;  %v1557_v34 = vld [vmem:[%s2056_s1 + $0x1e0] ss:$16 sps:$4 sm:$0xff]   ;;  %v1558_v35 = vld [vmem:[%s2056_s1 + $0x1e8] ss:$16 sps:$4 sm:$0xff]  }
   0xd   :  { %v1559_v36 = vld [vmem:[%s2056_s1 + $0x1c4] ss:$16 sps:$4 sm:$0xff]   ;;  %v1561_v37 = vld [vmem:[%s2056_s1 + $0x1cc] ss:$16 sps:$4 sm:$0xff]   ;;  %v1563_v38 = vld [vmem:[%s2056_s1 + $0x1c0] ss:$16 sps:$4 sm:$0xff]  }
   0xe   :  { %v1564_v39 = vld [vmem:[%s2056_s1 + $0x1c8] ss:$16 sps:$4 sm:$0xff]   ;;  %v1565_v40 = vld [vmem:[%s2056_s1 + $0x1a4] ss:$16 sps:$4 sm:$0xff]   ;;  %v1567_v41 = vld [vmem:[%s2056_s1 + $0x1ac] ss:$16 sps:$4 sm:$0xff]  }
   0xf   :  { %633 = vmatpush1.bf16.msra.mxu0 %v1527_v14  ;;  %746 = vmatpush1.bf16.msra.mxu1 %v1528_v15  ;;  %v1569_v42 = vld [vmem:[%s2056_s1 + $0x1a0] ss:$16 sps:$4 sm:$0xff]   ;;  %v1570_v43 = vld [vmem:[%s2056_s1 + $0x1a8] ss:$16 sps:$4 sm:$0xff]   ;;  %v1571_v44 = vld [vmem:[%s2056_s1 + $0x184] ss:$16 sps:$4 sm:$0xff]  }
  0x10   :  { %634 = vmatprep.subr.bf16.mxu0 %v1529_v16  ;;  %747 = vmatprep.subr.bf16.mxu1 %v1531_v17  ;;  %v1573_v45 = vld [vmem:[%s2056_s1 + $0x18c] ss:$16 sps:$4 sm:$0xff]   ;;  %v1575_v46 = vld [vmem:[%s2056_s1 + $0x180] ss:$16 sps:$4 sm:$0xff]   ;;  %v1576_v47 = vld [vmem:[%s2056_s1 + $0x188] ss:$16 sps:$4 sm:$0xff]   ;;  %v1049_v16 = vlaneseq }
  0x11   :  { %v1603_v48 = vld [vmem:[%s2057_s0 + $0x4] ss:$8 sps:$4 sm:$0xff]   ;;  %v1581_v51 = vld [vmem:[%s2056_s1 + $0x160] ss:$16 sps:$4 sm:$0xff]   ;;  %v1582_v52 = vld [vmem:[%s2056_s1 + $0x168] ss:$16 sps:$4 sm:$0xff]  }
  0x12   :  { %v1577_v49 = vld [vmem:[%s2056_s1 + $0x164] ss:$16 sps:$4 sm:$0xff]   ;;  %v1579_v50 = vld [vmem:[%s2056_s1 + $0x16c] ss:$16 sps:$4 sm:$0xff]   ;;  %658 = vmatprep.mubr.bf16.mxu0 %v1603_v48  ;;  %771 = vmatprep.mubr.bf16.mxu1 %v1603_v48  ;;  %v1587_v55 = vld [vmem:[%s2056_s1 + $0x140] ss:$16 sps:$4 sm:$0xff]  }
  0x13   :  { %635 = vmatpush1.bf16.msra.mxu0 %v1533_v18  ;;  %748 = vmatpush1.bf16.msra.mxu1 %v1534_v19  ;;  %v1583_v53 = vld [vmem:[%s2056_s1 + $0x144] ss:$16 sps:$4 sm:$0xff]   ;;  %v1585_v54 = vld [vmem:[%s2056_s1 + $0x14c] ss:$16 sps:$4 sm:$0xff]   ;;  %v1588_v56 = vld [vmem:[%s2056_s1 + $0x148] ss:$16 sps:$4 sm:$0xff]  }
  0x14   :  { %636 = vmatprep.subr.bf16.mxu0 %v1535_v20  ;;  %749 = vmatprep.subr.bf16.mxu1 %v1537_v21  ;;  %v1589_v57 = vld [vmem:[%s2056_s1 + $0x124] ss:$16 sps:$4 sm:$0xff]   ;;  %v1591_v58 = vld [vmem:[%s2056_s1 + $0x12c] ss:$16 sps:$4 sm:$0xff]   ;;  %v1593_v59 = vld [vmem:[%s2056_s1 + $0x120] ss:$16 sps:$4 sm:$0xff]  }
  0x15   :  { %v1594_v60 = vld [vmem:[%s2056_s1 + $0x128] ss:$16 sps:$4 sm:$0xff]   ;;  %v1595_v61 = vld [vmem:[%s2056_s1 + $0x104] ss:$16 sps:$4 sm:$0xff]   ;;  %v1597_v62 = vld [vmem:[%s2056_s1 + $0x10c] ss:$16 sps:$4 sm:$0xff]  }
  0x16   :  { %v1599_v63 = vld [vmem:[%s2056_s1 + $0x100] ss:$16 sps:$4 sm:$0xff]   ;;  %v1600_v0 = vld [vmem:[%s2056_s1 + $0x108] ss:$16 sps:$4 sm:$0xff]   ;;  %v1604_v2 = vld [vmem:[%s2057_s0 + $0x14] ss:$8 sps:$4 sm:$0xff]  }
  0x17   :  { %637 = vmatpush1.bf16.msra.mxu0 %v1539_v22  ;;  %750 = vmatpush1.bf16.msra.mxu1 %v1540_v23  ;;  %v1601_v1 = vld [vmem:[%s2057_s0] ss:$8 sps:$4 sm:$0xff]   ;;  %v1606_v3 = vld [vmem:[%s2057_s0 + $0x10] ss:$8 sps:$4 sm:$0xff]   ;;  %v1607_v4 = vld [vmem:[%s2057_s0 + $0x24] ss:$8 sps:$4 sm:$0xff]  }
  0x18   :  { %638 = vmatprep.subr.bf16.mxu0 %v1541_v24  ;;  %751 = vmatprep.subr.bf16.mxu1 %v1543_v25  ;;  %v1609_v5 = vld [vmem:[%s2057_s0 + $0x20] ss:$8 sps:$4 sm:$0xff]   ;;  %v1610_v6 = vld [vmem:[%s2057_s0 + $0x34] ss:$8 sps:$4 sm:$0xff]   ;;  %v1612_v7 = vld [vmem:[%s2057_s0 + $0x30] ss:$8 sps:$4 sm:$0xff]  }
  0x19   :  { %v1613_v8 = vld [vmem:[%s2057_s0 + $0x44] ss:$8 sps:$4 sm:$0xff]   ;;  %v1615_v9 = vld [vmem:[%s2057_s0 + $0x40] ss:$8 sps:$4 sm:$0xff]   ;;  %v1616_v10 = vld [vmem:[%s2057_s0 + $0x54] ss:$8 sps:$4 sm:$0xff]  }
  0x1a   :  { %v1618_v11 = vld [vmem:[%s2057_s0 + $0x50] ss:$8 sps:$4 sm:$0xff]   ;;  %v1619_v12 = vld [vmem:[%s2057_s0 + $0x64] ss:$8 sps:$4 sm:$0xff]   ;;  %v1621_v13 = vld [vmem:[%s2057_s0 + $0x60] ss:$8 sps:$4 sm:$0xff]  }
  0x1b   :  { %639 = vmatpush1.bf16.msra.mxu0 %v1545_v26  ;;  %752 = vmatpush1.bf16.msra.mxu1 %v1546_v27  ;;  %v1622_v14 = vld [vmem:[%s2057_s0 + $0x74] ss:$8 sps:$4 sm:$0xff]   ;;  %v1624_v15 = vld [vmem:[%s2057_s0 + $0x70] ss:$8 sps:$4 sm:$0xff]   ;;  %v1050_v17 = vshrl.u32 %v1049_v16, 7 }
  0x1c   :  { %640 = vmatprep.subr.bf16.mxu0 %v1547_v28  ;;  %753 = vmatprep.subr.bf16.mxu1 %v1549_v29  ;;  %v1047_v22 = vld [vmem:[%s2058_s2] sm:$0xf] }
  0x1d   :  { %v1051_v18 = vsub.s32 0, %v1050_v17  ;;  %v1059_v19 = vsub.s32 2, %v1050_v17  ;;  %v1055_v20 = vsub.s32 1, %v1050_v17  ;;  %v1063_v21 = vsub.s32 3, %v1050_v17 }
  0x1f   :  { %641 = vmatpush1.bf16.msra.mxu0 %v1551_v30  ;;  %754 = vmatpush1.bf16.msra.mxu1 %v1552_v31  ;;  %v1888_v23 = vrot.slane %v1047_v22, %v1051_v18  ;;  %v1890_v24 = vrot.slane %v1047_v22, %v1059_v19  ;;  %v1892_v25 = vrot.slane %v1047_v22, %v1055_v20 }
  0x20   :  { %642 = vmatprep.subr.bf16.mxu0 %v1553_v32  ;;  %755 = vmatprep.subr.bf16.mxu1 %v1555_v33  ;;  %v1894_v26 = vrot.slane %v1047_v22, %v1063_v21 }
  0x23   :  { %643 = vmatpush2.bf16.msra.mxu0 %v1557_v34  ;;  %756 = vmatpush2.bf16.msra.mxu1 %v1558_v35 }
  0x24   :  { %644 = vmatprep.subr.bf16.mxu0 %v1559_v36  ;;  %757 = vmatprep.subr.bf16.mxu1 %v1561_v37 }
  0x27   :  { %645 = vmatpush2.bf16.msra.mxu0 %v1563_v38  ;;  %758 = vmatpush2.bf16.msra.mxu1 %v1564_v39 }
  0x28   :  { %646 = vmatprep.subr.bf16.mxu0 %v1565_v40  ;;  %759 = vmatprep.subr.bf16.mxu1 %v1567_v41 }
  0x2b   :  { %647 = vmatpush2.bf16.msra.mxu0 %v1569_v42  ;;  %760 = vmatpush2.bf16.msra.mxu1 %v1570_v43 }
  0x2c   :  { %648 = vmatprep.subr.bf16.mxu0 %v1571_v44  ;;  %761 = vmatprep.subr.bf16.mxu1 %v1573_v45 }
  0x2f   :  { %649 = vmatpush2.bf16.msra.mxu0 %v1575_v46  ;;  %762 = vmatpush2.bf16.msra.mxu1 %v1576_v47 }
  0x30   :  { %650 = vmatprep.subr.bf16.mxu0 %v1577_v49  ;;  %763 = vmatprep.subr.bf16.mxu1 %v1579_v50 }
  0x33   :  { %651 = vmatpush2.bf16.msra.mxu0 %v1581_v51  ;;  %764 = vmatpush2.bf16.msra.mxu1 %v1582_v52 }
  0x34   :  { %652 = vmatprep.subr.bf16.mxu0 %v1583_v53  ;;  %765 = vmatprep.subr.bf16.mxu1 %v1585_v54 }
  0x37   :  { %653 = vmatpush2.bf16.msra.mxu0 %v1587_v55  ;;  %766 = vmatpush2.bf16.msra.mxu1 %v1588_v56 }
  0x38   :  { %654 = vmatprep.subr.bf16.mxu0 %v1589_v57  ;;  %767 = vmatprep.subr.bf16.mxu1 %v1591_v58 }
  0x3b   :  { %655 = vmatpush2.bf16.msra.mxu0 %v1593_v59  ;;  %768 = vmatpush2.bf16.msra.mxu1 %v1594_v60 }
  0x3c   :  { %656 = vmatprep.subr.bf16.mxu0 %v1595_v61  ;;  %769 = vmatprep.subr.bf16.mxu1 %v1597_v62 }
  0x3f   :  { %657 = vmatpush2.bf16.msra.mxu0 %v1599_v63  ;;  %770 = vmatpush2.bf16.msra.mxu1 %v1600_v0 }
  0x42   :  { %659 = vmatmul.mubr.bf16.vlgmr.msra.gmra.mxu0 %v1601_v1  ;;  %772 = vmatmul.mubr.bf16.vlgmr.msra.gmra.mxu1 %v1601_v1 }
  0x43   :  { %668 = vmatprep.mubr.bf16.mxu0 %v1604_v2  ;;  %781 = vmatprep.mubr.bf16.mxu1 %v1604_v2 }
  0x4a   :  { %669 = vmatmul.mubr.bf16.gmra.mxu0 %v1606_v3  ;;  %782 = vmatmul.mubr.bf16.gmra.mxu1 %v1606_v3 }
  0x4b   :  { %678 = vmatprep.mubr.bf16.mxu0 %v1607_v4  ;;  %791 = vmatprep.mubr.bf16.mxu1 %v1607_v4 }
  0x52   :  { %679 = vmatmul.mubr.bf16.gmra.mxu0 %v1609_v5  ;;  %792 = vmatmul.mubr.bf16.gmra.mxu1 %v1609_v5 }
  0x53   :  { %688 = vmatprep.mubr.bf16.mxu0 %v1610_v6  ;;  %801 = vmatprep.mubr.bf16.mxu1 %v1610_v6 }
  0x5a   :  { %689 = vmatmul.mubr.bf16.gmra.mxu0 %v1612_v7  ;;  %802 = vmatmul.mubr.bf16.gmra.mxu1 %v1612_v7 }
  0x5b   :  { %698 = vmatprep.mubr.bf16.mxu0 %v1613_v8  ;;  %811 = vmatprep.mubr.bf16.mxu1 %v1613_v8 }
  0x62   :  { %699 = vmatmul.mubr.bf16.gmra.mxu0 %v1615_v9  ;;  %812 = vmatmul.mubr.bf16.gmra.mxu1 %v1615_v9 }
  0x63   :  { %708 = vmatprep.mubr.bf16.mxu0 %v1616_v10  ;;  %821 = vmatprep.mubr.bf16.mxu1 %v1616_v10 }
  0x6a   :  { %709 = vmatmul.mubr.bf16.gmra.mxu0 %v1618_v11  ;;  %822 = vmatmul.mubr.bf16.gmra.mxu1 %v1618_v11 }
  0x6b   :  { %718 = vmatprep.mubr.bf16.mxu0 %v1619_v12  ;;  %831 = vmatprep.mubr.bf16.mxu1 %v1619_v12 }
  0x72   :  { %719 = vmatmul.mubr.bf16.gmra.mxu0 %v1621_v13  ;;  %832 = vmatmul.mubr.bf16.gmra.mxu1 %v1621_v13 }
  0x73   :  { %728 = vmatprep.mubr.bf16.mxu0 %v1622_v14  ;;  %841 = vmatprep.mubr.bf16.mxu1 %v1622_v14 }
  0x7a   :  { %729 = vmatmul.mubr.bf16.gmra.mxu0 %v1624_v15  ;;  %842 = vmatmul.mubr.bf16.gmra.mxu1 %v1624_v15 }
 0x102   :  { %v660_v27 = vpop.f32.mrf.mxu0  ;;  %v773_v28 = vpop.f32.mrf.mxu1 }
 0x103   :  { %v1069_v31 = vadd.f32 %v1888_v23, %v660_v27  ;;  %v1071_v32 = vadd.f32 %v1890_v24, %v773_v28 }
 0x104   :  { %v662_v29 = vpop.f32.mrf.mxu0  ;;  %v775_v30 = vpop.f32.mrf.mxu1 }
 0x105   :  { %v1070_v33 = vadd.f32 %v1892_v25, %v662_v29  ;;  %v1072_v34 = vadd.f32 %v1894_v26, %v775_v30 }
 0x106   :  { %v664_v35 = vpop.f32.mrf.mxu0  ;;  %v777_v36 = vpop.f32.mrf.mxu1 }
 0x107   :  { %v1473_v37 = vpack.c.bf16 %v1070_v33, %v1069_v31  ;;  %v1474_v38 = vpack.c.bf16 %v1072_v34, %v1071_v32  ;;  %v1073_v41 = vadd.f32 %v1888_v23, %v664_v35  ;;  %v1075_v42 = vadd.f32 %v1890_v24, %v777_v36 }
 0x108   :  { %v666_v39 = vpop.f32.mrf.mxu0  ;;  %v779_v40 = vpop.f32.mrf.mxu1 }
 0x109   :  { %1325 = vst [vmem:[%s2059_s3] sm:$0xff] %v1473_v37  ;;  %1326 = vst [vmem:[%s2059_s3 + $0x8] sm:$0xff] %v1474_v38  ;;  %v1074_v43 = vadd.f32 %v1892_v25, %v666_v39  ;;  %v1076_v44 = vadd.f32 %v1894_v26, %v779_v40 }
 0x10a   :  { %v670_v45 = vpop.f32.mrf.mxu0  ;;  %v783_v46 = vpop.f32.mrf.mxu1 }
 0x10b   :  { %v1475_v47 = vpack.c.bf16 %v1074_v43, %v1073_v41  ;;  %v1476_v48 = vpack.c.bf16 %v1076_v44, %v1075_v42  ;;  %v1077_v51 = vadd.f32 %v1888_v23, %v670_v45  ;;  %v1079_v52 = vadd.f32 %v1890_v24, %v783_v46 }
 0x10c   :  { %v672_v49 = vpop.f32.mrf.mxu0  ;;  %v785_v50 = vpop.f32.mrf.mxu1 }
 0x10d   :  { %1327 = vst [vmem:[%s2059_s3 + $0x10] sm:$0xff] %v1475_v47  ;;  %1328 = vst [vmem:[%s2059_s3 + $0x18] sm:$0xff] %v1476_v48  ;;  %v1078_v53 = vadd.f32 %v1892_v25, %v672_v49  ;;  %v1080_v54 = vadd.f32 %v1894_v26, %v785_v50 }
 0x10e   :  { %v674_v55 = vpop.f32.mrf.mxu0  ;;  %v787_v56 = vpop.f32.mrf.mxu1 }
 0x10f   :  { %v1477_v57 = vpack.c.bf16 %v1078_v53, %v1077_v51  ;;  %v1478_v58 = vpack.c.bf16 %v1080_v54, %v1079_v52  ;;  %v1081_v61 = vadd.f32 %v1888_v23, %v674_v55  ;;  %v1083_v62 = vadd.f32 %v1890_v24, %v787_v56 }
 0x110   :  { %v676_v59 = vpop.f32.mrf.mxu0  ;;  %v789_v60 = vpop.f32.mrf.mxu1 }
 0x111   :  { %1329 = vst [vmem:[%s2059_s3 + $0x20] sm:$0xff] %v1477_v57  ;;  %1330 = vst [vmem:[%s2059_s3 + $0x28] sm:$0xff] %v1478_v58  ;;  %v1082_v63 = vadd.f32 %v1892_v25, %v676_v59  ;;  %v1084_v0 = vadd.f32 %v1894_v26, %v789_v60 }
 0x112   :  { %v680_v1 = vpop.f32.mrf.mxu0  ;;  %v793_v2 = vpop.f32.mrf.mxu1 }
 0x113   :  { %v1479_v3 = vpack.c.bf16 %v1082_v63, %v1081_v61  ;;  %v1480_v4 = vpack.c.bf16 %v1084_v0, %v1083_v62  ;;  %v1085_v7 = vadd.f32 %v1888_v23, %v680_v1  ;;  %v1087_v8 = vadd.f32 %v1890_v24, %v793_v2 }
 0x114   :  { %v682_v5 = vpop.f32.mrf.mxu0  ;;  %v795_v6 = vpop.f32.mrf.mxu1 }
 0x115   :  { %1331 = vst [vmem:[%s2059_s3 + $0x30] sm:$0xff] %v1479_v3  ;;  %1332 = vst [vmem:[%s2059_s3 + $0x38] sm:$0xff] %v1480_v4  ;;  %v1086_v9 = vadd.f32 %v1892_v25, %v682_v5  ;;  %v1088_v10 = vadd.f32 %v1894_v26, %v795_v6 }
 0x116   :  { %v684_v11 = vpop.f32.mrf.mxu0  ;;  %v797_v12 = vpop.f32.mrf.mxu1 }
 0x117   :  { %v1481_v13 = vpack.c.bf16 %v1086_v9, %v1085_v7  ;;  %v1482_v14 = vpack.c.bf16 %v1088_v10, %v1087_v8  ;;  %v1089_v17 = vadd.f32 %v1888_v23, %v684_v11  ;;  %v1091_v18 = vadd.f32 %v1890_v24, %v797_v12 }
 0x118   :  { %v686_v15 = vpop.f32.mrf.mxu0  ;;  %v799_v16 = vpop.f32.mrf.mxu1 }
 0x119   :  { %1333 = vst [vmem:[%s2059_s3 + $0x40] sm:$0xff] %v1481_v13  ;;  %1334 = vst [vmem:[%s2059_s3 + $0x48] sm:$0xff] %v1482_v14  ;;  %v1090_v19 = vadd.f32 %v1892_v25, %v686_v15  ;;  %v1092_v20 = vadd.f32 %v1894_v26, %v799_v16 }
 0x11a   :  { %v690_v21 = vpop.f32.mrf.mxu0  ;;  %v803_v22 = vpop.f32.mrf.mxu1 }
 0x11b   :  { %v1483_v27 = vpack.c.bf16 %v1090_v19, %v1089_v17  ;;  %v1484_v28 = vpack.c.bf16 %v1092_v20, %v1091_v18  ;;  %v1093_v31 = vadd.f32 %v1888_v23, %v690_v21  ;;  %v1095_v32 = vadd.f32 %v1890_v24, %v803_v22 }
 0x11c   :  { %v692_v29 = vpop.f32.mrf.mxu0  ;;  %v805_v30 = vpop.f32.mrf.mxu1 }
 0x11d   :  { %1335 = vst [vmem:[%s2059_s3 + $0x50] sm:$0xff] %v1483_v27  ;;  %1336 = vst [vmem:[%s2059_s3 + $0x58] sm:$0xff] %v1484_v28  ;;  %v1094_v33 = vadd.f32 %v1892_v25, %v692_v29  ;;  %v1096_v34 = vadd.f32 %v1894_v26, %v805_v30 }
 0x11e   :  { %v694_v35 = vpop.f32.mrf.mxu0  ;;  %v807_v36 = vpop.f32.mrf.mxu1 }
 0x11f   :  { %v1485_v37 = vpack.c.bf16 %v1094_v33, %v1093_v31  ;;  %v1486_v38 = vpack.c.bf16 %v1096_v34, %v1095_v32  ;;  %v1097_v41 = vadd.f32 %v1888_v23, %v694_v35  ;;  %v1099_v42 = vadd.f32 %v1890_v24, %v807_v36 }
 0x120   :  { %v696_v39 = vpop.f32.mrf.mxu0  ;;  %v809_v40 = vpop.f32.mrf.mxu1 }
 0x121   :  { %1337 = vst [vmem:[%s2059_s3 + $0x60] sm:$0xff] %v1485_v37  ;;  %1338 = vst [vmem:[%s2059_s3 + $0x68] sm:$0xff] %v1486_v38  ;;  %v1098_v43 = vadd.f32 %v1892_v25, %v696_v39  ;;  %v1100_v44 = vadd.f32 %v1894_v26, %v809_v40 }
 0x122   :  { %v700_v45 = vpop.f32.mrf.mxu0  ;;  %v813_v46 = vpop.f32.mrf.mxu1 }
 0x123   :  { %v1487_v47 = vpack.c.bf16 %v1098_v43, %v1097_v41  ;;  %v1488_v48 = vpack.c.bf16 %v1100_v44, %v1099_v42  ;;  %v1101_v51 = vadd.f32 %v1888_v23, %v700_v45  ;;  %v1103_v52 = vadd.f32 %v1890_v24, %v813_v46 }
 0x124   :  { %v702_v49 = vpop.f32.mrf.mxu0  ;;  %v815_v50 = vpop.f32.mrf.mxu1 }
 0x125   :  { %1339 = vst [vmem:[%s2059_s3 + $0x70] sm:$0xff] %v1487_v47  ;;  %1340 = vst [vmem:[%s2059_s3 + $0x78] sm:$0xff] %v1488_v48  ;;  %v1102_v53 = vadd.f32 %v1892_v25, %v702_v49  ;;  %v1104_v54 = vadd.f32 %v1894_v26, %v815_v50 }
 0x126   :  { %v704_v55 = vpop.f32.mrf.mxu0  ;;  %v817_v56 = vpop.f32.mrf.mxu1 }
 0x127   :  { %v1489_v57 = vpack.c.bf16 %v1102_v53, %v1101_v51  ;;  %v1490_v58 = vpack.c.bf16 %v1104_v54, %v1103_v52  ;;  %v1105_v61 = vadd.f32 %v1888_v23, %v704_v55  ;;  %v1107_v62 = vadd.f32 %v1890_v24, %v817_v56 }
 0x128   :  { %v706_v59 = vpop.f32.mrf.mxu0  ;;  %v819_v60 = vpop.f32.mrf.mxu1 }
 0x129   :  { %1341 = vst [vmem:[%s2059_s3 + $0x80] sm:$0xff] %v1489_v57  ;;  %1342 = vst [vmem:[%s2059_s3 + $0x88] sm:$0xff] %v1490_v58  ;;  %v1106_v63 = vadd.f32 %v1892_v25, %v706_v59  ;;  %v1108_v0 = vadd.f32 %v1894_v26, %v819_v60 }
 0x12a   :  { %v710_v1 = vpop.f32.mrf.mxu0  ;;  %v823_v2 = vpop.f32.mrf.mxu1 }
 0x12b   :  { %v1491_v3 = vpack.c.bf16 %v1106_v63, %v1105_v61  ;;  %v1492_v4 = vpack.c.bf16 %v1108_v0, %v1107_v62  ;;  %v1109_v7 = vadd.f32 %v1888_v23, %v710_v1  ;;  %v1111_v8 = vadd.f32 %v1890_v24, %v823_v2 }
 0x12c   :  { %v712_v5 = vpop.f32.mrf.mxu0  ;;  %v825_v6 = vpop.f32.mrf.mxu1 }
 0x12d   :  { %1343 = vst [vmem:[%s2059_s3 + $0x90] sm:$0xff] %v1491_v3  ;;  %1344 = vst [vmem:[%s2059_s3 + $0x98] sm:$0xff] %v1492_v4  ;;  %v1110_v9 = vadd.f32 %v1892_v25, %v712_v5  ;;  %v1112_v10 = vadd.f32 %v1894_v26, %v825_v6 }
 0x12e   :  { %v714_v11 = vpop.f32.mrf.mxu0  ;;  %v827_v12 = vpop.f32.mrf.mxu1 }
 0x12f   :  { %v1493_v13 = vpack.c.bf16 %v1110_v9, %v1109_v7  ;;  %v1494_v14 = vpack.c.bf16 %v1112_v10, %v1111_v8  ;;  %v1113_v17 = vadd.f32 %v1888_v23, %v714_v11  ;;  %v1115_v18 = vadd.f32 %v1890_v24, %v827_v12 }
 0x130   :  { %v716_v15 = vpop.f32.mrf.mxu0  ;;  %v829_v16 = vpop.f32.mrf.mxu1 }
 0x131   :  { %1345 = vst [vmem:[%s2059_s3 + $0xa0] sm:$0xff] %v1493_v13  ;;  %1346 = vst [vmem:[%s2059_s3 + $0xa8] sm:$0xff] %v1494_v14  ;;  %v1114_v19 = vadd.f32 %v1892_v25, %v716_v15  ;;  %v1116_v20 = vadd.f32 %v1894_v26, %v829_v16 }
 0x132   :  { %v720_v21 = vpop.f32.mrf.mxu0  ;;  %v833_v22 = vpop.f32.mrf.mxu1 }
 0x133   :  { %v1495_v27 = vpack.c.bf16 %v1114_v19, %v1113_v17  ;;  %v1496_v28 = vpack.c.bf16 %v1116_v20, %v1115_v18  ;;  %v1117_v31 = vadd.f32 %v1888_v23, %v720_v21  ;;  %v1119_v32 = vadd.f32 %v1890_v24, %v833_v22 }
 0x134   :  { %v722_v29 = vpop.f32.mrf.mxu0  ;;  %v835_v30 = vpop.f32.mrf.mxu1 }
 0x135   :  { %1347 = vst [vmem:[%s2059_s3 + $0xb0] sm:$0xff] %v1495_v27  ;;  %1348 = vst [vmem:[%s2059_s3 + $0xb8] sm:$0xff] %v1496_v28  ;;  %v1118_v33 = vadd.f32 %v1892_v25, %v722_v29  ;;  %v1120_v34 = vadd.f32 %v1894_v26, %v835_v30 }
 0x136   :  { %v724_v35 = vpop.f32.mrf.mxu0  ;;  %v837_v36 = vpop.f32.mrf.mxu1 }
 0x137   :  { %v1497_v37 = vpack.c.bf16 %v1118_v33, %v1117_v31  ;;  %v1498_v38 = vpack.c.bf16 %v1120_v34, %v1119_v32  ;;  %v1121_v41 = vadd.f32 %v1888_v23, %v724_v35  ;;  %v1123_v42 = vadd.f32 %v1890_v24, %v837_v36 }
 0x138   :  { %v726_v39 = vpop.f32.mrf.mxu0  ;;  %v839_v40 = vpop.f32.mrf.mxu1 }
 0x139   :  { %1349 = vst [vmem:[%s2059_s3 + $0xc0] sm:$0xff] %v1497_v37  ;;  %1350 = vst [vmem:[%s2059_s3 + $0xc8] sm:$0xff] %v1498_v38  ;;  %v1122_v43 = vadd.f32 %v1892_v25, %v726_v39  ;;  %v1124_v44 = vadd.f32 %v1894_v26, %v839_v40 }
 0x13a   :  { %v730_v45 = vpop.f32.mrf.mxu0  ;;  %v843_v46 = vpop.f32.mrf.mxu1 }
 0x13b   :  { %v1499_v47 = vpack.c.bf16 %v1122_v43, %v1121_v41  ;;  %v1500_v48 = vpack.c.bf16 %v1124_v44, %v1123_v42  ;;  %v1125_v51 = vadd.f32 %v1888_v23, %v730_v45  ;;  %v1127_v52 = vadd.f32 %v1890_v24, %v843_v46 }
 0x13c   :  { %v732_v49 = vpop.f32.mrf.mxu0  ;;  %v845_v50 = vpop.f32.mrf.mxu1 }
 0x13d   :  { %1351 = vst [vmem:[%s2059_s3 + $0xd0] sm:$0xff] %v1499_v47  ;;  %1352 = vst [vmem:[%s2059_s3 + $0xd8] sm:$0xff] %v1500_v48  ;;  %v1126_v53 = vadd.f32 %v1892_v25, %v732_v49  ;;  %v1128_v54 = vadd.f32 %v1894_v26, %v845_v50 }
 0x13e   :  { %v734_v55 = vpop.f32.mrf.mxu0  ;;  %v847_v56 = vpop.f32.mrf.mxu1 }
 0x13f   :  { %v1501_v57 = vpack.c.bf16 %v1126_v53, %v1125_v51  ;;  %v1502_v58 = vpack.c.bf16 %v1128_v54, %v1127_v52  ;;  %v1129_v61 = vadd.f32 %v1888_v23, %v734_v55  ;;  %v1131_v62 = vadd.f32 %v1890_v24, %v847_v56 }
 0x140   :  { %v736_v59 = vpop.f32.mrf.mxu0  ;;  %v849_v60 = vpop.f32.mrf.mxu1 }
 0x141   :  { %1353 = vst [vmem:[%s2059_s3 + $0xe0] sm:$0xff] %v1501_v57  ;;  %1354 = vst [vmem:[%s2059_s3 + $0xe8] sm:$0xff] %v1502_v58  ;;  %v1130_v63 = vadd.f32 %v1892_v25, %v736_v59  ;;  %v1132_v0 = vadd.f32 %v1894_v26, %v849_v60 }
 0x143   :  { %v1503_v1 = vpack.c.bf16 %v1130_v63, %v1129_v61  ;;  %v1504_v2 = vpack.c.bf16 %v1132_v0, %v1131_v62 }
 0x145   :  { %1355 = vst [vmem:[%s2059_s3 + $0xf0] sm:$0xff] %v1503_v1  ;;  %1356 = vst [vmem:[%s2059_s3 + $0xf8] sm:$0xff] %v1504_v2 }

// kernel: forward.23
= control target key start
LH: loop header
LB: loop body
LE: loop exit
PB: predicated region body
PF: predicated region fallthrough
CT: control target
= control target key end

     0   :  { %v453_v29 = vmov 1983009808   ;;  %v93_v31 = vlaneseq  ;;  %vm127_vm0 = vcmask 1041409   ;;  %vm129_vm1 = vcmask 1043459   ;;  %s692_s1 = inlined_call_operand.vmem [shape: f32[512,128], index: 1, kind: input, shape index: {}]   ;;  %s693_s0 = inlined_call_operand.vmem [shape: bf16[2,8,512], index: 0, kind: input, shape index: {}]   ;;  %s694_s2 = inlined_call_operand.vmem [shape: f32[1,128], index: 2, kind: input, shape index: {}]   ;;  %s695_s3 = inlined_call_operand.vmem [shape: f32[2,128], index: 3, kind: output, shape index: {}]  }
   0x1   :  { %v174_v0 = vld [vmem:[%s692_s1 + $0xf8] sm:$0xff]  ;;  %v173_v2 = vld [vmem:[%s692_s1 + $0xf0] sm:$0xff]  ;;  %v172_v6 = vld [vmem:[%s692_s1 + $0xe8] sm:$0xff]  ;;  %v91_v30 = vunpack.c.l.s4 %v453_v29  ;;  %vm131_vm2 = vcmask 1045509   ;;  %vm133_vm3 = vcmask 1047559  }
   0x2   :  { %v158_v1 = vld [vmem:[%s692_s1 + $0x78] sm:$0xff]  ;;  %382 = vmatprep.subr.mxu0 %v174_v0  ;;  %v157_v4 = vld [vmem:[%s692_s1 + $0x70] sm:$0xff]  ;;  %v156_v8 = vld [vmem:[%s692_s1 + $0x68] sm:$0xff]  ;;  %v94_v41 = vshrl.u32 %v93_v31, 7 }
   0x3   :  { %v206_v3 = vld [vmem:[%s692_s1 + $0x1f8] sm:$0xff]  ;;  %383 = vmatpush3.msra.mxu0 %v158_v1  ;;  %v205_v7 = vld [vmem:[%s692_s1 + $0x1f0] sm:$0xff]  ;;  %v204_v10 = vld [vmem:[%s692_s1 + $0x1e8] sm:$0xff]  ;;  %v92_v40 = vunpack.c.0.s8 %v91_v30 }
   0x4   :  { %v190_v5 = vld [vmem:[%s692_s1 + $0x178] sm:$0xff]  ;;  %417 = vmatprep.subr.mxu1 %v206_v3  ;;  %384 = vmatprep.subr.mxu0 %v173_v2  ;;  %v189_v9 = vld [vmem:[%s692_s1 + $0x170] sm:$0xff]  ;;  %v171_v11 = vld [vmem:[%s692_s1 + $0xe0] sm:$0xff] }
   0x5   :  { %418 = vmatpush3.msra.mxu1 %v190_v5  ;;  %385 = vmatpush3.msra.mxu0 %v157_v4  ;;  %v188_v12 = vld [vmem:[%s692_s1 + $0x168] sm:$0xff]  ;;  %v155_v13 = vld [vmem:[%s692_s1 + $0x60] sm:$0xff]  ;;  %v170_v15 = vld [vmem:[%s692_s1 + $0xd8] sm:$0xff]  ;;  %v618_v53 = vsub.s32 %v92_v40, %v94_v41 }
   0x6   :  { %419 = vmatprep.subr.mxu1 %v205_v7  ;;  %386 = vmatprep.subr.mxu0 %v172_v6  ;;  %v203_v14 = vld [vmem:[%s692_s1 + $0x1e0] sm:$0xff]  ;;  %v154_v17 = vld [vmem:[%s692_s1 + $0x58] sm:$0xff]  ;;  %v169_v19 = vld [vmem:[%s692_s1 + $0xd0] sm:$0xff] }
   0x7   :  { %420 = vmatpush3.msra.mxu1 %v189_v9  ;;  %387 = vmatpush3.msra.mxu0 %v156_v8  ;;  %v187_v16 = vld [vmem:[%s692_s1 + $0x160] sm:$0xff]  ;;  %v202_v18 = vld [vmem:[%s692_s1 + $0x1d8] sm:$0xff]  ;;  %v153_v21 = vld [vmem:[%s692_s1 + $0x50] sm:$0xff] }
   0x8   :  { %421 = vmatprep.subr.mxu1 %v204_v10  ;;  %388 = vmatprep.subr.mxu0 %v171_v11  ;;  %v186_v20 = vld [vmem:[%s692_s1 + $0x158] sm:$0xff]  ;;  %v201_v22 = vld [vmem:[%s692_s1 + $0x1d0] sm:$0xff]  ;;  %v168_v23 = vld [vmem:[%s692_s1 + $0xc8] sm:$0xff] }
   0x9   :  { %422 = vmatpush3.msra.mxu1 %v188_v12  ;;  %389 = vmatpush3.msra.mxu0 %v155_v13  ;;  %v185_v24 = vld [vmem:[%s692_s1 + $0x150] sm:$0xff]  ;;  %v152_v25 = vld [vmem:[%s692_s1 + $0x48] sm:$0xff]  ;;  %v167_v27 = vld [vmem:[%s692_s1 + $0xc0] sm:$0xff] }
   0xa   :  { %423 = vmatprep.subr.mxu1 %v203_v14  ;;  %390 = vmatprep.subr.mxu0 %v170_v15  ;;  %v200_v26 = vld [vmem:[%s692_s1 + $0x1c8] sm:$0xff]  ;;  %v151_v32 = vld [vmem:[%s692_s1 + $0x40] sm:$0xff]  ;;  %v166_v34 = vld [vmem:[%s692_s1 + $0xb8] sm:$0xff] }
   0xb   :  { %424 = vmatpush3.msra.mxu1 %v187_v16  ;;  %391 = vmatpush3.msra.mxu0 %v154_v17  ;;  %v184_v28 = vld [vmem:[%s692_s1 + $0x148] sm:$0xff]  ;;  %v199_v33 = vld [vmem:[%s692_s1 + $0x1c0] sm:$0xff]  ;;  %v150_v36 = vld [vmem:[%s692_s1 + $0x38] sm:$0xff] }
   0xc   :  { %425 = vmatprep.subr.mxu1 %v202_v18  ;;  %392 = vmatprep.subr.mxu0 %v169_v19  ;;  %v183_v35 = vld [vmem:[%s692_s1 + $0x140] sm:$0xff]  ;;  %v198_v37 = vld [vmem:[%s692_s1 + $0x1b8] sm:$0xff]  ;;  %v165_v38 = vld [vmem:[%s692_s1 + $0xb0] sm:$0xff] }
   0xd   :  { %426 = vmatpush3.msra.mxu1 %v186_v20  ;;  %393 = vmatpush3.msra.mxu0 %v153_v21  ;;  %v182_v39 = vld [vmem:[%s692_s1 + $0x138] sm:$0xff]  ;;  %v149_v42 = vld [vmem:[%s692_s1 + $0x30] sm:$0xff]  ;;  %v164_v44 = vld [vmem:[%s692_s1 + $0xa8] sm:$0xff] }
   0xe   :  { %427 = vmatprep.subr.mxu1 %v201_v22  ;;  %394 = vmatprep.subr.mxu0 %v168_v23  ;;  %v197_v43 = vld [vmem:[%s692_s1 + $0x1b0] sm:$0xff]  ;;  %v148_v45 = vld [vmem:[%s692_s1 + $0x28] sm:$0xff]  ;;  %v163_v47 = vld [vmem:[%s692_s1 + $0xa0] sm:$0xff] }
   0xf   :  { %428 = vmatpush3.msra.mxu1 %v185_v24  ;;  %395 = vmatpush3.msra.mxu0 %v152_v25  ;;  %v181_v46 = vld [vmem:[%s692_s1 + $0x130] sm:$0xff]  ;;  %v196_v48 = vld [vmem:[%s692_s1 + $0x1a8] sm:$0xff]  ;;  %v147_v49 = vld [vmem:[%s692_s1 + $0x20] sm:$0xff] }
  0x10   :  { %429 = vmatprep.subr.mxu1 %v200_v26  ;;  %396 = vmatprep.subr.mxu0 %v167_v27  ;;  %v180_v50 = vld [vmem:[%s692_s1 + $0x128] sm:$0xff]  ;;  %v20_v51 = vld [vmem:[%s693_s0] sm:$0xff]  ;;  %v22_v55 = vld [vmem:[%s693_s0 + $0x10] sm:$0xff] }
  0x11   :  { %430 = vmatpush3.msra.mxu1 %v184_v28  ;;  %397 = vmatpush3.msra.mxu0 %v151_v32  ;;  %v21_v52 = vld [vmem:[%s693_s0 + $0x8] sm:$0xff]  ;;  %v195_v54 = vld [vmem:[%s692_s1 + $0x1a0] sm:$0xff]  ;;  %v23_v56 = vld [vmem:[%s693_s0 + $0x18] sm:$0xff]  ;;  %v24_v57 = vunpack.c.l.bf16 %v20_v51  ;;  %v25_v58 = vunpack.c.h.bf16 %v20_v51  ;;  %v28_v63 = vunpack.c.l.bf16 %v22_v55  ;;  %v29_v0 = vunpack.c.h.bf16 %v22_v55 }
  0x12   :  { %431 = vmatprep.subr.mxu1 %v199_v33  ;;  %398 = vmatprep.subr.mxu0 %v166_v34  ;;  %v26_v59 = vunpack.c.l.bf16 %v21_v52  ;;  %v27_v60 = vunpack.c.h.bf16 %v21_v52  ;;  %v162_v61 = vld [vmem:[%s692_s1 + $0x98] sm:$0xff]  ;;  %v179_v62 = vld [vmem:[%s692_s1 + $0x120] sm:$0xff]  ;;  %v30_v1 = vunpack.c.l.bf16 %v23_v56  ;;  %v31_v2 = vunpack.c.h.bf16 %v23_v56  ;;  %v161_v9 = vld [vmem:[%s692_s1 + $0x90] sm:$0xff] }
  0x13   :  { %432 = vmatpush3.msra.mxu1 %v183_v35  ;;  %399 = vmatpush3.msra.mxu0 %v150_v36  ;;  %v146_v3 = vld [vmem:[%s692_s1 + $0x18] sm:$0xff]  ;;  %v32_v5 = vrot.slane %v24_v57, 4  ;;  %v38_v6 = vrot.slane %v25_v58, 4  ;;  %v56_v11 = vrot.slane %v28_v63, 4  ;;  %v62_v12 = vrot.slane %v29_v0, 4  ;;  %v145_v15 = vld [vmem:[%s692_s1 + $0x10] sm:$0xff] }
  0x14   :  { %433 = vmatprep.subr.mxu1 %v198_v37  ;;  %400 = vmatprep.subr.mxu0 %v165_v38  ;;  %v194_v4 = vld [vmem:[%s692_s1 + $0x198] sm:$0xff]  ;;  %v44_v7 = vrot.slane %v26_v59, 4  ;;  %v50_v8 = vrot.slane %v27_v60, 4  ;;  %v68_v13 = vrot.slane %v30_v1, 4  ;;  %v74_v14 = vrot.slane %v31_v2, 4  ;;  %v193_v16 = vld [vmem:[%s692_s1 + $0x190] sm:$0xff] }
  0x15   :  { %434 = vmatpush3.msra.mxu1 %v182_v39  ;;  %401 = vmatpush3.msra.mxu0 %v149_v42  ;;  %v178_v10 = vld [vmem:[%s692_s1 + $0x118] sm:$0xff]  ;;  %v33_v17 = vadd.f32 %v32_v5, %v24_v57  ;;  %v39_v18 = vadd.f32 %v38_v6, %v25_v58  ;;  %v160_v20 = vld [vmem:[%s692_s1 + $0x88] sm:$0xff]  ;;  %v177_v21 = vld [vmem:[%s692_s1 + $0x110] sm:$0xff]  ;;  %v57_v23 = vadd.f32 %v56_v11, %v28_v63 }
  0x16   :  { %435 = vmatprep.subr.mxu1 %v197_v43  ;;  %402 = vmatprep.subr.mxu0 %v164_v44  ;;  %v45_v19 = vadd.f32 %v44_v7, %v26_v59  ;;  %v51_v22 = vadd.f32 %v50_v8, %v27_v60  ;;  %v63_v24 = vadd.f32 %v62_v12, %v29_v0  ;;  %v144_v25 = vld [vmem:[%s692_s1 + $0x8] sm:$0xff]  ;;  %v159_v31 = vld [vmem:[%s692_s1 + $0x80] sm:$0xff] }
  0x17   :  { %436 = vmatpush3.msra.mxu1 %v181_v46  ;;  %403 = vmatpush3.msra.mxu0 %v148_v45  ;;  %v192_v26 = vld [vmem:[%s692_s1 + $0x188] sm:$0xff]  ;;  %v34_v27 = vrot.slane %v33_v17, 2  ;;  %v40_v28 = vrot.slane %v39_v18, 2  ;;  %v69_v30 = vadd.f32 %v68_v13, %v30_v1  ;;  %v58_v33 = vrot.slane %v57_v23, 2  ;;  %v143_v37 = vld [vmem:[%s692_s1] sm:$0xff] }
  0x18   :  { %437 = vmatprep.subr.mxu1 %v196_v48  ;;  %404 = vmatprep.subr.mxu0 %v163_v47  ;;  %v46_v29 = vrot.slane %v45_v19, 2  ;;  %v52_v32 = vrot.slane %v51_v22, 2  ;;  %v64_v34 = vrot.slane %v63_v24, 2  ;;  %v75_v35 = vadd.f32 %v74_v14, %v31_v2  ;;  %v176_v36 = vld [vmem:[%s692_s1 + $0x108] sm:$0xff]  ;;  %v191_v42 = vld [vmem:[%s692_s1 + $0x180] sm:$0xff] }
  0x19   :  { %438 = vmatpush3.msra.mxu1 %v180_v50  ;;  %405 = vmatpush3.msra.mxu0 %v147_v49  ;;  %v35_v38 = vadd.f32 %v34_v27, %v33_v17  ;;  %v41_v39 = vadd.f32 %v40_v28, %v39_v18  ;;  %v70_v41 = vrot.slane %v69_v30, 2  ;;  %v59_v44 = vadd.f32 %v58_v33, %v57_v23  ;;  %v175_v47 = vld [vmem:[%s692_s1 + $0x100] sm:$0xff] }
  0x1a   :  { %439 = vmatprep.subr.mxu1 %v195_v54  ;;  %406 = vmatprep.subr.mxu0 %v162_v61  ;;  %v47_v40 = vadd.f32 %v46_v29, %v45_v19  ;;  %v53_v43 = vadd.f32 %v52_v32, %v51_v22  ;;  %v65_v45 = vadd.f32 %v64_v34, %v63_v24  ;;  %v76_v46 = vrot.slane %v75_v35, 2 }
  0x1b   :  { %440 = vmatpush3.msra.mxu1 %v179_v62  ;;  %407 = vmatpush3.msra.mxu0 %v146_v3  ;;  %v36_v48 = vrot.slane %v35_v38, 1  ;;  %v42_v49 = vrot.slane %v41_v39, 1  ;;  %v71_v51 = vadd.f32 %v70_v41, %v69_v30  ;;  %v60_v54 = vrot.slane %v59_v44, 1 }
  0x1c   :  { %441 = vmatprep.subr.mxu1 %v194_v4  ;;  %408 = vmatprep.subr.mxu0 %v161_v9  ;;  %v48_v50 = vrot.slane %v47_v40, 1  ;;  %v54_v52 = vrot.slane %v53_v43, 1  ;;  %v66_v55 = vrot.slane %v65_v45, 1  ;;  %v77_v56 = vadd.f32 %v76_v46, %v75_v35 }
  0x1d   :  { %442 = vmatpush3.msra.mxu1 %v178_v10  ;;  %409 = vmatpush3.msra.mxu0 %v145_v15  ;;  %v37_v57 = vadd.f32 %v36_v48, %v35_v38  ;;  %v43_v58 = vadd.f32 %v42_v49, %v41_v39  ;;  %v72_v60 = vrot.slane %v71_v51, 1  ;;  %v61_v62 = vadd.f32 %v60_v54, %v59_v44 }
  0x1e   :  { %443 = vmatprep.subr.mxu1 %v193_v16  ;;  %410 = vmatprep.subr.mxu0 %v160_v20  ;;  %v49_v59 = vadd.f32 %v48_v50, %v47_v40  ;;  %v55_v61 = vadd.f32 %v54_v52, %v53_v43  ;;  %v67_v63 = vadd.f32 %v66_v55, %v65_v45  ;;  %v78_v0 = vrot.slane %v77_v56, 1 }
  0x1f   :  { %444 = vmatpush3.msra.mxu1 %v177_v21  ;;  %411 = vmatpush3.msra.mxu0 %v144_v25  ;;  %v73_v1 = vadd.f32 %v72_v60, %v71_v51  ;;  %v88_v2 = vcombine.low %v37_v57, %v43_v58  ;;  %v381_v25 = vld [vmem:[%s694_s2] ss:$0 sm:$0xff] }
  0x20   :  { %445 = vmatprep.subr.mxu1 %v192_v26  ;;  %412 = vmatprep.subr.mxu0 %v159_v31  ;;  %v79_v3 = vadd.f32 %v78_v0, %v77_v56  ;;  %v89_v4 = vcombine.low %v49_v59, %v55_v61  ;;  %v105_v5 = vcombine.low %v61_v62, %v67_v63 }
  0x21   :  { %446 = vmatpush3.msra.mxu1 %v176_v36  ;;  %413 = vmatpush3.msra.mxu0 %v143_v37  ;;  %v96_v6 = vrot.slane %v88_v2, %v618_v53 }
  0x22   :  { %447 = vmatprep.subr.mxu1 %v191_v42  ;;  %v103_v7 = vrot.slane %v89_v4, %v618_v53  ;;  %v106_v8 = vcombine.low %v73_v1, %v79_v3  ;;  %v113_v9 = vrot.slane %v105_v5, %v618_v53 }
  0x23   :  { %448 = vmatpush3.msra.mxu1 %v175_v47 }
  0x24   :  { %v120_v10 = vrot.slane %v106_v8, %v618_v53  ;;  %v104_v11 = vcombine.low %v96_v6, %v103_v7 }
  0x26   :  { %v121_v12 = vcombine.low %v113_v9, %v120_v10 }
  0x28   :  { %v126_v13 = vrot.slane %v121_v12, 7 }
  0x2a   :  { %v128_v14 = vsel %vm127_vm0, %v126_v13, %v104_v11 }
  0x2b   :  { %v130_v15 = vsel %vm129_vm1, %v126_v13, %v128_v14 }
  0x2c   :  { %v132_v16 = vsel %vm131_vm2, %v126_v13, %v130_v15 }
  0x2d   :  { %v134_v17 = vsel %vm133_vm3, %v126_v13, %v132_v16 }
  0x2e   :  { %v142_v18 = vmul.f32 0.125, %v134_v17 }
  0x30   :  { %v222_v19 = vrot.slane %v142_v18, %v618_v53  ;;  %v215_v20 = vcombine.high %v142_v18, %v142_v18 }
  0x32   :  { %v230_v21 = vcombine.high %v222_v19, %v222_v19  ;;  %v229_v22 = vrot.slane %v215_v20, %v618_v53 }
  0x34   :  { %300 = vmatprep.mubr.f32.mxu0 %v230_v21  ;;  %v231_v23 = vcombine.high %v229_v22, %v229_v22 }
  0x35   :  { %301 = vmatmul.mubr.f32.vlgmr.msra.gmra.mxu0 %v222_v19 }
  0x36   :  { %370 = vmatprep.mubr.f32.mxu1 %v231_v23 }
  0x37   :  { %371 = vmatmul.mubr.f32.vlgmr.msra.gmra.mxu1 %v229_v22 }
  0xf5   :  { %v414_v24 = vpop.f32.mrf.mxu0 }
  0xf7   :  { %v415_v26 = vpop.f32.mrf.mxu0  ;;  %v449_v27 = vpop.f32.mrf.mxu1 }
  0xf8   :  { %v416_v28 = vadd.f32 %v415_v26, %v414_v24 }
  0xf9   :  { %v450_v29 = vpop.f32.mrf.mxu1 }
  0xfa   :  { %v303_v30 = vadd.f32 %v416_v28, %v381_v25  ;;  %v451_v31 = vadd.f32 %v450_v29, %v449_v27 }
  0xfc   :  { %v373_v32 = vadd.f32 %v451_v31, %v303_v30 }
  0xfe   :  { %376 = vst [vmem:[%s695_s3] sm:$0x3] %v373_v32 }

// kernel: forward.22
= control target key start
LH: loop header
LB: loop body
LE: loop exit
PB: predicated region body
PF: predicated region fallthrough
CT: control target
= control target key end

     0   :  { %s3431_s15 = smov 0   ;;  %s3433_s16 = smov 0   ;;  %s4173_s0 = inlined_call_operand.vmem [shape: bf16[128,13824], index: 0, kind: input, shape index: {}]   ;;  %s4174_s1 = inlined_call_operand.vmem [shape: bf16[13824,512], index: 1, kind: input, shape index: {}]   ;;  %s4175_s2 = inlined_call_operand.vmem [shape: f32[1,512], index: 2, kind: input, shape index: {}]   ;;  %s4176_s3 = inlined_call_operand.vmem [shape: bf16[128,512], index: 3, kind: input, shape index: {}]   ;;  %s4177_s4 = inlined_call_operand.vmem [shape: bf16[128,512], index: 4, kind: output, shape index: {}]  }
   0x1   :  { %s3435_s17 = smov 0   ;;  %s3437_s18 = smov 0  }
   0x2   :  { %s3439_s19 = smov 0  }
   0x3 LB: > { %s26_s20 = sadd.s32 1, %s3399_s18  ;;  %p49_p1 = scmp.ne.s32.totalorder %s3391_s16, %s3387_s15  ;;  %s3403_s19 = sphi %s3439_s19, %s14_s19   ;;  %s3399_s18 = sphi %s3437_s18, %s4181_s18   ;;  %s3395_s17 = sphi %s3435_s17, %s4180_s17   ;;  %s3391_s16 = sphi %s3433_s16, %s4179_s16   ;;  %s3387_s15 = sphi %s3431_s15, %s4178_s15  }
   0x4   : > { %p27_p0 = scmp.ge.s32.totalorder %s26_s20, 27  ;;  %p50_p2 = scmp.eq.s32.totalorder %s3403_s19, 0 }
   0x5   : > { %s42_s22 = sadd.s32 1, %s3391_s16  ;;  %p2843_p5 = scmp.ge.s32.totalorder %s3403_s19, 27 }
   0x6   : > { %s4183_s20 = smov (%p27_p0, %s26_s20), 0  ;;  %p51_p3 = por %p50_p2, %p49_p1 }
   0x7   : > { %s38_s21 = ssub.s32 %s3399_s18, %s4183_s20  ;;  %208 = sbr.rel (%p2843_p5) target bundleno = 32 (0x20), region = 24 }
   0x8   : > { %p40_p4 = scmp.eq.s32.totalorder %s38_s21, 0 }
   0xa   : > { %s3466_s23 = scalar_select %p40_p4, %s3391_s16, %s42_s22  }
   0xc   : > { %211 = sbr.rel (!%p51_p3) target bundleno = 32 (0x20), region = 28  ;;  %s213_s24 = sand.u32 (%p51_p3), 1, %s3391_s16  }
   0xd   : > { %s3050_s25 = sshll.u32 (%p51_p3), %s3399_s18, 4  ;;  %s2844_s26 = sshll.u32 (%p51_p3), %s213_s24, 8 }
   0xe   : > { %s3474_s29 = scalar_lea.vmem (%p51_p3), %s4173_s0, %s3050_s25  ;;  %s3479_s30 = scalar_lea.vmem (%p51_p3), [#allocation3], %s2844_s26 }
   0xf   : > { %v234_v0 = vld [vmem:[%s3474_s29] sm:$0xff] (%p51_p3)  ;;  %v236_v1 = vld [vmem:[%s3474_s29 + $0x8] sm:$0xff] (%p51_p3)  ;;  %v238_v2 = vld [vmem:[%s3474_s29 + $0x1b0] sm:$0xff] (%p51_p3) }
  0x10   : > { %235 = vst [vmem:[%s3479_s30] sm:$0xff] (%p51_p3), %v234_v0  ;;  %237 = vst [vmem:[%s3479_s30 + $0x8] sm:$0xff] (%p51_p3), %v236_v1  ;;  %v240_v3 = vld [vmem:[%s3474_s29 + $0x1b8] sm:$0xff] (%p51_p3)  ;;  %v242_v4 = vld [vmem:[%s3474_s29 + $0x360] sm:$0xff] (%p51_p3) }
  0x11   : > { %239 = vst [vmem:[%s3479_s30 + $0x10] sm:$0xff] %v238_v2  ;;  %v244_v5 = vld [vmem:[%s3474_s29 + $0x368] sm:$0xff]  ;;  %241 = vst [vmem:[%s3479_s30 + $0x18] sm:$0xff] %v240_v3  ;;  %v246_v6 = vld [vmem:[%s3474_s29 + $0x510] sm:$0xff] }
  0x12   : > { %243 = vst [vmem:[%s3479_s30 + $0x20] sm:$0xff] %v242_v4  ;;  %245 = vst [vmem:[%s3479_s30 + $0x28] sm:$0xff] %v244_v5  ;;  %v248_v7 = vld [vmem:[%s3474_s29 + $0x518] sm:$0xff]  ;;  %v250_v8 = vld [vmem:[%s3474_s29 + $0x6c0] sm:$0xff] }
  0x13   : > { %247 = vst [vmem:[%s3479_s30 + $0x30] sm:$0xff] %v246_v6  ;;  %249 = vst [vmem:[%s3479_s30 + $0x38] sm:$0xff] %v248_v7  ;;  %v252_v9 = vld [vmem:[%s3474_s29 + $0x6c8] sm:$0xff]  ;;  %v254_v10 = vld [vmem:[%s3474_s29 + $0x870] sm:$0xff] }
  0x14   : > { %251 = vst [vmem:[%s3479_s30 + $0x40] sm:$0xff] %v250_v8  ;;  %v256_v11 = vld [vmem:[%s3474_s29 + $0x878] sm:$0xff]  ;;  %253 = vst [vmem:[%s3479_s30 + $0x48] sm:$0xff] %v252_v9  ;;  %v258_v12 = vld [vmem:[%s3474_s29 + $0xa20] sm:$0xff] }
  0x15   : > { %255 = vst [vmem:[%s3479_s30 + $0x50] sm:$0xff] %v254_v10  ;;  %257 = vst [vmem:[%s3479_s30 + $0x58] sm:$0xff] %v256_v11  ;;  %v260_v13 = vld [vmem:[%s3474_s29 + $0xa28] sm:$0xff]  ;;  %v262_v14 = vld [vmem:[%s3474_s29 + $0xbd0] sm:$0xff] }
  0x16   : > { %259 = vst [vmem:[%s3479_s30 + $0x60] sm:$0xff] %v258_v12  ;;  %261 = vst [vmem:[%s3479_s30 + $0x68] sm:$0xff] %v260_v13  ;;  %v264_v15 = vld [vmem:[%s3474_s29 + $0xbd8] sm:$0xff]  ;;  %v266_v16 = vld [vmem:[%s3474_s29 + $0xd80] sm:$0xff] }
  0x17   : > { %263 = vst [vmem:[%s3479_s30 + $0x70] sm:$0xff] %v262_v14  ;;  %v268_v17 = vld [vmem:[%s3474_s29 + $0xd88] sm:$0xff]  ;;  %265 = vst [vmem:[%s3479_s30 + $0x78] sm:$0xff] %v264_v15  ;;  %v270_v18 = vld [vmem:[%s3474_s29 + $0xf30] sm:$0xff] }
  0x18   : > { %267 = vst [vmem:[%s3479_s30 + $0x80] sm:$0xff] %v266_v16  ;;  %269 = vst [vmem:[%s3479_s30 + $0x88] sm:$0xff] %v268_v17  ;;  %v272_v19 = vld [vmem:[%s3474_s29 + $0xf38] sm:$0xff]  ;;  %v274_v20 = vld [vmem:[%s3474_s29 + $0x10e0] sm:$0xff] }
  0x19   : > { %271 = vst [vmem:[%s3479_s30 + $0x90] sm:$0xff] %v270_v18  ;;  %273 = vst [vmem:[%s3479_s30 + $0x98] sm:$0xff] %v272_v19  ;;  %v276_v21 = vld [vmem:[%s3474_s29 + $0x10e8] sm:$0xff]  ;;  %v278_v22 = vld [vmem:[%s3474_s29 + $0x1290] sm:$0xff] }
  0x1a   : > { %275 = vst [vmem:[%s3479_s30 + $0xa0] sm:$0xff] %v274_v20  ;;  %v280_v23 = vld [vmem:[%s3474_s29 + $0x1298] sm:$0xff]  ;;  %277 = vst [vmem:[%s3479_s30 + $0xa8] sm:$0xff] %v276_v21  ;;  %v282_v24 = vld [vmem:[%s3474_s29 + $0x1440] sm:$0xff] }
  0x1b   : > { %279 = vst [vmem:[%s3479_s30 + $0xb0] sm:$0xff] %v278_v22  ;;  %281 = vst [vmem:[%s3479_s30 + $0xb8] sm:$0xff] %v280_v23  ;;  %v284_v25 = vld [vmem:[%s3474_s29 + $0x1448] sm:$0xff]  ;;  %v286_v26 = vld [vmem:[%s3474_s29 + $0x15f0] sm:$0xff] }
  0x1c   : > { %283 = vst [vmem:[%s3479_s30 + $0xc0] sm:$0xff] %v282_v24  ;;  %285 = vst [vmem:[%s3479_s30 + $0xc8] sm:$0xff] %v284_v25  ;;  %v288_v27 = vld [vmem:[%s3474_s29 + $0x15f8] sm:$0xff]  ;;  %v290_v28 = vld [vmem:[%s3474_s29 + $0x17a0] sm:$0xff] }
  0x1d   : > { %287 = vst [vmem:[%s3479_s30 + $0xd0] sm:$0xff] %v286_v26  ;;  %v292_v29 = vld [vmem:[%s3474_s29 + $0x17a8] sm:$0xff]  ;;  %289 = vst [vmem:[%s3479_s30 + $0xd8] sm:$0xff] %v288_v27  ;;  %v294_v30 = vld [vmem:[%s3474_s29 + $0x1950] sm:$0xff] }
  0x1e   : > { %291 = vst [vmem:[%s3479_s30 + $0xe0] sm:$0xff] %v290_v28  ;;  %293 = vst [vmem:[%s3479_s30 + $0xe8] sm:$0xff] %v292_v29  ;;  %v296_v31 = vld [vmem:[%s3474_s29 + $0x1958] sm:$0xff] }
  0x1f   : > { %295 = vst [vmem:[%s3479_s30 + $0xf0] sm:$0xff] %v294_v30  ;;  %297 = vst [vmem:[%s3479_s30 + $0xf8] sm:$0xff] %v296_v31 }
  0x20 PF: > { %p2847_p6 = scmp.ge.s32.totalorder %s3403_s19, 1  ;;  %p317_p7 = scmp.lt.s32.totalorder %s3403_s19, 28 }
  0x22   : > { %p318_p8 = pnand %p2847_p6, %p317_p7 }
  0x23   : > { %s324_s5 = sand.u32 (!%p318_p8), 1, %s3387_s15   ;;  %s2849_s6 = sshll.u32 (!%p318_p8), %s3395_s17, 6 }
  0x24   : > { %321 = sbr.rel (%p318_p8) target bundleno = 552 (0x228), region = 55  ;;  %s2848_s7 = sshll.u32 (!%p318_p8), %s324_s5, 8 }
  0x25   : > { %p382_p9 = scmp.lt.s32.totalorder (!%p318_p8), %s2849_s6, 1727  ;;  %s3551_s12 = scalar_lea.vmem (!%p318_p8), [#allocation3], %s2848_s7 }
  0x26   : > { %p2852_p10 = scmp.ne.s32.totalorder (!%p318_p8), %s3395_s17, 0 }
  0x29   : > { %s4185_s6 = smov (!%p382_p9, %s2849_s6), 1727  ;;  %424 = sbr.rel (%p2852_p10) target bundleno = 79 (0x4f), region = 63 }
  0x2a   : > { %s3051_s8 = sshll.u32 %s4185_s6, 4 }
  0x2b   : > { %s3549_s11 = scalar_lea.vmem %s4174_s1, %s3051_s8 }
  0x2e   : > { %v3405_v32 = vmov 0.0  }
  0x2f   : > { %425 = vst [vmem:[#allocation2 + $0xb0] sm:$0xff] %v3405_v32  ;;  %426 = vst [vmem:[#allocation2 + $0x1b0] sm:$0xff] %v3405_v32 }
  0x30   : > { %427 = vst [vmem:[#allocation2 + $0xd8] sm:$0xff] %v3405_v32  ;;  %428 = vst [vmem:[#allocation2 + $0x18] sm:$0xff] %v3405_v32 }
  0x31   : > { %429 = vst [vmem:[#allocation2 + $0x50] sm:$0xff] %v3405_v32  ;;  %430 = vst [vmem:[#allocation2 + $0x168] sm:$0xff] %v3405_v32 }
  0x32   : > { %431 = vst [vmem:[#allocation2 + $0x130] sm:$0xff] %v3405_v32  ;;  %432 = vst [vmem:[#allocation2 + $0x48] sm:$0xff] %v3405_v32 }
  0x33   : > { %433 = vst [vmem:[#allocation2 + $0x180] sm:$0xff] %v3405_v32  ;;  %434 = vst [vmem:[#allocation2 + $0x110] sm:$0xff] %v3405_v32 }
  0x34   : > { %435 = vst [vmem:[#allocation2 + $0x118] sm:$0xff] %v3405_v32  ;;  %436 = vst [vmem:[#allocation2 + $0x98] sm:$0xff] %v3405_v32 }
  0x35   : > { %437 = vst [vmem:[#allocation2 + $0x120] sm:$0xff] %v3405_v32  ;;  %438 = vst [vmem:[#allocation2 + $0x150] sm:$0xff] %v3405_v32 }
  0x36   : > { %439 = vst [vmem:[#allocation2 + $0x108] sm:$0xff] %v3405_v32  ;;  %440 = vst [vmem:[#allocation2 + $0x60] sm:$0xff] %v3405_v32 }
  0x37   : > { %441 = vst [vmem:[#allocation2 + $0xe0] sm:$0xff] %v3405_v32  ;;  %442 = vst [vmem:[#allocation2 + $0x188] sm:$0xff] %v3405_v32 }
  0x38   : > { %443 = vst [vmem:[#allocation2 + $0x138] sm:$0xff] %v3405_v32  ;;  %444 = vst [vmem:[#allocation2 + $0x140] sm:$0xff] %v3405_v32 }
  0x39   : > { %445 = vst [vmem:[#allocation2 + $0x80] sm:$0xff] %v3405_v32  ;;  %446 = vst [vmem:[#allocation2 + $0x1a8] sm:$0xff] %v3405_v32 }
  0x3a   : > { %447 = vst [vmem:[#allocation2 + $0x1b8] sm:$0xff] %v3405_v32  ;;  %448 = vst [vmem:[#allocation2 + $0x28] sm:$0xff] %v3405_v32 }
  0x3b   : > { %449 = vst [vmem:[#allocation2 + $0x1e8] sm:$0xff] %v3405_v32  ;;  %450 = vst [vmem:[#allocation2 + $0xf8] sm:$0xff] %v3405_v32 }
  0x3c   : > { %451 = vst [vmem:[#allocation2 + $0x160] sm:$0xff] %v3405_v32  ;;  %452 = vst [vmem:[#allocation2 + $0x30] sm:$0xff] %v3405_v32 }
  0x3d   : > { %453 = vst [vmem:[#allocation2 + $0x1e0] sm:$0xff] %v3405_v32  ;;  %454 = vst [vmem:[#allocation2] sm:$0xff] %v3405_v32 }
  0x3e   : > { %455 = vst [vmem:[#allocation2 + $0xf0] sm:$0xff] %v3405_v32  ;;  %456 = vst [vmem:[#allocation2 + $0x8] sm:$0xff] %v3405_v32 }
  0x3f   : > { %457 = vst [vmem:[#allocation2 + $0x148] sm:$0xff] %v3405_v32  ;;  %458 = vst [vmem:[#allocation2 + $0x1d0] sm:$0xff] %v3405_v32 }
  0x40   : > { %459 = vst [vmem:[#allocation2 + $0x100] sm:$0xff] %v3405_v32  ;;  %460 = vst [vmem:[#allocation2 + $0xc8] sm:$0xff] %v3405_v32 }
  0x41   : > { %461 = vst [vmem:[#allocation2 + $0x40] sm:$0xff] %v3405_v32  ;;  %462 = vst [vmem:[#allocation2 + $0x1f8] sm:$0xff] %v3405_v32 }
  0x42   : > { %463 = vst [vmem:[#allocation2 + $0x20] sm:$0xff] %v3405_v32  ;;  %464 = vst [vmem:[#allocation2 + $0x128] sm:$0xff] %v3405_v32 }
  0x43   : > { %465 = vst [vmem:[#allocation2 + $0x1a0] sm:$0xff] %v3405_v32  ;;  %466 = vst [vmem:[#allocation2 + $0x1f0] sm:$0xff] %v3405_v32 }
  0x44   : > { %467 = vst [vmem:[#allocation2 + $0xe8] sm:$0xff] %v3405_v32  ;;  %468 = vst [vmem:[#allocation2 + $0x78] sm:$0xff] %v3405_v32 }
  0x45   : > { %469 = vst [vmem:[#allocation2 + $0x70] sm:$0xff] %v3405_v32  ;;  %470 = vst [vmem:[#allocation2 + $0x90] sm:$0xff] %v3405_v32 }
  0x46   : > { %471 = vst [vmem:[#allocation2 + $0x1d8] sm:$0xff] %v3405_v32  ;;  %472 = vst [vmem:[#allocation2 + $0xd0] sm:$0xff] %v3405_v32 }
  0x47   : > { %473 = vst [vmem:[#allocation2 + $0xb8] sm:$0xff] %v3405_v32  ;;  %474 = vst [vmem:[#allocation2 + $0x88] sm:$0xff] %v3405_v32 }
  0x48   : > { %475 = vst [vmem:[#allocation2 + $0xa8] sm:$0xff] %v3405_v32  ;;  %476 = vst [vmem:[#allocation2 + $0x1c8] sm:$0xff] %v3405_v32 }
  0x49   : > { %477 = vst [vmem:[#allocation2 + $0x170] sm:$0xff] %v3405_v32  ;;  %478 = vst [vmem:[#allocation2 + $0x178] sm:$0xff] %v3405_v32 }
  0x4a   : > { %479 = vst [vmem:[#allocation2 + $0x68] sm:$0xff] %v3405_v32  ;;  %480 = vst [vmem:[#allocation2 + $0x190] sm:$0xff] %v3405_v32 }
  0x4b   : > { %481 = vst [vmem:[#allocation2 + $0x198] sm:$0xff] %v3405_v32  ;;  %482 = vst [vmem:[#allocation2 + $0x38] sm:$0xff] %v3405_v32 }
  0x4c   : > { %483 = vst [vmem:[#allocation2 + $0xc0] sm:$0xff] %v3405_v32  ;;  %484 = vst [vmem:[#allocation2 + $0x1c0] sm:$0xff] %v3405_v32 }
  0x4d   : > { %485 = vst [vmem:[#allocation2 + $0x158] sm:$0xff] %v3405_v32  ;;  %486 = vst [vmem:[#allocation2 + $0x10] sm:$0xff] %v3405_v32 }
  0x4e   : > { %487 = vst [vmem:[#allocation2 + $0x58] sm:$0xff] %v3405_v32  ;;  %488 = vst [vmem:[#allocation2 + $0xa0] sm:$0xff] %v3405_v32 }
  0x4f PF: > { %v3125_v33 = vld [vmem:[%s3549_s11 + $0xe4] ss:$16 sps:$4 sm:$0xff]   ;;  %v3129_v35 = vld [vmem:[%s3549_s11 + $0xe0] ss:$16 sps:$4 sm:$0xff]   ;;  %v3672_v20 = vld [vmem:[%s3551_s12 + $0xc] ss:$16 sps:$4 sm:$0xff]  }
  0x50   : > { %v3127_v34 = vld [vmem:[%s3549_s11 + $0x2e4] ss:$16 sps:$4 sm:$0xff]   ;;  %1513 = vmatprep.subr.bf16.mxu0 %v3125_v33  ;;  %v3130_v36 = vld [vmem:[%s3549_s11 + $0x2e0] ss:$16 sps:$4 sm:$0xff]   ;;  %1658 = vmatprep.mubr.bf16.mxu1 %v3672_v20  ;;  %p3013_p11 = scmp.ne.s32.totalorder %s3395_s17, 26 }
  0x51   : > { %1626 = vmatprep.subr.bf16.mxu1 %v3127_v34  ;;  %v3131_v37 = vld [vmem:[%s3549_s11 + $0xc4] ss:$16 sps:$4 sm:$0xff]   ;;  %1514 = vmatpush1.bf16.msra.mxu0 %v3129_v35  ;;  %v3135_v39 = vld [vmem:[%s3549_s11 + $0xc0] ss:$16 sps:$4 sm:$0xff]   ;;  %v3229_v35 = vld [vmem:[%s3549_s11 + $0xec] ss:$16 sps:$4 sm:$0xff]  }
  0x52   : > { %1627 = vmatpush1.bf16.msra.mxu1 %v3130_v36  ;;  %v3133_v38 = vld [vmem:[%s3549_s11 + $0x2c4] ss:$16 sps:$4 sm:$0xff]   ;;  %1515 = vmatprep.subr.bf16.mxu0 %v3131_v37  ;;  %v3136_v40 = vld [vmem:[%s3549_s11 + $0x2c0] ss:$16 sps:$4 sm:$0xff]   ;;  %v3232_v36 = vld [vmem:[%s3549_s11 + $0x2ec] ss:$16 sps:$4 sm:$0xff]  }
  0x53   : > { %1628 = vmatprep.subr.bf16.mxu1 %v3133_v38  ;;  %v3137_v41 = vld [vmem:[%s3549_s11 + $0xa4] ss:$16 sps:$4 sm:$0xff]   ;;  %v3141_v43 = vld [vmem:[%s3549_s11 + $0xa0] ss:$16 sps:$4 sm:$0xff]   ;;  %v3696_v38 = vld [vmem:[%s3551_s12 + $0x8] ss:$16 sps:$4 sm:$0xff]  }
  0x54   : > { %v3139_v42 = vld [vmem:[%s3549_s11 + $0x2a4] ss:$16 sps:$4 sm:$0xff]   ;;  %v3142_v44 = vld [vmem:[%s3549_s11 + $0x2a0] ss:$16 sps:$4 sm:$0xff]  }
  0x55   : > { %1516 = vmatpush1.bf16.msra.mxu0 %v3135_v39  ;;  %v3143_v45 = vld [vmem:[%s3549_s11 + $0x84] ss:$16 sps:$4 sm:$0xff]   ;;  %v3147_v47 = vld [vmem:[%s3549_s11 + $0x80] ss:$16 sps:$4 sm:$0xff]   ;;  %v3227_v39 = vld [vmem:[%s3549_s11 + $0xe8] ss:$16 sps:$4 sm:$0xff]  }
  0x56   : > { %1629 = vmatpush1.bf16.msra.mxu1 %v3136_v40  ;;  %1517 = vmatprep.subr.bf16.mxu0 %v3137_v41  ;;  %v3145_v46 = vld [vmem:[%s3549_s11 + $0x284] ss:$16 sps:$4 sm:$0xff]   ;;  %v3148_v48 = vld [vmem:[%s3549_s11 + $0x280] ss:$16 sps:$4 sm:$0xff]   ;;  %v3230_v40 = vld [vmem:[%s3549_s11 + $0x2e8] ss:$16 sps:$4 sm:$0xff]  }
  0x57   : > { %1630 = vmatprep.subr.bf16.mxu1 %v3139_v42  ;;  %v3149_v49 = vld [vmem:[%s3549_s11 + $0x64] ss:$16 sps:$4 sm:$0xff]   ;;  %v3153_v51 = vld [vmem:[%s3549_s11 + $0x60] ss:$16 sps:$4 sm:$0xff]   ;;  %v3235_v41 = vld [vmem:[%s3549_s11 + $0xcc] ss:$16 sps:$4 sm:$0xff]  }
  0x58   : > { %v3151_v50 = vld [vmem:[%s3549_s11 + $0x264] ss:$16 sps:$4 sm:$0xff]   ;;  %v3154_v52 = vld [vmem:[%s3549_s11 + $0x260] ss:$16 sps:$4 sm:$0xff]   ;;  %v3238_v42 = vld [vmem:[%s3549_s11 + $0x2cc] ss:$16 sps:$4 sm:$0xff]  }
  0x59   : > { %1518 = vmatpush1.bf16.msra.mxu0 %v3141_v43  ;;  %v3155_v53 = vld [vmem:[%s3549_s11 + $0x44] ss:$16 sps:$4 sm:$0xff]   ;;  %v3159_v55 = vld [vmem:[%s3549_s11 + $0x40] ss:$16 sps:$4 sm:$0xff]  }
  0x5a   : > { %1631 = vmatpush1.bf16.msra.mxu1 %v3142_v44  ;;  %1519 = vmatprep.subr.bf16.mxu0 %v3143_v45  ;;  %v3157_v54 = vld [vmem:[%s3549_s11 + $0x244] ss:$16 sps:$4 sm:$0xff]   ;;  %v3160_v56 = vld [vmem:[%s3549_s11 + $0x240] ss:$16 sps:$4 sm:$0xff]   ;;  %v3706_v44 = vld [vmem:[%s3551_s12 + $0x2c] ss:$16 sps:$4 sm:$0xff]  }
  0x5b   : > { %1632 = vmatprep.subr.bf16.mxu1 %v3145_v46  ;;  %v3161_v57 = vld [vmem:[%s3549_s11 + $0x24] ss:$16 sps:$4 sm:$0xff]   ;;  %v3165_v59 = vld [vmem:[%s3549_s11 + $0x20] ss:$16 sps:$4 sm:$0xff]   ;;  %v3233_v45 = vld [vmem:[%s3549_s11 + $0xc8] ss:$16 sps:$4 sm:$0xff]  }
  0x5c   : > { %v3163_v58 = vld [vmem:[%s3549_s11 + $0x224] ss:$16 sps:$4 sm:$0xff]   ;;  %v3166_v60 = vld [vmem:[%s3549_s11 + $0x220] ss:$16 sps:$4 sm:$0xff]   ;;  %v3236_v46 = vld [vmem:[%s3549_s11 + $0x2c8] ss:$16 sps:$4 sm:$0xff]  }
  0x5d   : > { %1520 = vmatpush1.bf16.msra.mxu0 %v3147_v47  ;;  %v3167_v61 = vld [vmem:[%s3549_s11 + $0x4] ss:$16 sps:$4 sm:$0xff]   ;;  %v3171_v63 = vld [vmem:[%s3549_s11] ss:$16 sps:$4 sm:$0xff]   ;;  %v3247_v47 = vld [vmem:[%s3549_s11 + $0xac] ss:$16 sps:$4 sm:$0xff]  }
  0x5e   : > { %1633 = vmatpush1.bf16.msra.mxu1 %v3148_v48  ;;  %1521 = vmatprep.subr.bf16.mxu0 %v3149_v49  ;;  %v3169_v62 = vld [vmem:[%s3549_s11 + $0x204] ss:$16 sps:$4 sm:$0xff]   ;;  %v3172_v0 = vld [vmem:[%s3549_s11 + $0x200] ss:$16 sps:$4 sm:$0xff]   ;;  %v3250_v48 = vld [vmem:[%s3549_s11 + $0x2ac] ss:$16 sps:$4 sm:$0xff]  }
  0x5f   : > { %1634 = vmatprep.subr.bf16.mxu1 %v3151_v50  ;;  %v3173_v1 = vld [vmem:[%s3549_s11 + $0x1e4] ss:$16 sps:$4 sm:$0xff]   ;;  %v3177_v3 = vld [vmem:[%s3549_s11 + $0x1e0] ss:$16 sps:$4 sm:$0xff]   ;;  %v3720_v50 = vld [vmem:[%s3551_s12 + $0x28] ss:$16 sps:$4 sm:$0xff]  }
  0x60   : > { %v3175_v2 = vld [vmem:[%s3549_s11 + $0x3e4] ss:$16 sps:$4 sm:$0xff]   ;;  %v3178_v4 = vld [vmem:[%s3549_s11 + $0x3e0] ss:$16 sps:$4 sm:$0xff]  }
  0x61   : > { %1522 = vmatpush1.bf16.msra.mxu0 %v3153_v51  ;;  %v3179_v5 = vld [vmem:[%s3549_s11 + $0x1c4] ss:$16 sps:$4 sm:$0xff]   ;;  %v3183_v7 = vld [vmem:[%s3549_s11 + $0x1c0] ss:$16 sps:$4 sm:$0xff]   ;;  %v3245_v51 = vld [vmem:[%s3549_s11 + $0xa8] ss:$16 sps:$4 sm:$0xff]  }
  0x62   : > { %1635 = vmatpush1.bf16.msra.mxu1 %v3154_v52  ;;  %1523 = vmatprep.subr.bf16.mxu0 %v3155_v53  ;;  %v3181_v6 = vld [vmem:[%s3549_s11 + $0x3c4] ss:$16 sps:$4 sm:$0xff]   ;;  %v3184_v8 = vld [vmem:[%s3549_s11 + $0x3c0] ss:$16 sps:$4 sm:$0xff]   ;;  %v3248_v52 = vld [vmem:[%s3549_s11 + $0x2a8] ss:$16 sps:$4 sm:$0xff]  }
  0x63   : > { %1636 = vmatprep.subr.bf16.mxu1 %v3157_v54  ;;  %v3185_v9 = vld [vmem:[%s3549_s11 + $0x1a4] ss:$16 sps:$4 sm:$0xff]   ;;  %v3189_v11 = vld [vmem:[%s3549_s11 + $0x1a0] ss:$16 sps:$4 sm:$0xff]   ;;  %v3253_v53 = vld [vmem:[%s3549_s11 + $0x8c] ss:$16 sps:$4 sm:$0xff]  }
  0x64   : > { %v3187_v10 = vld [vmem:[%s3549_s11 + $0x3a4] ss:$16 sps:$4 sm:$0xff]   ;;  %v3190_v12 = vld [vmem:[%s3549_s11 + $0x3a0] ss:$16 sps:$4 sm:$0xff]   ;;  %v3256_v54 = vld [vmem:[%s3549_s11 + $0x28c] ss:$16 sps:$4 sm:$0xff]  }
  0x65   : > { %1524 = vmatpush1.bf16.msra.mxu0 %v3159_v55  ;;  %v3191_v13 = vld [vmem:[%s3549_s11 + $0x184] ss:$16 sps:$4 sm:$0xff]   ;;  %v3195_v15 = vld [vmem:[%s3549_s11 + $0x180] ss:$16 sps:$4 sm:$0xff]  }
  0x66   : > { %1637 = vmatpush1.bf16.msra.mxu1 %v3160_v56  ;;  %1525 = vmatprep.subr.bf16.mxu0 %v3161_v57  ;;  %v3193_v14 = vld [vmem:[%s3549_s11 + $0x384] ss:$16 sps:$4 sm:$0xff]   ;;  %v3196_v16 = vld [vmem:[%s3549_s11 + $0x380] ss:$16 sps:$4 sm:$0xff]   ;;  %v3730_v56 = vld [vmem:[%s3551_s12 + $0x4c] ss:$16 sps:$4 sm:$0xff]  }
  0x67   : > { %1638 = vmatprep.subr.bf16.mxu1 %v3163_v58  ;;  %v3197_v17 = vld [vmem:[%s3549_s11 + $0x164] ss:$16 sps:$4 sm:$0xff]   ;;  %v3201_v21 = vld [vmem:[%s3549_s11 + $0x160] ss:$16 sps:$4 sm:$0xff]   ;;  %v3251_v57 = vld [vmem:[%s3549_s11 + $0x88] ss:$16 sps:$4 sm:$0xff]  }
  0x68   : > { %v3668_v18 = vld [vmem:[%s3551_s12 + $0x4] ss:$16 sps:$4 sm:$0xff]   ;;  %v3202_v22 = vld [vmem:[%s3549_s11 + $0x360] ss:$16 sps:$4 sm:$0xff]   ;;  %v3254_v58 = vld [vmem:[%s3549_s11 + $0x288] ss:$16 sps:$4 sm:$0xff]  }
  0x69   : > { %1526 = vmatpush1.bf16.msra.mxu0 %v3165_v59  ;;  %v3199_v19 = vld [vmem:[%s3549_s11 + $0x364] ss:$16 sps:$4 sm:$0xff]   ;;  %1545 = vmatprep.mubr.bf16.mxu0 %v3668_v18  ;;  %v3207_v25 = vld [vmem:[%s3549_s11 + $0x140] ss:$16 sps:$4 sm:$0xff]   ;;  %v3265_v59 = vld [vmem:[%s3549_s11 + $0x6c] ss:$16 sps:$4 sm:$0xff]  }
  0x6a   : > { %1639 = vmatpush1.bf16.msra.mxu1 %v3166_v60  ;;  %1527 = vmatprep.subr.bf16.mxu0 %v3167_v61  ;;  %v3203_v23 = vld [vmem:[%s3549_s11 + $0x144] ss:$16 sps:$4 sm:$0xff]   ;;  %v3208_v26 = vld [vmem:[%s3549_s11 + $0x340] ss:$16 sps:$4 sm:$0xff]   ;;  %v3268_v60 = vld [vmem:[%s3549_s11 + $0x26c] ss:$16 sps:$4 sm:$0xff]  }
  0x6b   : > { %1640 = vmatprep.subr.bf16.mxu1 %v3169_v62  ;;  %v3205_v24 = vld [vmem:[%s3549_s11 + $0x344] ss:$16 sps:$4 sm:$0xff]   ;;  %v3213_v29 = vld [vmem:[%s3549_s11 + $0x120] ss:$16 sps:$4 sm:$0xff]   ;;  %v3744_v62 = vld [vmem:[%s3551_s12 + $0x48] ss:$16 sps:$4 sm:$0xff]  }
  0x6c   : > { %v3209_v27 = vld [vmem:[%s3549_s11 + $0x124] ss:$16 sps:$4 sm:$0xff]   ;;  %v3214_v30 = vld [vmem:[%s3549_s11 + $0x320] ss:$16 sps:$4 sm:$0xff]  }
  0x6d   : > { %1528 = vmatpush1.bf16.msra.mxu0 %v3171_v63  ;;  %v3211_v28 = vld [vmem:[%s3549_s11 + $0x324] ss:$16 sps:$4 sm:$0xff]   ;;  %v3219_v33 = vld [vmem:[%s3549_s11 + $0x100] ss:$16 sps:$4 sm:$0xff]   ;;  %v3263_v63 = vld [vmem:[%s3549_s11 + $0x68] ss:$16 sps:$4 sm:$0xff]  }
  0x6e   : > { %1641 = vmatpush1.bf16.msra.mxu1 %v3172_v0  ;;  %1529 = vmatprep.subr.bf16.mxu0 %v3173_v1  ;;  %v3215_v31 = vld [vmem:[%s3549_s11 + $0x104] ss:$16 sps:$4 sm:$0xff]   ;;  %v3220_v34 = vld [vmem:[%s3549_s11 + $0x300] ss:$16 sps:$4 sm:$0xff]   ;;  %v3266_v0 = vld [vmem:[%s3549_s11 + $0x268] ss:$16 sps:$4 sm:$0xff]  }
  0x6f   : > { %1642 = vmatprep.subr.bf16.mxu1 %v3175_v2  ;;  %v3217_v32 = vld [vmem:[%s3549_s11 + $0x304] ss:$16 sps:$4 sm:$0xff]   ;;  %v3693_v37 = vld [vmem:[%s3551_s12] ss:$16 sps:$4 sm:$0xff]   ;;  %v3271_v1 = vld [vmem:[%s3549_s11 + $0x4c] ss:$16 sps:$4 sm:$0xff]  }
  0x70   : > { %v3703_v43 = vld [vmem:[%s3551_s12 + $0x24] ss:$16 sps:$4 sm:$0xff]   ;;  %v3717_v49 = vld [vmem:[%s3551_s12 + $0x20] ss:$16 sps:$4 sm:$0xff]   ;;  %v3274_v2 = vld [vmem:[%s3549_s11 + $0x24c] ss:$16 sps:$4 sm:$0xff]  }
  0x71   : > { %1530 = vmatpush2.bf16.msra.mxu0 %v3177_v3  ;;  %v3727_v55 = vld [vmem:[%s3551_s12 + $0x44] ss:$16 sps:$4 sm:$0xff]   ;;  %v3741_v61 = vld [vmem:[%s3551_s12 + $0x40] ss:$16 sps:$4 sm:$0xff]  }
  0x72   : > { %1643 = vmatpush2.bf16.msra.mxu1 %v3178_v4  ;;  %1531 = vmatprep.subr.bf16.mxu0 %v3179_v5  ;;  %v3751_v3 = vld [vmem:[%s3551_s12 + $0x64] ss:$16 sps:$4 sm:$0xff]   ;;  %v3754_v4 = vld [vmem:[%s3551_s12 + $0x6c] ss:$16 sps:$4 sm:$0xff]   ;;  %v3269_v5 = vld [vmem:[%s3549_s11 + $0x48] ss:$16 sps:$4 sm:$0xff]  }
  0x73   : > { %1644 = vmatprep.subr.bf16.mxu1 %v3181_v6  ;;  %v3272_v6 = vld [vmem:[%s3549_s11 + $0x248] ss:$16 sps:$4 sm:$0xff]  }
  0x75   : > { %1532 = vmatpush2.bf16.msra.mxu0 %v3183_v7  ;;  %v3283_v7 = vld [vmem:[%s3549_s11 + $0x2c] ss:$16 sps:$4 sm:$0xff]  }
  0x76   : > { %1645 = vmatpush2.bf16.msra.mxu1 %v3184_v8  ;;  %1533 = vmatprep.subr.bf16.mxu0 %v3185_v9  ;;  %v3286_v8 = vld [vmem:[%s3549_s11 + $0x22c] ss:$16 sps:$4 sm:$0xff]   ;;  %v3765_v9 = vld [vmem:[%s3551_s12 + $0x60] ss:$16 sps:$4 sm:$0xff]  }
  0x77   : > { %1646 = vmatprep.subr.bf16.mxu1 %v3187_v10  ;;  %v3768_v10 = vld [vmem:[%s3551_s12 + $0x68] ss:$16 sps:$4 sm:$0xff]  }
  0x79   : > { %1534 = vmatpush2.bf16.msra.mxu0 %v3189_v11  ;;  %v3281_v11 = vld [vmem:[%s3549_s11 + $0x28] ss:$16 sps:$4 sm:$0xff]  }
  0x7a   : > { %1647 = vmatpush2.bf16.msra.mxu1 %v3190_v12  ;;  %1535 = vmatprep.subr.bf16.mxu0 %v3191_v13  ;;  %v3284_v12 = vld [vmem:[%s3549_s11 + $0x228] ss:$16 sps:$4 sm:$0xff]   ;;  %v3289_v13 = vld [vmem:[%s3549_s11 + $0xc] ss:$16 sps:$4 sm:$0xff]  }
  0x7b   : > { %1648 = vmatprep.subr.bf16.mxu1 %v3193_v14  ;;  %v3292_v14 = vld [vmem:[%s3549_s11 + $0x20c] ss:$16 sps:$4 sm:$0xff]  }
  0x7d   : > { %1536 = vmatpush2.bf16.msra.mxu0 %v3195_v15  ;;  %v3775_v15 = vld [vmem:[%s3551_s12 + $0x84] ss:$16 sps:$4 sm:$0xff]  }
  0x7e   : > { %1649 = vmatpush2.bf16.msra.mxu1 %v3196_v16  ;;  %1537 = vmatprep.subr.bf16.mxu0 %v3197_v17  ;;  %v3778_v16 = vld [vmem:[%s3551_s12 + $0x8c] ss:$16 sps:$4 sm:$0xff]   ;;  %v3287_v17 = vld [vmem:[%s3549_s11 + $0x8] ss:$16 sps:$4 sm:$0xff]  }
  0x7f   : > { %1650 = vmatprep.subr.bf16.mxu1 %v3199_v19  ;;  %v3290_v19 = vld [vmem:[%s3549_s11 + $0x208] ss:$16 sps:$4 sm:$0xff]  }
  0x81   : > { %1538 = vmatpush2.bf16.msra.mxu0 %v3201_v21  ;;  %v3301_v21 = vld [vmem:[%s3549_s11 + $0x1ec] ss:$16 sps:$4 sm:$0xff]  }
  0x82   : > { %1651 = vmatpush2.bf16.msra.mxu1 %v3202_v22  ;;  %1539 = vmatprep.subr.bf16.mxu0 %v3203_v23  ;;  %v3304_v22 = vld [vmem:[%s3549_s11 + $0x3ec] ss:$16 sps:$4 sm:$0xff]   ;;  %v3789_v23 = vld [vmem:[%s3551_s12 + $0x80] ss:$16 sps:$4 sm:$0xff]  }
  0x83   : > { %1652 = vmatprep.subr.bf16.mxu1 %v3205_v24  ;;  %v3792_v24 = vld [vmem:[%s3551_s12 + $0x88] ss:$16 sps:$4 sm:$0xff]  }
  0x85   : > { %1540 = vmatpush2.bf16.msra.mxu0 %v3207_v25  ;;  %v3299_v25 = vld [vmem:[%s3549_s11 + $0x1e8] ss:$16 sps:$4 sm:$0xff]  }
  0x86   : > { %1653 = vmatpush2.bf16.msra.mxu1 %v3208_v26  ;;  %1541 = vmatprep.subr.bf16.mxu0 %v3209_v27  ;;  %v3302_v26 = vld [vmem:[%s3549_s11 + $0x3e8] ss:$16 sps:$4 sm:$0xff]   ;;  %v3307_v27 = vld [vmem:[%s3549_s11 + $0x1cc] ss:$16 sps:$4 sm:$0xff]  }
  0x87   : > { %1654 = vmatprep.subr.bf16.mxu1 %v3211_v28  ;;  %v3310_v28 = vld [vmem:[%s3549_s11 + $0x3cc] ss:$16 sps:$4 sm:$0xff]  }
  0x89   : > { %1542 = vmatpush2.bf16.msra.mxu0 %v3213_v29  ;;  %v3799_v29 = vld [vmem:[%s3551_s12 + $0xa4] ss:$16 sps:$4 sm:$0xff]  }
  0x8a   : > { %1655 = vmatpush2.bf16.msra.mxu1 %v3214_v30  ;;  %1543 = vmatprep.subr.bf16.mxu0 %v3215_v31  ;;  %v3802_v30 = vld [vmem:[%s3551_s12 + $0xac] ss:$16 sps:$4 sm:$0xff]   ;;  %v3305_v31 = vld [vmem:[%s3549_s11 + $0x1c8] ss:$16 sps:$4 sm:$0xff]  }
  0x8b   : > { %1656 = vmatprep.subr.bf16.mxu1 %v3217_v32  ;;  %v3308_v32 = vld [vmem:[%s3549_s11 + $0x3c8] ss:$16 sps:$4 sm:$0xff]  }
  0x8d   : > { %1544 = vmatpush2.bf16.msra.mxu0 %v3219_v33  ;;  %v3319_v33 = vld [vmem:[%s3549_s11 + $0x1ac] ss:$16 sps:$4 sm:$0xff]  }
  0x8e   : > { %1657 = vmatpush2.bf16.msra.mxu1 %v3220_v34  ;;  %1739 = vmatprep.subr.bf16.mxu0 %v3229_v35  ;;  %v3322_v34 = vld [vmem:[%s3549_s11 + $0x3ac] ss:$16 sps:$4 sm:$0xff]   ;;  %v3813_v35 = vld [vmem:[%s3551_s12 + $0xa0] ss:$16 sps:$4 sm:$0xff]  }
  0x8f   : > { %1852 = vmatprep.subr.bf16.mxu1 %v3232_v36  ;;  %v3816_v36 = vld [vmem:[%s3551_s12 + $0xa8] ss:$16 sps:$4 sm:$0xff]  }
  0x90   : > { %1546 = vmatmul.mubr.bf16.vlgmr.msra.gmra.mxu0 %v3693_v37 }
  0x91   : > { %1659 = vmatmul.mubr.bf16.vlgmr.msra.gmra.mxu1 %v3696_v38  ;;  %1740 = vmatpush1.bf16.msra.mxu0 %v3227_v39  ;;  %v3317_v39 = vld [vmem:[%s3549_s11 + $0x1a8] ss:$16 sps:$4 sm:$0xff]  }
  0x92   : > { %1853 = vmatpush1.bf16.msra.mxu1 %v3230_v40  ;;  %1741 = vmatprep.subr.bf16.mxu0 %v3235_v41  ;;  %v3320_v40 = vld [vmem:[%s3549_s11 + $0x3a8] ss:$16 sps:$4 sm:$0xff]   ;;  %v3325_v41 = vld [vmem:[%s3549_s11 + $0x18c] ss:$16 sps:$4 sm:$0xff]  }
  0x93   : > { %1854 = vmatprep.subr.bf16.mxu1 %v3238_v42  ;;  %1555 = vmatprep.mubr.bf16.mxu0 %v3703_v43  ;;  %v3328_v42 = vld [vmem:[%s3549_s11 + $0x38c] ss:$16 sps:$4 sm:$0xff]  }
  0x94   : > { %1668 = vmatprep.mubr.bf16.mxu1 %v3706_v44 }
  0x95   : > { %1742 = vmatpush1.bf16.msra.mxu0 %v3233_v45  ;;  %v3823_v45 = vld [vmem:[%s3551_s12 + $0xc4] ss:$16 sps:$4 sm:$0xff]  }
  0x96   : > { %1855 = vmatpush1.bf16.msra.mxu1 %v3236_v46  ;;  %1743 = vmatprep.subr.bf16.mxu0 %v3247_v47  ;;  %v3826_v46 = vld [vmem:[%s3551_s12 + $0xcc] ss:$16 sps:$4 sm:$0xff]   ;;  %v3323_v47 = vld [vmem:[%s3549_s11 + $0x188] ss:$16 sps:$4 sm:$0xff]  }
  0x97   : > { %1856 = vmatprep.subr.bf16.mxu1 %v3250_v48  ;;  %v3326_v48 = vld [vmem:[%s3549_s11 + $0x388] ss:$16 sps:$4 sm:$0xff]  }
  0x98   : > { %1556 = vmatmul.mubr.bf16.gmra.mxu0 %v3717_v49 }
  0x99   : > { %1669 = vmatmul.mubr.bf16.gmra.mxu1 %v3720_v50  ;;  %1744 = vmatpush1.bf16.msra.mxu0 %v3245_v51  ;;  %v3337_v51 = vld [vmem:[%s3549_s11 + $0x16c] ss:$16 sps:$4 sm:$0xff]  }
  0x9a   : > { %1857 = vmatpush1.bf16.msra.mxu1 %v3248_v52  ;;  %1745 = vmatprep.subr.bf16.mxu0 %v3253_v53  ;;  %v3340_v52 = vld [vmem:[%s3549_s11 + $0x36c] ss:$16 sps:$4 sm:$0xff]   ;;  %v3837_v53 = vld [vmem:[%s3551_s12 + $0xc0] ss:$16 sps:$4 sm:$0xff]  }
  0x9b   : > { %1858 = vmatprep.subr.bf16.mxu1 %v3256_v54  ;;  %1565 = vmatprep.mubr.bf16.mxu0 %v3727_v55  ;;  %v3840_v54 = vld [vmem:[%s3551_s12 + $0xc8] ss:$16 sps:$4 sm:$0xff]  }
  0x9c   : > { %1678 = vmatprep.mubr.bf16.mxu1 %v3730_v56 }
  0x9d   : > { %1746 = vmatpush1.bf16.msra.mxu0 %v3251_v57  ;;  %v3335_v57 = vld [vmem:[%s3549_s11 + $0x168] ss:$16 sps:$4 sm:$0xff]  }
  0x9e   : > { %1859 = vmatpush1.bf16.msra.mxu1 %v3254_v58  ;;  %1747 = vmatprep.subr.bf16.mxu0 %v3265_v59  ;;  %v3338_v58 = vld [vmem:[%s3549_s11 + $0x368] ss:$16 sps:$4 sm:$0xff]   ;;  %v3343_v59 = vld [vmem:[%s3549_s11 + $0x14c] ss:$16 sps:$4 sm:$0xff]  }
  0x9f   : > { %1860 = vmatprep.subr.bf16.mxu1 %v3268_v60  ;;  %v3346_v60 = vld [vmem:[%s3549_s11 + $0x34c] ss:$16 sps:$4 sm:$0xff]  }
  0xa0   : > { %1566 = vmatmul.mubr.bf16.gmra.mxu0 %v3741_v61 }
  0xa1   : > { %1679 = vmatmul.mubr.bf16.gmra.mxu1 %v3744_v62  ;;  %1748 = vmatpush1.bf16.msra.mxu0 %v3263_v63  ;;  %v3347_v63 = vld [vmem:[%s3551_s12 + $0xe4] ss:$16 sps:$4 sm:$0xff]  }
  0xa2   : > { %1861 = vmatpush1.bf16.msra.mxu1 %v3266_v0  ;;  %1749 = vmatprep.subr.bf16.mxu0 %v3271_v1  ;;  %v3349_v0 = vld [vmem:[%s3551_s12 + $0xec] ss:$16 sps:$4 sm:$0xff]   ;;  %v3341_v1 = vld [vmem:[%s3549_s11 + $0x148] ss:$16 sps:$4 sm:$0xff]  }
  0xa3   : > { %1862 = vmatprep.subr.bf16.mxu1 %v3274_v2  ;;  %1575 = vmatprep.mubr.bf16.mxu0 %v3751_v3  ;;  %v3344_v2 = vld [vmem:[%s3549_s11 + $0x348] ss:$16 sps:$4 sm:$0xff]  }
  0xa4   : > { %1688 = vmatprep.mubr.bf16.mxu1 %v3754_v4 }
  0xa5   : > { %1750 = vmatpush1.bf16.msra.mxu0 %v3269_v5  ;;  %v3355_v5 = vld [vmem:[%s3549_s11 + $0x12c] ss:$16 sps:$4 sm:$0xff]  }
  0xa6   : > { %1863 = vmatpush1.bf16.msra.mxu1 %v3272_v6  ;;  %1751 = vmatprep.subr.bf16.mxu0 %v3283_v7  ;;  %v3358_v6 = vld [vmem:[%s3549_s11 + $0x32c] ss:$16 sps:$4 sm:$0xff]   ;;  %v3351_v7 = vld [vmem:[%s3551_s12 + $0xe0] ss:$16 sps:$4 sm:$0xff]  }
  0xa7   : > { %1864 = vmatprep.subr.bf16.mxu1 %v3286_v8  ;;  %v3352_v8 = vld [vmem:[%s3551_s12 + $0xe8] ss:$16 sps:$4 sm:$0xff]  }
  0xa8   : > { %1576 = vmatmul.mubr.bf16.gmra.mxu0 %v3765_v9 }
  0xa9   : > { %1689 = vmatmul.mubr.bf16.gmra.mxu1 %v3768_v10  ;;  %1752 = vmatpush1.bf16.msra.mxu0 %v3281_v11  ;;  %v3353_v11 = vld [vmem:[%s3549_s11 + $0x128] ss:$16 sps:$4 sm:$0xff]  }
  0xaa   : > { %1865 = vmatpush1.bf16.msra.mxu1 %v3284_v12  ;;  %1753 = vmatprep.subr.bf16.mxu0 %v3289_v13  ;;  %v3356_v12 = vld [vmem:[%s3549_s11 + $0x328] ss:$16 sps:$4 sm:$0xff]   ;;  %v3361_v13 = vld [vmem:[%s3549_s11 + $0x10c] ss:$16 sps:$4 sm:$0xff]  }
  0xab   : > { %1866 = vmatprep.subr.bf16.mxu1 %v3292_v14  ;;  %1585 = vmatprep.mubr.bf16.mxu0 %v3775_v15  ;;  %v3364_v14 = vld [vmem:[%s3549_s11 + $0x30c] ss:$16 sps:$4 sm:$0xff]  }
  0xac   : > { %1698 = vmatprep.mubr.bf16.mxu1 %v3778_v16 }
  0xad   : > { %1754 = vmatpush1.bf16.msra.mxu0 %v3287_v17  ;;  %v3359_v17 = vld [vmem:[%s3549_s11 + $0x108] ss:$16 sps:$4 sm:$0xff]  }
  0xae   : > { %1867 = vmatpush1.bf16.msra.mxu1 %v3290_v19  ;;  %1755 = vmatprep.subr.bf16.mxu0 %v3301_v21  ;;  %v3362_v19 = vld [vmem:[%s3549_s11 + $0x308] ss:$16 sps:$4 sm:$0xff]  }
  0xaf   : > { %1868 = vmatprep.subr.bf16.mxu1 %v3304_v22 }
  0xb0   : > { %1586 = vmatmul.mubr.bf16.gmra.mxu0 %v3789_v23 }
  0xb1   : > { %1699 = vmatmul.mubr.bf16.gmra.mxu1 %v3792_v24  ;;  %1756 = vmatpush2.bf16.msra.mxu0 %v3299_v25 }
  0xb2   : > { %1869 = vmatpush2.bf16.msra.mxu1 %v3302_v26  ;;  %1757 = vmatprep.subr.bf16.mxu0 %v3307_v27 }
  0xb3   : > { %1870 = vmatprep.subr.bf16.mxu1 %v3310_v28  ;;  %1595 = vmatprep.mubr.bf16.mxu0 %v3799_v29  ;;  %v498_v28 = vld [vmem:[#allocation2 + $0x110] sm:$0xff] }
  0xb4   : > { %1708 = vmatprep.mubr.bf16.mxu1 %v3802_v30 }
  0xb5   : > { %1758 = vmatpush2.bf16.msra.mxu0 %v3305_v31 }
  0xb6   : > { %1871 = vmatpush2.bf16.msra.mxu1 %v3308_v32  ;;  %1759 = vmatprep.subr.bf16.mxu0 %v3319_v33  ;;  %v501_v33 = vld [vmem:[#allocation2 + $0x120] sm:$0xff] }
  0xb7   : > { %1872 = vmatprep.subr.bf16.mxu1 %v3322_v34 }
  0xb8   : > { %1596 = vmatmul.mubr.bf16.gmra.mxu0 %v3813_v35 }
  0xb9   : > { %1709 = vmatmul.mubr.bf16.gmra.mxu1 %v3816_v36  ;;  %1760 = vmatpush2.bf16.msra.mxu0 %v3317_v39 }
  0xba   : > { %1873 = vmatpush2.bf16.msra.mxu1 %v3320_v40  ;;  %1761 = vmatprep.subr.bf16.mxu0 %v3325_v41  ;;  %v502_v40 = vld [vmem:[#allocation2 + $0x150] sm:$0xff] }
  0xbb   : > { %1874 = vmatprep.subr.bf16.mxu1 %v3328_v42  ;;  %1605 = vmatprep.mubr.bf16.mxu0 %v3823_v45 }
  0xbc   : > { %1718 = vmatprep.mubr.bf16.mxu1 %v3826_v46 }
  0xbd   : > { %1762 = vmatpush2.bf16.msra.mxu0 %v3323_v47  ;;  %v505_v47 = vld [vmem:[#allocation2 + $0xe0] sm:$0xff] }
  0xbe   : > { %1875 = vmatpush2.bf16.msra.mxu1 %v3326_v48  ;;  %1763 = vmatprep.subr.bf16.mxu0 %v3337_v51 }
  0xbf   : > { %1876 = vmatprep.subr.bf16.mxu1 %v3340_v52 }
  0xc0   : > { %1606 = vmatmul.mubr.bf16.gmra.mxu0 %v3837_v53 }
  0xc1   : > { %1719 = vmatmul.mubr.bf16.gmra.mxu1 %v3840_v54  ;;  %1764 = vmatpush2.bf16.msra.mxu0 %v3335_v57 }
  0xc2   : > { %1877 = vmatpush2.bf16.msra.mxu1 %v3338_v58  ;;  %1765 = vmatprep.subr.bf16.mxu0 %v3343_v59 }
  0xc3   : > { %1878 = vmatprep.subr.bf16.mxu1 %v3346_v60  ;;  %1615 = vmatprep.mubr.bf16.mxu0 %v3347_v63 }
  0xc4   : > { %1728 = vmatprep.mubr.bf16.mxu1 %v3349_v0 }
  0xc5   : > { %1766 = vmatpush2.bf16.msra.mxu0 %v3341_v1 }
  0xc6   : > { %1879 = vmatpush2.bf16.msra.mxu1 %v3344_v2  ;;  %1767 = vmatprep.subr.bf16.mxu0 %v3355_v5 }
  0xc7   : > { %1880 = vmatprep.subr.bf16.mxu1 %v3358_v6  ;;  %v510_v6 = vld [vmem:[#allocation2 + $0x1a8] sm:$0xff] }
  0xc8   : > { %1616 = vmatmul.mubr.bf16.gmra.mxu0 %v3351_v7 }
  0xc9   : > { %1729 = vmatmul.mubr.bf16.gmra.mxu1 %v3352_v8  ;;  %1768 = vmatpush2.bf16.msra.mxu0 %v3353_v11 }
  0xca   : > { %1881 = vmatpush2.bf16.msra.mxu1 %v3356_v12  ;;  %1769 = vmatprep.subr.bf16.mxu0 %v3361_v13  ;;  %v513_v13 = vld [vmem:[#allocation2 + $0x1e8] sm:$0xff] }
  0xcb   : > { %1882 = vmatprep.subr.bf16.mxu1 %v3364_v14  ;;  %1771 = vmatprep.mubr.bf16.mxu0 %v3668_v18 }
  0xcc   : > { %1884 = vmatprep.mubr.bf16.mxu1 %v3672_v20  ;;  %v489_v20 = vld [vmem:[#allocation2 + $0xb0] sm:$0xff] }
  0xcd   : > { %1770 = vmatpush2.bf16.msra.mxu0 %v3359_v17 }
  0xce   : > { %1883 = vmatpush2.bf16.msra.mxu1 %v3362_v19 }
  0xd0   : > { %1772 = vmatmul.mubr.bf16.vlgmr.msra.gmra.mxu0 %v3693_v37 }
  0xd1   : > { %1885 = vmatmul.mubr.bf16.vlgmr.msra.gmra.mxu1 %v3696_v38  ;;  %1781 = vmatprep.mubr.bf16.mxu0 %v3703_v43 }
  0xd2   : > { %1894 = vmatprep.mubr.bf16.mxu1 %v3706_v44  ;;  %v490_v44 = vld [vmem:[#allocation2 + $0x1b0] sm:$0xff] }
  0xd8   : > { %1782 = vmatmul.mubr.bf16.gmra.mxu0 %v3717_v49 }
  0xd9   : > { %1895 = vmatmul.mubr.bf16.gmra.mxu1 %v3720_v50  ;;  %1791 = vmatprep.mubr.bf16.mxu0 %v3727_v55 }
  0xda   : > { %1904 = vmatprep.mubr.bf16.mxu1 %v3730_v56 }
  0xe0   : > { %1792 = vmatmul.mubr.bf16.gmra.mxu0 %v3741_v61  ;;  %v493_v61 = vld [vmem:[#allocation2 + $0x50] sm:$0xff] }
  0xe1   : > { %1905 = vmatmul.mubr.bf16.gmra.mxu1 %v3744_v62  ;;  %1801 = vmatprep.mubr.bf16.mxu0 %v3751_v3 }
  0xe2   : > { %1914 = vmatprep.mubr.bf16.mxu1 %v3754_v4 }
  0xe8   : > { %1802 = vmatmul.mubr.bf16.gmra.mxu0 %v3765_v9 }
  0xe9   : > { %1915 = vmatmul.mubr.bf16.gmra.mxu1 %v3768_v10  ;;  %1811 = vmatprep.mubr.bf16.mxu0 %v3775_v15  ;;  %v494_v10 = vld [vmem:[#allocation2 + $0x168] sm:$0xff] }
  0xea   : > { %1924 = vmatprep.mubr.bf16.mxu1 %v3778_v16 }
  0xf0   : > { %1812 = vmatmul.mubr.bf16.gmra.mxu0 %v3789_v23  ;;  %v497_v23 = vld [vmem:[#allocation2 + $0x180] sm:$0xff] }
  0xf1   : > { %1925 = vmatmul.mubr.bf16.gmra.mxu1 %v3792_v24  ;;  %1821 = vmatprep.mubr.bf16.mxu0 %v3799_v29 }
  0xf2   : > { %1934 = vmatprep.mubr.bf16.mxu1 %v3802_v30 }
  0xf8   : > { %1822 = vmatmul.mubr.bf16.gmra.mxu0 %v3813_v35 }
  0xf9   : > { %1935 = vmatmul.mubr.bf16.gmra.mxu1 %v3816_v36  ;;  %1831 = vmatprep.mubr.bf16.mxu0 %v3823_v45 }
  0xfa   : > { %1944 = vmatprep.mubr.bf16.mxu1 %v3826_v46 }
 0x100   : > { %1832 = vmatmul.mubr.bf16.gmra.mxu0 %v3837_v53 }
 0x101   : > { %1945 = vmatmul.mubr.bf16.gmra.mxu1 %v3840_v54  ;;  %1841 = vmatprep.mubr.bf16.mxu0 %v3347_v63  ;;  %v506_v54 = vld [vmem:[#allocation2 + $0x188] sm:$0xff]  ;;  %v509_v63 = vld [vmem:[#allocation2 + $0x80] sm:$0xff] }
 0x102   : > { %1954 = vmatprep.mubr.bf16.mxu1 %v3349_v0 }
 0x108   : > { %1842 = vmatmul.mubr.bf16.gmra.mxu0 %v3351_v7 }
 0x109   : > { %1955 = vmatmul.mubr.bf16.gmra.mxu1 %v3352_v8 }
 0x150   : > { %v1547_v18 = vpop.f32.mrf.mxu0 }
 0x151   : > { %v1660_v37 = vpop.f32.mrf.mxu1 }
 0x152   : > { %v1661_v38 = vadd.f32 %v1660_v37, %v1547_v18  ;;  %v1549_v43 = vpop.f32.mrf.mxu0 }
 0x153   : > { %v1662_v49 = vpop.f32.mrf.mxu1 }
 0x154   : > { %v1965_v50 = vadd.f32 %v1661_v38, %v489_v20  ;;  %v1663_v55 = vadd.f32 %v1662_v49, %v1549_v43  ;;  %v1551_v56 = vpop.f32.mrf.mxu0  ;;  %v514_v20 = vld [vmem:[#allocation2 + $0xf8] sm:$0xff]  ;;  %v517_v49 = vld [vmem:[#allocation2 + $0x1e0] sm:$0xff] }
 0x155   : > { %v1664_v62 = vpop.f32.mrf.mxu1 }
 0x156   : > { %2029 = vst [vmem:[#allocation2 + $0xb0] sm:$0xff] %v1965_v50  ;;  %v1966_v3 = vadd.f32 %v1663_v55, %v490_v44  ;;  %v1665_v4 = vadd.f32 %v1664_v62, %v1551_v56  ;;  %v1553_v9 = vpop.f32.mrf.mxu0  ;;  %v518_v62 = vld [vmem:[#allocation2] sm:$0xff] }
 0x157   : > { %v1666_v15 = vpop.f32.mrf.mxu1 }
 0x158   : > { %2030 = vst [vmem:[#allocation2 + $0x1b0] sm:$0xff] %v1966_v3  ;;  %v1969_v16 = vadd.f32 %v1665_v4, %v493_v61  ;;  %v1667_v21 = vadd.f32 %v1666_v15, %v1553_v9  ;;  %v1557_v22 = vpop.f32.mrf.mxu0  ;;  %v521_v15 = vld [vmem:[#allocation2 + $0x148] sm:$0xff] }
 0x159   : > { %v1670_v24 = vpop.f32.mrf.mxu1 }
 0x15a   : > { %2033 = vst [vmem:[#allocation2 + $0x50] sm:$0xff] %v1969_v16  ;;  %v1970_v25 = vadd.f32 %v1667_v21, %v494_v10  ;;  %v1671_v26 = vadd.f32 %v1670_v24, %v1557_v22  ;;  %v1559_v27 = vpop.f32.mrf.mxu0  ;;  %v522_v24 = vld [vmem:[#allocation2 + $0x1d0] sm:$0xff] }
 0x15b   : > { %v1672_v29 = vpop.f32.mrf.mxu1 }
 0x15c   : > { %2034 = vst [vmem:[#allocation2 + $0x168] sm:$0xff] %v1970_v25  ;;  %v1973_v30 = vadd.f32 %v1671_v26, %v497_v23  ;;  %v1673_v31 = vadd.f32 %v1672_v29, %v1559_v27  ;;  %v1561_v32 = vpop.f32.mrf.mxu0  ;;  %v525_v29 = vld [vmem:[#allocation2 + $0x40] sm:$0xff] }
 0x15d   : > { %v1674_v34 = vpop.f32.mrf.mxu1 }
 0x15e   : > { %2037 = vst [vmem:[#allocation2 + $0x180] sm:$0xff] %v1973_v30  ;;  %v1974_v35 = vadd.f32 %v1673_v31, %v498_v28  ;;  %v1675_v36 = vadd.f32 %v1674_v34, %v1561_v32  ;;  %v1563_v39 = vpop.f32.mrf.mxu0  ;;  %v526_v34 = vld [vmem:[#allocation2 + $0x1f8] sm:$0xff] }
 0x15f   : > { %v1676_v41 = vpop.f32.mrf.mxu1 }
 0x160   : > { %2038 = vst [vmem:[#allocation2 + $0x110] sm:$0xff] %v1974_v35  ;;  %v1977_v42 = vadd.f32 %v1675_v36, %v501_v33  ;;  %v1677_v45 = vadd.f32 %v1676_v41, %v1563_v39  ;;  %v1567_v46 = vpop.f32.mrf.mxu0  ;;  %v529_v41 = vld [vmem:[#allocation2 + $0x1a0] sm:$0xff] }
 0x161   : > { %v1680_v48 = vpop.f32.mrf.mxu1 }
 0x162   : > { %2041 = vst [vmem:[#allocation2 + $0x120] sm:$0xff] %v1977_v42  ;;  %v1978_v51 = vadd.f32 %v1677_v45, %v502_v40  ;;  %v1681_v52 = vadd.f32 %v1680_v48, %v1567_v46  ;;  %v1569_v53 = vpop.f32.mrf.mxu0  ;;  %v530_v48 = vld [vmem:[#allocation2 + $0x1f0] sm:$0xff] }
 0x163   : > { %v1682_v57 = vpop.f32.mrf.mxu1 }
 0x164   : > { %2042 = vst [vmem:[#allocation2 + $0x150] sm:$0xff] %v1978_v51  ;;  %v1981_v58 = vadd.f32 %v1681_v52, %v505_v47  ;;  %v1683_v59 = vadd.f32 %v1682_v57, %v1569_v53  ;;  %v1571_v60 = vpop.f32.mrf.mxu0  ;;  %v533_v57 = vld [vmem:[#allocation2 + $0x70] sm:$0xff] }
 0x165   : > { %v1684_v0 = vpop.f32.mrf.mxu1 }
 0x166   : > { %2045 = vst [vmem:[#allocation2 + $0xe0] sm:$0xff] %v1981_v58  ;;  %v1982_v1 = vadd.f32 %v1683_v59, %v506_v54  ;;  %v1685_v2 = vadd.f32 %v1684_v0, %v1571_v60  ;;  %v1573_v5 = vpop.f32.mrf.mxu0  ;;  %v534_v0 = vld [vmem:[#allocation2 + $0x90] sm:$0xff] }
 0x167   : > { %v1686_v7 = vpop.f32.mrf.mxu1 }
 0x168   : > { %2046 = vst [vmem:[#allocation2 + $0x188] sm:$0xff] %v1982_v1  ;;  %v1985_v8 = vadd.f32 %v1685_v2, %v509_v63  ;;  %v1687_v11 = vadd.f32 %v1686_v7, %v1573_v5  ;;  %v1577_v12 = vpop.f32.mrf.mxu0  ;;  %v537_v7 = vld [vmem:[#allocation2 + $0xb8] sm:$0xff] }
 0x169   : > { %v1690_v14 = vpop.f32.mrf.mxu1 }
 0x16a   : > { %2049 = vst [vmem:[#allocation2 + $0x80] sm:$0xff] %v1985_v8  ;;  %v1986_v17 = vadd.f32 %v1687_v11, %v510_v6  ;;  %v1691_v19 = vadd.f32 %v1690_v14, %v1577_v12  ;;  %v1579_v18 = vpop.f32.mrf.mxu0  ;;  %v538_v14 = vld [vmem:[#allocation2 + $0x88] sm:$0xff] }
 0x16b   : > { %v1692_v37 = vpop.f32.mrf.mxu1 }
 0x16c   : > { %2050 = vst [vmem:[#allocation2 + $0x1a8] sm:$0xff] %v1986_v17  ;;  %v1989_v38 = vadd.f32 %v1691_v19, %v513_v13  ;;  %v1693_v43 = vadd.f32 %v1692_v37, %v1579_v18  ;;  %v1581_v44 = vpop.f32.mrf.mxu0  ;;  %v541_v37 = vld [vmem:[#allocation2 + $0x170] sm:$0xff] }
 0x16d   : > { %v1694_v50 = vpop.f32.mrf.mxu1 }
 0x16e   : > { %2053 = vst [vmem:[#allocation2 + $0x1e8] sm:$0xff] %v1989_v38  ;;  %v1990_v55 = vadd.f32 %v1693_v43, %v514_v20  ;;  %v1695_v56 = vadd.f32 %v1694_v50, %v1581_v44  ;;  %v1583_v61 = vpop.f32.mrf.mxu0  ;;  %v542_v50 = vld [vmem:[#allocation2 + $0x178] sm:$0xff] }
 0x16f   : > { %v1696_v3 = vpop.f32.mrf.mxu1 }
 0x170   : > { %2054 = vst [vmem:[#allocation2 + $0xf8] sm:$0xff] %v1990_v55  ;;  %v1993_v4 = vadd.f32 %v1695_v56, %v517_v49  ;;  %v1697_v9 = vadd.f32 %v1696_v3, %v1583_v61  ;;  %v1587_v10 = vpop.f32.mrf.mxu0  ;;  %v545_v3 = vld [vmem:[#allocation2 + $0x198] sm:$0xff] }
 0x171   : > { %v1700_v16 = vpop.f32.mrf.mxu1 }
 0x172   : > { %2057 = vst [vmem:[#allocation2 + $0x1e0] sm:$0xff] %v1993_v4  ;;  %v1994_v21 = vadd.f32 %v1697_v9, %v518_v62  ;;  %v1701_v22 = vadd.f32 %v1700_v16, %v1587_v10  ;;  %v1589_v23 = vpop.f32.mrf.mxu0  ;;  %v546_v16 = vld [vmem:[#allocation2 + $0x38] sm:$0xff] }
 0x173   : > { %v1702_v25 = vpop.f32.mrf.mxu1 }
 0x174   : > { %2058 = vst [vmem:[#allocation2] sm:$0xff] %v1994_v21  ;;  %v1997_v26 = vadd.f32 %v1701_v22, %v521_v15  ;;  %v1703_v27 = vadd.f32 %v1702_v25, %v1589_v23  ;;  %v1591_v28 = vpop.f32.mrf.mxu0  ;;  %v549_v25 = vld [vmem:[#allocation2 + $0x158] sm:$0xff] }
 0x175   : > { %v1704_v30 = vpop.f32.mrf.mxu1 }
 0x176   : > { %2061 = vst [vmem:[#allocation2 + $0x148] sm:$0xff] %v1997_v26  ;;  %v1998_v31 = vadd.f32 %v1703_v27, %v522_v24  ;;  %v1705_v32 = vadd.f32 %v1704_v30, %v1591_v28  ;;  %v1593_v33 = vpop.f32.mrf.mxu0  ;;  %v550_v30 = vld [vmem:[#allocation2 + $0x10] sm:$0xff] }
 0x177   : > { %v1706_v35 = vpop.f32.mrf.mxu1 }
 0x178   : > { %2062 = vst [vmem:[#allocation2 + $0x1d0] sm:$0xff] %v1998_v31  ;;  %v2001_v36 = vadd.f32 %v1705_v32, %v525_v29  ;;  %v1707_v39 = vadd.f32 %v1706_v35, %v1593_v33  ;;  %v1597_v40 = vpop.f32.mrf.mxu0  ;;  %v491_v35 = vld [vmem:[#allocation2 + $0xd8] sm:$0xff] }
 0x179   : > { %v1710_v42 = vpop.f32.mrf.mxu1 }
 0x17a   : > { %2065 = vst [vmem:[#allocation2 + $0x40] sm:$0xff] %v2001_v36  ;;  %v2002_v45 = vadd.f32 %v1707_v39, %v526_v34  ;;  %v1711_v46 = vadd.f32 %v1710_v42, %v1597_v40  ;;  %v1599_v47 = vpop.f32.mrf.mxu0  ;;  %v492_v42 = vld [vmem:[#allocation2 + $0x18] sm:$0xff] }
 0x17b   : > { %v1712_v51 = vpop.f32.mrf.mxu1 }
 0x17c   : > { %2066 = vst [vmem:[#allocation2 + $0x1f8] sm:$0xff] %v2002_v45  ;;  %v2005_v52 = vadd.f32 %v1711_v46, %v529_v41  ;;  %v1713_v53 = vadd.f32 %v1712_v51, %v1599_v47  ;;  %v1601_v54 = vpop.f32.mrf.mxu0  ;;  %v495_v51 = vld [vmem:[#allocation2 + $0x130] sm:$0xff] }
 0x17d   : > { %v1714_v58 = vpop.f32.mrf.mxu1 }
 0x17e   : > { %2069 = vst [vmem:[#allocation2 + $0x1a0] sm:$0xff] %v2005_v52  ;;  %v2006_v59 = vadd.f32 %v1713_v53, %v530_v48  ;;  %v1715_v60 = vadd.f32 %v1714_v58, %v1601_v54  ;;  %v1603_v63 = vpop.f32.mrf.mxu0  ;;  %v496_v58 = vld [vmem:[#allocation2 + $0x48] sm:$0xff] }
 0x17f   : > { %v1716_v1 = vpop.f32.mrf.mxu1 }
 0x180   : > { %2070 = vst [vmem:[#allocation2 + $0x1f0] sm:$0xff] %v2006_v59  ;;  %v2009_v2 = vadd.f32 %v1715_v60, %v533_v57  ;;  %v1717_v5 = vadd.f32 %v1716_v1, %v1603_v63  ;;  %v1607_v6 = vpop.f32.mrf.mxu0  ;;  %v499_v1 = vld [vmem:[#allocation2 + $0x118] sm:$0xff] }
 0x181   : > { %v1720_v8 = vpop.f32.mrf.mxu1 }
 0x182   : > { %2073 = vst [vmem:[#allocation2 + $0x70] sm:$0xff] %v2009_v2  ;;  %v2010_v11 = vadd.f32 %v1717_v5, %v534_v0  ;;  %v1721_v12 = vadd.f32 %v1720_v8, %v1607_v6  ;;  %v1609_v13 = vpop.f32.mrf.mxu0  ;;  %v500_v8 = vld [vmem:[#allocation2 + $0x98] sm:$0xff] }
 0x183   : > { %v1722_v17 = vpop.f32.mrf.mxu1 }
 0x184   : > { %2074 = vst [vmem:[#allocation2 + $0x90] sm:$0xff] %v2010_v11  ;;  %v2013_v19 = vadd.f32 %v1721_v12, %v537_v7  ;;  %v1723_v18 = vadd.f32 %v1722_v17, %v1609_v13  ;;  %v1611_v20 = vpop.f32.mrf.mxu0  ;;  %v503_v17 = vld [vmem:[#allocation2 + $0x108] sm:$0xff] }
 0x185   : > { %v1724_v38 = vpop.f32.mrf.mxu1 }
 0x186   : > { %2077 = vst [vmem:[#allocation2 + $0xb8] sm:$0xff] %v2013_v19  ;;  %v2014_v43 = vadd.f32 %v1723_v18, %v538_v14  ;;  %v1725_v44 = vadd.f32 %v1724_v38, %v1611_v20  ;;  %v1613_v49 = vpop.f32.mrf.mxu0  ;;  %v504_v38 = vld [vmem:[#allocation2 + $0x60] sm:$0xff] }
 0x187   : > { %v1726_v55 = vpop.f32.mrf.mxu1 }
 0x188   : > { %2078 = vst [vmem:[#allocation2 + $0x88] sm:$0xff] %v2014_v43  ;;  %v2017_v56 = vadd.f32 %v1725_v44, %v541_v37  ;;  %v1727_v61 = vadd.f32 %v1726_v55, %v1613_v49  ;;  %v1617_v62 = vpop.f32.mrf.mxu0  ;;  %v507_v55 = vld [vmem:[#allocation2 + $0x138] sm:$0xff] }
 0x189   : > { %v1730_v4 = vpop.f32.mrf.mxu1 }
 0x18a   : > { %2081 = vst [vmem:[#allocation2 + $0x170] sm:$0xff] %v2017_v56  ;;  %v2018_v9 = vadd.f32 %v1727_v61, %v542_v50  ;;  %v1731_v10 = vadd.f32 %v1730_v4, %v1617_v62  ;;  %v1619_v15 = vpop.f32.mrf.mxu0  ;;  %v508_v4 = vld [vmem:[#allocation2 + $0x140] sm:$0xff] }
 0x18b   : > { %v1732_v21 = vpop.f32.mrf.mxu1 }
 0x18c   : > { %2082 = vst [vmem:[#allocation2 + $0x178] sm:$0xff] %v2018_v9  ;;  %v2021_v22 = vadd.f32 %v1731_v10, %v545_v3  ;;  %v1733_v23 = vadd.f32 %v1732_v21, %v1619_v15  ;;  %v1621_v24 = vpop.f32.mrf.mxu0  ;;  %v511_v21 = vld [vmem:[#allocation2 + $0x1b8] sm:$0xff] }
 0x18d   : > { %v1734_v26 = vpop.f32.mrf.mxu1 }
 0x18e   : > { %2085 = vst [vmem:[#allocation2 + $0x198] sm:$0xff] %v2021_v22  ;;  %v2022_v27 = vadd.f32 %v1733_v23, %v546_v16  ;;  %v1735_v28 = vadd.f32 %v1734_v26, %v1621_v24  ;;  %v1623_v29 = vpop.f32.mrf.mxu0  ;;  %v512_v26 = vld [vmem:[#allocation2 + $0x28] sm:$0xff] }
 0x18f   : > { %v1736_v31 = vpop.f32.mrf.mxu1 }
 0x190   : > { %2086 = vst [vmem:[#allocation2 + $0x38] sm:$0xff] %v2022_v27  ;;  %v2025_v32 = vadd.f32 %v1735_v28, %v549_v25  ;;  %v1737_v33 = vadd.f32 %v1736_v31, %v1623_v29  ;;  %v1773_v34 = vpop.f32.mrf.mxu0  ;;  %v515_v31 = vld [vmem:[#allocation2 + $0x160] sm:$0xff] }
 0x191   : > { %v1886_v36 = vpop.f32.mrf.mxu1 }
 0x192   : > { %2089 = vst [vmem:[#allocation2 + $0x158] sm:$0xff] %v2025_v32  ;;  %v2026_v39 = vadd.f32 %v1737_v33, %v550_v30  ;;  %v1887_v40 = vadd.f32 %v1886_v36, %v1773_v34  ;;  %v1775_v41 = vpop.f32.mrf.mxu0  ;;  %v516_v36 = vld [vmem:[#allocation2 + $0x30] sm:$0xff] }
 0x193   : > { %v1888_v45 = vpop.f32.mrf.mxu1 }
 0x194   : > { %2090 = vst [vmem:[#allocation2 + $0x10] sm:$0xff] %v2026_v39  ;;  %v1967_v46 = vadd.f32 %v1887_v40, %v491_v35  ;;  %v1889_v47 = vadd.f32 %v1888_v45, %v1775_v41  ;;  %v1777_v48 = vpop.f32.mrf.mxu0  ;;  %v519_v45 = vld [vmem:[#allocation2 + $0xf0] sm:$0xff] }
 0x195   : > { %v1890_v52 = vpop.f32.mrf.mxu1 }
 0x196   : > { %2031 = vst [vmem:[#allocation2 + $0xd8] sm:$0xff] %v1967_v46  ;;  %v1968_v53 = vadd.f32 %v1889_v47, %v492_v42  ;;  %v1891_v54 = vadd.f32 %v1890_v52, %v1777_v48  ;;  %v1779_v57 = vpop.f32.mrf.mxu0  ;;  %v520_v52 = vld [vmem:[#allocation2 + $0x8] sm:$0xff] }
 0x197   : > { %v1892_v59 = vpop.f32.mrf.mxu1 }
 0x198   : > { %2032 = vst [vmem:[#allocation2 + $0x18] sm:$0xff] %v1968_v53  ;;  %v1971_v60 = vadd.f32 %v1891_v54, %v495_v51  ;;  %v1893_v63 = vadd.f32 %v1892_v59, %v1779_v57  ;;  %v1783_v0 = vpop.f32.mrf.mxu0  ;;  %v523_v59 = vld [vmem:[#allocation2 + $0x100] sm:$0xff] }
 0x199   : > { %v1896_v2 = vpop.f32.mrf.mxu1 }
 0x19a   : > { %2035 = vst [vmem:[#allocation2 + $0x130] sm:$0xff] %v1971_v60  ;;  %v1972_v5 = vadd.f32 %v1893_v63, %v496_v58  ;;  %v1897_v6 = vadd.f32 %v1896_v2, %v1783_v0  ;;  %v1785_v7 = vpop.f32.mrf.mxu0  ;;  %v524_v2 = vld [vmem:[#allocation2 + $0xc8] sm:$0xff] }
 0x19b   : > { %v1898_v11 = vpop.f32.mrf.mxu1 }
 0x19c   : > { %2036 = vst [vmem:[#allocation2 + $0x48] sm:$0xff] %v1972_v5  ;;  %v1975_v12 = vadd.f32 %v1897_v6, %v499_v1  ;;  %v1899_v13 = vadd.f32 %v1898_v11, %v1785_v7  ;;  %v1787_v14 = vpop.f32.mrf.mxu0  ;;  %v527_v11 = vld [vmem:[#allocation2 + $0x20] sm:$0xff] }
 0x19d   : > { %v1900_v19 = vpop.f32.mrf.mxu1 }
 0x19e   : > { %2039 = vst [vmem:[#allocation2 + $0x118] sm:$0xff] %v1975_v12  ;;  %v1976_v18 = vadd.f32 %v1899_v13, %v500_v8  ;;  %v1901_v20 = vadd.f32 %v1900_v19, %v1787_v14  ;;  %v1789_v37 = vpop.f32.mrf.mxu0  ;;  %v528_v19 = vld [vmem:[#allocation2 + $0x128] sm:$0xff] }
 0x19f   : > { %v1902_v43 = vpop.f32.mrf.mxu1 }
 0x1a0   : > { %2040 = vst [vmem:[#allocation2 + $0x98] sm:$0xff] %v1976_v18  ;;  %v1979_v44 = vadd.f32 %v1901_v20, %v503_v17  ;;  %v1903_v49 = vadd.f32 %v1902_v43, %v1789_v37  ;;  %v1793_v50 = vpop.f32.mrf.mxu0  ;;  %v531_v43 = vld [vmem:[#allocation2 + $0xe8] sm:$0xff] }
 0x1a1   : > { %v1906_v56 = vpop.f32.mrf.mxu1 }
 0x1a2   : > { %2043 = vst [vmem:[#allocation2 + $0x108] sm:$0xff] %v1979_v44  ;;  %v1980_v61 = vadd.f32 %v1903_v49, %v504_v38  ;;  %v1907_v62 = vadd.f32 %v1906_v56, %v1793_v50  ;;  %v1795_v3 = vpop.f32.mrf.mxu0  ;;  %v532_v56 = vld [vmem:[#allocation2 + $0x78] sm:$0xff] }
 0x1a3   : > { %v1908_v9 = vpop.f32.mrf.mxu1 }
 0x1a4   : > { %2044 = vst [vmem:[#allocation2 + $0x60] sm:$0xff] %v1980_v61  ;;  %v1983_v10 = vadd.f32 %v1907_v62, %v507_v55  ;;  %v1909_v15 = vadd.f32 %v1908_v9, %v1795_v3  ;;  %v1797_v16 = vpop.f32.mrf.mxu0  ;;  %v535_v9 = vld [vmem:[#allocation2 + $0x1d8] sm:$0xff] }
 0x1a5   : > { %v1910_v22 = vpop.f32.mrf.mxu1 }
 0x1a6   : > { %2047 = vst [vmem:[#allocation2 + $0x138] sm:$0xff] %v1983_v10  ;;  %v1984_v23 = vadd.f32 %v1909_v15, %v508_v4  ;;  %v1911_v24 = vadd.f32 %v1910_v22, %v1797_v16  ;;  %v1799_v25 = vpop.f32.mrf.mxu0  ;;  %v536_v22 = vld [vmem:[#allocation2 + $0xd0] sm:$0xff] }
 0x1a7   : > { %v1912_v27 = vpop.f32.mrf.mxu1 }
 0x1a8   : > { %2048 = vst [vmem:[#allocation2 + $0x140] sm:$0xff] %v1984_v23  ;;  %v1987_v28 = vadd.f32 %v1911_v24, %v511_v21  ;;  %v1913_v29 = vadd.f32 %v1912_v27, %v1799_v25  ;;  %v1803_v30 = vpop.f32.mrf.mxu0  ;;  %v539_v27 = vld [vmem:[#allocation2 + $0xa8] sm:$0xff] }
 0x1a9   : > { %v1916_v32 = vpop.f32.mrf.mxu1 }
 0x1aa   : > { %2051 = vst [vmem:[#allocation2 + $0x1b8] sm:$0xff] %v1987_v28  ;;  %v1988_v33 = vadd.f32 %v1913_v29, %v512_v26  ;;  %v1917_v34 = vadd.f32 %v1916_v32, %v1803_v30  ;;  %v1805_v35 = vpop.f32.mrf.mxu0  ;;  %v540_v32 = vld [vmem:[#allocation2 + $0x1c8] sm:$0xff] }
 0x1ab   : > { %v1918_v39 = vpop.f32.mrf.mxu1 }
 0x1ac   : > { %2052 = vst [vmem:[#allocation2 + $0x28] sm:$0xff] %v1988_v33  ;;  %v1991_v40 = vadd.f32 %v1917_v34, %v515_v31  ;;  %v1919_v41 = vadd.f32 %v1918_v39, %v1805_v35  ;;  %v1807_v42 = vpop.f32.mrf.mxu0  ;;  %v543_v39 = vld [vmem:[#allocation2 + $0x68] sm:$0xff] }
 0x1ad   : > { %v1920_v46 = vpop.f32.mrf.mxu1 }
 0x1ae   : > { %2055 = vst [vmem:[#allocation2 + $0x160] sm:$0xff] %v1991_v40  ;;  %v1992_v47 = vadd.f32 %v1919_v41, %v516_v36  ;;  %v1921_v48 = vadd.f32 %v1920_v46, %v1807_v42  ;;  %v1809_v51 = vpop.f32.mrf.mxu0  ;;  %v544_v46 = vld [vmem:[#allocation2 + $0x190] sm:$0xff] }
 0x1af   : > { %v1922_v53 = vpop.f32.mrf.mxu1 }
 0x1b0   : > { %2056 = vst [vmem:[#allocation2 + $0x30] sm:$0xff] %v1992_v47  ;;  %v1995_v54 = vadd.f32 %v1921_v48, %v519_v45  ;;  %v1923_v57 = vadd.f32 %v1922_v53, %v1809_v51  ;;  %v1813_v58 = vpop.f32.mrf.mxu0  ;;  %v547_v53 = vld [vmem:[#allocation2 + $0xc0] sm:$0xff] }
 0x1b1   : > { %v1926_v60 = vpop.f32.mrf.mxu1 }
 0x1b2   : > { %2059 = vst [vmem:[#allocation2 + $0xf0] sm:$0xff] %v1995_v54  ;;  %v1996_v63 = vadd.f32 %v1923_v57, %v520_v52  ;;  %v1927_v0 = vadd.f32 %v1926_v60, %v1813_v58  ;;  %v1815_v1 = vpop.f32.mrf.mxu0  ;;  %v548_v60 = vld [vmem:[#allocation2 + $0x1c0] sm:$0xff] }
 0x1b3   : > { %v1928_v5 = vpop.f32.mrf.mxu1 }
 0x1b4   : > { %2060 = vst [vmem:[#allocation2 + $0x8] sm:$0xff] %v1996_v63  ;;  %v1999_v6 = vadd.f32 %v1927_v0, %v523_v59  ;;  %v1929_v7 = vadd.f32 %v1928_v5, %v1815_v1  ;;  %v1817_v8 = vpop.f32.mrf.mxu0  ;;  %v551_v5 = vld [vmem:[#allocation2 + $0x58] sm:$0xff] }
 0x1b5   : > { %v1930_v12 = vpop.f32.mrf.mxu1 }
 0x1b6   : > { %2063 = vst [vmem:[#allocation2 + $0x100] sm:$0xff] %v1999_v6  ;;  %v2000_v13 = vadd.f32 %v1929_v7, %v524_v2  ;;  %v1931_v14 = vadd.f32 %v1930_v12, %v1817_v8  ;;  %v1819_v17 = vpop.f32.mrf.mxu0  ;;  %v552_v12 = vld [vmem:[#allocation2 + $0xa0] sm:$0xff] }
 0x1b7   : > { %v1932_v18 = vpop.f32.mrf.mxu1 }
 0x1b8   : > { %2064 = vst [vmem:[#allocation2 + $0xc8] sm:$0xff] %v2000_v13  ;;  %v2003_v20 = vadd.f32 %v1931_v14, %v527_v11  ;;  %v1933_v37 = vadd.f32 %v1932_v18, %v1819_v17  ;;  %v1823_v38 = vpop.f32.mrf.mxu0 }
 0x1b9   : > { %v1936_v44 = vpop.f32.mrf.mxu1 }
 0x1ba   : > { %2067 = vst [vmem:[#allocation2 + $0x20] sm:$0xff] %v2003_v20  ;;  %v2004_v49 = vadd.f32 %v1933_v37, %v528_v19  ;;  %v1937_v50 = vadd.f32 %v1936_v44, %v1823_v38  ;;  %v1825_v55 = vpop.f32.mrf.mxu0 }
 0x1bb   : > { %v1938_v61 = vpop.f32.mrf.mxu1 }
 0x1bc   : > { %2068 = vst [vmem:[#allocation2 + $0x128] sm:$0xff] %v2004_v49  ;;  %v2007_v62 = vadd.f32 %v1937_v50, %v531_v43  ;;  %v1939_v3 = vadd.f32 %v1938_v61, %v1825_v55  ;;  %v1827_v4 = vpop.f32.mrf.mxu0 }
 0x1bd   : > { %v1940_v10 = vpop.f32.mrf.mxu1 }
 0x1be   : > { %2071 = vst [vmem:[#allocation2 + $0xe8] sm:$0xff] %v2007_v62  ;;  %v2008_v15 = vadd.f32 %v1939_v3, %v532_v56  ;;  %v1941_v16 = vadd.f32 %v1940_v10, %v1827_v4  ;;  %v1829_v21 = vpop.f32.mrf.mxu0 }
 0x1bf   : > { %v1942_v23 = vpop.f32.mrf.mxu1 }
 0x1c0   : > { %2072 = vst [vmem:[#allocation2 + $0x78] sm:$0xff] %v2008_v15  ;;  %v2011_v24 = vadd.f32 %v1941_v16, %v535_v9  ;;  %v1943_v25 = vadd.f32 %v1942_v23, %v1829_v21  ;;  %v1833_v26 = vpop.f32.mrf.mxu0 }
 0x1c1   : > { %v1946_v28 = vpop.f32.mrf.mxu1 }
 0x1c2   : > { %2075 = vst [vmem:[#allocation2 + $0x1d8] sm:$0xff] %v2011_v24  ;;  %v2012_v29 = vadd.f32 %v1943_v25, %v536_v22  ;;  %v1947_v30 = vadd.f32 %v1946_v28, %v1833_v26  ;;  %v1835_v31 = vpop.f32.mrf.mxu0 }
 0x1c3   : > { %v1948_v33 = vpop.f32.mrf.mxu1 }
 0x1c4   : > { %2076 = vst [vmem:[#allocation2 + $0xd0] sm:$0xff] %v2012_v29  ;;  %v2015_v34 = vadd.f32 %v1947_v30, %v539_v27  ;;  %v1949_v35 = vadd.f32 %v1948_v33, %v1835_v31  ;;  %v1837_v36 = vpop.f32.mrf.mxu0 }
 0x1c5   : > { %v1950_v40 = vpop.f32.mrf.mxu1 }
 0x1c6   : > { %2079 = vst [vmem:[#allocation2 + $0xa8] sm:$0xff] %v2015_v34  ;;  %v2016_v41 = vadd.f32 %v1949_v35, %v540_v32  ;;  %v1951_v42 = vadd.f32 %v1950_v40, %v1837_v36  ;;  %v1839_v45 = vpop.f32.mrf.mxu0 }
 0x1c7   : > { %v1952_v47 = vpop.f32.mrf.mxu1 }
 0x1c8   : > { %2080 = vst [vmem:[#allocation2 + $0x1c8] sm:$0xff] %v2016_v41  ;;  %v2019_v48 = vadd.f32 %v1951_v42, %v543_v39  ;;  %v1953_v51 = vadd.f32 %v1952_v47, %v1839_v45  ;;  %v1843_v52 = vpop.f32.mrf.mxu0 }
 0x1c9   : > { %v1956_v54 = vpop.f32.mrf.mxu1 }
 0x1ca   : > { %2083 = vst [vmem:[#allocation2 + $0x68] sm:$0xff] %v2019_v48  ;;  %v2020_v57 = vadd.f32 %v1953_v51, %v544_v46  ;;  %v1957_v58 = vadd.f32 %v1956_v54, %v1843_v52  ;;  %v1845_v59 = vpop.f32.mrf.mxu0 }
 0x1cb   : > { %v1958_v63 = vpop.f32.mrf.mxu1 }
 0x1cc   : > { %2084 = vst [vmem:[#allocation2 + $0x190] sm:$0xff] %v2020_v57  ;;  %v2023_v0 = vadd.f32 %v1957_v58, %v547_v53  ;;  %v1959_v1 = vadd.f32 %v1958_v63, %v1845_v59  ;;  %v1847_v2 = vpop.f32.mrf.mxu0 }
 0x1cd   : > { %v1960_v6 = vpop.f32.mrf.mxu1 }
 0x1ce   : > { %2087 = vst [vmem:[#allocation2 + $0xc0] sm:$0xff] %v2023_v0  ;;  %v2024_v7 = vadd.f32 %v1959_v1, %v548_v60  ;;  %v1961_v8 = vadd.f32 %v1960_v6, %v1847_v2  ;;  %v1849_v11 = vpop.f32.mrf.mxu0 }
 0x1cf   : > { %v1962_v13 = vpop.f32.mrf.mxu1 }
 0x1d0   : > { %2088 = vst [vmem:[#allocation2 + $0x1c0] sm:$0xff] %v2024_v7  ;;  %v2027_v14 = vadd.f32 %v1961_v8, %v551_v5  ;;  %v1963_v17 = vadd.f32 %v1962_v13, %v1849_v11  ;;  %2096 = sbr.rel (%p3013_p11) target bundleno = 552 (0x228), region = 67 }
 0x1d2   : > { %2091 = vst [vmem:[#allocation2 + $0x58] sm:$0xff] %v2027_v14  ;;  %v2028_v19 = vadd.f32 %v1963_v17, %v552_v12 }
 0x1d4   : > { %2092 = vst [vmem:[#allocation2 + $0xa0] sm:$0xff] %v2028_v19 }
 0x1d5   : > { %v2163_v18 = vlaneseq  ;;  %v2247_v20 = vld [vmem:[%s4176_s3] sm:$0xff]  ;;  %v2248_v38 = vld [vmem:[%s4176_s3 + $0x8] sm:$0xff]  ;;  %v2097_v43 = vld [vmem:[#allocation2 + $0xb0] sm:$0xff] }
 0x1d6   : > { %v2098_v44 = vld [vmem:[#allocation2 + $0x1b0] sm:$0xff]  ;;  %v2161_v49 = vld [vmem:[%s4175_s2] sm:$0xf]  ;;  %v2279_v50 = vunpack.c.l.bf16 %v2247_v20  ;;  %v2280_v55 = vunpack.c.h.bf16 %v2247_v20  ;;  %v2099_v56 = vld [vmem:[#allocation2 + $0xd8] sm:$0xff]  ;;  %v2281_v61 = vunpack.c.l.bf16 %v2248_v38  ;;  %v2282_v62 = vunpack.c.h.bf16 %v2248_v38 }
 0x1d7   : > { %v2164_v37 = vshrl.u32 %v2163_v18, 7  ;;  %v2249_v3 = vld [vmem:[%s4176_s3 + $0x10] sm:$0xff]  ;;  %v2100_v10 = vld [vmem:[#allocation2 + $0x18] sm:$0xff]  ;;  %v2102_v23 = vld [vmem:[#allocation2 + $0x168] sm:$0xff] }
 0x1d8   : > { %v2250_v21 = vld [vmem:[%s4176_s3 + $0x18] sm:$0xff]  ;;  %v2101_v22 = vld [vmem:[#allocation2 + $0x50] sm:$0xff]  ;;  %v2283_v24 = vunpack.c.l.bf16 %v2249_v3  ;;  %v2284_v25 = vunpack.c.h.bf16 %v2249_v3  ;;  %v2251_v28 = vld [vmem:[%s4176_s3 + $0x20] sm:$0xff] }
 0x1d9   : > { %v2165_v4 = vsub.s32 0, %v2164_v37  ;;  %v2169_v9 = vsub.s32 1, %v2164_v37  ;;  %v2173_v15 = vsub.s32 2, %v2164_v37  ;;  %v2177_v16 = vsub.s32 3, %v2164_v37  ;;  %v2103_v33 = vld [vmem:[#allocation2 + $0x130] sm:$0xff]  ;;  %v2104_v34 = vld [vmem:[#allocation2 + $0x48] sm:$0xff] }
 0x1da   : > { %v2285_v26 = vunpack.c.l.bf16 %v2250_v21  ;;  %v2286_v27 = vunpack.c.h.bf16 %v2250_v21  ;;  %v2252_v35 = vld [vmem:[%s4176_s3 + $0x28] sm:$0xff]  ;;  %v2287_v36 = vunpack.c.l.bf16 %v2251_v28  ;;  %v2288_v39 = vunpack.c.h.bf16 %v2251_v28  ;;  %v2105_v2 = vld [vmem:[#allocation2 + $0x180] sm:$0xff]  ;;  %v2106_v5 = vld [vmem:[#allocation2 + $0x110] sm:$0xff] }
 0x1db   : > { %v3909_v29 = vrot.slane %v2161_v49, %v2165_v4  ;;  %v3911_v30 = vrot.slane %v2161_v49, %v2169_v9  ;;  %v3913_v31 = vrot.slane %v2161_v49, %v2173_v15  ;;  %v3915_v32 = vrot.slane %v2161_v49, %v2177_v16  ;;  %v2107_v12 = vld [vmem:[#allocation2 + $0x118] sm:$0xff]  ;;  %v2109_v20 = vld [vmem:[#allocation2 + $0x120] sm:$0xff]  ;;  %v2110_v37 = vld [vmem:[#allocation2 + $0x150] sm:$0xff] }
 0x1dc   : > { %v2289_v40 = vunpack.c.l.bf16 %v2252_v35  ;;  %v2290_v41 = vunpack.c.h.bf16 %v2252_v35  ;;  %v2108_v13 = vld [vmem:[#allocation2 + $0x98] sm:$0xff]  ;;  %v2111_v3 = vld [vmem:[#allocation2 + $0x108] sm:$0xff]  ;;  %v2112_v4 = vld [vmem:[#allocation2 + $0x60] sm:$0xff] }
 0x1dd   : > { %v2183_v42 = vadd.f32 %v3909_v29, %v2097_v43  ;;  %v2184_v45 = vadd.f32 %v3911_v30, %v2098_v44  ;;  %v2185_v46 = vadd.f32 %v3913_v31, %v2099_v56  ;;  %v2186_v47 = vadd.f32 %v3915_v32, %v2100_v10  ;;  %v2114_v35 = vld [vmem:[#allocation2 + $0x188] sm:$0xff] }
 0x1de   : > { %v2187_v48 = vadd.f32 %v3909_v29, %v2101_v22  ;;  %v2188_v51 = vadd.f32 %v3911_v30, %v2102_v23  ;;  %v2189_v52 = vadd.f32 %v3913_v31, %v2103_v33  ;;  %v2190_v53 = vadd.f32 %v3915_v32, %v2104_v34 }
 0x1df   : > { %v2343_v54 = vadd.f32 %v2279_v50, %v2183_v42  ;;  %v2344_v57 = vadd.f32 %v2280_v55, %v2184_v45  ;;  %v2345_v58 = vadd.f32 %v2281_v61, %v2185_v46  ;;  %v2346_v59 = vadd.f32 %v2282_v62, %v2186_v47  ;;  %v2253_v50 = vld [vmem:[%s4176_s3 + $0x30] sm:$0xff] }
 0x1e0   : > { %v2347_v60 = vadd.f32 %v2283_v24, %v2187_v48  ;;  %v2348_v63 = vadd.f32 %v2284_v25, %v2188_v51  ;;  %v2349_v0 = vadd.f32 %v2285_v26, %v2189_v52  ;;  %v2350_v1 = vadd.f32 %v2286_v27, %v2190_v53  ;;  %v2254_v25 = vld [vmem:[%s4176_s3 + $0x38] sm:$0xff]  ;;  %v2113_v26 = vld [vmem:[#allocation2 + $0xe0] sm:$0xff]  ;;  %v2256_v53 = vld [vmem:[%s4176_s3 + $0x48] sm:$0xff] }
 0x1e1   : > { %v2407_v6 = vmax.f32 %v2343_v54, 0.0  ;;  %v2408_v7 = vmax.f32 %v2344_v57, 0.0  ;;  %v2409_v8 = vmax.f32 %v2345_v58, 0.0  ;;  %v2410_v11 = vmax.f32 %v2346_v59, 0.0  ;;  %v2115_v51 = vld [vmem:[#allocation2 + $0x138] sm:$0xff]  ;;  %v2116_v52 = vld [vmem:[#allocation2 + $0x140] sm:$0xff] }
 0x1e2   : > { %v2411_v14 = vmax.f32 %v2347_v60, 0.0  ;;  %v2412_v17 = vmax.f32 %v2348_v63, 0.0  ;;  %v2413_v19 = vmax.f32 %v2349_v0, 0.0  ;;  %v2414_v18 = vmax.f32 %v2350_v1, 0.0 }
 0x1e3   : > { %v3052_v38 = vpack.c.bf16 %v2408_v7, %v2407_v6  ;;  %v3053_v43 = vpack.c.bf16 %v2410_v11, %v2409_v8  ;;  %v2191_v44 = vadd.f32 %v3909_v29, %v2105_v2  ;;  %v2192_v49 = vadd.f32 %v3911_v30, %v2106_v5  ;;  %v2117_v2 = vld [vmem:[#allocation2 + $0x80] sm:$0xff]  ;;  %v2118_v5 = vld [vmem:[#allocation2 + $0x1a8] sm:$0xff] }
 0x1e4   : > { %v3054_v55 = vpack.c.bf16 %v2412_v17, %v2411_v14  ;;  %v3055_v56 = vpack.c.bf16 %v2414_v18, %v2413_v19  ;;  %v2193_v61 = vadd.f32 %v3913_v31, %v2107_v12  ;;  %v2194_v62 = vadd.f32 %v3915_v32, %v2108_v13  ;;  %v2257_v12 = vld [vmem:[%s4176_s3 + $0x50] sm:$0xff]  ;;  %v2119_v18 = vld [vmem:[#allocation2 + $0x1b8] sm:$0xff] }
 0x1e5   : > { %2663 = vst [vmem:[%s4177_s4] sm:$0xff] %v3052_v38  ;;  %2664 = vst [vmem:[%s4177_s4 + $0x8] sm:$0xff] %v3053_v43  ;;  %v2351_v9 = vadd.f32 %v2287_v36, %v2191_v44  ;;  %v2352_v10 = vadd.f32 %v2288_v39, %v2192_v49  ;;  %v2195_v15 = vadd.f32 %v3909_v29, %v2109_v20  ;;  %v2291_v23 = vunpack.c.l.bf16 %v2253_v50  ;;  %v2120_v44 = vld [vmem:[#allocation2 + $0x28] sm:$0xff]  ;;  %v2258_v49 = vld [vmem:[%s4176_s3 + $0x58] sm:$0xff] }
 0x1e6   : > { %v2196_v16 = vadd.f32 %v3911_v30, %v2110_v37  ;;  %2665 = vst [vmem:[%s4177_s4 + $0x10] sm:$0xff] %v3054_v55  ;;  %2666 = vst [vmem:[%s4177_s4 + $0x18] sm:$0xff] %v3055_v56  ;;  %v2353_v21 = vadd.f32 %v2289_v40, %v2193_v61  ;;  %v2354_v22 = vadd.f32 %v2290_v41, %v2194_v62  ;;  %v2292_v24 = vunpack.c.h.bf16 %v2253_v50  ;;  %v2255_v40 = vld [vmem:[%s4176_s3 + $0x40] sm:$0xff]  ;;  %v2121_v62 = vld [vmem:[#allocation2 + $0x1e8] sm:$0xff] }
 0x1e7   : > { %v2415_v27 = vmax.f32 %v2351_v9, 0.0  ;;  %v2416_v28 = vmax.f32 %v2352_v10, 0.0  ;;  %v2197_v33 = vadd.f32 %v3913_v31, %v2111_v3  ;;  %v2198_v34 = vadd.f32 %v3915_v32, %v2112_v4 }
 0x1e8   : > { %v2417_v36 = vmax.f32 %v2353_v21, 0.0  ;;  %v2418_v39 = vmax.f32 %v2354_v22, 0.0  ;;  %v2355_v42 = vadd.f32 %v2291_v23, %v2195_v15  ;;  %v2356_v45 = vadd.f32 %v2292_v24, %v2196_v16  ;;  %v2122_v15 = vld [vmem:[#allocation2 + $0xf8] sm:$0xff]  ;;  %v2259_v16 = vld [vmem:[%s4176_s3 + $0x60] sm:$0xff] }
 0x1e9   : > { %v3056_v41 = vpack.c.bf16 %v2416_v28, %v2415_v27  ;;  %v2293_v46 = vunpack.c.l.bf16 %v2254_v25  ;;  %v2294_v47 = vunpack.c.h.bf16 %v2254_v25  ;;  %v2199_v48 = vadd.f32 %v3909_v29, %v2113_v26 }
 0x1ea   : > { %v3057_v54 = vpack.c.bf16 %v2418_v39, %v2417_v36  ;;  %v2419_v57 = vmax.f32 %v2355_v42, 0.0  ;;  %v2420_v58 = vmax.f32 %v2356_v45, 0.0  ;;  %v2200_v59 = vadd.f32 %v3911_v30, %v2114_v35  ;;  %v2260_v45 = vld [vmem:[%s4176_s3 + $0x68] sm:$0xff] }
 0x1eb   : > { %2667 = vst [vmem:[%s4177_s4 + $0x20] sm:$0xff] %v3056_v41  ;;  %v2357_v60 = vadd.f32 %v2293_v46, %v2197_v33  ;;  %v2358_v63 = vadd.f32 %v2294_v47, %v2198_v34  ;;  %v2295_v0 = vunpack.c.l.bf16 %v2255_v40  ;;  %v2296_v1 = vunpack.c.h.bf16 %v2255_v40  ;;  %v2123_v33 = vld [vmem:[#allocation2 + $0x160] sm:$0xff]  ;;  %v2124_v34 = vld [vmem:[#allocation2 + $0x30] sm:$0xff] }
 0x1ec   : > { %2668 = vst [vmem:[%s4177_s4 + $0x28] sm:$0xff] %v3057_v54  ;;  %v3058_v6 = vpack.c.bf16 %v2420_v58, %v2419_v57  ;;  %v2201_v7 = vadd.f32 %v3913_v31, %v2115_v51  ;;  %v2202_v8 = vadd.f32 %v3915_v32, %v2116_v52  ;;  %v2297_v11 = vunpack.c.l.bf16 %v2256_v53  ;;  %v2126_v51 = vld [vmem:[#allocation2] sm:$0xff]  ;;  %v2261_v58 = vld [vmem:[%s4176_s3 + $0x70] sm:$0xff] }
 0x1ed   : > { %v2421_v13 = vmax.f32 %v2357_v60, 0.0  ;;  %v2422_v14 = vmax.f32 %v2358_v63, 0.0  ;;  %v2359_v17 = vadd.f32 %v2295_v0, %v2199_v48  ;;  %v2360_v19 = vadd.f32 %v2296_v1, %v2200_v59  ;;  %v2125_v48 = vld [vmem:[#allocation2 + $0x1e0] sm:$0xff]  ;;  %v2127_v1 = vld [vmem:[#allocation2 + $0xf0] sm:$0xff] }
 0x1ee   : > { %2669 = vst [vmem:[%s4177_s4 + $0x30] sm:$0xff] %v3058_v6  ;;  %v2298_v20 = vunpack.c.h.bf16 %v2256_v53  ;;  %v2361_v37 = vadd.f32 %v2297_v11, %v2201_v7  ;;  %v2203_v38 = vadd.f32 %v3909_v29, %v2117_v2  ;;  %v2204_v43 = vadd.f32 %v3911_v30, %v2118_v5  ;;  %v2128_v2 = vld [vmem:[#allocation2 + $0x8] sm:$0xff]  ;;  %v2262_v11 = vld [vmem:[%s4176_s3 + $0x78] sm:$0xff] }
 0x1ef   : > { %v3059_v50 = vpack.c.bf16 %v2422_v14, %v2421_v13  ;;  %v2423_v55 = vmax.f32 %v2359_v17, 0.0  ;;  %v2424_v56 = vmax.f32 %v2360_v19, 0.0  ;;  %v2299_v61 = vunpack.c.l.bf16 %v2257_v12  ;;  %v2129_v19 = vld [vmem:[#allocation2 + $0x148] sm:$0xff] }
 0x1f0   : > { %v2362_v3 = vadd.f32 %v2298_v20, %v2202_v8  ;;  %v2425_v4 = vmax.f32 %v2361_v37, 0.0  ;;  %v2300_v9 = vunpack.c.h.bf16 %v2257_v12  ;;  %v2205_v10 = vadd.f32 %v3913_v31, %v2119_v18 }
 0x1f1   : > { %2670 = vst [vmem:[%s4177_s4 + $0x38] sm:$0xff] %v3059_v50  ;;  %v3060_v21 = vpack.c.bf16 %v2424_v56, %v2423_v55  ;;  %v2363_v22 = vadd.f32 %v2299_v61, %v2203_v38  ;;  %v2206_v23 = vadd.f32 %v3915_v32, %v2120_v44  ;;  %v2301_v24 = vunpack.c.l.bf16 %v2258_v49  ;;  %v2263_v44 = vld [vmem:[%s4176_s3 + $0x80] sm:$0xff] }
 0x1f2   : > { %v2426_v25 = vmax.f32 %v2362_v3, 0.0  ;;  %v2364_v26 = vadd.f32 %v2300_v9, %v2204_v43  ;;  %v2302_v27 = vunpack.c.h.bf16 %v2258_v49  ;;  %v2207_v28 = vadd.f32 %v3909_v29, %v2121_v62  ;;  %v2130_v43 = vld [vmem:[#allocation2 + $0x1d0] sm:$0xff]  ;;  %v2131_v9 = vld [vmem:[#allocation2 + $0x100] sm:$0xff] }
 0x1f3   : > { %2671 = vst [vmem:[%s4177_s4 + $0x40] sm:$0xff] %v3060_v21  ;;  %v2427_v35 = vmax.f32 %v2363_v22, 0.0  ;;  %v2365_v36 = vadd.f32 %v2301_v24, %v2205_v10  ;;  %v2208_v39 = vadd.f32 %v3911_v30, %v2122_v15  ;;  %v2303_v42 = vunpack.c.l.bf16 %v2259_v16  ;;  %v2132_v10 = vld [vmem:[#allocation2 + $0xc8] sm:$0xff] }
 0x1f4   : > { %v3061_v40 = vpack.c.bf16 %v2426_v25, %v2425_v4  ;;  %v2428_v41 = vmax.f32 %v2364_v26, 0.0  ;;  %v2366_v46 = vadd.f32 %v2302_v27, %v2206_v23  ;;  %v2304_v47 = vunpack.c.h.bf16 %v2259_v16  ;;  %v2264_v23 = vld [vmem:[%s4176_s3 + $0x88] sm:$0xff] }
 0x1f5   : > { %v2429_v52 = vmax.f32 %v2365_v36, 0.0  ;;  %v2367_v53 = vadd.f32 %v2303_v42, %v2207_v28  ;;  %v2209_v54 = vadd.f32 %v3913_v31, %v2123_v33  ;;  %v2210_v57 = vadd.f32 %v3915_v32, %v2124_v34  ;;  %v2133_v28 = vld [vmem:[#allocation2 + $0x40] sm:$0xff]  ;;  %v2134_v33 = vld [vmem:[#allocation2 + $0x1f8] sm:$0xff]  ;;  %v2265_v42 = vld [vmem:[%s4176_s3 + $0x90] sm:$0xff] }
 0x1f6   : > { %2672 = vst [vmem:[%s4177_s4 + $0x48] sm:$0xff] %v3061_v40  ;;  %v3062_v59 = vpack.c.bf16 %v2428_v41, %v2427_v35  ;;  %v2430_v60 = vmax.f32 %v2366_v46, 0.0  ;;  %v2368_v63 = vadd.f32 %v2304_v47, %v2208_v39  ;;  %v2305_v0 = vunpack.c.l.bf16 %v2260_v45  ;;  %v2135_v47 = vld [vmem:[#allocation2 + $0x20] sm:$0xff] }
 0x1f7   : > { %v2431_v5 = vmax.f32 %v2367_v53, 0.0  ;;  %v2306_v6 = vunpack.c.h.bf16 %v2260_v45  ;;  %v2211_v7 = vadd.f32 %v3909_v29, %v2125_v48  ;;  %v2212_v8 = vadd.f32 %v3911_v30, %v2126_v51  ;;  %v2136_v48 = vld [vmem:[#allocation2 + $0x128] sm:$0xff] }
 0x1f8   : > { %2673 = vst [vmem:[%s4177_s4 + $0x50] sm:$0xff] %v3062_v59  ;;  %v3063_v12 = vpack.c.bf16 %v2430_v60, %v2429_v52  ;;  %v2432_v13 = vmax.f32 %v2368_v63, 0.0  ;;  %v2369_v14 = vadd.f32 %v2305_v0, %v2209_v54  ;;  %v2307_v17 = vunpack.c.l.bf16 %v2261_v58  ;;  %v2137_v0 = vld [vmem:[#allocation2 + $0x1a0] sm:$0xff] }
 0x1f9   : > { %v2370_v18 = vadd.f32 %v2306_v6, %v2210_v57  ;;  %v2308_v20 = vunpack.c.h.bf16 %v2261_v58  ;;  %v2213_v37 = vadd.f32 %v3913_v31, %v2127_v1  ;;  %v2214_v38 = vadd.f32 %v3915_v32, %v2128_v2  ;;  %v2266_v57 = vld [vmem:[%s4176_s3 + $0x98] sm:$0xff] }
 0x1fa   : > { %2674 = vst [vmem:[%s4177_s4 + $0x58] sm:$0xff] %v3063_v12  ;;  %v3064_v49 = vpack.c.bf16 %v2432_v13, %v2431_v5  ;;  %v2433_v50 = vmax.f32 %v2369_v14, 0.0  ;;  %v2371_v55 = vadd.f32 %v2307_v17, %v2211_v7  ;;  %v2309_v56 = vunpack.c.l.bf16 %v2262_v11  ;;  %v2138_v7 = vld [vmem:[#allocation2 + $0x1f0] sm:$0xff] }
 0x1fb   : > { %v2434_v61 = vmax.f32 %v2370_v18, 0.0  ;;  %v2372_v62 = vadd.f32 %v2308_v20, %v2212_v8  ;;  %v2310_v3 = vunpack.c.h.bf16 %v2262_v11  ;;  %v2215_v4 = vadd.f32 %v3909_v29, %v2129_v19  ;;  %v2267_v8 = vld [vmem:[%s4176_s3 + $0xa0] sm:$0xff] }
 0x1fc   : > { %2675 = vst [vmem:[%s4177_s4 + $0x60] sm:$0xff] %v3064_v49  ;;  %v2435_v15 = vmax.f32 %v2371_v55, 0.0  ;;  %v2373_v16 = vadd.f32 %v2309_v56, %v2213_v37  ;;  %v2216_v21 = vadd.f32 %v3911_v30, %v2130_v43  ;;  %v2311_v22 = vunpack.c.l.bf16 %v2263_v44  ;;  %v2139_v37 = vld [vmem:[#allocation2 + $0xe8] sm:$0xff] }
 0x1fd   : > { %v3065_v24 = vpack.c.bf16 %v2434_v61, %v2433_v50  ;;  %v2436_v25 = vmax.f32 %v2372_v62, 0.0  ;;  %v2374_v26 = vadd.f32 %v2310_v3, %v2214_v38  ;;  %v2312_v27 = vunpack.c.h.bf16 %v2263_v44  ;;  %v2140_v38 = vld [vmem:[#allocation2 + $0x78] sm:$0xff]  ;;  %v2268_v55 = vld [vmem:[%s4176_s3 + $0xa8] sm:$0xff] }
 0x1fe   : > { %v2437_v34 = vmax.f32 %v2373_v16, 0.0  ;;  %v2375_v35 = vadd.f32 %v2311_v22, %v2215_v4  ;;  %v2217_v36 = vadd.f32 %v3913_v31, %v2131_v9  ;;  %v2218_v39 = vadd.f32 %v3915_v32, %v2132_v10  ;;  %v2141_v4 = vld [vmem:[#allocation2 + $0x70] sm:$0xff] }
 0x1ff   : > { %2676 = vst [vmem:[%s4177_s4 + $0x68] sm:$0xff] %v3065_v24  ;;  %v3066_v45 = vpack.c.bf16 %v2436_v25, %v2435_v15  ;;  %v2438_v40 = vmax.f32 %v2374_v26, 0.0  ;;  %v2376_v41 = vadd.f32 %v2312_v27, %v2216_v21  ;;  %v2313_v46 = vunpack.c.l.bf16 %v2264_v23  ;;  %v2142_v9 = vld [vmem:[#allocation2 + $0x90] sm:$0xff]  ;;  %v2143_v27 = vld [vmem:[#allocation2 + $0x1d8] sm:$0xff] }
 0x200   : > { %v2439_v51 = vmax.f32 %v2375_v35, 0.0  ;;  %v2314_v52 = vunpack.c.h.bf16 %v2264_v23  ;;  %v2219_v53 = vadd.f32 %v3909_v29, %v2133_v28  ;;  %v2220_v54 = vadd.f32 %v3911_v30, %v2134_v33  ;;  %v2269_v22 = vld [vmem:[%s4176_s3 + $0xb0] sm:$0xff] }
 0x201   : > { %2677 = vst [vmem:[%s4177_s4 + $0x70] sm:$0xff] %v3066_v45  ;;  %v3067_v58 = vpack.c.bf16 %v2438_v40, %v2437_v34  ;;  %v2440_v59 = vmax.f32 %v2376_v41, 0.0  ;;  %v2377_v60 = vadd.f32 %v2313_v46, %v2217_v36  ;;  %v2315_v63 = vunpack.c.l.bf16 %v2265_v42  ;;  %v2144_v28 = vld [vmem:[#allocation2 + $0xd0] sm:$0xff]  ;;  %v2145_v46 = vld [vmem:[#allocation2 + $0xb8] sm:$0xff] }
 0x202   : > { %v2378_v1 = vadd.f32 %v2314_v52, %v2218_v39  ;;  %v2316_v2 = vunpack.c.h.bf16 %v2265_v42  ;;  %v2221_v5 = vadd.f32 %v3913_v31, %v2135_v47  ;;  %v2222_v6 = vadd.f32 %v3915_v32, %v2136_v48  ;;  %v2270_v39 = vld [vmem:[%s4176_s3 + $0xb8] sm:$0xff] }
 0x203   : > { %2678 = vst [vmem:[%s4177_s4 + $0x78] sm:$0xff] %v3067_v58  ;;  %v3068_v11 = vpack.c.bf16 %v2440_v59, %v2439_v51  ;;  %v2441_v12 = vmax.f32 %v2377_v60, 0.0  ;;  %v2379_v13 = vadd.f32 %v2315_v63, %v2219_v53  ;;  %v2317_v14 = vunpack.c.l.bf16 %v2266_v57  ;;  %v2146_v53 = vld [vmem:[#allocation2 + $0x88] sm:$0xff] }
 0x204   : > { %v2442_v17 = vmax.f32 %v2378_v1, 0.0  ;;  %v2380_v19 = vadd.f32 %v2316_v2, %v2220_v54  ;;  %v2318_v18 = vunpack.c.h.bf16 %v2266_v57  ;;  %v2223_v20 = vadd.f32 %v3909_v29, %v2137_v0  ;;  %v2271_v54 = vld [vmem:[%s4176_s3 + $0xc0] sm:$0xff] }
 0x205   : > { %2679 = vst [vmem:[%s4177_s4 + $0x80] sm:$0xff] %v3068_v11  ;;  %v2443_v43 = vmax.f32 %v2379_v13, 0.0  ;;  %v2381_v44 = vadd.f32 %v2317_v14, %v2221_v5  ;;  %v2224_v49 = vadd.f32 %v3911_v30, %v2138_v7  ;;  %v2319_v50 = vunpack.c.l.bf16 %v2267_v8  ;;  %v2147_v5 = vld [vmem:[#allocation2 + $0xa8] sm:$0xff] }
 0x206   : > { %v3069_v56 = vpack.c.bf16 %v2442_v17, %v2441_v12  ;;  %v2444_v61 = vmax.f32 %v2380_v19, 0.0  ;;  %v2382_v62 = vadd.f32 %v2318_v18, %v2222_v6  ;;  %v2320_v3 = vunpack.c.h.bf16 %v2267_v8  ;;  %v2148_v6 = vld [vmem:[#allocation2 + $0x1c8] sm:$0xff] }
 0x207   : > { %v2445_v10 = vmax.f32 %v2381_v44, 0.0  ;;  %v2383_v15 = vadd.f32 %v2319_v50, %v2223_v20  ;;  %v2225_v16 = vadd.f32 %v3913_v31, %v2139_v37  ;;  %v2226_v21 = vadd.f32 %v3915_v32, %v2140_v38  ;;  %v2272_v13 = vld [vmem:[%s4176_s3 + $0xc8] sm:$0xff]  ;;  %v2149_v20 = vld [vmem:[#allocation2 + $0x170] sm:$0xff]  ;;  %v2150_v37 = vld [vmem:[#allocation2 + $0x178] sm:$0xff] }
 0x208   : > { %2680 = vst [vmem:[%s4177_s4 + $0x88] sm:$0xff] %v3069_v56  ;;  %v3070_v23 = vpack.c.bf16 %v2444_v61, %v2443_v43  ;;  %v2446_v24 = vmax.f32 %v2382_v62, 0.0  ;;  %v2384_v25 = vadd.f32 %v2320_v3, %v2224_v49  ;;  %v2321_v26 = vunpack.c.l.bf16 %v2268_v55  ;;  %v2273_v50 = vld [vmem:[%s4176_s3 + $0xd0] sm:$0xff]  ;;  %v2151_v3 = vld [vmem:[#allocation2 + $0x68] sm:$0xff] }
 0x209   : > { %v2447_v33 = vmax.f32 %v2383_v15, 0.0  ;;  %v2322_v34 = vunpack.c.h.bf16 %v2268_v55  ;;  %v2227_v35 = vadd.f32 %v3909_v29, %v2141_v4  ;;  %v2228_v36 = vadd.f32 %v3911_v30, %v2142_v9  ;;  %v2152_v4 = vld [vmem:[#allocation2 + $0x190] sm:$0xff] }
 0x20a   : > { %2681 = vst [vmem:[%s4177_s4 + $0x90] sm:$0xff] %v3070_v23  ;;  %v3071_v42 = vpack.c.bf16 %v2446_v24, %v2445_v10  ;;  %v2448_v45 = vmax.f32 %v2384_v25, 0.0  ;;  %v2385_v40 = vadd.f32 %v2321_v26, %v2225_v16  ;;  %v2323_v41 = vunpack.c.l.bf16 %v2269_v22  ;;  %v2153_v26 = vld [vmem:[#allocation2 + $0x198] sm:$0xff] }
 0x20b   : > { %v2386_v47 = vadd.f32 %v2322_v34, %v2226_v21  ;;  %v2324_v48 = vunpack.c.h.bf16 %v2269_v22  ;;  %v2229_v51 = vadd.f32 %v3913_v31, %v2143_v27  ;;  %v2230_v52 = vadd.f32 %v3915_v32, %v2144_v28  ;;  %v2274_v21 = vld [vmem:[%s4176_s3 + $0xd8] sm:$0xff] }
 0x20c   : > { %2682 = vst [vmem:[%s4177_s4 + $0x98] sm:$0xff] %v3071_v42  ;;  %v3072_v57 = vpack.c.bf16 %v2448_v45, %v2447_v33  ;;  %v2449_v58 = vmax.f32 %v2385_v40, 0.0  ;;  %v2387_v59 = vadd.f32 %v2323_v41, %v2227_v35  ;;  %v2325_v60 = vunpack.c.l.bf16 %v2270_v39  ;;  %v2154_v35 = vld [vmem:[#allocation2 + $0x38] sm:$0xff] }
 0x20d   : > { %v2450_v63 = vmax.f32 %v2386_v47, 0.0  ;;  %v2388_v0 = vadd.f32 %v2324_v48, %v2228_v36  ;;  %v2326_v1 = vunpack.c.h.bf16 %v2270_v39  ;;  %v2231_v2 = vadd.f32 %v3909_v29, %v2145_v46  ;;  %v2275_v36 = vld [vmem:[%s4176_s3 + $0xe0] sm:$0xff] }
 0x20e   : > { %2683 = vst [vmem:[%s4177_s4 + $0xa0] sm:$0xff] %v3072_v57  ;;  %v2451_v7 = vmax.f32 %v2387_v59, 0.0  ;;  %v2389_v8 = vadd.f32 %v2325_v60, %v2229_v51  ;;  %v2232_v11 = vadd.f32 %v3911_v30, %v2146_v53  ;;  %v2327_v12 = vunpack.c.l.bf16 %v2271_v54  ;;  %v2155_v51 = vld [vmem:[#allocation2 + $0xc0] sm:$0xff]  ;;  %v2276_v59 = vld [vmem:[%s4176_s3 + $0xe8] sm:$0xff] }
 0x20f   : > { %v3073_v14 = vpack.c.bf16 %v2450_v63, %v2449_v58  ;;  %v2452_v17 = vmax.f32 %v2388_v0, 0.0  ;;  %v2390_v19 = vadd.f32 %v2326_v1, %v2230_v52  ;;  %v2328_v18 = vunpack.c.h.bf16 %v2271_v54  ;;  %v2156_v52 = vld [vmem:[#allocation2 + $0x1c0] sm:$0xff] }
 0x210   : > { %v2453_v38 = vmax.f32 %v2389_v8, 0.0  ;;  %v2391_v43 = vadd.f32 %v2327_v12, %v2231_v2  ;;  %v2233_v44 = vadd.f32 %v3913_v31, %v2147_v5  ;;  %v2234_v49 = vadd.f32 %v3915_v32, %v2148_v6  ;;  %v2157_v2 = vld [vmem:[#allocation2 + $0x158] sm:$0xff]  ;;  %v2158_v5 = vld [vmem:[#allocation2 + $0x10] sm:$0xff] }
 0x211   : > { %2684 = vst [vmem:[%s4177_s4 + $0xa8] sm:$0xff] %v3073_v14  ;;  %v3074_v55 = vpack.c.bf16 %v2452_v17, %v2451_v7  ;;  %v2454_v56 = vmax.f32 %v2390_v19, 0.0  ;;  %v2392_v61 = vadd.f32 %v2328_v18, %v2232_v11  ;;  %v2329_v62 = vunpack.c.l.bf16 %v2272_v13  ;;  %v2277_v12 = vld [vmem:[%s4176_s3 + $0xf0] sm:$0xff]  ;;  %v2159_v18 = vld [vmem:[#allocation2 + $0x58] sm:$0xff] }
 0x212   : > { %v2455_v9 = vmax.f32 %v2391_v43, 0.0  ;;  %v2330_v10 = vunpack.c.h.bf16 %v2272_v13  ;;  %v2235_v15 = vadd.f32 %v3909_v29, %v2149_v20  ;;  %v2236_v16 = vadd.f32 %v3911_v30, %v2150_v37  ;;  %v2160_v20 = vld [vmem:[#allocation2 + $0xa0] sm:$0xff] }
 0x213   : > { %2685 = vst [vmem:[%s4177_s4 + $0xb0] sm:$0xff] %v3074_v55  ;;  %v3075_v22 = vpack.c.bf16 %v2454_v56, %v2453_v38  ;;  %v2456_v23 = vmax.f32 %v2392_v61, 0.0  ;;  %v2393_v24 = vadd.f32 %v2329_v62, %v2233_v44  ;;  %v2331_v25 = vunpack.c.l.bf16 %v2273_v50 }
 0x214   : > { %v2394_v27 = vadd.f32 %v2330_v10, %v2234_v49  ;;  %v2332_v28 = vunpack.c.h.bf16 %v2273_v50  ;;  %v2237_v33 = vadd.f32 %v3913_v31, %v2151_v3  ;;  %v2238_v34 = vadd.f32 %v3915_v32, %v2152_v4  ;;  %v2278_v49 = vld [vmem:[%s4176_s3 + $0xf8] sm:$0xff] }
 0x215   : > { %2686 = vst [vmem:[%s4177_s4 + $0xb8] sm:$0xff] %v3075_v22  ;;  %v3076_v39 = vpack.c.bf16 %v2456_v23, %v2455_v9  ;;  %v2457_v42 = vmax.f32 %v2393_v24, 0.0  ;;  %v2395_v45 = vadd.f32 %v2331_v25, %v2235_v15  ;;  %v2333_v40 = vunpack.c.l.bf16 %v2274_v21 }
 0x216   : > { %v2458_v41 = vmax.f32 %v2394_v27, 0.0  ;;  %v2396_v46 = vadd.f32 %v2332_v28, %v2236_v16  ;;  %v2334_v47 = vunpack.c.h.bf16 %v2274_v21  ;;  %v2239_v48 = vadd.f32 %v3909_v29, %v2153_v26 }
 0x217   : > { %2687 = vst [vmem:[%s4177_s4 + $0xc0] sm:$0xff] %v3076_v39  ;;  %v2459_v53 = vmax.f32 %v2395_v45, 0.0  ;;  %v2397_v54 = vadd.f32 %v2333_v40, %v2237_v33  ;;  %v2240_v57 = vadd.f32 %v3911_v30, %v2154_v35  ;;  %v2335_v58 = vunpack.c.l.bf16 %v2275_v36 }
 0x218   : > { %v3077_v60 = vpack.c.bf16 %v2458_v41, %v2457_v42  ;;  %v2460_v63 = vmax.f32 %v2396_v46, 0.0  ;;  %v2398_v0 = vadd.f32 %v2334_v47, %v2238_v34  ;;  %v2336_v1 = vunpack.c.h.bf16 %v2275_v36 }
 0x219   : > { %v2461_v6 = vmax.f32 %v2397_v54, 0.0  ;;  %v2399_v7 = vadd.f32 %v2335_v58, %v2239_v48  ;;  %v2241_v8 = vadd.f32 %v3913_v31, %v2155_v51  ;;  %v2242_v11 = vadd.f32 %v3915_v32, %v2156_v52 }
 0x21a   : > { %2688 = vst [vmem:[%s4177_s4 + $0xc8] sm:$0xff] %v3077_v60  ;;  %v3078_v13 = vpack.c.bf16 %v2460_v63, %v2459_v53  ;;  %v2462_v14 = vmax.f32 %v2398_v0, 0.0  ;;  %v2400_v17 = vadd.f32 %v2336_v1, %v2240_v57  ;;  %v2337_v19 = vunpack.c.l.bf16 %v2276_v59 }
 0x21b   : > { %v2463_v37 = vmax.f32 %v2399_v7, 0.0  ;;  %v2338_v38 = vunpack.c.h.bf16 %v2276_v59  ;;  %v2243_v43 = vadd.f32 %v3909_v29, %v2157_v2  ;;  %v2244_v44 = vadd.f32 %v3911_v30, %v2158_v5 }
 0x21c   : > { %2689 = vst [vmem:[%s4177_s4 + $0xd0] sm:$0xff] %v3078_v13  ;;  %v3079_v50 = vpack.c.bf16 %v2462_v14, %v2461_v6  ;;  %v2464_v55 = vmax.f32 %v2400_v17, 0.0  ;;  %v2401_v56 = vadd.f32 %v2337_v19, %v2241_v8  ;;  %v2339_v61 = vunpack.c.l.bf16 %v2277_v12 }
 0x21d   : > { %v2402_v62 = vadd.f32 %v2338_v38, %v2242_v11  ;;  %v2340_v3 = vunpack.c.h.bf16 %v2277_v12  ;;  %v2245_v4 = vadd.f32 %v3913_v31, %v2159_v18  ;;  %v2246_v29 = vadd.f32 %v3915_v32, %v2160_v20 }
 0x21e   : > { %2690 = vst [vmem:[%s4177_s4 + $0xd8] sm:$0xff] %v3079_v50  ;;  %v3080_v30 = vpack.c.bf16 %v2464_v55, %v2463_v37  ;;  %v2465_v9 = vmax.f32 %v2401_v56, 0.0  ;;  %v2403_v10 = vadd.f32 %v2339_v61, %v2243_v43  ;;  %v2341_v15 = vunpack.c.l.bf16 %v2278_v49 }
 0x21f   : > { %v2466_v16 = vmax.f32 %v2402_v62, 0.0  ;;  %v2404_v21 = vadd.f32 %v2340_v3, %v2244_v44  ;;  %v2342_v22 = vunpack.c.h.bf16 %v2278_v49 }
 0x220   : > { %2691 = vst [vmem:[%s4177_s4 + $0xe0] sm:$0xff] %v3080_v30  ;;  %v2467_v23 = vmax.f32 %v2403_v10, 0.0  ;;  %v2405_v24 = vadd.f32 %v2341_v15, %v2245_v4 }
 0x221   : > { %v3081_v31 = vpack.c.bf16 %v2466_v16, %v2465_v9  ;;  %v2468_v25 = vmax.f32 %v2404_v21, 0.0  ;;  %v2406_v32 = vadd.f32 %v2342_v22, %v2246_v29 }
 0x222   : > { %v2469_v26 = vmax.f32 %v2405_v24, 0.0 }
 0x223   : > { %2692 = vst [vmem:[%s4177_s4 + $0xe8] sm:$0xff] %v3081_v31  ;;  %v3082_v27 = vpack.c.bf16 %v2468_v25, %v2467_v23  ;;  %v2470_v28 = vmax.f32 %v2406_v32, 0.0 }
 0x225   : > { %2693 = vst [vmem:[%s4177_s4 + $0xf0] sm:$0xff] %v3082_v27  ;;  %v3083_v33 = vpack.c.bf16 %v2470_v28, %v2469_v26 }
 0x227   : > { %2694 = vst [vmem:[%s4177_s4 + $0xf8] sm:$0xff] %v3083_v33 }
 0x228 PF: > { %s14_s19 = sadd.s32 1, %s3403_s19   ;;  %s4178_s15 = smov %s3391_s16 }
 0x229   : > { %p11_p12 = scmp.ge.s32.totalorder %s14_s19, 29   ;;  %s4179_s16 = smov %s3466_s23 }
 0x22a   : > { %s4180_s17 = smov %s3399_s18  ;;  %s4181_s18 = smov %s4183_s20 }
 0x22b   :  { %13 = sbr.rel (!%p11_p12) target bundleno = 3 (0x3), region = 111 }

</bundles_post_ra>
